<compile_context>
chip_gen: v5e
topology: v5e:2x2
jax: 0.10.0
libtpu: 0.0.40
codegen_flags: <defaults>
</compile_context>

<pallas_src>
import math
import functools

import jax
import jax.numpy as jnp
from jax.experimental import pallas as pl
from jax.experimental.pallas import tpu as pltpu

SQRT2 = math.sqrt(2.0)
BLUR_1D = (1.0, 3.0, 3.0, 1.0)          # StyleGAN2 blur taps (normalized in-wrapper)
_LANE = 128                             # lane width -> channel padding target


def _default_vmem_limit():
    """Chip-aware scoped-VMEM limit: ~3/4 of physical, capped at 96 MiB (v5e/v6e),
    which yields 48 MiB on v7x's 64 MiB VMEM."""
    try:
        cap = int(pltpu.get_tpu_info().vmem_capacity_bytes)
        if cap >= 64 * 1024 * 1024:
            return int(min(96 * 1024 * 1024, (cap * 3) // 4))
    except Exception:
        pass
    return 48 * 1024 * 1024


_VMEM_LIMIT = _default_vmem_limit()


# ---------------------------------------------------------------------------
# Pallas kernel: stride-1 "valid" conv (implicit im2col on the MXU) with in-kernel
# output-row tiling, fused epilogue (bias + LeakyReLU) and an optional fused second
# conv (the skip branch) added in-register.
# One grid step = one (cout tile, batch sample); cout-tile axis is outermost so the
# weight tiles are not re-fetched across the batch.
# ---------------------------------------------------------------------------
def _conv_kernel(*refs, mt_base, out_w, activate, has_skip):
    if has_skip:
        x_ref, w_ref, b_ref, xs_ref, ws_ref, o_ref = refs
    else:
        x_ref, w_ref, b_ref, o_ref = refs
        xs_ref = ws_ref = None

    ho, ct = o_ref.shape[1], o_ref.shape[3]
    wo = out_w                                                  # true output width

    def conv_taps(src_ref, wt_ref, r0, mt):
        """Valid stride-1 conv of output rows [r0, r0+mt) against a (kh, kw, Cin, ct)
        weight tile.  One dense full-width slab load per ky, per-kx f32 accumulators,
        the kx column shift applied once at the end as a value slice."""
        kh, kw = wt_ref.shape[0], wt_ref.shape[1]
        tw, cin = src_ref.shape[2], src_ref.shape[3]
        slab = src_ref[0, r0:r0 + mt + kh - 1, :, :]            # (mt+kh-1, tw, cin) dense
        accs = [None] * kw
        for ky in range(kh):
            xs = slab[ky:ky + mt].reshape(mt * tw, cin)         # tw % 8 == 0 -> free reshape
            for kx in range(kw):
                z = jnp.dot(xs, wt_ref[ky, kx],
                            preferred_element_type=jnp.float32)
                accs[kx] = z if accs[kx] is None else accs[kx] + z
        y = None
        for kx in range(kw):                                    # shift-by-kx combine
            c = accs[kx].reshape(mt, tw, ct)[:, kx:kx + wo, :]
            y = c if y is None else y + c
        return y                                                # (mt, wo, ct) f32

    # In-kernel M-tiling: accumulators cover only mt_base output rows at a time.
    # TODO(synk): for very large spatial sizes also row-tile the *grid* (halo rows via
    # manual make_async_copy double-buffering) so the per-sample VMEM block is bounded too.
    for r0 in range(0, ho, mt_base):
        mt = min(mt_base, ho - r0)
        y = conv_taps(x_ref, w_ref, r0, mt)
        if activate:
            y = y + b_ref[...]                                  # (1, ct) broadcast
            y = jnp.where(y >= 0, y, jnp.float32(0.2) * y)      # LeakyReLU(0.2)
        if has_skip:
            y = y + conv_taps(xs_ref, ws_ref, r0, mt)           # fused skip + residual
        o_ref[0, r0:r0 + mt, :, :] = y.astype(o_ref.dtype)


# ---------------------------------------------------------------------------
# pallas_call wrapper
# ---------------------------------------------------------------------------
def _pick_cout_tile(cout_p, cin_k, n_taps):
    """Prefer the MXU-native 256-wide N tile, drop to 128 if the double-buffered bf16
    weight tile would eat too much VMEM.  cout_p is always a multiple of 128."""
    if cout_p % 256 == 0 and 2 * n_taps * cin_k * 256 * 2 <= 8 * 1024 * 1024:
        return 256
    return 128


def _pick_row_tile(ho, tw, ct, n_acc):
    """Output rows per in-kernel tile so the live f32 accumulators stay <= ~192 KiB."""
    per_row = tw * ct * 4 * n_acc
    return max(1, min(ho, (192 * 1024) // per_row))


def _conv_call(x, w, b, *, out_w, activate, out_dtype, skip=None):
    """x: (N, Hp, Wp8, Cin_k) bf16 halo-padded, width padded to a multiple of 8.
       w: (kh, kw, Cin_k, Cout_p) bf16 (all scales pre-folded).  b: (1, Cout_p) f32.
       skip: optional (xs, ws) second conv whose un-activated output is added."""
    n, hp, twx, cin_k = x.shape
    kh, kw, _, cout_p = w.shape
    ho = hp - kh + 1
    wo = out_w
    has_skip = skip is not None

    ct = _pick_cout_tile(cout_p, cin_k, kh * kw)
    n_ct = cout_p // ct

    in_specs = [
        pl.BlockSpec((1, hp, twx, cin_k), lambda j, i: (i, 0, 0, 0)),
        pl.BlockSpec((kh, kw, cin_k, ct), lambda j, i: (0, 0, 0, j)),   # const over batch
        pl.BlockSpec((1, ct), lambda j, i: (0, j)),
    ]
    inputs = [x, w, b]
    tw_max, n_acc = twx, kw
    flops = 2 * n * ho * twx * kh * kw * cin_k * cout_p
    bytes_accessed = (n_ct * x.size * x.dtype.itemsize          # activations per cout tile
                      + w.size * w.dtype.itemsize               # weights fetched once
                      + b.size * b.dtype.itemsize
                      + n * ho * wo * cout_p * jnp.dtype(out_dtype).itemsize)

    if has_skip:
        xs, ws = skip
        _, hps, tws, cin_s = xs.shape
        khs, kws = ws.shape[0], ws.shape[1]
        assert hps - khs + 1 == ho
        in_specs += [
            pl.BlockSpec((1, hps, tws, cin_s), lambda j, i: (i, 0, 0, 0)),
            pl.BlockSpec((khs, kws, cin_s, ct), lambda j, i: (0, 0, 0, j)),
        ]
        inputs += [xs, ws]
        tw_max = max(tw_max, tws)
        n_acc = max(kw, kws) + 1
        flops += 2 * n * ho * tws * khs * kws * cin_s * cout_p
        bytes_accessed += (n_ct * xs.size * xs.dtype.itemsize
                           + ws.size * ws.dtype.itemsize)

    mt = _pick_row_tile(ho, tw_max, ct, n_acc)

    kernel = functools.partial(_conv_kernel, mt_base=mt, out_w=wo,
                               activate=activate, has_skip=has_skip)
    return pl.pallas_call(
        kernel,
        out_shape=jax.ShapeDtypeStruct((n, ho, wo, cout_p), out_dtype),
        grid=(n_ct, n),                                          # cout tiles outermost
        in_specs=in_specs,
        out_specs=pl.BlockSpec((1, ho, wo, ct), lambda j, i: (i, 0, 0, j)),
        compiler_params=pltpu.CompilerParams(
            dimension_semantics=("parallel", "parallel"),
            vmem_limit_bytes=_VMEM_LIMIT),
        cost_estimate=pl.CostEstimate(flops=int(flops), transcendentals=0,
                                      bytes_accessed=int(bytes_accessed)),
    )(*inputs)


# ---------------------------------------------------------------------------
# Layout / weight-composition helpers (plain-JAX glue, run once per call)
# ---------------------------------------------------------------------------
def _round_up(v, m):
    return (v + m - 1) // m * m


def _pad_last(a, target):
    pad = target - a.shape[-1]
    if pad == 0:
        return a
    return jnp.pad(a, [(0, 0)] * (a.ndim - 1) + [(0, pad)])


def _pad_width8(a):
    """Zero-pad the NHWC width (axis 2) to a multiple of 8 (sublane aligned slabs)."""
    wpad = (-a.shape[2]) % 8
    if wpad == 0:
        return a
    return jnp.pad(a, ((0, 0), (0, 0), (0, wpad), (0, 0)))


def _space_to_depth(x):
    """(N, 2R, 2C, Ch) -> (N, R, C, 4*Ch); channel block index = phase_y*2 + phase_x."""
    n, h, w, c = x.shape
    assert h % 2 == 0 and w % 2 == 0
    x = x.reshape(n, h // 2, 2, w // 2, 2, c)
    x = jnp.transpose(x, (0, 1, 3, 2, 4, 5))
    return x.reshape(n, h // 2, w // 2, 4 * c)


def _compose_blur_conv(w_oihw, blur2d):
    """Full 2D convolution of each (o,i) filter with the blur kernel: (O,I,kh,kw)->(O,I,kh+3,kw+3)."""
    co, ci, kh, kw = w_oihw.shape
    bh, bw = blur2d.shape
    comp = jnp.zeros((co, ci, kh + bh - 1, kw + bw - 1), jnp.float32)
    for ty in range(bh):
        for tx in range(bw):
            comp = comp.at[:, :, ty:ty + kh, tx:tx + kw].add(blur2d[ty, tx] * w_oihw)
    return comp


def _s2d_weight(comp_oihw, cin_p, cout_p):
    """Composite (O, I, 2*kh, 2*kw) stride-2 kernel -> stride-1 space-to-depth weight
    (kh, kw, 4*cin_p, cout_p) matching the _space_to_depth channel layout."""
    co, ci, kh2, kw2 = comp_oihw.shape
    kh, kw = kh2 // 2, kw2 // 2
    w = jnp.transpose(comp_oihw, (2, 3, 1, 0))            # (2kh, 2kw, I, O)
    w = w.reshape(kh, 2, kw, 2, ci, co)                    # [uy, py, ux, px, i, o]
    w = jnp.transpose(w, (0, 2, 1, 3, 4, 5))               # [uy, ux, py, px, i, o]
    w = jnp.pad(w, ((0, 0), (0, 0), (0, 0), (0, 0),
                    (0, cin_p - ci), (0, cout_p - co)))
    return w.reshape(kh, kw, 4 * cin_p, cout_p)


# ---------------------------------------------------------------------------
# DiscriminatorBlock forward
# ---------------------------------------------------------------------------
def discriminator_block(x_nchw, params):
    """x: (N, in_fmaps, H, W) -> (N, out_fmaps, H/2, W/2)."""
    n, cin, h, w = x_nchw.shape
    cout = params["w1"].shape[0]
    assert h % 2 == 0 and w % 2 == 0
    cin_p = _round_up(cin, _LANE)
    cout_p = _round_up(cout, _LANE)

    x = jnp.transpose(x_nchw, (0, 2, 3, 1)).astype(jnp.float32)   # NCHW -> NHWC
    x_p = _pad_last(x, cin_p)                                     # lane-dense channels

    # --- weights / biases: blur composition + scale folding + layout (small one-shot) ---
    taps = jnp.asarray(BLUR_1D, jnp.float32)
    blur2d = jnp.outer(taps, taps) / jnp.sum(taps) ** 2           # 4x4, sums to 1

    s_conv = 1.0 / math.sqrt(cin * 9)     # equalized-lr for the 3x3 convs
    s_skip = 1.0 / math.sqrt(cin * 1)     # equalized-lr for the 1x1 skip conv

    # conv0: fold equalized-lr scale and the sqrt(2) amplify into W, sqrt(2) into b.
    w0 = jnp.transpose(params["w0"].astype(jnp.float32), (2, 3, 1, 0)) * (s_conv * SQRT2)
    w0 = jnp.pad(w0, ((0, 0), (0, 0), (0, cin_p - cin), (0, cin_p - cin))
                 ).astype(jnp.bfloat16)
    b0 = _pad_last((params["b0"].astype(jnp.float32) * SQRT2).reshape(1, cin), cin_p)

    # conv1_down: blur folded into a 6x6 stride-2 kernel -> 3x3 stride-1 on s2d input.
    # The sqrt(2) amplify cancels against the final 1/sqrt(2) residual scale (LeakyReLU is
    # positively homogeneous), so only the equalized-lr scale is folded in; bias unscaled.
    w1c = _compose_blur_conv(params["w1"].astype(jnp.float32), blur2d) * s_conv
    w1s = _s2d_weight(w1c, cin_p, cout_p).astype(jnp.bfloat16)            # (3,3,4Cin_p,Cout_p)
    b1 = _pad_last(params["b1"].astype(jnp.float32).reshape(1, cout), cout_p)

    # skip: blur folded into a 4x4 stride-2 kernel -> 2x2 stride-1 on s2d input;
    # fold equalized-lr scale and the final 1/sqrt(2).  (Padded lanes stay exactly zero
    # because weight and bias padding are zero -- keep that invariant.)
    wsc = (params["ws"].astype(jnp.float32)[:, :, 0:1, 0:1] * blur2d[None, None]
           * (s_skip / SQRT2))                                            # (Cout,Cin,4,4)
    wss = _s2d_weight(wsc, cin_p, cout_p).astype(jnp.bfloat16)            # (2,2,4Cin_p,Cout_p)

    # --- call 1: conv0 = 3x3 s1 p1 + bias + LeakyReLU (scales pre-folded) ---
    x_halo = jnp.pad(x_p, ((0, 0), (1, 1), (1, 1), (0, 0)))
    x0_in = _pad_width8(x_halo).astype(jnp.bfloat16)
    y0 = _conv_call(x0_in, w0, b0, out_w=w, activate=True, out_dtype=jnp.bfloat16)

    # --- call 2: fused conv1_down (+bias +LReLU) + skip conv + residual, all in-register ---
    # TODO(synk): emit y0 directly in padded space-to-depth layout from the conv0 kernel
    # (or via the consumer's index_map) to avoid this wrapper-side HBM round trip.
    y1_in = _pad_width8(_space_to_depth(jnp.pad(y0, ((0, 0), (2, 2), (2, 2), (0, 0))))
                        ).astype(jnp.bfloat16)
    xs_in = _pad_width8(_space_to_depth(x_halo)).astype(jnp.bfloat16)
    out = _conv_call(y1_in, w1s, b1, out_w=w // 2, activate=True,
                     out_dtype=jnp.float32, skip=(xs_in, wss))

    out = out[..., :cout]                                         # drop channel padding
    return jnp.transpose(out, (0, 3, 1, 2))                       # NHWC -> NCHW


# ---------------------------------------------------------------------------
# Pure-JAX reference (exact module semantics, f32) for validation
# ---------------------------------------------------------------------------
def _reference(x, params):
    def conv(v, wgt, stride, pad):
        return jax.lax.conv_general_dilated(
            v, wgt, window_strides=(stride, stride),
            padding=((pad, pad), (pad, pad)),
            dimension_numbers=("NCHW", "OIHW", "NCHW"))

    def blur(v, pad):
        c = v.shape[1]
        t = jnp.asarray(BLUR_1D, jnp.float32)
        k2 = jnp.outer(t, t) / jnp.sum(t) ** 2
        wgt = jnp.tile(k2[None, None], (c, 1, 1, 1))
        vp = jnp.pad(v, ((0, 0), (0, 0), (pad[0], pad[1]), (pad[0], pad[1])))
        return jax.lax.conv_general_dilated(
            vp, wgt, window_strides=(1, 1), padding="VALID",
            feature_group_count=c,
            dimension_numbers=("NCHW", "OIHW", "NCHW"))

    def act(v, b):
        v = (v + b[None, :, None, None]) * SQRT2
        return jnp.where(v >= 0, v, 0.2 * v)

    cin = x.shape[1]
    w0 = params["w0"] / math.sqrt(cin * 9)
    w1 = params["w1"] / math.sqrt(cin * 9)
    ws = params["ws"] / math.sqrt(cin)
    out = act(conv(x, w0, 1, 1), params["b0"])
    out = act(conv(blur(out, (2, 2)), w1, 2, 0), params["b1"])
    skip = conv(blur(x, (1, 1)), ws, 2, 0)
    return (out + skip) / SQRT2


# ---------------------------------------------------------------------------
# Main
# ---------------------------------------------------------------------------
if __name__ == "__main__":
    N, in_fmaps, out_fmaps, H, W = 2, 4, 8, 16, 16

    key = jax.random.PRNGKey(0)
    kx_, k0, k1, ks = jax.random.split(key, 4)

    x = jax.random.normal(kx_, (N, in_fmaps, H, W), jnp.float32)
    params = {
        # EqualizedConv2D weights: standard normal (equalized-lr scale applied at runtime)
        "w0": jax.random.normal(k0, (in_fmaps, in_fmaps, 3, 3), jnp.float32),
        "w1": jax.random.normal(k1, (out_fmaps, in_fmaps, 3, 3), jnp.float32),
        "ws": jax.random.normal(ks, (out_fmaps, in_fmaps, 1, 1), jnp.float32),
        # AddChannelwiseBias initializes its bias to zeros
        "b0": jnp.zeros((in_fmaps,), jnp.float32),
        "b1": jnp.zeros((out_fmaps,), jnp.float32),
    }

    y = jax.jit(discriminator_block)(x, params)
    y = jax.block_until_ready(y)
    assert y.shape == (N, out_fmaps, H // 2, W // 2), y.shape
    assert bool(jnp.all(jnp.isfinite(y)))

    ref = _reference(x, params)
    max_err = float(jnp.max(jnp.abs(y - ref)))
    assert max_err < 1e-1, f"max abs err vs reference: {max_err}"

    print("KERNEL_OK")
</pallas_src>

<mosaic_0001>
module attributes {stable_mosaic.version = 11 : i64} {
  func.func @_conv_kernel(%arg0: i32, %arg1: i32, %arg2: memref<1x18x24x128xbf16, #tpu.memory_space<vmem>>, %arg3: memref<3x3x128x128xbf16, #tpu.memory_space<vmem>>, %arg4: memref<1x128xf32, #tpu.memory_space<vmem>>, %arg5: memref<1x16x16x128xbf16, #tpu.memory_space<vmem>>) attributes {dimension_semantics = [#tpu.dimension_semantics<parallel>, #tpu.dimension_semantics<parallel>], iteration_bounds = array<i64: 1, 2>, scalar_prefetch = 0 : i64, scratch_operands = 0 : i64, tpu.core_type = #tpu.core_type<tc>, window_params = [{transform_indices = @transform_0, window_bounds = array<i64: 1, 18, 24, 128>}, {transform_indices = @transform_1, window_bounds = array<i64: 3, 3, 128, 128>}, {transform_indices = @transform_2, window_bounds = array<i64: 1, 128>}, {transform_indices = @transform_3, window_bounds = array<i64: 1, 16, 16, 128>}]} {
    %c0 = arith.constant 0 : index
    %c0_0 = arith.constant 0 : index
    %c0_1 = arith.constant 0 : index
    %c0_2 = arith.constant 0 : index
    %0 = vector.load %arg2[%c0, %c0_0, %c0_1, %c0_2] : memref<1x18x24x128xbf16, #tpu.memory_space<vmem>>, vector<1x7x24x128xbf16>
    %1 = vector.shape_cast %0 : vector<1x7x24x128xbf16> to vector<7x24x128xbf16>
    %2 = vector.extract_strided_slice %1 {offsets = [0, 0, 0], sizes = [5, 24, 128], strides = [1, 1, 1]} : vector<7x24x128xbf16> to vector<5x24x128xbf16>
    %3 = vector.shape_cast %2 : vector<5x24x128xbf16> to vector<120x128xbf16>
    %c0_3 = arith.constant 0 : index
    %c0_4 = arith.constant 0 : index
    %c0_5 = arith.constant 0 : index
    %c0_6 = arith.constant 0 : index
    %4 = vector.load %arg3[%c0_3, %c0_4, %c0_5, %c0_6] : memref<3x3x128x128xbf16, #tpu.memory_space<vmem>>, vector<1x1x128x128xbf16>
    %5 = vector.shape_cast %4 : vector<1x1x128x128xbf16> to vector<128x128xbf16>
    %cst = arith.constant dense<0.000000e+00> : vector<120x128xf32>
    %6 = tpu.matmul %3, %5, %cst {dimension_numbers = #tpu.dot_dimension_numbers<[1], [0], [0], [1], [0, 0, 1, 1], [], []>} : vector<120x128xbf16>, vector<128x128xbf16>, vector<120x128xf32> -> vector<120x128xf32>
    %c0_7 = arith.constant 0 : index
    %c1 = arith.constant 1 : index
    %c0_8 = arith.constant 0 : index
    %c0_9 = arith.constant 0 : index
    %7 = vector.load %arg3[%c0_7, %c1, %c0_8, %c0_9] : memref<3x3x128x128xbf16, #tpu.memory_space<vmem>>, vector<1x1x128x128xbf16>
    %8 = vector.shape_cast %7 : vector<1x1x128x128xbf16> to vector<128x128xbf16>
    %cst_10 = arith.constant dense<0.000000e+00> : vector<120x128xf32>
    %9 = tpu.matmul %3, %8, %cst_10 {dimension_numbers = #tpu.dot_dimension_numbers<[1], [0], [0], [1], [0, 0, 1, 1], [], []>} : vector<120x128xbf16>, vector<128x128xbf16>, vector<120x128xf32> -> vector<120x128xf32>
    %c0_11 = arith.constant 0 : index
    %c2 = arith.constant 2 : index
    %c0_12 = arith.constant 0 : index
    %c0_13 = arith.constant 0 : index
    %10 = vector.load %arg3[%c0_11, %c2, %c0_12, %c0_13] : memref<3x3x128x128xbf16, #tpu.memory_space<vmem>>, vector<1x1x128x128xbf16>
    %11 = vector.shape_cast %10 : vector<1x1x128x128xbf16> to vector<128x128xbf16>
    %cst_14 = arith.constant dense<0.000000e+00> : vector<120x128xf32>
    %12 = tpu.matmul %3, %11, %cst_14 {dimension_numbers = #tpu.dot_dimension_numbers<[1], [0], [0], [1], [0, 0, 1, 1], [], []>} : vector<120x128xbf16>, vector<128x128xbf16>, vector<120x128xf32> -> vector<120x128xf32>
    %13 = vector.extract_strided_slice %1 {offsets = [1, 0, 0], sizes = [5, 24, 128], strides = [1, 1, 1]} : vector<7x24x128xbf16> to vector<5x24x128xbf16>
    %14 = vector.shape_cast %13 : vector<5x24x128xbf16> to vector<120x128xbf16>
    %c1_15 = arith.constant 1 : index
    %c0_16 = arith.constant 0 : index
    %c0_17 = arith.constant 0 : index
    %c0_18 = arith.constant 0 : index
    %15 = vector.load %arg3[%c1_15, %c0_16, %c0_17, %c0_18] : memref<3x3x128x128xbf16, #tpu.memory_space<vmem>>, vector<1x1x128x128xbf16>
    %16 = vector.shape_cast %15 : vector<1x1x128x128xbf16> to vector<128x128xbf16>
    %cst_19 = arith.constant dense<0.000000e+00> : vector<120x128xf32>
    %17 = tpu.matmul %14, %16, %cst_19 {dimension_numbers = #tpu.dot_dimension_numbers<[1], [0], [0], [1], [0, 0, 1, 1], [], []>} : vector<120x128xbf16>, vector<128x128xbf16>, vector<120x128xf32> -> vector<120x128xf32>
    %18 = arith.addf %6, %17 : vector<120x128xf32>
    %c1_20 = arith.constant 1 : index
    %c1_21 = arith.constant 1 : index
    %c0_22 = arith.constant 0 : index
    %c0_23 = arith.constant 0 : index
    %19 = vector.load %arg3[%c1_20, %c1_21, %c0_22, %c0_23] : memref<3x3x128x128xbf16, #tpu.memory_space<vmem>>, vector<1x1x128x128xbf16>
    %20 = vector.shape_cast %19 : vector<1x1x128x128xbf16> to vector<128x128xbf16>
    %cst_24 = arith.constant dense<0.000000e+00> : vector<120x128xf32>
    %21 = tpu.matmul %14, %20, %cst_24 {dimension_numbers = #tpu.dot_dimension_numbers<[1], [0], [0], [1], [0, 0, 1, 1], [], []>} : vector<120x128xbf16>, vector<128x128xbf16>, vector<120x128xf32> -> vector<120x128xf32>
    %22 = arith.addf %9, %21 : vector<120x128xf32>
    %c1_25 = arith.constant 1 : index
    %c2_26 = arith.constant 2 : index
    %c0_27 = arith.constant 0 : index
    %c0_28 = arith.constant 0 : index
    %23 = vector.load %arg3[%c1_25, %c2_26, %c0_27, %c0_28] : memref<3x3x128x128xbf16, #tpu.memory_space<vmem>>, vector<1x1x128x128xbf16>
    %24 = vector.shape_cast %23 : vector<1x1x128x128xbf16> to vector<128x128xbf16>
    %cst_29 = arith.constant dense<0.000000e+00> : vector<120x128xf32>
    %25 = tpu.matmul %14, %24, %cst_29 {dimension_numbers = #tpu.dot_dimension_numbers<[1], [0], [0], [1], [0, 0, 1, 1], [], []>} : vector<120x128xbf16>, vector<128x128xbf16>, vector<120x128xf32> -> vector<120x128xf32>
    %26 = arith.addf %12, %25 : vector<120x128xf32>
    %27 = vector.extract_strided_slice %1 {offsets = [2, 0, 0], sizes = [5, 24, 128], strides = [1, 1, 1]} : vector<7x24x128xbf16> to vector<5x24x128xbf16>
    %28 = vector.shape_cast %27 : vector<5x24x128xbf16> to vector<120x128xbf16>
    %c2_30 = arith.constant 2 : index
    %c0_31 = arith.constant 0 : index
    %c0_32 = arith.constant 0 : index
    %c0_33 = arith.constant 0 : index
    %29 = vector.load %arg3[%c2_30, %c0_31, %c0_32, %c0_33] : memref<3x3x128x128xbf16, #tpu.memory_space<vmem>>, vector<1x1x128x128xbf16>
    %30 = vector.shape_cast %29 : vector<1x1x128x128xbf16> to vector<128x128xbf16>
    %cst_34 = arith.constant dense<0.000000e+00> : vector<120x128xf32>
    %31 = tpu.matmul %28, %30, %cst_34 {dimension_numbers = #tpu.dot_dimension_numbers<[1], [0], [0], [1], [0, 0, 1, 1], [], []>} : vector<120x128xbf16>, vector<128x128xbf16>, vector<120x128xf32> -> vector<120x128xf32>
    %32 = arith.addf %18, %31 : vector<120x128xf32>
    %c2_35 = arith.constant 2 : index
    %c1_36 = arith.constant 1 : index
    %c0_37 = arith.constant 0 : index
    %c0_38 = arith.constant 0 : index
    %33 = vector.load %arg3[%c2_35, %c1_36, %c0_37, %c0_38] : memref<3x3x128x128xbf16, #tpu.memory_space<vmem>>, vector<1x1x128x128xbf16>
    %34 = vector.shape_cast %33 : vector<1x1x128x128xbf16> to vector<128x128xbf16>
    %cst_39 = arith.constant dense<0.000000e+00> : vector<120x128xf32>
    %35 = tpu.matmul %28, %34, %cst_39 {dimension_numbers = #tpu.dot_dimension_numbers<[1], [0], [0], [1], [0, 0, 1, 1], [], []>} : vector<120x128xbf16>, vector<128x128xbf16>, vector<120x128xf32> -> vector<120x128xf32>
    %36 = arith.addf %22, %35 : vector<120x128xf32>
    %c2_40 = arith.constant 2 : index
    %c2_41 = arith.constant 2 : index
    %c0_42 = arith.constant 0 : index
    %c0_43 = arith.constant 0 : index
    %37 = vector.load %arg3[%c2_40, %c2_41, %c0_42, %c0_43] : memref<3x3x128x128xbf16, #tpu.memory_space<vmem>>, vector<1x1x128x128xbf16>
    %38 = vector.shape_cast %37 : vector<1x1x128x128xbf16> to vector<128x128xbf16>
    %cst_44 = arith.constant dense<0.000000e+00> : vector<120x128xf32>
    %39 = tpu.matmul %28, %38, %cst_44 {dimension_numbers = #tpu.dot_dimension_numbers<[1], [0], [0], [1], [0, 0, 1, 1], [], []>} : vector<120x128xbf16>, vector<128x128xbf16>, vector<120x128xf32> -> vector<120x128xf32>
    %40 = arith.addf %26, %39 : vector<120x128xf32>
    %41 = vector.shape_cast %32 : vector<120x128xf32> to vector<5x24x128xf32>
    %42 = vector.extract_strided_slice %41 {offsets = [0, 0, 0], sizes = [5, 16, 128], strides = [1, 1, 1]} : vector<5x24x128xf32> to vector<5x16x128xf32>
    %43 = vector.shape_cast %36 : vector<120x128xf32> to vector<5x24x128xf32>
    %44 = vector.extract_strided_slice %43 {offsets = [0, 1, 0], sizes = [5, 16, 128], strides = [1, 1, 1]} : vector<5x24x128xf32> to vector<5x16x128xf32>
    %45 = arith.addf %42, %44 : vector<5x16x128xf32>
    %46 = vector.shape_cast %40 : vector<120x128xf32> to vector<5x24x128xf32>
    %47 = vector.extract_strided_slice %46 {offsets = [0, 2, 0], sizes = [5, 16, 128], strides = [1, 1, 1]} : vector<5x24x128xf32> to vector<5x16x128xf32>
    %48 = arith.addf %45, %47 : vector<5x16x128xf32>
    %c0_45 = arith.constant 0 : index
    %c0_46 = arith.constant 0 : index
    %49 = vector.load %arg4[%c0_45, %c0_46] : memref<1x128xf32, #tpu.memory_space<vmem>>, vector<1x128xf32>
    %50 = vector.shape_cast %49 : vector<1x128xf32> to vector<1x1x128xf32>
    %51 = vector.broadcast %50 : vector<1x1x128xf32> to vector<5x16x128xf32>
    %52 = arith.addf %48, %51 : vector<5x16x128xf32>
    %cst_47 = arith.constant 0.000000e+00 : f32
    %53 = vector.broadcast %cst_47 : f32 to vector<5x16x128xf32>
    %54 = arith.cmpf oge, %52, %53 : vector<5x16x128xf32>
    %cst_48 = arith.constant 2.000000e-01 : f32
    %55 = vector.broadcast %cst_48 : f32 to vector<5x16x128xf32>
    %56 = arith.mulf %55, %52 : vector<5x16x128xf32>
    %57 = arith.select %54, %52, %56 : vector<5x16x128xi1>, vector<5x16x128xf32>
    %58 = arith.truncf %57 : vector<5x16x128xf32> to vector<5x16x128xbf16>
    %c0_49 = arith.constant 0 : index
    %c0_50 = arith.constant 0 : index
    %c0_51 = arith.constant 0 : index
    %c0_52 = arith.constant 0 : index
    %59 = vector.load %arg5[%c0_49, %c0_50, %c0_51, %c0_52] : memref<1x16x16x128xbf16, #tpu.memory_space<vmem>>, vector<1x5x16x128xbf16>
    %60 = vector.shape_cast %59 : vector<1x5x16x128xbf16> to vector<5x16x128xbf16>
    %61 = vector.shape_cast %58 : vector<5x16x128xbf16> to vector<1x5x16x128xbf16>
    tpu.vector_store %arg5[%c0_49, %c0_50, %c0_51, %c0_52], %61 {strides = array<i32>} : memref<1x16x16x128xbf16, #tpu.memory_space<vmem>>, vector<1x5x16x128xbf16>,
    %c0_53 = arith.constant 0 : index
    %c5 = arith.constant 5 : index
    %c0_54 = arith.constant 0 : index
    %c0_55 = arith.constant 0 : index
    %62 = vector.load %arg2[%c0_53, %c5, %c0_54, %c0_55] : memref<1x18x24x128xbf16, #tpu.memory_space<vmem>>, vector<1x7x24x128xbf16>
    %63 = vector.shape_cast %62 : vector<1x7x24x128xbf16> to vector<7x24x128xbf16>
    %64 = vector.extract_strided_slice %63 {offsets = [0, 0, 0], sizes = [5, 24, 128], strides = [1, 1, 1]} : vector<7x24x128xbf16> to vector<5x24x128xbf16>
    %65 = vector.shape_cast %64 : vector<5x24x128xbf16> to vector<120x128xbf16>
    %c0_56 = arith.constant 0 : index
    %c0_57 = arith.constant 0 : index
    %c0_58 = arith.constant 0 : index
    %c0_59 = arith.constant 0 : index
    %66 = vector.load %arg3[%c0_56, %c0_57, %c0_58, %c0_59] : memref<3x3x128x128xbf16, #tpu.memory_space<vmem>>, vector<1x1x128x128xbf16>
    %67 = vector.shape_cast %66 : vector<1x1x128x128xbf16> to vector<128x128xbf16>
    %cst_60 = arith.constant dense<0.000000e+00> : vector<120x128xf32>
    %68 = tpu.matmul %65, %67, %cst_60 {dimension_numbers = #tpu.dot_dimension_numbers<[1], [0], [0], [1], [0, 0, 1, 1], [], []>} : vector<120x128xbf16>, vector<128x128xbf16>, vector<120x128xf32> -> vector<120x128xf32>
    %c0_61 = arith.constant 0 : index
    %c1_62 = arith.constant 1 : index
    %c0_63 = arith.constant 0 : index
    %c0_64 = arith.constant 0 : index
    %69 = vector.load %arg3[%c0_61, %c1_62, %c0_63, %c0_64] : memref<3x3x128x128xbf16, #tpu.memory_space<vmem>>, vector<1x1x128x128xbf16>
    %70 = vector.shape_cast %69 : vector<1x1x128x128xbf16> to vector<128x128xbf16>
    %cst_65 = arith.constant dense<0.000000e+00> : vector<120x128xf32>
    %71 = tpu.matmul %65, %70, %cst_65 {dimension_numbers = #tpu.dot_dimension_numbers<[1], [0], [0], [1], [0, 0, 1, 1], [], []>} : vector<120x128xbf16>, vector<128x128xbf16>, vector<120x128xf32> -> vector<120x128xf32>
    %c0_66 = arith.constant 0 : index
    %c2_67 = arith.constant 2 : index
    %c0_68 = arith.constant 0 : index
    %c0_69 = arith.constant 0 : index
    %72 = vector.load %arg3[%c0_66, %c2_67, %c0_68, %c0_69] : memref<3x3x128x128xbf16, #tpu.memory_space<vmem>>, vector<1x1x128x128xbf16>
    %73 = vector.shape_cast %72 : vector<1x1x128x128xbf16> to vector<128x128xbf16>
    %cst_70 = arith.constant dense<0.000000e+00> : vector<120x128xf32>
    %74 = tpu.matmul %65, %73, %cst_70 {dimension_numbers = #tpu.dot_dimension_numbers<[1], [0], [0], [1], [0, 0, 1, 1], [], []>} : vector<120x128xbf16>, vector<128x128xbf16>, vector<120x128xf32> -> vector<120x128xf32>
    %75 = vector.extract_strided_slice %63 {offsets = [1, 0, 0], sizes = [5, 24, 128], strides = [1, 1, 1]} : vector<7x24x128xbf16> to vector<5x24x128xbf16>
    %76 = vector.shape_cast %75 : vector<5x24x128xbf16> to vector<120x128xbf16>
    %c1_71 = arith.constant 1 : index
    %c0_72 = arith.constant 0 : index
    %c0_73 = arith.constant 0 : index
    %c0_74 = arith.constant 0 : index
    %77 = vector.load %arg3[%c1_71, %c0_72, %c0_73, %c0_74] : memref<3x3x128x128xbf16, #tpu.memory_space<vmem>>, vector<1x1x128x128xbf16>
    %78 = vector.shape_cast %77 : vector<1x1x128x128xbf16> to vector<128x128xbf16>
    %cst_75 = arith.constant dense<0.000000e+00> : vector<120x128xf32>
    %79 = tpu.matmul %76, %78, %cst_75 {dimension_numbers = #tpu.dot_dimension_numbers<[1], [0], [0], [1], [0, 0, 1, 1], [], []>} : vector<120x128xbf16>, vector<128x128xbf16>, vector<120x128xf32> -> vector<120x128xf32>
    %80 = arith.addf %68, %79 : vector<120x128xf32>
    %c1_76 = arith.constant 1 : index
    %c1_77 = arith.constant 1 : index
    %c0_78 = arith.constant 0 : index
    %c0_79 = arith.constant 0 : index
    %81 = vector.load %arg3[%c1_76, %c1_77, %c0_78, %c0_79] : memref<3x3x128x128xbf16, #tpu.memory_space<vmem>>, vector<1x1x128x128xbf16>
    %82 = vector.shape_cast %81 : vector<1x1x128x128xbf16> to vector<128x128xbf16>
    %cst_80 = arith.constant dense<0.000000e+00> : vector<120x128xf32>
    %83 = tpu.matmul %76, %82, %cst_80 {dimension_numbers = #tpu.dot_dimension_numbers<[1], [0], [0], [1], [0, 0, 1, 1], [], []>} : vector<120x128xbf16>, vector<128x128xbf16>, vector<120x128xf32> -> vector<120x128xf32>
    %84 = arith.addf %71, %83 : vector<120x128xf32>
    %c1_81 = arith.constant 1 : index
    %c2_82 = arith.constant 2 : index
    %c0_83 = arith.constant 0 : index
    %c0_84 = arith.constant 0 : index
    %85 = vector.load %arg3[%c1_81, %c2_82, %c0_83, %c0_84] : memref<3x3x128x128xbf16, #tpu.memory_space<vmem>>, vector<1x1x128x128xbf16>
    %86 = vector.shape_cast %85 : vector<1x1x128x128xbf16> to vector<128x128xbf16>
    %cst_85 = arith.constant dense<0.000000e+00> : vector<120x128xf32>
    %87 = tpu.matmul %76, %86, %cst_85 {dimension_numbers = #tpu.dot_dimension_numbers<[1], [0], [0], [1], [0, 0, 1, 1], [], []>} : vector<120x128xbf16>, vector<128x128xbf16>, vector<120x128xf32> -> vector<120x128xf32>
    %88 = arith.addf %74, %87 : vector<120x128xf32>
    %89 = vector.extract_strided_slice %63 {offsets = [2, 0, 0], sizes = [5, 24, 128], strides = [1, 1, 1]} : vector<7x24x128xbf16> to vector<5x24x128xbf16>
    %90 = vector.shape_cast %89 : vector<5x24x128xbf16> to vector<120x128xbf16>
    %c2_86 = arith.constant 2 : index
    %c0_87 = arith.constant 0 : index
    %c0_88 = arith.constant 0 : index
    %c0_89 = arith.constant 0 : index
    %91 = vector.load %arg3[%c2_86, %c0_87, %c0_88, %c0_89] : memref<3x3x128x128xbf16, #tpu.memory_space<vmem>>, vector<1x1x128x128xbf16>
    %92 = vector.shape_cast %91 : vector<1x1x128x128xbf16> to vector<128x128xbf16>
    %cst_90 = arith.constant dense<0.000000e+00> : vector<120x128xf32>
    %93 = tpu.matmul %90, %92, %cst_90 {dimension_numbers = #tpu.dot_dimension_numbers<[1], [0], [0], [1], [0, 0, 1, 1], [], []>} : vector<120x128xbf16>, vector<128x128xbf16>, vector<120x128xf32> -> vector<120x128xf32>
    %94 = arith.addf %80, %93 : vector<120x128xf32>
    %c2_91 = arith.constant 2 : index
    %c1_92 = arith.constant 1 : index
    %c0_93 = arith.constant 0 : index
    %c0_94 = arith.constant 0 : index
    %95 = vector.load %arg3[%c2_91, %c1_92, %c0_93, %c0_94] : memref<3x3x128x128xbf16, #tpu.memory_space<vmem>>, vector<1x1x128x128xbf16>
    %96 = vector.shape_cast %95 : vector<1x1x128x128xbf16> to vector<128x128xbf16>
    %cst_95 = arith.constant dense<0.000000e+00> : vector<120x128xf32>
    %97 = tpu.matmul %90, %96, %cst_95 {dimension_numbers = #tpu.dot_dimension_numbers<[1], [0], [0], [1], [0, 0, 1, 1], [], []>} : vector<120x128xbf16>, vector<128x128xbf16>, vector<120x128xf32> -> vector<120x128xf32>
    %98 = arith.addf %84, %97 : vector<120x128xf32>
    %c2_96 = arith.constant 2 : index
    %c2_97 = arith.constant 2 : index
    %c0_98 = arith.constant 0 : index
    %c0_99 = arith.constant 0 : index
    %99 = vector.load %arg3[%c2_96, %c2_97, %c0_98, %c0_99] : memref<3x3x128x128xbf16, #tpu.memory_space<vmem>>, vector<1x1x128x128xbf16>
    %100 = vector.shape_cast %99 : vector<1x1x128x128xbf16> to vector<128x128xbf16>
    %cst_100 = arith.constant dense<0.000000e+00> : vector<120x128xf32>
    %101 = tpu.matmul %90, %100, %cst_100 {dimension_numbers = #tpu.dot_dimension_numbers<[1], [0], [0], [1], [0, 0, 1, 1], [], []>} : vector<120x128xbf16>, vector<128x128xbf16>, vector<120x128xf32> -> vector<120x128xf32>
    %102 = arith.addf %88, %101 : vector<120x128xf32>
    %103 = vector.shape_cast %94 : vector<120x128xf32> to vector<5x24x128xf32>
    %104 = vector.extract_strided_slice %103 {offsets = [0, 0, 0], sizes = [5, 16, 128], strides = [1, 1, 1]} : vector<5x24x128xf32> to vector<5x16x128xf32>
    %105 = vector.shape_cast %98 : vector<120x128xf32> to vector<5x24x128xf32>
    %106 = vector.extract_strided_slice %105 {offsets = [0, 1, 0], sizes = [5, 16, 128], strides = [1, 1, 1]} : vector<5x24x128xf32> to vector<5x16x128xf32>
    %107 = arith.addf %104, %106 : vector<5x16x128xf32>
    %108 = vector.shape_cast %102 : vector<120x128xf32> to vector<5x24x128xf32>
    %109 = vector.extract_strided_slice %108 {offsets = [0, 2, 0], sizes = [5, 16, 128], strides = [1, 1, 1]} : vector<5x24x128xf32> to vector<5x16x128xf32>
    %110 = arith.addf %107, %109 : vector<5x16x128xf32>
    %c0_101 = arith.constant 0 : index
    %c0_102 = arith.constant 0 : index
    %111 = vector.load %arg4[%c0_101, %c0_102] : memref<1x128xf32, #tpu.memory_space<vmem>>, vector<1x128xf32>
    %112 = vector.shape_cast %111 : vector<1x128xf32> to vector<1x1x128xf32>
    %113 = vector.broadcast %112 : vector<1x1x128xf32> to vector<5x16x128xf32>
    %114 = arith.addf %110, %113 : vector<5x16x128xf32>
    %cst_103 = arith.constant 0.000000e+00 : f32
    %115 = vector.broadcast %cst_103 : f32 to vector<5x16x128xf32>
    %116 = arith.cmpf oge, %114, %115 : vector<5x16x128xf32>
    %cst_104 = arith.constant 2.000000e-01 : f32
    %117 = vector.broadcast %cst_104 : f32 to vector<5x16x128xf32>
    %118 = arith.mulf %117, %114 : vector<5x16x128xf32>
    %119 = arith.select %116, %114, %118 : vector<5x16x128xi1>, vector<5x16x128xf32>
    %120 = arith.truncf %119 : vector<5x16x128xf32> to vector<5x16x128xbf16>
    %c0_105 = arith.constant 0 : index
    %c5_106 = arith.constant 5 : index
    %c0_107 = arith.constant 0 : index
    %c0_108 = arith.constant 0 : index
    %121 = vector.load %arg5[%c0_105, %c5_106, %c0_107, %c0_108] : memref<1x16x16x128xbf16, #tpu.memory_space<vmem>>, vector<1x5x16x128xbf16>
    %122 = vector.shape_cast %121 : vector<1x5x16x128xbf16> to vector<5x16x128xbf16>
    %123 = vector.shape_cast %120 : vector<5x16x128xbf16> to vector<1x5x16x128xbf16>
    tpu.vector_store %arg5[%c0_105, %c5_106, %c0_107, %c0_108], %123 {strides = array<i32>} : memref<1x16x16x128xbf16, #tpu.memory_space<vmem>>, vector<1x5x16x128xbf16>,
    %c0_109 = arith.constant 0 : index
    %c10 = arith.constant 10 : index
    %c0_110 = arith.constant 0 : index
    %c0_111 = arith.constant 0 : index
    %124 = vector.load %arg2[%c0_109, %c10, %c0_110, %c0_111] : memref<1x18x24x128xbf16, #tpu.memory_space<vmem>>, vector<1x7x24x128xbf16>
    %125 = vector.shape_cast %124 : vector<1x7x24x128xbf16> to vector<7x24x128xbf16>
    %126 = vector.extract_strided_slice %125 {offsets = [0, 0, 0], sizes = [5, 24, 128], strides = [1, 1, 1]} : vector<7x24x128xbf16> to vector<5x24x128xbf16>
    %127 = vector.shape_cast %126 : vector<5x24x128xbf16> to vector<120x128xbf16>
    %c0_112 = arith.constant 0 : index
    %c0_113 = arith.constant 0 : index
    %c0_114 = arith.constant 0 : index
    %c0_115 = arith.constant 0 : index
    %128 = vector.load %arg3[%c0_112, %c0_113, %c0_114, %c0_115] : memref<3x3x128x128xbf16, #tpu.memory_space<vmem>>, vector<1x1x128x128xbf16>
    %129 = vector.shape_cast %128 : vector<1x1x128x128xbf16> to vector<128x128xbf16>
    %cst_116 = arith.constant dense<0.000000e+00> : vector<120x128xf32>
    %130 = tpu.matmul %127, %129, %cst_116 {dimension_numbers = #tpu.dot_dimension_numbers<[1], [0], [0], [1], [0, 0, 1, 1], [], []>} : vector<120x128xbf16>, vector<128x128xbf16>, vector<120x128xf32> -> vector<120x128xf32>
    %c0_117 = arith.constant 0 : index
    %c1_118 = arith.constant 1 : index
    %c0_119 = arith.constant 0 : index
    %c0_120 = arith.constant 0 : index
    %131 = vector.load %arg3[%c0_117, %c1_118, %c0_119, %c0_120] : memref<3x3x128x128xbf16, #tpu.memory_space<vmem>>, vector<1x1x128x128xbf16>
    %132 = vector.shape_cast %131 : vector<1x1x128x128xbf16> to vector<128x128xbf16>
    %cst_121 = arith.constant dense<0.000000e+00> : vector<120x128xf32>
    %133 = tpu.matmul %127, %132, %cst_121 {dimension_numbers = #tpu.dot_dimension_numbers<[1], [0], [0], [1], [0, 0, 1, 1], [], []>} : vector<120x128xbf16>, vector<128x128xbf16>, vector<120x128xf32> -> vector<120x128xf32>
    %c0_122 = arith.constant 0 : index
    %c2_123 = arith.constant 2 : index
    %c0_124 = arith.constant 0 : index
    %c0_125 = arith.constant 0 : index
    %134 = vector.load %arg3[%c0_122, %c2_123, %c0_124, %c0_125] : memref<3x3x128x128xbf16, #tpu.memory_space<vmem>>, vector<1x1x128x128xbf16>
    %135 = vector.shape_cast %134 : vector<1x1x128x128xbf16> to vector<128x128xbf16>
    %cst_126 = arith.constant dense<0.000000e+00> : vector<120x128xf32>
    %136 = tpu.matmul %127, %135, %cst_126 {dimension_numbers = #tpu.dot_dimension_numbers<[1], [0], [0], [1], [0, 0, 1, 1], [], []>} : vector<120x128xbf16>, vector<128x128xbf16>, vector<120x128xf32> -> vector<120x128xf32>
    %137 = vector.extract_strided_slice %125 {offsets = [1, 0, 0], sizes = [5, 24, 128], strides = [1, 1, 1]} : vector<7x24x128xbf16> to vector<5x24x128xbf16>
    %138 = vector.shape_cast %137 : vector<5x24x128xbf16> to vector<120x128xbf16>
    %c1_127 = arith.constant 1 : index
    %c0_128 = arith.constant 0 : index
    %c0_129 = arith.constant 0 : index
    %c0_130 = arith.constant 0 : index
    %139 = vector.load %arg3[%c1_127, %c0_128, %c0_129, %c0_130] : memref<3x3x128x128xbf16, #tpu.memory_space<vmem>>, vector<1x1x128x128xbf16>
    %140 = vector.shape_cast %139 : vector<1x1x128x128xbf16> to vector<128x128xbf16>
    %cst_131 = arith.constant dense<0.000000e+00> : vector<120x128xf32>
    %141 = tpu.matmul %138, %140, %cst_131 {dimension_numbers = #tpu.dot_dimension_numbers<[1], [0], [0], [1], [0, 0, 1, 1], [], []>} : vector<120x128xbf16>, vector<128x128xbf16>, vector<120x128xf32> -> vector<120x128xf32>
    %142 = arith.addf %130, %141 : vector<120x128xf32>
    %c1_132 = arith.constant 1 : index
    %c1_133 = arith.constant 1 : index
    %c0_134 = arith.constant 0 : index
    %c0_135 = arith.constant 0 : index
    %143 = vector.load %arg3[%c1_132, %c1_133, %c0_134, %c0_135] : memref<3x3x128x128xbf16, #tpu.memory_space<vmem>>, vector<1x1x128x128xbf16>
    %144 = vector.shape_cast %143 : vector<1x1x128x128xbf16> to vector<128x128xbf16>
    %cst_136 = arith.constant dense<0.000000e+00> : vector<120x128xf32>
    %145 = tpu.matmul %138, %144, %cst_136 {dimension_numbers = #tpu.dot_dimension_numbers<[1], [0], [0], [1], [0, 0, 1, 1], [], []>} : vector<120x128xbf16>, vector<128x128xbf16>, vector<120x128xf32> -> vector<120x128xf32>
    %146 = arith.addf %133, %145 : vector<120x128xf32>
    %c1_137 = arith.constant 1 : index
    %c2_138 = arith.constant 2 : index
    %c0_139 = arith.constant 0 : index
    %c0_140 = arith.constant 0 : index
    %147 = vector.load %arg3[%c1_137, %c2_138, %c0_139, %c0_140] : memref<3x3x128x128xbf16, #tpu.memory_space<vmem>>, vector<1x1x128x128xbf16>
    %148 = vector.shape_cast %147 : vector<1x1x128x128xbf16> to vector<128x128xbf16>
    %cst_141 = arith.constant dense<0.000000e+00> : vector<120x128xf32>
    %149 = tpu.matmul %138, %148, %cst_141 {dimension_numbers = #tpu.dot_dimension_numbers<[1], [0], [0], [1], [0, 0, 1, 1], [], []>} : vector<120x128xbf16>, vector<128x128xbf16>, vector<120x128xf32> -> vector<120x128xf32>
    %150 = arith.addf %136, %149 : vector<120x128xf32>
    %151 = vector.extract_strided_slice %125 {offsets = [2, 0, 0], sizes = [5, 24, 128], strides = [1, 1, 1]} : vector<7x24x128xbf16> to vector<5x24x128xbf16>
    %152 = vector.shape_cast %151 : vector<5x24x128xbf16> to vector<120x128xbf16>
    %c2_142 = arith.constant 2 : index
    %c0_143 = arith.constant 0 : index
    %c0_144 = arith.constant 0 : index
    %c0_145 = arith.constant 0 : index
    %153 = vector.load %arg3[%c2_142, %c0_143, %c0_144, %c0_145] : memref<3x3x128x128xbf16, #tpu.memory_space<vmem>>, vector<1x1x128x128xbf16>
    %154 = vector.shape_cast %153 : vector<1x1x128x128xbf16> to vector<128x128xbf16>
    %cst_146 = arith.constant dense<0.000000e+00> : vector<120x128xf32>
    %155 = tpu.matmul %152, %154, %cst_146 {dimension_numbers = #tpu.dot_dimension_numbers<[1], [0], [0], [1], [0, 0, 1, 1], [], []>} : vector<120x128xbf16>, vector<128x128xbf16>, vector<120x128xf32> -> vector<120x128xf32>
    %156 = arith.addf %142, %155 : vector<120x128xf32>
    %c2_147 = arith.constant 2 : index
    %c1_148 = arith.constant 1 : index
    %c0_149 = arith.constant 0 : index
    %c0_150 = arith.constant 0 : index
    %157 = vector.load %arg3[%c2_147, %c1_148, %c0_149, %c0_150] : memref<3x3x128x128xbf16, #tpu.memory_space<vmem>>, vector<1x1x128x128xbf16>
    %158 = vector.shape_cast %157 : vector<1x1x128x128xbf16> to vector<128x128xbf16>
    %cst_151 = arith.constant dense<0.000000e+00> : vector<120x128xf32>
    %159 = tpu.matmul %152, %158, %cst_151 {dimension_numbers = #tpu.dot_dimension_numbers<[1], [0], [0], [1], [0, 0, 1, 1], [], []>} : vector<120x128xbf16>, vector<128x128xbf16>, vector<120x128xf32> -> vector<120x128xf32>
    %160 = arith.addf %146, %159 : vector<120x128xf32>
    %c2_152 = arith.constant 2 : index
    %c2_153 = arith.constant 2 : index
    %c0_154 = arith.constant 0 : index
    %c0_155 = arith.constant 0 : index
    %161 = vector.load %arg3[%c2_152, %c2_153, %c0_154, %c0_155] : memref<3x3x128x128xbf16, #tpu.memory_space<vmem>>, vector<1x1x128x128xbf16>
    %162 = vector.shape_cast %161 : vector<1x1x128x128xbf16> to vector<128x128xbf16>
    %cst_156 = arith.constant dense<0.000000e+00> : vector<120x128xf32>
    %163 = tpu.matmul %152, %162, %cst_156 {dimension_numbers = #tpu.dot_dimension_numbers<[1], [0], [0], [1], [0, 0, 1, 1], [], []>} : vector<120x128xbf16>, vector<128x128xbf16>, vector<120x128xf32> -> vector<120x128xf32>
    %164 = arith.addf %150, %163 : vector<120x128xf32>
    %165 = vector.shape_cast %156 : vector<120x128xf32> to vector<5x24x128xf32>
    %166 = vector.extract_strided_slice %165 {offsets = [0, 0, 0], sizes = [5, 16, 128], strides = [1, 1, 1]} : vector<5x24x128xf32> to vector<5x16x128xf32>
    %167 = vector.shape_cast %160 : vector<120x128xf32> to vector<5x24x128xf32>
    %168 = vector.extract_strided_slice %167 {offsets = [0, 1, 0], sizes = [5, 16, 128], strides = [1, 1, 1]} : vector<5x24x128xf32> to vector<5x16x128xf32>
    %169 = arith.addf %166, %168 : vector<5x16x128xf32>
    %170 = vector.shape_cast %164 : vector<120x128xf32> to vector<5x24x128xf32>
    %171 = vector.extract_strided_slice %170 {offsets = [0, 2, 0], sizes = [5, 16, 128], strides = [1, 1, 1]} : vector<5x24x128xf32> to vector<5x16x128xf32>
    %172 = arith.addf %169, %171 : vector<5x16x128xf32>
    %c0_157 = arith.constant 0 : index
    %c0_158 = arith.constant 0 : index
    %173 = vector.load %arg4[%c0_157, %c0_158] : memref<1x128xf32, #tpu.memory_space<vmem>>, vector<1x128xf32>
    %174 = vector.shape_cast %173 : vector<1x128xf32> to vector<1x1x128xf32>
    %175 = vector.broadcast %174 : vector<1x1x128xf32> to vector<5x16x128xf32>
    %176 = arith.addf %172, %175 : vector<5x16x128xf32>
    %cst_159 = arith.constant 0.000000e+00 : f32
    %177 = vector.broadcast %cst_159 : f32 to vector<5x16x128xf32>
    %178 = arith.cmpf oge, %176, %177 : vector<5x16x128xf32>
    %cst_160 = arith.constant 2.000000e-01 : f32
    %179 = vector.broadcast %cst_160 : f32 to vector<5x16x128xf32>
    %180 = arith.mulf %179, %176 : vector<5x16x128xf32>
    %181 = arith.select %178, %176, %180 : vector<5x16x128xi1>, vector<5x16x128xf32>
    %182 = arith.truncf %181 : vector<5x16x128xf32> to vector<5x16x128xbf16>
    %c0_161 = arith.constant 0 : index
    %c10_162 = arith.constant 10 : index
    %c0_163 = arith.constant 0 : index
    %c0_164 = arith.constant 0 : index
    %183 = vector.load %arg5[%c0_161, %c10_162, %c0_163, %c0_164] : memref<1x16x16x128xbf16, #tpu.memory_space<vmem>>, vector<1x5x16x128xbf16>
    %184 = vector.shape_cast %183 : vector<1x5x16x128xbf16> to vector<5x16x128xbf16>
    %185 = vector.shape_cast %182 : vector<5x16x128xbf16> to vector<1x5x16x128xbf16>
    tpu.vector_store %arg5[%c0_161, %c10_162, %c0_163, %c0_164], %185 {strides = array<i32>} : memref<1x16x16x128xbf16, #tpu.memory_space<vmem>>, vector<1x5x16x128xbf16>,
    %c0_165 = arith.constant 0 : index
    %c15 = arith.constant 15 : index
    %c0_166 = arith.constant 0 : index
    %c0_167 = arith.constant 0 : index
    %186 = vector.load %arg2[%c0_165, %c15, %c0_166, %c0_167] : memref<1x18x24x128xbf16, #tpu.memory_space<vmem>>, vector<1x3x24x128xbf16>
    %187 = vector.shape_cast %186 : vector<1x3x24x128xbf16> to vector<3x24x128xbf16>
    %188 = vector.extract_strided_slice %187 {offsets = [0, 0, 0], sizes = [1, 24, 128], strides = [1, 1, 1]} : vector<3x24x128xbf16> to vector<1x24x128xbf16>
    %189 = vector.shape_cast %188 : vector<1x24x128xbf16> to vector<24x128xbf16>
    %c0_168 = arith.constant 0 : index
    %c0_169 = arith.constant 0 : index
    %c0_170 = arith.constant 0 : index
    %c0_171 = arith.constant 0 : index
    %190 = vector.load %arg3[%c0_168, %c0_169, %c0_170, %c0_171] : memref<3x3x128x128xbf16, #tpu.memory_space<vmem>>, vector<1x1x128x128xbf16>
    %191 = vector.shape_cast %190 : vector<1x1x128x128xbf16> to vector<128x128xbf16>
    %cst_172 = arith.constant dense<0.000000e+00> : vector<24x128xf32>
    %192 = tpu.matmul %189, %191, %cst_172 {dimension_numbers = #tpu.dot_dimension_numbers<[1], [0], [0], [1], [0, 0, 1, 1], [], []>} : vector<24x128xbf16>, vector<128x128xbf16>, vector<24x128xf32> -> vector<24x128xf32>
    %c0_173 = arith.constant 0 : index
    %c1_174 = arith.constant 1 : index
    %c0_175 = arith.constant 0 : index
    %c0_176 = arith.constant 0 : index
    %193 = vector.load %arg3[%c0_173, %c1_174, %c0_175, %c0_176] : memref<3x3x128x128xbf16, #tpu.memory_space<vmem>>, vector<1x1x128x128xbf16>
    %194 = vector.shape_cast %193 : vector<1x1x128x128xbf16> to vector<128x128xbf16>
    %cst_177 = arith.constant dense<0.000000e+00> : vector<24x128xf32>
    %195 = tpu.matmul %189, %194, %cst_177 {dimension_numbers = #tpu.dot_dimension_numbers<[1], [0], [0], [1], [0, 0, 1, 1], [], []>} : vector<24x128xbf16>, vector<128x128xbf16>, vector<24x128xf32> -> vector<24x128xf32>
    %c0_178 = arith.constant 0 : index
    %c2_179 = arith.constant 2 : index
    %c0_180 = arith.constant 0 : index
    %c0_181 = arith.constant 0 : index
    %196 = vector.load %arg3[%c0_178, %c2_179, %c0_180, %c0_181] : memref<3x3x128x128xbf16, #tpu.memory_space<vmem>>, vector<1x1x128x128xbf16>
    %197 = vector.shape_cast %196 : vector<1x1x128x128xbf16> to vector<128x128xbf16>
    %cst_182 = arith.constant dense<0.000000e+00> : vector<24x128xf32>
    %198 = tpu.matmul %189, %197, %cst_182 {dimension_numbers = #tpu.dot_dimension_numbers<[1], [0], [0], [1], [0, 0, 1, 1], [], []>} : vector<24x128xbf16>, vector<128x128xbf16>, vector<24x128xf32> -> vector<24x128xf32>
    %199 = vector.extract_strided_slice %187 {offsets = [1, 0, 0], sizes = [1, 24, 128], strides = [1, 1, 1]} : vector<3x24x128xbf16> to vector<1x24x128xbf16>
    %200 = vector.shape_cast %199 : vector<1x24x128xbf16> to vector<24x128xbf16>
    %c1_183 = arith.constant 1 : index
    %c0_184 = arith.constant 0 : index
    %c0_185 = arith.constant 0 : index
    %c0_186 = arith.constant 0 : index
    %201 = vector.load %arg3[%c1_183, %c0_184, %c0_185, %c0_186] : memref<3x3x128x128xbf16, #tpu.memory_space<vmem>>, vector<1x1x128x128xbf16>
    %202 = vector.shape_cast %201 : vector<1x1x128x128xbf16> to vector<128x128xbf16>
    %cst_187 = arith.constant dense<0.000000e+00> : vector<24x128xf32>
    %203 = tpu.matmul %200, %202, %cst_187 {dimension_numbers = #tpu.dot_dimension_numbers<[1], [0], [0], [1], [0, 0, 1, 1], [], []>} : vector<24x128xbf16>, vector<128x128xbf16>, vector<24x128xf32> -> vector<24x128xf32>
    %204 = arith.addf %192, %203 : vector<24x128xf32>
    %c1_188 = arith.constant 1 : index
    %c1_189 = arith.constant 1 : index
    %c0_190 = arith.constant 0 : index
    %c0_191 = arith.constant 0 : index
    %205 = vector.load %arg3[%c1_188, %c1_189, %c0_190, %c0_191] : memref<3x3x128x128xbf16, #tpu.memory_space<vmem>>, vector<1x1x128x128xbf16>
    %206 = vector.shape_cast %205 : vector<1x1x128x128xbf16> to vector<128x128xbf16>
    %cst_192 = arith.constant dense<0.000000e+00> : vector<24x128xf32>
    %207 = tpu.matmul %200, %206, %cst_192 {dimension_numbers = #tpu.dot_dimension_numbers<[1], [0], [0], [1], [0, 0, 1, 1], [], []>} : vector<24x128xbf16>, vector<128x128xbf16>, vector<24x128xf32> -> vector<24x128xf32>
    %208 = arith.addf %195, %207 : vector<24x128xf32>
    %c1_193 = arith.constant 1 : index
    %c2_194 = arith.constant 2 : index
    %c0_195 = arith.constant 0 : index
    %c0_196 = arith.constant 0 : index
    %209 = vector.load %arg3[%c1_193, %c2_194, %c0_195, %c0_196] : memref<3x3x128x128xbf16, #tpu.memory_space<vmem>>, vector<1x1x128x128xbf16>
    %210 = vector.shape_cast %209 : vector<1x1x128x128xbf16> to vector<128x128xbf16>
    %cst_197 = arith.constant dense<0.000000e+00> : vector<24x128xf32>
    %211 = tpu.matmul %200, %210, %cst_197 {dimension_numbers = #tpu.dot_dimension_numbers<[1], [0], [0], [1], [0, 0, 1, 1], [], []>} : vector<24x128xbf16>, vector<128x128xbf16>, vector<24x128xf32> -> vector<24x128xf32>
    %212 = arith.addf %198, %211 : vector<24x128xf32>
    %213 = vector.extract_strided_slice %187 {offsets = [2, 0, 0], sizes = [1, 24, 128], strides = [1, 1, 1]} : vector<3x24x128xbf16> to vector<1x24x128xbf16>
    %214 = vector.shape_cast %213 : vector<1x24x128xbf16> to vector<24x128xbf16>
    %c2_198 = arith.constant 2 : index
    %c0_199 = arith.constant 0 : index
    %c0_200 = arith.constant 0 : index
    %c0_201 = arith.constant 0 : index
    %215 = vector.load %arg3[%c2_198, %c0_199, %c0_200, %c0_201] : memref<3x3x128x128xbf16, #tpu.memory_space<vmem>>, vector<1x1x128x128xbf16>
    %216 = vector.shape_cast %215 : vector<1x1x128x128xbf16> to vector<128x128xbf16>
    %cst_202 = arith.constant dense<0.000000e+00> : vector<24x128xf32>
    %217 = tpu.matmul %214, %216, %cst_202 {dimension_numbers = #tpu.dot_dimension_numbers<[1], [0], [0], [1], [0, 0, 1, 1], [], []>} : vector<24x128xbf16>, vector<128x128xbf16>, vector<24x128xf32> -> vector<24x128xf32>
    %218 = arith.addf %204, %217 : vector<24x128xf32>
    %c2_203 = arith.constant 2 : index
    %c1_204 = arith.constant 1 : index
    %c0_205 = arith.constant 0 : index
    %c0_206 = arith.constant 0 : index
    %219 = vector.load %arg3[%c2_203, %c1_204, %c0_205, %c0_206] : memref<3x3x128x128xbf16, #tpu.memory_space<vmem>>, vector<1x1x128x128xbf16>
    %220 = vector.shape_cast %219 : vector<1x1x128x128xbf16> to vector<128x128xbf16>
    %cst_207 = arith.constant dense<0.000000e+00> : vector<24x128xf32>
    %221 = tpu.matmul %214, %220, %cst_207 {dimension_numbers = #tpu.dot_dimension_numbers<[1], [0], [0], [1], [0, 0, 1, 1], [], []>} : vector<24x128xbf16>, vector<128x128xbf16>, vector<24x128xf32> -> vector<24x128xf32>
    %222 = arith.addf %208, %221 : vector<24x128xf32>
    %c2_208 = arith.constant 2 : index
    %c2_209 = arith.constant 2 : index
    %c0_210 = arith.constant 0 : index
    %c0_211 = arith.constant 0 : index
    %223 = vector.load %arg3[%c2_208, %c2_209, %c0_210, %c0_211] : memref<3x3x128x128xbf16, #tpu.memory_space<vmem>>, vector<1x1x128x128xbf16>
    %224 = vector.shape_cast %223 : vector<1x1x128x128xbf16> to vector<128x128xbf16>
    %cst_212 = arith.constant dense<0.000000e+00> : vector<24x128xf32>
    %225 = tpu.matmul %214, %224, %cst_212 {dimension_numbers = #tpu.dot_dimension_numbers<[1], [0], [0], [1], [0, 0, 1, 1], [], []>} : vector<24x128xbf16>, vector<128x128xbf16>, vector<24x128xf32> -> vector<24x128xf32>
    %226 = arith.addf %212, %225 : vector<24x128xf32>
    %227 = vector.shape_cast %218 : vector<24x128xf32> to vector<1x24x128xf32>
    %228 = vector.extract_strided_slice %227 {offsets = [0, 0, 0], sizes = [1, 16, 128], strides = [1, 1, 1]} : vector<1x24x128xf32> to vector<1x16x128xf32>
    %229 = vector.shape_cast %222 : vector<24x128xf32> to vector<1x24x128xf32>
    %230 = vector.extract_strided_slice %229 {offsets = [0, 1, 0], sizes = [1, 16, 128], strides = [1, 1, 1]} : vector<1x24x128xf32> to vector<1x16x128xf32>
    %231 = arith.addf %228, %230 : vector<1x16x128xf32>
    %232 = vector.shape_cast %226 : vector<24x128xf32> to vector<1x24x128xf32>
    %233 = vector.extract_strided_slice %232 {offsets = [0, 2, 0], sizes = [1, 16, 128], strides = [1, 1, 1]} : vector<1x24x128xf32> to vector<1x16x128xf32>
    %234 = arith.addf %231, %233 : vector<1x16x128xf32>
    %c0_213 = arith.constant 0 : index
    %c0_214 = arith.constant 0 : index
    %235 = vector.load %arg4[%c0_213, %c0_214] : memref<1x128xf32, #tpu.memory_space<vmem>>, vector<1x128xf32>
    %236 = vector.shape_cast %235 : vector<1x128xf32> to vector<1x1x128xf32>
    %237 = vector.broadcast %236 : vector<1x1x128xf32> to vector<1x16x128xf32>
    %238 = arith.addf %234, %237 : vector<1x16x128xf32>
    %cst_215 = arith.constant 0.000000e+00 : f32
    %239 = vector.broadcast %cst_215 : f32 to vector<1x16x128xf32>
    %240 = arith.cmpf oge, %238, %239 : vector<1x16x128xf32>
    %cst_216 = arith.constant 2.000000e-01 : f32
    %241 = vector.broadcast %cst_216 : f32 to vector<1x16x128xf32>
    %242 = arith.mulf %241, %238 : vector<1x16x128xf32>
    %243 = arith.select %240, %238, %242 : vector<1x16x128xi1>, vector<1x16x128xf32>
    %244 = arith.truncf %243 : vector<1x16x128xf32> to vector<1x16x128xbf16>
    %c0_217 = arith.constant 0 : index
    %c15_218 = arith.constant 15 : index
    %c0_219 = arith.constant 0 : index
    %c0_220 = arith.constant 0 : index
    %245 = vector.load %arg5[%c0_217, %c15_218, %c0_219, %c0_220] : memref<1x16x16x128xbf16, #tpu.memory_space<vmem>>, vector<1x1x16x128xbf16>
    %246 = vector.shape_cast %245 : vector<1x1x16x128xbf16> to vector<1x16x128xbf16>
    %247 = vector.shape_cast %244 : vector<1x16x128xbf16> to vector<1x1x16x128xbf16>
    tpu.vector_store %arg5[%c0_217, %c15_218, %c0_219, %c0_220], %247 {strides = array<i32>} : memref<1x16x16x128xbf16, #tpu.memory_space<vmem>>, vector<1x1x16x128xbf16>,
    return
  }
  func.func @transform_0(%arg0: i32, %arg1: i32) -> (i32, i32, i32, i32) {
    %c0_i32 = arith.constant 0 : i32
    %c0_i32_0 = arith.constant 0 : i32
    %c0_i32_1 = arith.constant 0 : i32
    %c0_i32_2 = arith.constant 0 : i32
    return %arg1, %c0_i32, %c0_i32_0, %c0_i32_1 : i32, i32, i32, i32
  }
  func.func @transform_1(%arg0: i32, %arg1: i32) -> (i32, i32, i32, i32) {
    %c0_i32 = arith.constant 0 : i32
    %c0_i32_0 = arith.constant 0 : i32
    %c0_i32_1 = arith.constant 0 : i32
    %c0_i32_2 = arith.constant 0 : i32
    return %c0_i32, %c0_i32_0, %c0_i32_1, %arg0 : i32, i32, i32, i32
  }
  func.func @transform_2(%arg0: i32, %arg1: i32) -> (i32, i32) {
    %c0_i32 = arith.constant 0 : i32
    %c0_i32_0 = arith.constant 0 : i32
    return %c0_i32, %arg0 : i32, i32
  }
  func.func @transform_3(%arg0: i32, %arg1: i32) -> (i32, i32, i32, i32) {
    %c0_i32 = arith.constant 0 : i32
    %c0_i32_0 = arith.constant 0 : i32
    %c0_i32_1 = arith.constant 0 : i32
    return %arg1, %c0_i32, %c0_i32_0, %arg0 : i32, i32, i32, i32
  }
}

module attributes {stable_mosaic.version = 11 : i64} {
  func.func @_conv_kernel(%arg0: i32, %arg1: i32, %arg2: memref<1x10x16x512xbf16, #tpu.memory_space<vmem>>, %arg3: memref<3x3x512x128xbf16, #tpu.memory_space<vmem>>, %arg4: memref<1x128xf32, #tpu.memory_space<vmem>>, %arg5: memref<1x9x16x512xbf16, #tpu.memory_space<vmem>>, %arg6: memref<2x2x512x128xbf16, #tpu.memory_space<vmem>>, %arg7: memref<1x8x8x128xf32, #tpu.memory_space<vmem>>) attributes {dimension_semantics = [#tpu.dimension_semantics<parallel>, #tpu.dimension_semantics<parallel>], iteration_bounds = array<i64: 1, 2>, scalar_prefetch = 0 : i64, scratch_operands = 0 : i64, tpu.core_type = #tpu.core_type<tc>, window_params = [{transform_indices = @transform_0, window_bounds = array<i64: 1, 10, 16, 512>}, {transform_indices = @transform_1, window_bounds = array<i64: 3, 3, 512, 128>}, {transform_indices = @transform_2, window_bounds = array<i64: 1, 128>}, {transform_indices = @transform_3, window_bounds = array<i64: 1, 9, 16, 512>}, {transform_indices = @transform_4, window_bounds = array<i64: 2, 2, 512, 128>}, {transform_indices = @transform_5, window_bounds = array<i64: 1, 8, 8, 128>}]} {
    %c0 = arith.constant 0 : index
    %c0_0 = arith.constant 0 : index
    %c0_1 = arith.constant 0 : index
    %c0_2 = arith.constant 0 : index
    %0 = vector.load %arg2[%c0, %c0_0, %c0_1, %c0_2] : memref<1x10x16x512xbf16, #tpu.memory_space<vmem>>, vector<1x8x16x512xbf16>
    %1 = vector.shape_cast %0 : vector<1x8x16x512xbf16> to vector<8x16x512xbf16>
    %2 = vector.extract_strided_slice %1 {offsets = [0, 0, 0], sizes = [6, 16, 512], strides = [1, 1, 1]} : vector<8x16x512xbf16> to vector<6x16x512xbf16>
    %3 = vector.shape_cast %2 : vector<6x16x512xbf16> to vector<96x512xbf16>
    %c0_3 = arith.constant 0 : index
    %c0_4 = arith.constant 0 : index
    %c0_5 = arith.constant 0 : index
    %c0_6 = arith.constant 0 : index
    %4 = vector.load %arg3[%c0_3, %c0_4, %c0_5, %c0_6] : memref<3x3x512x128xbf16, #tpu.memory_space<vmem>>, vector<1x1x512x128xbf16>
    %5 = vector.shape_cast %4 : vector<1x1x512x128xbf16> to vector<512x128xbf16>
    %cst = arith.constant dense<0.000000e+00> : vector<96x128xf32>
    %6 = tpu.matmul %3, %5, %cst {dimension_numbers = #tpu.dot_dimension_numbers<[1], [0], [0], [1], [0, 0, 1, 1], [], []>} : vector<96x512xbf16>, vector<512x128xbf16>, vector<96x128xf32> -> vector<96x128xf32>
    %c0_7 = arith.constant 0 : index
    %c1 = arith.constant 1 : index
    %c0_8 = arith.constant 0 : index
    %c0_9 = arith.constant 0 : index
    %7 = vector.load %arg3[%c0_7, %c1, %c0_8, %c0_9] : memref<3x3x512x128xbf16, #tpu.memory_space<vmem>>, vector<1x1x512x128xbf16>
    %8 = vector.shape_cast %7 : vector<1x1x512x128xbf16> to vector<512x128xbf16>
    %cst_10 = arith.constant dense<0.000000e+00> : vector<96x128xf32>
    %9 = tpu.matmul %3, %8, %cst_10 {dimension_numbers = #tpu.dot_dimension_numbers<[1], [0], [0], [1], [0, 0, 1, 1], [], []>} : vector<96x512xbf16>, vector<512x128xbf16>, vector<96x128xf32> -> vector<96x128xf32>
    %c0_11 = arith.constant 0 : index
    %c2 = arith.constant 2 : index
    %c0_12 = arith.constant 0 : index
    %c0_13 = arith.constant 0 : index
    %10 = vector.load %arg3[%c0_11, %c2, %c0_12, %c0_13] : memref<3x3x512x128xbf16, #tpu.memory_space<vmem>>, vector<1x1x512x128xbf16>
    %11 = vector.shape_cast %10 : vector<1x1x512x128xbf16> to vector<512x128xbf16>
    %cst_14 = arith.constant dense<0.000000e+00> : vector<96x128xf32>
    %12 = tpu.matmul %3, %11, %cst_14 {dimension_numbers = #tpu.dot_dimension_numbers<[1], [0], [0], [1], [0, 0, 1, 1], [], []>} : vector<96x512xbf16>, vector<512x128xbf16>, vector<96x128xf32> -> vector<96x128xf32>
    %13 = vector.extract_strided_slice %1 {offsets = [1, 0, 0], sizes = [6, 16, 512], strides = [1, 1, 1]} : vector<8x16x512xbf16> to vector<6x16x512xbf16>
    %14 = vector.shape_cast %13 : vector<6x16x512xbf16> to vector<96x512xbf16>
    %c1_15 = arith.constant 1 : index
    %c0_16 = arith.constant 0 : index
    %c0_17 = arith.constant 0 : index
    %c0_18 = arith.constant 0 : index
    %15 = vector.load %arg3[%c1_15, %c0_16, %c0_17, %c0_18] : memref<3x3x512x128xbf16, #tpu.memory_space<vmem>>, vector<1x1x512x128xbf16>
    %16 = vector.shape_cast %15 : vector<1x1x512x128xbf16> to vector<512x128xbf16>
    %cst_19 = arith.constant dense<0.000000e+00> : vector<96x128xf32>
    %17 = tpu.matmul %14, %16, %cst_19 {dimension_numbers = #tpu.dot_dimension_numbers<[1], [0], [0], [1], [0, 0, 1, 1], [], []>} : vector<96x512xbf16>, vector<512x128xbf16>, vector<96x128xf32> -> vector<96x128xf32>
    %18 = arith.addf %6, %17 : vector<96x128xf32>
    %c1_20 = arith.constant 1 : index
    %c1_21 = arith.constant 1 : index
    %c0_22 = arith.constant 0 : index
    %c0_23 = arith.constant 0 : index
    %19 = vector.load %arg3[%c1_20, %c1_21, %c0_22, %c0_23] : memref<3x3x512x128xbf16, #tpu.memory_space<vmem>>, vector<1x1x512x128xbf16>
    %20 = vector.shape_cast %19 : vector<1x1x512x128xbf16> to vector<512x128xbf16>
    %cst_24 = arith.constant dense<0.000000e+00> : vector<96x128xf32>
    %21 = tpu.matmul %14, %20, %cst_24 {dimension_numbers = #tpu.dot_dimension_numbers<[1], [0], [0], [1], [0, 0, 1, 1], [], []>} : vector<96x512xbf16>, vector<512x128xbf16>, vector<96x128xf32> -> vector<96x128xf32>
    %22 = arith.addf %9, %21 : vector<96x128xf32>
    %c1_25 = arith.constant 1 : index
    %c2_26 = arith.constant 2 : index
    %c0_27 = arith.constant 0 : index
    %c0_28 = arith.constant 0 : index
    %23 = vector.load %arg3[%c1_25, %c2_26, %c0_27, %c0_28] : memref<3x3x512x128xbf16, #tpu.memory_space<vmem>>, vector<1x1x512x128xbf16>
    %24 = vector.shape_cast %23 : vector<1x1x512x128xbf16> to vector<512x128xbf16>
    %cst_29 = arith.constant dense<0.000000e+00> : vector<96x128xf32>
    %25 = tpu.matmul %14, %24, %cst_29 {dimension_numbers = #tpu.dot_dimension_numbers<[1], [0], [0], [1], [0, 0, 1, 1], [], []>} : vector<96x512xbf16>, vector<512x128xbf16>, vector<96x128xf32> -> vector<96x128xf32>
    %26 = arith.addf %12, %25 : vector<96x128xf32>
    %27 = vector.extract_strided_slice %1 {offsets = [2, 0, 0], sizes = [6, 16, 512], strides = [1, 1, 1]} : vector<8x16x512xbf16> to vector<6x16x512xbf16>
    %28 = vector.shape_cast %27 : vector<6x16x512xbf16> to vector<96x512xbf16>
    %c2_30 = arith.constant 2 : index
    %c0_31 = arith.constant 0 : index
    %c0_32 = arith.constant 0 : index
    %c0_33 = arith.constant 0 : index
    %29 = vector.load %arg3[%c2_30, %c0_31, %c0_32, %c0_33] : memref<3x3x512x128xbf16, #tpu.memory_space<vmem>>, vector<1x1x512x128xbf16>
    %30 = vector.shape_cast %29 : vector<1x1x512x128xbf16> to vector<512x128xbf16>
    %cst_34 = arith.constant dense<0.000000e+00> : vector<96x128xf32>
    %31 = tpu.matmul %28, %30, %cst_34 {dimension_numbers = #tpu.dot_dimension_numbers<[1], [0], [0], [1], [0, 0, 1, 1], [], []>} : vector<96x512xbf16>, vector<512x128xbf16>, vector<96x128xf32> -> vector<96x128xf32>
    %32 = arith.addf %18, %31 : vector<96x128xf32>
    %c2_35 = arith.constant 2 : index
    %c1_36 = arith.constant 1 : index
    %c0_37 = arith.constant 0 : index
    %c0_38 = arith.constant 0 : index
    %33 = vector.load %arg3[%c2_35, %c1_36, %c0_37, %c0_38] : memref<3x3x512x128xbf16, #tpu.memory_space<vmem>>, vector<1x1x512x128xbf16>
    %34 = vector.shape_cast %33 : vector<1x1x512x128xbf16> to vector<512x128xbf16>
    %cst_39 = arith.constant dense<0.000000e+00> : vector<96x128xf32>
    %35 = tpu.matmul %28, %34, %cst_39 {dimension_numbers = #tpu.dot_dimension_numbers<[1], [0], [0], [1], [0, 0, 1, 1], [], []>} : vector<96x512xbf16>, vector<512x128xbf16>, vector<96x128xf32> -> vector<96x128xf32>
    %36 = arith.addf %22, %35 : vector<96x128xf32>
    %c2_40 = arith.constant 2 : index
    %c2_41 = arith.constant 2 : index
    %c0_42 = arith.constant 0 : index
    %c0_43 = arith.constant 0 : index
    %37 = vector.load %arg3[%c2_40, %c2_41, %c0_42, %c0_43] : memref<3x3x512x128xbf16, #tpu.memory_space<vmem>>, vector<1x1x512x128xbf16>
    %38 = vector.shape_cast %37 : vector<1x1x512x128xbf16> to vector<512x128xbf16>
    %cst_44 = arith.constant dense<0.000000e+00> : vector<96x128xf32>
    %39 = tpu.matmul %28, %38, %cst_44 {dimension_numbers = #tpu.dot_dimension_numbers<[1], [0], [0], [1], [0, 0, 1, 1], [], []>} : vector<96x512xbf16>, vector<512x128xbf16>, vector<96x128xf32> -> vector<96x128xf32>
    %40 = arith.addf %26, %39 : vector<96x128xf32>
    %41 = vector.shape_cast %32 : vector<96x128xf32> to vector<6x16x128xf32>
    %42 = vector.extract_strided_slice %41 {offsets = [0, 0, 0], sizes = [6, 8, 128], strides = [1, 1, 1]} : vector<6x16x128xf32> to vector<6x8x128xf32>
    %43 = vector.shape_cast %36 : vector<96x128xf32> to vector<6x16x128xf32>
    %44 = vector.extract_strided_slice %43 {offsets = [0, 1, 0], sizes = [6, 8, 128], strides = [1, 1, 1]} : vector<6x16x128xf32> to vector<6x8x128xf32>
    %45 = arith.addf %42, %44 : vector<6x8x128xf32>
    %46 = vector.shape_cast %40 : vector<96x128xf32> to vector<6x16x128xf32>
    %47 = vector.extract_strided_slice %46 {offsets = [0, 2, 0], sizes = [6, 8, 128], strides = [1, 1, 1]} : vector<6x16x128xf32> to vector<6x8x128xf32>
    %48 = arith.addf %45, %47 : vector<6x8x128xf32>
    %c0_45 = arith.constant 0 : index
    %c0_46 = arith.constant 0 : index
    %49 = vector.load %arg4[%c0_45, %c0_46] : memref<1x128xf32, #tpu.memory_space<vmem>>, vector<1x128xf32>
    %50 = vector.shape_cast %49 : vector<1x128xf32> to vector<1x1x128xf32>
    %51 = vector.broadcast %50 : vector<1x1x128xf32> to vector<6x8x128xf32>
    %52 = arith.addf %48, %51 : vector<6x8x128xf32>
    %cst_47 = arith.constant 0.000000e+00 : f32
    %53 = vector.broadcast %cst_47 : f32 to vector<6x8x128xf32>
    %54 = arith.cmpf oge, %52, %53 : vector<6x8x128xf32>
    %cst_48 = arith.constant 2.000000e-01 : f32
    %55 = vector.broadcast %cst_48 : f32 to vector<6x8x128xf32>
    %56 = arith.mulf %55, %52 : vector<6x8x128xf32>
    %57 = arith.select %54, %52, %56 : vector<6x8x128xi1>, vector<6x8x128xf32>
    %c0_49 = arith.constant 0 : index
    %c0_50 = arith.constant 0 : index
    %c0_51 = arith.constant 0 : index
    %c0_52 = arith.constant 0 : index
    %58 = vector.load %arg5[%c0_49, %c0_50, %c0_51, %c0_52] : memref<1x9x16x512xbf16, #tpu.memory_space<vmem>>, vector<1x7x16x512xbf16>
    %59 = vector.shape_cast %58 : vector<1x7x16x512xbf16> to vector<7x16x512xbf16>
    %60 = vector.extract_strided_slice %59 {offsets = [0, 0, 0], sizes = [6, 16, 512], strides = [1, 1, 1]} : vector<7x16x512xbf16> to vector<6x16x512xbf16>
    %61 = vector.shape_cast %60 : vector<6x16x512xbf16> to vector<96x512xbf16>
    %c0_53 = arith.constant 0 : index
    %c0_54 = arith.constant 0 : index
    %c0_55 = arith.constant 0 : index
    %c0_56 = arith.constant 0 : index
    %62 = vector.load %arg6[%c0_53, %c0_54, %c0_55, %c0_56] : memref<2x2x512x128xbf16, #tpu.memory_space<vmem>>, vector<1x1x512x128xbf16>
    %63 = vector.shape_cast %62 : vector<1x1x512x128xbf16> to vector<512x128xbf16>
    %cst_57 = arith.constant dense<0.000000e+00> : vector<96x128xf32>
    %64 = tpu.matmul %61, %63, %cst_57 {dimension_numbers = #tpu.dot_dimension_numbers<[1], [0], [0], [1], [0, 0, 1, 1], [], []>} : vector<96x512xbf16>, vector<512x128xbf16>, vector<96x128xf32> -> vector<96x128xf32>
    %c0_58 = arith.constant 0 : index
    %c1_59 = arith.constant 1 : index
    %c0_60 = arith.constant 0 : index
    %c0_61 = arith.constant 0 : index
    %65 = vector.load %arg6[%c0_58, %c1_59, %c0_60, %c0_61] : memref<2x2x512x128xbf16, #tpu.memory_space<vmem>>, vector<1x1x512x128xbf16>
    %66 = vector.shape_cast %65 : vector<1x1x512x128xbf16> to vector<512x128xbf16>
    %cst_62 = arith.constant dense<0.000000e+00> : vector<96x128xf32>
    %67 = tpu.matmul %61, %66, %cst_62 {dimension_numbers = #tpu.dot_dimension_numbers<[1], [0], [0], [1], [0, 0, 1, 1], [], []>} : vector<96x512xbf16>, vector<512x128xbf16>, vector<96x128xf32> -> vector<96x128xf32>
    %68 = vector.extract_strided_slice %59 {offsets = [1, 0, 0], sizes = [6, 16, 512], strides = [1, 1, 1]} : vector<7x16x512xbf16> to vector<6x16x512xbf16>
    %69 = vector.shape_cast %68 : vector<6x16x512xbf16> to vector<96x512xbf16>
    %c1_63 = arith.constant 1 : index
    %c0_64 = arith.constant 0 : index
    %c0_65 = arith.constant 0 : index
    %c0_66 = arith.constant 0 : index
    %70 = vector.load %arg6[%c1_63, %c0_64, %c0_65, %c0_66] : memref<2x2x512x128xbf16, #tpu.memory_space<vmem>>, vector<1x1x512x128xbf16>
    %71 = vector.shape_cast %70 : vector<1x1x512x128xbf16> to vector<512x128xbf16>
    %cst_67 = arith.constant dense<0.000000e+00> : vector<96x128xf32>
    %72 = tpu.matmul %69, %71, %cst_67 {dimension_numbers = #tpu.dot_dimension_numbers<[1], [0], [0], [1], [0, 0, 1, 1], [], []>} : vector<96x512xbf16>, vector<512x128xbf16>, vector<96x128xf32> -> vector<96x128xf32>
    %73 = arith.addf %64, %72 : vector<96x128xf32>
    %c1_68 = arith.constant 1 : index
    %c1_69 = arith.constant 1 : index
    %c0_70 = arith.constant 0 : index
    %c0_71 = arith.constant 0 : index
    %74 = vector.load %arg6[%c1_68, %c1_69, %c0_70, %c0_71] : memref<2x2x512x128xbf16, #tpu.memory_space<vmem>>, vector<1x1x512x128xbf16>
    %75 = vector.shape_cast %74 : vector<1x1x512x128xbf16> to vector<512x128xbf16>
    %cst_72 = arith.constant dense<0.000000e+00> : vector<96x128xf32>
    %76 = tpu.matmul %69, %75, %cst_72 {dimension_numbers = #tpu.dot_dimension_numbers<[1], [0], [0], [1], [0, 0, 1, 1], [], []>} : vector<96x512xbf16>, vector<512x128xbf16>, vector<96x128xf32> -> vector<96x128xf32>
    %77 = arith.addf %67, %76 : vector<96x128xf32>
    %78 = vector.shape_cast %73 : vector<96x128xf32> to vector<6x16x128xf32>
    %79 = vector.extract_strided_slice %78 {offsets = [0, 0, 0], sizes = [6, 8, 128], strides = [1, 1, 1]} : vector<6x16x128xf32> to vector<6x8x128xf32>
    %80 = vector.shape_cast %77 : vector<96x128xf32> to vector<6x16x128xf32>
    %81 = vector.extract_strided_slice %80 {offsets = [0, 1, 0], sizes = [6, 8, 128], strides = [1, 1, 1]} : vector<6x16x128xf32> to vector<6x8x128xf32>
    %82 = arith.addf %79, %81 : vector<6x8x128xf32>
    %83 = arith.addf %57, %82 : vector<6x8x128xf32>
    %c0_73 = arith.constant 0 : index
    %c0_74 = arith.constant 0 : index
    %c0_75 = arith.constant 0 : index
    %c0_76 = arith.constant 0 : index
    %84 = vector.load %arg7[%c0_73, %c0_74, %c0_75, %c0_76] : memref<1x8x8x128xf32, #tpu.memory_space<vmem>>, vector<1x6x8x128xf32>
    %85 = vector.shape_cast %84 : vector<1x6x8x128xf32> to vector<6x8x128xf32>
    %86 = vector.shape_cast %83 : vector<6x8x128xf32> to vector<1x6x8x128xf32>
    tpu.vector_store %arg7[%c0_73, %c0_74, %c0_75, %c0_76], %86 {strides = array<i32>} : memref<1x8x8x128xf32, #tpu.memory_space<vmem>>, vector<1x6x8x128xf32>,
    %c0_77 = arith.constant 0 : index
    %c6 = arith.constant 6 : index
    %c0_78 = arith.constant 0 : index
    %c0_79 = arith.constant 0 : index
    %87 = vector.load %arg2[%c0_77, %c6, %c0_78, %c0_79] : memref<1x10x16x512xbf16, #tpu.memory_space<vmem>>, vector<1x4x16x512xbf16>
    %88 = vector.shape_cast %87 : vector<1x4x16x512xbf16> to vector<4x16x512xbf16>
    %89 = vector.extract_strided_slice %88 {offsets = [0, 0, 0], sizes = [2, 16, 512], strides = [1, 1, 1]} : vector<4x16x512xbf16> to vector<2x16x512xbf16>
    %90 = vector.shape_cast %89 : vector<2x16x512xbf16> to vector<32x512xbf16>
    %c0_80 = arith.constant 0 : index
    %c0_81 = arith.constant 0 : index
    %c0_82 = arith.constant 0 : index
    %c0_83 = arith.constant 0 : index
    %91 = vector.load %arg3[%c0_80, %c0_81, %c0_82, %c0_83] : memref<3x3x512x128xbf16, #tpu.memory_space<vmem>>, vector<1x1x512x128xbf16>
    %92 = vector.shape_cast %91 : vector<1x1x512x128xbf16> to vector<512x128xbf16>
    %cst_84 = arith.constant dense<0.000000e+00> : vector<32x128xf32>
    %93 = tpu.matmul %90, %92, %cst_84 {dimension_numbers = #tpu.dot_dimension_numbers<[1], [0], [0], [1], [0, 0, 1, 1], [], []>} : vector<32x512xbf16>, vector<512x128xbf16>, vector<32x128xf32> -> vector<32x128xf32>
    %c0_85 = arith.constant 0 : index
    %c1_86 = arith.constant 1 : index
    %c0_87 = arith.constant 0 : index
    %c0_88 = arith.constant 0 : index
    %94 = vector.load %arg3[%c0_85, %c1_86, %c0_87, %c0_88] : memref<3x3x512x128xbf16, #tpu.memory_space<vmem>>, vector<1x1x512x128xbf16>
    %95 = vector.shape_cast %94 : vector<1x1x512x128xbf16> to vector<512x128xbf16>
    %cst_89 = arith.constant dense<0.000000e+00> : vector<32x128xf32>
    %96 = tpu.matmul %90, %95, %cst_89 {dimension_numbers = #tpu.dot_dimension_numbers<[1], [0], [0], [1], [0, 0, 1, 1], [], []>} : vector<32x512xbf16>, vector<512x128xbf16>, vector<32x128xf32> -> vector<32x128xf32>
    %c0_90 = arith.constant 0 : index
    %c2_91 = arith.constant 2 : index
    %c0_92 = arith.constant 0 : index
    %c0_93 = arith.constant 0 : index
    %97 = vector.load %arg3[%c0_90, %c2_91, %c0_92, %c0_93] : memref<3x3x512x128xbf16, #tpu.memory_space<vmem>>, vector<1x1x512x128xbf16>
    %98 = vector.shape_cast %97 : vector<1x1x512x128xbf16> to vector<512x128xbf16>
    %cst_94 = arith.constant dense<0.000000e+00> : vector<32x128xf32>
    %99 = tpu.matmul %90, %98, %cst_94 {dimension_numbers = #tpu.dot_dimension_numbers<[1], [0], [0], [1], [0, 0, 1, 1], [], []>} : vector<32x512xbf16>, vector<512x128xbf16>, vector<32x128xf32> -> vector<32x128xf32>
    %100 = vector.extract_strided_slice %88 {offsets = [1, 0, 0], sizes = [2, 16, 512], strides = [1, 1, 1]} : vector<4x16x512xbf16> to vector<2x16x512xbf16>
    %101 = vector.shape_cast %100 : vector<2x16x512xbf16> to vector<32x512xbf16>
    %c1_95 = arith.constant 1 : index
    %c0_96 = arith.constant 0 : index
    %c0_97 = arith.constant 0 : index
    %c0_98 = arith.constant 0 : index
    %102 = vector.load %arg3[%c1_95, %c0_96, %c0_97, %c0_98] : memref<3x3x512x128xbf16, #tpu.memory_space<vmem>>, vector<1x1x512x128xbf16>
    %103 = vector.shape_cast %102 : vector<1x1x512x128xbf16> to vector<512x128xbf16>
    %cst_99 = arith.constant dense<0.000000e+00> : vector<32x128xf32>
    %104 = tpu.matmul %101, %103, %cst_99 {dimension_numbers = #tpu.dot_dimension_numbers<[1], [0], [0], [1], [0, 0, 1, 1], [], []>} : vector<32x512xbf16>, vector<512x128xbf16>, vector<32x128xf32> -> vector<32x128xf32>
    %105 = arith.addf %93, %104 : vector<32x128xf32>
    %c1_100 = arith.constant 1 : index
    %c1_101 = arith.constant 1 : index
    %c0_102 = arith.constant 0 : index
    %c0_103 = arith.constant 0 : index
    %106 = vector.load %arg3[%c1_100, %c1_101, %c0_102, %c0_103] : memref<3x3x512x128xbf16, #tpu.memory_space<vmem>>, vector<1x1x512x128xbf16>
    %107 = vector.shape_cast %106 : vector<1x1x512x128xbf16> to vector<512x128xbf16>
    %cst_104 = arith.constant dense<0.000000e+00> : vector<32x128xf32>
    %108 = tpu.matmul %101, %107, %cst_104 {dimension_numbers = #tpu.dot_dimension_numbers<[1], [0], [0], [1], [0, 0, 1, 1], [], []>} : vector<32x512xbf16>, vector<512x128xbf16>, vector<32x128xf32> -> vector<32x128xf32>
    %109 = arith.addf %96, %108 : vector<32x128xf32>
    %c1_105 = arith.constant 1 : index
    %c2_106 = arith.constant 2 : index
    %c0_107 = arith.constant 0 : index
    %c0_108 = arith.constant 0 : index
    %110 = vector.load %arg3[%c1_105, %c2_106, %c0_107, %c0_108] : memref<3x3x512x128xbf16, #tpu.memory_space<vmem>>, vector<1x1x512x128xbf16>
    %111 = vector.shape_cast %110 : vector<1x1x512x128xbf16> to vector<512x128xbf16>
    %cst_109 = arith.constant dense<0.000000e+00> : vector<32x128xf32>
    %112 = tpu.matmul %101, %111, %cst_109 {dimension_numbers = #tpu.dot_dimension_numbers<[1], [0], [0], [1], [0, 0, 1, 1], [], []>} : vector<32x512xbf16>, vector<512x128xbf16>, vector<32x128xf32> -> vector<32x128xf32>
    %113 = arith.addf %99, %112 : vector<32x128xf32>
    %114 = vector.extract_strided_slice %88 {offsets = [2, 0, 0], sizes = [2, 16, 512], strides = [1, 1, 1]} : vector<4x16x512xbf16> to vector<2x16x512xbf16>
    %115 = vector.shape_cast %114 : vector<2x16x512xbf16> to vector<32x512xbf16>
    %c2_110 = arith.constant 2 : index
    %c0_111 = arith.constant 0 : index
    %c0_112 = arith.constant 0 : index
    %c0_113 = arith.constant 0 : index
    %116 = vector.load %arg3[%c2_110, %c0_111, %c0_112, %c0_113] : memref<3x3x512x128xbf16, #tpu.memory_space<vmem>>, vector<1x1x512x128xbf16>
    %117 = vector.shape_cast %116 : vector<1x1x512x128xbf16> to vector<512x128xbf16>
    %cst_114 = arith.constant dense<0.000000e+00> : vector<32x128xf32>
    %118 = tpu.matmul %115, %117, %cst_114 {dimension_numbers = #tpu.dot_dimension_numbers<[1], [0], [0], [1], [0, 0, 1, 1], [], []>} : vector<32x512xbf16>, vector<512x128xbf16>, vector<32x128xf32> -> vector<32x128xf32>
    %119 = arith.addf %105, %118 : vector<32x128xf32>
    %c2_115 = arith.constant 2 : index
    %c1_116 = arith.constant 1 : index
    %c0_117 = arith.constant 0 : index
    %c0_118 = arith.constant 0 : index
    %120 = vector.load %arg3[%c2_115, %c1_116, %c0_117, %c0_118] : memref<3x3x512x128xbf16, #tpu.memory_space<vmem>>, vector<1x1x512x128xbf16>
    %121 = vector.shape_cast %120 : vector<1x1x512x128xbf16> to vector<512x128xbf16>
    %cst_119 = arith.constant dense<0.000000e+00> : vector<32x128xf32>
    %122 = tpu.matmul %115, %121, %cst_119 {dimension_numbers = #tpu.dot_dimension_numbers<[1], [0], [0], [1], [0, 0, 1, 1], [], []>} : vector<32x512xbf16>, vector<512x128xbf16>, vector<32x128xf32> -> vector<32x128xf32>
    %123 = arith.addf %109, %122 : vector<32x128xf32>
    %c2_120 = arith.constant 2 : index
    %c2_121 = arith.constant 2 : index
    %c0_122 = arith.constant 0 : index
    %c0_123 = arith.constant 0 : index
    %124 = vector.load %arg3[%c2_120, %c2_121, %c0_122, %c0_123] : memref<3x3x512x128xbf16, #tpu.memory_space<vmem>>, vector<1x1x512x128xbf16>
    %125 = vector.shape_cast %124 : vector<1x1x512x128xbf16> to vector<512x128xbf16>
    %cst_124 = arith.constant dense<0.000000e+00> : vector<32x128xf32>
    %126 = tpu.matmul %115, %125, %cst_124 {dimension_numbers = #tpu.dot_dimension_numbers<[1], [0], [0], [1], [0, 0, 1, 1], [], []>} : vector<32x512xbf16>, vector<512x128xbf16>, vector<32x128xf32> -> vector<32x128xf32>
    %127 = arith.addf %113, %126 : vector<32x128xf32>
    %128 = vector.shape_cast %119 : vector<32x128xf32> to vector<2x16x128xf32>
    %129 = vector.extract_strided_slice %128 {offsets = [0, 0, 0], sizes = [2, 8, 128], strides = [1, 1, 1]} : vector<2x16x128xf32> to vector<2x8x128xf32>
    %130 = vector.shape_cast %123 : vector<32x128xf32> to vector<2x16x128xf32>
    %131 = vector.extract_strided_slice %130 {offsets = [0, 1, 0], sizes = [2, 8, 128], strides = [1, 1, 1]} : vector<2x16x128xf32> to vector<2x8x128xf32>
    %132 = arith.addf %129, %131 : vector<2x8x128xf32>
    %133 = vector.shape_cast %127 : vector<32x128xf32> to vector<2x16x128xf32>
    %134 = vector.extract_strided_slice %133 {offsets = [0, 2, 0], sizes = [2, 8, 128], strides = [1, 1, 1]} : vector<2x16x128xf32> to vector<2x8x128xf32>
    %135 = arith.addf %132, %134 : vector<2x8x128xf32>
    %c0_125 = arith.constant 0 : index
    %c0_126 = arith.constant 0 : index
    %136 = vector.load %arg4[%c0_125, %c0_126] : memref<1x128xf32, #tpu.memory_space<vmem>>, vector<1x128xf32>
    %137 = vector.shape_cast %136 : vector<1x128xf32> to vector<1x1x128xf32>
    %138 = vector.broadcast %137 : vector<1x1x128xf32> to vector<2x8x128xf32>
    %139 = arith.addf %135, %138 : vector<2x8x128xf32>
    %cst_127 = arith.constant 0.000000e+00 : f32
    %140 = vector.broadcast %cst_127 : f32 to vector<2x8x128xf32>
    %141 = arith.cmpf oge, %139, %140 : vector<2x8x128xf32>
    %cst_128 = arith.constant 2.000000e-01 : f32
    %142 = vector.broadcast %cst_128 : f32 to vector<2x8x128xf32>
    %143 = arith.mulf %142, %139 : vector<2x8x128xf32>
    %144 = arith.select %141, %139, %143 : vector<2x8x128xi1>, vector<2x8x128xf32>
    %c0_129 = arith.constant 0 : index
    %c6_130 = arith.constant 6 : index
    %c0_131 = arith.constant 0 : index
    %c0_132 = arith.constant 0 : index
    %145 = vector.load %arg5[%c0_129, %c6_130, %c0_131, %c0_132] : memref<1x9x16x512xbf16, #tpu.memory_space<vmem>>, vector<1x3x16x512xbf16>
    %146 = vector.shape_cast %145 : vector<1x3x16x512xbf16> to vector<3x16x512xbf16>
    %147 = vector.extract_strided_slice %146 {offsets = [0, 0, 0], sizes = [2, 16, 512], strides = [1, 1, 1]} : vector<3x16x512xbf16> to vector<2x16x512xbf16>
    %148 = vector.shape_cast %147 : vector<2x16x512xbf16> to vector<32x512xbf16>
    %c0_133 = arith.constant 0 : index
    %c0_134 = arith.constant 0 : index
    %c0_135 = arith.constant 0 : index
    %c0_136 = arith.constant 0 : index
    %149 = vector.load %arg6[%c0_133, %c0_134, %c0_135, %c0_136] : memref<2x2x512x128xbf16, #tpu.memory_space<vmem>>, vector<1x1x512x128xbf16>
    %150 = vector.shape_cast %149 : vector<1x1x512x128xbf16> to vector<512x128xbf16>
    %cst_137 = arith.constant dense<0.000000e+00> : vector<32x128xf32>
    %151 = tpu.matmul %148, %150, %cst_137 {dimension_numbers = #tpu.dot_dimension_numbers<[1], [0], [0], [1], [0, 0, 1, 1], [], []>} : vector<32x512xbf16>, vector<512x128xbf16>, vector<32x128xf32> -> vector<32x128xf32>
    %c0_138 = arith.constant 0 : index
    %c1_139 = arith.constant 1 : index
    %c0_140 = arith.constant 0 : index
    %c0_141 = arith.constant 0 : index
    %152 = vector.load %arg6[%c0_138, %c1_139, %c0_140, %c0_141] : memref<2x2x512x128xbf16, #tpu.memory_space<vmem>>, vector<1x1x512x128xbf16>
    %153 = vector.shape_cast %152 : vector<1x1x512x128xbf16> to vector<512x128xbf16>
    %cst_142 = arith.constant dense<0.000000e+00> : vector<32x128xf32>
    %154 = tpu.matmul %148, %153, %cst_142 {dimension_numbers = #tpu.dot_dimension_numbers<[1], [0], [0], [1], [0, 0, 1, 1], [], []>} : vector<32x512xbf16>, vector<512x128xbf16>, vector<32x128xf32> -> vector<32x128xf32>
    %155 = vector.extract_strided_slice %146 {offsets = [1, 0, 0], sizes = [2, 16, 512], strides = [1, 1, 1]} : vector<3x16x512xbf16> to vector<2x16x512xbf16>
    %156 = vector.shape_cast %155 : vector<2x16x512xbf16> to vector<32x512xbf16>
    %c1_143 = arith.constant 1 : index
    %c0_144 = arith.constant 0 : index
    %c0_145 = arith.constant 0 : index
    %c0_146 = arith.constant 0 : index
    %157 = vector.load %arg6[%c1_143, %c0_144, %c0_145, %c0_146] : memref<2x2x512x128xbf16, #tpu.memory_space<vmem>>, vector<1x1x512x128xbf16>
    %158 = vector.shape_cast %157 : vector<1x1x512x128xbf16> to vector<512x128xbf16>
    %cst_147 = arith.constant dense<0.000000e+00> : vector<32x128xf32>
    %159 = tpu.matmul %156, %158, %cst_147 {dimension_numbers = #tpu.dot_dimension_numbers<[1], [0], [0], [1], [0, 0, 1, 1], [], []>} : vector<32x512xbf16>, vector<512x128xbf16>, vector<32x128xf32> -> vector<32x128xf32>
    %160 = arith.addf %151, %159 : vector<32x128xf32>
    %c1_148 = arith.constant 1 : index
    %c1_149 = arith.constant 1 : index
    %c0_150 = arith.constant 0 : index
    %c0_151 = arith.constant 0 : index
    %161 = vector.load %arg6[%c1_148, %c1_149, %c0_150, %c0_151] : memref<2x2x512x128xbf16, #tpu.memory_space<vmem>>, vector<1x1x512x128xbf16>
    %162 = vector.shape_cast %161 : vector<1x1x512x128xbf16> to vector<512x128xbf16>
    %cst_152 = arith.constant dense<0.000000e+00> : vector<32x128xf32>
    %163 = tpu.matmul %156, %162, %cst_152 {dimension_numbers = #tpu.dot_dimension_numbers<[1], [0], [0], [1], [0, 0, 1, 1], [], []>} : vector<32x512xbf16>, vector<512x128xbf16>, vector<32x128xf32> -> vector<32x128xf32>
    %164 = arith.addf %154, %163 : vector<32x128xf32>
    %165 = vector.shape_cast %160 : vector<32x128xf32> to vector<2x16x128xf32>
    %166 = vector.extract_strided_slice %165 {offsets = [0, 0, 0], sizes = [2, 8, 128], strides = [1, 1, 1]} : vector<2x16x128xf32> to vector<2x8x128xf32>
    %167 = vector.shape_cast %164 : vector<32x128xf32> to vector<2x16x128xf32>
    %168 = vector.extract_strided_slice %167 {offsets = [0, 1, 0], sizes = [2, 8, 128], strides = [1, 1, 1]} : vector<2x16x128xf32> to vector<2x8x128xf32>
    %169 = arith.addf %166, %168 : vector<2x8x128xf32>
    %170 = arith.addf %144, %169 : vector<2x8x128xf32>
    %c0_153 = arith.constant 0 : index
    %c6_154 = arith.constant 6 : index
    %c0_155 = arith.constant 0 : index
    %c0_156 = arith.constant 0 : index
    %171 = vector.load %arg7[%c0_153, %c6_154, %c0_155, %c0_156] : memref<1x8x8x128xf32, #tpu.memory_space<vmem>>, vector<1x2x8x128xf32>
    %172 = vector.shape_cast %171 : vector<1x2x8x128xf32> to vector<2x8x128xf32>
    %173 = vector.shape_cast %170 : vector<2x8x128xf32> to vector<1x2x8x128xf32>
    tpu.vector_store %arg7[%c0_153, %c6_154, %c0_155, %c0_156], %173 {strides = array<i32>} : memref<1x8x8x128xf32, #tpu.memory_space<vmem>>, vector<1x2x8x128xf32>,
    return
  }
  func.func @transform_0(%arg0: i32, %arg1: i32) -> (i32, i32, i32, i32) {
    %c0_i32 = arith.constant 0 : i32
    %c0_i32_0 = arith.constant 0 : i32
    %c0_i32_1 = arith.constant 0 : i32
    %c0_i32_2 = arith.constant 0 : i32
    return %arg1, %c0_i32, %c0_i32_0, %c0_i32_1 : i32, i32, i32, i32
  }
  func.func @transform_1(%arg0: i32, %arg1: i32) -> (i32, i32, i32, i32) {
    %c0_i32 = arith.constant 0 : i32
    %c0_i32_0 = arith.constant 0 : i32
    %c0_i32_1 = arith.constant 0 : i32
    %c0_i32_2 = arith.constant 0 : i32
    return %c0_i32, %c0_i32_0, %c0_i32_1, %arg0 : i32, i32, i32, i32
  }
  func.func @transform_2(%arg0: i32, %arg1: i32) -> (i32, i32) {
    %c0_i32 = arith.constant 0 : i32
    %c0_i32_0 = arith.constant 0 : i32
    return %c0_i32, %arg0 : i32, i32
  }
  func.func @transform_3(%arg0: i32, %arg1: i32) -> (i32, i32, i32, i32) {
    %c0_i32 = arith.constant 0 : i32
    %c0_i32_0 = arith.constant 0 : i32
    %c0_i32_1 = arith.constant 0 : i32
    %c0_i32_2 = arith.constant 0 : i32
    return %arg1, %c0_i32, %c0_i32_0, %c0_i32_1 : i32, i32, i32, i32
  }
  func.func @transform_4(%arg0: i32, %arg1: i32) -> (i32, i32, i32, i32) {
    %c0_i32 = arith.constant 0 : i32
    %c0_i32_0 = arith.constant 0 : i32
    %c0_i32_1 = arith.constant 0 : i32
    %c0_i32_2 = arith.constant 0 : i32
    return %c0_i32, %c0_i32_0, %c0_i32_1, %arg0 : i32, i32, i32, i32
  }
  func.func @transform_5(%arg0: i32, %arg1: i32) -> (i32, i32, i32, i32) {
    %c0_i32 = arith.constant 0 : i32
    %c0_i32_0 = arith.constant 0 : i32
    %c0_i32_1 = arith.constant 0 : i32
    return %arg1, %c0_i32, %c0_i32_0, %arg0 : i32, i32, i32, i32
  }
}

</mosaic_0001>

<bundles_post_ra>
// kernel: discriminator_block.2
= control target key start
LH: loop header
LB: loop body
LE: loop exit
PB: predicated region body
PF: predicated region fallthrough
CT: control target
= control target key end

     0   :  { %s7626_s12 = smov 0   ;;  %s7628_s13 = smov 0   ;;  %s9564_s0 = inlined_call_operand.vmem [shape: bf16[2,18,24,128], index: 0, kind: input, shape index: {}]   ;;  %s9565_s1 = inlined_call_operand.vmem [shape: bf16[3,3,128,128], index: 1, kind: input, shape index: {}]   ;;  %s9566_s2 = inlined_call_operand.vmem [shape: f32[1,128], index: 2, kind: input, shape index: {}]   ;;  %s9567_s3 = inlined_call_operand.vmem [shape: bf16[2,16,16,128], index: 3, kind: output, shape index: {}]  }
   0x1   :  { %s7630_s14 = smov 0  }
   0x2 LB: > { %s22_s15 = sadd.s32 1, %s7600_s13  ;;  %p5131_p0 = scmp.ge.s32.totalorder %s7604_s14, 1  ;;  %s7604_s14 = sphi %s7630_s14, %s13_s14   ;;  %s7600_s13 = sphi %s7628_s13, %s9625_s13   ;;  %s7596_s12 = sphi %s7626_s12, %s9624_s12  }
   0x3   : > { %p23_p1 = scmp.ge.s32.totalorder %s22_s15, 2  ;;  %p168_p2 = scmp.lt.s32.totalorder %s7604_s14, 3 }
   0x5   : > { %s9627_s15 = smov (%p23_p1, %s22_s15), 0  ;;  %p169_p3 = pnand %p5131_p0, %p168_p2 }
   0x7   : > { %172 = sbr.rel (%p169_p3) target bundleno = 1121 (0x461), region = 32 }
   0xc   : > { %v6944_v0 = vld [vmem:[%s9565_s1 + $0xf8] sm:$0xff]  ;;  %v6943_v4 = vld [vmem:[%s9565_s1 + $0xf0] sm:$0xff]  ;;  %v6942_v8 = vld [vmem:[%s9565_s1 + $0xe8] sm:$0xff]  ;;  %p202_p4 = scmp.lt.s32.totalorder %s7596_s12, 1  ;;  %vm1381_vm0 = vcmask 1046528   ;;  %vm1442_vm1 = vcmask 1045504  }
   0xd   : > { %v6920_v1 = vld [vmem:[%s9565_s1 + $0x38] sm:$0xff]  ;;  %404 = vmatpush.bf16.msra.mxu0 %v6944_v0  ;;  %v6919_v5 = vld [vmem:[%s9565_s1 + $0x30] sm:$0xff]  ;;  %v6918_v9 = vld [vmem:[%s9565_s1 + $0x28] sm:$0xff] }
   0xe   : > { %v6952_v2 = vld [vmem:[%s9565_s1 + $0x138] sm:$0xff]  ;;  %517 = vmatpush.bf16.msra.mxu1 %v6920_v1  ;;  %v6951_v6 = vld [vmem:[%s9565_s1 + $0x130] sm:$0xff]  ;;  %v6950_v10 = vld [vmem:[%s9565_s1 + $0x128] sm:$0xff]  ;;  %s9629_s12 = smov (!%p202_p4, %s7596_s12), 1 }
   0xf   : > { %v6928_v3 = vld [vmem:[%s9565_s1 + $0x78] sm:$0xff]  ;;  %625 = vmatpush.bf16.msra.mxu2 %v6952_v2  ;;  %v6927_v7 = vld [vmem:[%s9565_s1 + $0x70] sm:$0xff]  ;;  %v6926_v11 = vld [vmem:[%s9565_s1 + $0x68] sm:$0xff]  ;;  %s7550_s22 = smul.u32 216, %s9629_s12  ;;  %s6910_s9 = sshll.u32 %s9629_s12, 7 }
  0x10   : > { %721 = vmatpush.bf16.msra.mxu3 %v6928_v3  ;;  %v6941_v12 = vld [vmem:[%s9565_s1 + $0xe0] sm:$0xff]  ;;  %v6940_v16 = vld [vmem:[%s9565_s1 + $0xd8] sm:$0xff]  ;;  %v6939_v20 = vld [vmem:[%s9565_s1 + $0xd0] sm:$0xff]  ;;  %s8459_s16 = scalar_lea.vmem %s9567_s3, %s6910_s9 }
  0x11   : > { %405 = vmatpush.bf16.msra.mxu0 %v6943_v4  ;;  %v6917_v13 = vld [vmem:[%s9565_s1 + $0x20] sm:$0xff]  ;;  %v6916_v17 = vld [vmem:[%s9565_s1 + $0x18] sm:$0xff]  ;;  %v6915_v21 = vld [vmem:[%s9565_s1 + $0x10] sm:$0xff]  ;;  %s7744_s6 = scalar_lea.vmem %s9564_s0, %s7550_s22 }
  0x12   : > { %518 = vmatpush.bf16.msra.mxu1 %v6919_v5  ;;  %v6949_v14 = vld [vmem:[%s9565_s1 + $0x120] sm:$0xff]  ;;  %v6948_v18 = vld [vmem:[%s9565_s1 + $0x118] sm:$0xff]  ;;  %v6947_v22 = vld [vmem:[%s9565_s1 + $0x110] sm:$0xff] }
  0x13   : > { %626 = vmatpush.bf16.msra.mxu2 %v6951_v6  ;;  %v6925_v15 = vld [vmem:[%s9565_s1 + $0x60] sm:$0xff]  ;;  %v6924_v19 = vld [vmem:[%s9565_s1 + $0x58] sm:$0xff]  ;;  %v6923_v23 = vld [vmem:[%s9565_s1 + $0x50] sm:$0xff] }
  0x14   : > { %722 = vmatpush.bf16.msra.mxu3 %v6927_v7  ;;  %v6938_v24 = vld [vmem:[%s9565_s1 + $0xc8] sm:$0xff]  ;;  %v6937_v28 = vld [vmem:[%s9565_s1 + $0xc0] sm:$0xff]  ;;  %v6960_v32 = vld [vmem:[%s9565_s1 + $0x178] sm:$0xff] }
  0x15   : > { %406 = vmatpush.bf16.msra.mxu0 %v6942_v8  ;;  %v6914_v25 = vld [vmem:[%s9565_s1 + $0x8] sm:$0xff]  ;;  %v6913_v29 = vld [vmem:[%s9565_s1] sm:$0xff]  ;;  %v6936_v33 = vld [vmem:[%s9565_s1 + $0xb8] sm:$0xff] }
  0x16   : > { %519 = vmatpush.bf16.msra.mxu1 %v6918_v9  ;;  %v6946_v26 = vld [vmem:[%s9565_s1 + $0x108] sm:$0xff]  ;;  %v6945_v30 = vld [vmem:[%s9565_s1 + $0x100] sm:$0xff]  ;;  %v6976_v36 = vld [vmem:[%s9565_s1 + $0x1f8] sm:$0xff] }
  0x17   : > { %627 = vmatpush.bf16.msra.mxu2 %v6950_v10  ;;  %v6922_v27 = vld [vmem:[%s9565_s1 + $0x48] sm:$0xff]  ;;  %v6921_v31 = vld [vmem:[%s9565_s1 + $0x40] sm:$0xff]  ;;  %v6968_v37 = vld [vmem:[%s9565_s1 + $0x1b8] sm:$0xff] }
  0x18   : > { %723 = vmatpush.bf16.msra.mxu3 %v6926_v11  ;;  %v7759_v34 = vld [vmem:[%s7744_s6 + $0xc] sm:$0xff]   ;;  %v7762_v35 = vld [vmem:[%s7744_s6] sm:$0xff]  ;;  %v7793_v44 = vld [vmem:[%s7744_s6 + $0x14] sm:$0xff]  }
  0x19   : > { %407 = vmatpush.bf16.msra.mxu0 %v6941_v12  ;;  %v6959_v38 = vld [vmem:[%s9565_s1 + $0x170] sm:$0xff]  ;;  %v6958_v42 = vld [vmem:[%s9565_s1 + $0x168] sm:$0xff]  ;;  %v6957_v46 = vld [vmem:[%s9565_s1 + $0x160] sm:$0xff] }
  0x1a   : > { %520 = vmatpush.bf16.msra.mxu1 %v6917_v13  ;;  %v6935_v39 = vld [vmem:[%s9565_s1 + $0xb0] sm:$0xff]  ;;  %v6934_v43 = vld [vmem:[%s9565_s1 + $0xa8] sm:$0xff]  ;;  %v6933_v48 = vld [vmem:[%s9565_s1 + $0xa0] sm:$0xff] }
  0x1b   : > { %628 = vmatpush.bf16.msra.mxu2 %v6949_v14  ;;  %v6975_v40 = vld [vmem:[%s9565_s1 + $0x1f0] sm:$0xff]  ;;  %v7796_v45 = vld [vmem:[%s7744_s6 + $0x8] sm:$0xff]   ;;  %v7815_v50 = vld [vmem:[%s7744_s6 + $0x1c] sm:$0xff]  }
  0x1c   : > { %724 = vmatpush.bf16.msra.mxu3 %v6925_v15  ;;  %v6967_v41 = vld [vmem:[%s9565_s1 + $0x1b0] sm:$0xff]  ;;  %v6974_v47 = vld [vmem:[%s9565_s1 + $0x1e8] sm:$0xff]  ;;  %v6956_v52 = vld [vmem:[%s9565_s1 + $0x158] sm:$0xff] }
  0x1d   : > { %408 = vmatpush.bf16.msra.mxu0 %v6940_v16  ;;  %v6966_v49 = vld [vmem:[%s9565_s1 + $0x1a8] sm:$0xff]  ;;  %v7818_v51 = vld [vmem:[%s7744_s6 + $0x10] sm:$0xff]   ;;  %v6973_v53 = vld [vmem:[%s9565_s1 + $0x1e0] sm:$0xff] }
  0x1e   : > { %521 = vmatpush.bf16.msra.mxu1 %v6916_v17  ;;  %v6932_v54 = vld [vmem:[%s9565_s1 + $0x98] sm:$0xff]  ;;  %v6965_v55 = vld [vmem:[%s9565_s1 + $0x1a0] sm:$0xff]  ;;  %v6955_v58 = vld [vmem:[%s9565_s1 + $0x150] sm:$0xff] }
  0x1f   : > { %629 = vmatpush.bf16.msra.mxu2 %v6948_v18  ;;  %v7837_v56 = vld [vmem:[%s7744_s6 + $0x24] sm:$0xff]   ;;  %v7840_v57 = vld [vmem:[%s7744_s6 + $0x18] sm:$0xff]   ;;  %v6931_v60 = vld [vmem:[%s9565_s1 + $0x90] sm:$0xff] }
  0x20   : > { %725 = vmatpush.bf16.msra.mxu3 %v6924_v19  ;;  %v6972_v59 = vld [vmem:[%s9565_s1 + $0x1d8] sm:$0xff]  ;;  %v7859_v62 = vld [vmem:[%s7744_s6 + $0x2c] sm:$0xff]   ;;  %v7862_v63 = vld [vmem:[%s7744_s6 + $0x20] sm:$0xff]  }
  0x21   : > { %409 = vmatpush.bf16.msra.mxu0 %v6939_v20  ;;  %v6964_v61 = vld [vmem:[%s9565_s1 + $0x198] sm:$0xff]  ;;  %v6954_v0 = vld [vmem:[%s9565_s1 + $0x148] sm:$0xff]  ;;  %v6971_v1 = vld [vmem:[%s9565_s1 + $0x1d0] sm:$0xff] }
  0x22   : > { %522 = vmatpush.bf16.msra.mxu1 %v6915_v21  ;;  %v6930_v2 = vld [vmem:[%s9565_s1 + $0x88] sm:$0xff]  ;;  %v6963_v3 = vld [vmem:[%s9565_s1 + $0x190] sm:$0xff]  ;;  %v7884_v5 = vld [vmem:[%s7744_s6 + $0x38] sm:$0xff]  }
  0x23   : > { %630 = vmatpush.bf16.msra.mxu2 %v6947_v22  ;;  %v7881_v4 = vld [vmem:[%s7744_s6 + $0x30] sm:$0xff]   ;;  %v7234_v7 = vunpack.c.l.b16 %v7884_v5  ;;  %v7891_v9 = vld [vmem:[%s7744_s6 + $0x28] sm:$0xff]   ;;  %v6953_v10 = vld [vmem:[%s9565_s1 + $0x140] sm:$0xff] }
  0x24   : > { %726 = vmatpush.bf16.msra.mxu3 %v6923_v23  ;;  %v7231_v6 = vunpack.c.h.b16 %v7881_v4  ;;  %v6970_v11 = vld [vmem:[%s9565_s1 + $0x1c8] sm:$0xff]  ;;  %v6929_v12 = vld [vmem:[%s9565_s1 + $0x80] sm:$0xff]  ;;  %v6984_v17 = vld [vmem:[%s9565_s1 + $0x238] sm:$0xff] }
  0x25   : > { %410 = vmatpush.bf16.msra.mxu0 %v6938_v24  ;;  %v6962_v13 = vld [vmem:[%s9565_s1 + $0x188] sm:$0xff]  ;;  %v7910_v14 = vld [vmem:[%s7744_s6 + $0x3c] sm:$0xff]   ;;  %v7934_v22 = vpack.c.b16 %v7234_v7, %v7234_v7  ;;  %v6983_v23 = vld [vmem:[%s9565_s1 + $0x230] sm:$0xff] }
  0x26   : > { %523 = vmatpush.bf16.msra.mxu1 %v6914_v25  ;;  %v7888_v8 = vpack.c.b16 %v7234_v7, %v7231_v6  ;;  %v6961_v15 = vld [vmem:[%s9565_s1 + $0x180] sm:$0xff]  ;;  %v7018_v19 = vld [vmem:[%s9565_s1 + $0xf8] sm:$0xff]  ;;  %v7017_v25 = vld [vmem:[%s9565_s1 + $0xf0] sm:$0xff] }
  0x27   : > { %631 = vmatpush.bf16.msra.mxu2 %v6946_v26  ;;  %v6969_v16 = vld [vmem:[%s9565_s1 + $0x1c0] sm:$0xff]  ;;  %v7026_v24 = vld [vmem:[%s9565_s1 + $0x138] sm:$0xff] }
  0x28   : > { %727 = vmatpush.bf16.msra.mxu3 %v6922_v27  ;;  %v7926_v18 = vld [vmem:[%s7744_s6 + $0x40] sm:$0xff]   ;;  %v6994_v26 = vld [vmem:[%s9565_s1 + $0x38] sm:$0xff] }
  0x29   : > { %411 = vmatpush.bf16.msra.mxu0 %v6937_v28  ;;  %v7239_v20 = vunpack.c.h.b16 %v7926_v18  ;;  %v7023_v6 = vld [vmem:[%s9565_s1 + $0x120] sm:$0xff] }
  0x2a   : > { %524 = vmatpush.bf16.msra.mxu1 %v6913_v29 }
  0x2b   : > { %632 = vmatpush.bf16.msra.mxu2 %v6945_v30  ;;  %v7932_v21 = vpack.c.b16 %v7239_v20, %v7239_v20  ;;  %v6982_v30 = vld [vmem:[%s9565_s1 + $0x228] sm:$0xff] }
  0x2c   : > { %728 = vmatpush.bf16.msra.mxu3 %v6921_v31  ;;  %412 = vmatmul.bf16.vlgmr.msra.gmra.mxu0 %v7759_v34  ;;  %v7025_v31 = vld [vmem:[%s9565_s1 + $0x130] sm:$0xff] }
  0x2d   : > { %834 = vmatpush.bf16.msrb.mxu0 %v6960_v32  ;;  %525 = vmatmul.bf16.vlgmr.msra.gmra.mxu1 %v7762_v35 }
  0x2e   : > { %930 = vmatpush.bf16.msrb.mxu1 %v6936_v33  ;;  %633 = vmatmul.bf16.vlgmr.msra.gmra.mxu2 %v7759_v34 }
  0x2f   : > { %729 = vmatmul.bf16.vlgmr.msra.gmra.mxu3 %v7762_v35  ;;  %1057 = vmatpush.bf16.msrb.mxu2 %v6968_v37  ;;  %v7016_v37 = vld [vmem:[%s9565_s1 + $0xe8] sm:$0xff] }
  0x30   : > { %1175 = vmatpush.bf16.msrb.mxu3 %v6976_v36 }
  0x31   : > { %835 = vmatpush.bf16.msrb.mxu0 %v6959_v38  ;;  %v6993_v38 = vld [vmem:[%s9565_s1 + $0x30] sm:$0xff] }
  0x32   : > { %931 = vmatpush.bf16.msrb.mxu1 %v6935_v39 }
  0x33   : > { %1058 = vmatpush.bf16.msrb.mxu2 %v6967_v41 }
  0x34   : > { %1176 = vmatpush.bf16.msrb.mxu3 %v6975_v40 }
  0x35   : > { %836 = vmatpush.bf16.msrb.mxu0 %v6958_v42 }
  0x36   : > { %932 = vmatpush.bf16.msrb.mxu1 %v6934_v43 }
  0x37   : > { %1059 = vmatpush.bf16.msrb.mxu2 %v6966_v49 }
  0x38   : > { %1177 = vmatpush.bf16.msrb.mxu3 %v6974_v47  ;;  %v6981_v47 = vld [vmem:[%s9565_s1 + $0x220] sm:$0xff] }
  0x39   : > { %837 = vmatpush.bf16.msrb.mxu0 %v6957_v46 }
  0x3a   : > { %933 = vmatpush.bf16.msrb.mxu1 %v6933_v48  ;;  %v7024_v48 = vld [vmem:[%s9565_s1 + $0x128] sm:$0xff] }
  0x3b   : > { %1060 = vmatpush.bf16.msrb.mxu2 %v6965_v55  ;;  %v7015_v55 = vld [vmem:[%s9565_s1 + $0xe0] sm:$0xff] }
  0x3c   : > { %417 = vmatmul.bf16.gmra.mxu0 %v7793_v44  ;;  %1178 = vmatpush.bf16.msrb.mxu3 %v6973_v53 }
  0x3d   : > { %530 = vmatmul.bf16.gmra.mxu1 %v7796_v45  ;;  %838 = vmatpush.bf16.msrb.mxu0 %v6956_v52 }
  0x3e   : > { %638 = vmatmul.bf16.gmra.mxu2 %v7793_v44  ;;  %934 = vmatpush.bf16.msrb.mxu1 %v6932_v54 }
  0x3f   : > { %734 = vmatmul.bf16.gmra.mxu3 %v7796_v45  ;;  %1061 = vmatpush.bf16.msrb.mxu2 %v6964_v61 }
  0x40   : > { %1179 = vmatpush.bf16.msrb.mxu3 %v6972_v59 }
  0x41   : > { %839 = vmatpush.bf16.msrb.mxu0 %v6955_v58  ;;  %v6992_v58 = vld [vmem:[%s9565_s1 + $0x28] sm:$0xff] }
  0x42   : > { %935 = vmatpush.bf16.msrb.mxu1 %v6931_v60 }
  0x43   : > { %1062 = vmatpush.bf16.msrb.mxu2 %v6963_v3  ;;  %v6980_v3 = vld [vmem:[%s9565_s1 + $0x218] sm:$0xff] }
  0x44   : > { %1180 = vmatpush.bf16.msrb.mxu3 %v6971_v1 }
  0x45   : > { %840 = vmatpush.bf16.msrb.mxu0 %v6954_v0 }
  0x46   : > { %936 = vmatpush.bf16.msrb.mxu1 %v6930_v2 }
  0x47   : > { %1063 = vmatpush.bf16.msrb.mxu2 %v6962_v13  ;;  %v6991_v13 = vld [vmem:[%s9565_s1 + $0x20] sm:$0xff] }
  0x48   : > { %1181 = vmatpush.bf16.msrb.mxu3 %v6970_v11 }
  0x49   : > { %841 = vmatpush.bf16.msrb.mxu0 %v6953_v10 }
  0x4a   : > { %937 = vmatpush.bf16.msrb.mxu1 %v6929_v12  ;;  %v7014_v12 = vld [vmem:[%s9565_s1 + $0xd8] sm:$0xff] }
  0x4b   : > { %1064 = vmatpush.bf16.msrb.mxu2 %v6961_v15 }
  0x4c   : > { %421 = vmatmul.bf16.gmra.mxu0 %v7815_v50  ;;  %1182 = vmatpush.bf16.msrb.mxu3 %v6969_v16 }
  0x4d   : > { %534 = vmatmul.bf16.gmra.mxu1 %v7818_v51  ;;  %1303 = vmatpush.bf16.msra.mxu0 %v6984_v17 }
  0x4e   : > { %643 = vmatmul.bf16.gmra.mxu2 %v7815_v50  ;;  %1732 = vmatpush.bf16.msra.mxu1 %v7018_v19 }
  0x4f   : > { %739 = vmatmul.bf16.gmra.mxu3 %v7818_v51  ;;  %1845 = vmatpush.bf16.msra.mxu2 %v6994_v26 }
  0x50   : > { %1952 = vmatpush.bf16.msra.mxu3 %v7026_v24  ;;  %v6979_v24 = vld [vmem:[%s9565_s1 + $0x210] sm:$0xff] }
  0x51   : > { %1304 = vmatpush.bf16.msra.mxu0 %v6983_v23 }
  0x52   : > { %1733 = vmatpush.bf16.msra.mxu1 %v7017_v25  ;;  %v7022_v25 = vld [vmem:[%s9565_s1 + $0x118] sm:$0xff] }
  0x53   : > { %1846 = vmatpush.bf16.msra.mxu2 %v6993_v38 }
  0x54   : > { %1953 = vmatpush.bf16.msra.mxu3 %v7025_v31  ;;  %v7013_v31 = vld [vmem:[%s9565_s1 + $0xd0] sm:$0xff] }
  0x55   : > { %1305 = vmatpush.bf16.msra.mxu0 %v6982_v30 }
  0x56   : > { %1734 = vmatpush.bf16.msra.mxu1 %v7016_v37 }
  0x57   : > { %1847 = vmatpush.bf16.msra.mxu2 %v6992_v58 }
  0x58   : > { %1954 = vmatpush.bf16.msra.mxu3 %v7024_v48 }
  0x59   : > { %1306 = vmatpush.bf16.msra.mxu0 %v6981_v47 }
  0x5a   : > { %1735 = vmatpush.bf16.msra.mxu1 %v7015_v55 }
  0x5b   : > { %1848 = vmatpush.bf16.msra.mxu2 %v6991_v13  ;;  %v6988_v13 = vld [vmem:[%s9565_s1 + $0x8] sm:$0xff] }
  0x5c   : > { %425 = vmatmul.bf16.gmra.mxu0 %v7837_v56  ;;  %1955 = vmatpush.bf16.msra.mxu3 %v7023_v6  ;;  %v7020_v6 = vld [vmem:[%s9565_s1 + $0x108] sm:$0xff] }
  0x5d   : > { %538 = vmatmul.bf16.gmra.mxu1 %v7840_v57  ;;  %1307 = vmatpush.bf16.msra.mxu0 %v6980_v3  ;;  %v6977_v3 = vld [vmem:[%s9565_s1 + $0x200] sm:$0xff] }
  0x5e   : > { %648 = vmatmul.bf16.gmra.mxu2 %v7837_v56  ;;  %1736 = vmatpush.bf16.msra.mxu1 %v7014_v12  ;;  %v7011_v12 = vld [vmem:[%s9565_s1 + $0xc0] sm:$0xff] }
  0x5f   : > { %744 = vmatmul.bf16.gmra.mxu3 %v7840_v57 }
  0x60   : > { %1956 = vmatpush.bf16.msra.mxu3 %v7022_v25 }
  0x61   : > { %1308 = vmatpush.bf16.msra.mxu0 %v6979_v24 }
  0x62   : > { %1737 = vmatpush.bf16.msra.mxu1 %v7013_v31 }
  0x6c   : > { %430 = vmatmul.bf16.gmra.mxu0 %v7859_v62 }
  0x6d   : > { %543 = vmatmul.bf16.gmra.mxu1 %v7862_v63 }
  0x6e   : > { %653 = vmatmul.bf16.gmra.mxu2 %v7859_v62 }
  0x6f   : > { %749 = vmatmul.bf16.gmra.mxu3 %v7862_v63 }
  0x7c   : > { %434 = vmatmul.bf16.gmra.mxu0 %v7888_v8 }
  0x7d   : > { %547 = vmatmul.bf16.gmra.mxu1 %v7891_v9 }
  0x7e   : > { %658 = vmatmul.bf16.gmra.mxu2 %v7888_v8 }
  0x7f   : > { %754 = vmatmul.bf16.gmra.mxu3 %v7891_v9 }
  0x8c   : > { %438 = vmatmul.bf16.gmra.mxu0 %v7910_v14 }
  0x8d   : > { %551 = vmatmul.bf16.gmra.mxu1 %v7881_v4 }
  0x8e   : > { %663 = vmatmul.bf16.gmra.mxu2 %v7910_v14 }
  0x8f   : > { %759 = vmatmul.bf16.gmra.mxu3 %v7881_v4 }
  0x9c   : > { %443 = vmatmul.bf16.gmra.mxu0 %v7932_v21 }
  0x9d   : > { %556 = vmatmul.bf16.gmra.mxu1 %v7934_v22 }
  0x9e   : > { %668 = vmatmul.bf16.gmra.mxu2 %v7932_v21 }
  0x9f   : > { %764 = vmatmul.bf16.gmra.mxu3 %v7934_v22 }
  0xa9   : > { %v413_v27 = vpop.f32.mrf.mxu0 }
  0xaa   : > { %v526_v28 = vpop.f32.mrf.mxu1 }
  0xab   : > { %v7952_v29 = vadd.f32 %v526_v28, %v413_v27 }
  0xac   : > { %842 = vmatmul.bf16.vlgmr.msrb.gmra.mxu0 %v7759_v34 }
  0xad   : > { %938 = vmatmul.bf16.vlgmr.msrb.gmra.mxu1 %v7762_v35 }
  0xae   : > { %1065 = vmatmul.bf16.vlgmr.msrb.gmra.mxu2 %v7840_v57 }
  0xaf   : > { %1183 = vmatmul.bf16.vlgmr.msrb.gmra.mxu3 %v7840_v57 }
  0xb1   : > { %v634_v32 = vpop.f32.mrf.mxu2  ;;  %v415_v34 = vpop.f32.mrf.mxu0 }
  0xb2   : > { %v730_v33 = vpop.f32.mrf.mxu3  ;;  %v528_v35 = vpop.f32.mrf.mxu1 }
  0xb3   : > { %v7964_v36 = vadd.f32 %v730_v33, %v634_v32  ;;  %v7972_v39 = vadd.f32 %v528_v35, %v415_v34  ;;  %v6990_v32 = vld [vmem:[%s9565_s1 + $0x18] sm:$0xff] }
  0xb4   : > { %1849 = vmatpush.bf16.msra.mxu2 %v6990_v32 }
  0xb9   : > { %v636_v40 = vpop.f32.mrf.mxu2  ;;  %v418_v43 = vpop.f32.mrf.mxu0 }
  0xba   : > { %v732_v41 = vpop.f32.mrf.mxu3  ;;  %v531_v46 = vpop.f32.mrf.mxu1  ;;  %v7021_v43 = vld [vmem:[%s9565_s1 + $0x110] sm:$0xff] }
  0xbb   : > { %v7974_v42 = vadd.f32 %v732_v41, %v636_v40  ;;  %v6978_v41 = vld [vmem:[%s9565_s1 + $0x208] sm:$0xff]  ;;  %1957 = vmatpush.bf16.msra.mxu3 %v7021_v43 }
  0xbc   : > { %847 = vmatmul.bf16.gmra.mxu0 %v7793_v44 }
  0xbd   : > { %943 = vmatmul.bf16.gmra.mxu1 %v7796_v45  ;;  %1309 = vmatpush.bf16.msra.mxu0 %v6978_v41  ;;  %v7034_v41 = vld [vmem:[%s9565_s1 + $0x178] sm:$0xff] }
  0xbe   : > { %1070 = vmatmul.bf16.gmra.mxu2 %v7862_v63 }
  0xbf   : > { %1188 = vmatmul.bf16.gmra.mxu3 %v7862_v63 }
  0xc0   : > { %1958 = vmatpush.bf16.msra.mxu3 %v7020_v6  ;;  %v7033_v6 = vld [vmem:[%s9565_s1 + $0x170] sm:$0xff] }
  0xc1   : > { %v639_v49 = vpop.f32.mrf.mxu2  ;;  %v419_v44 = vpop.f32.mrf.mxu0  ;;  %1310 = vmatpush.bf16.msra.mxu0 %v6977_v3 }
  0xc2   : > { %v735_v52 = vpop.f32.mrf.mxu3  ;;  %v532_v45 = vpop.f32.mrf.mxu1 }
  0xc3   : > { %v7986_v53 = vadd.f32 %v735_v52, %v639_v49  ;;  %v7988_v54 = vadd.f32 %v532_v45, %v419_v44  ;;  %v7012_v44 = vld [vmem:[%s9565_s1 + $0xc8] sm:$0xff]  ;;  %v6989_v45 = vld [vmem:[%s9565_s1 + $0x10] sm:$0xff] }
  0xc4   : > { %1738 = vmatpush.bf16.msra.mxu1 %v7012_v44  ;;  %1850 = vmatpush.bf16.msra.mxu2 %v6989_v45 }
  0xc8   : > { %1739 = vmatpush.bf16.msra.mxu1 %v7011_v12  ;;  %1851 = vmatpush.bf16.msra.mxu2 %v6988_v13  ;;  %v8137_v13 = vld [vmem:[%s7744_s6 + $0x48] sm:$0xff]  }
  0xc9   : > { %v641_v59 = vpop.f32.mrf.mxu2  ;;  %v422_v0 = vpop.f32.mrf.mxu0 }
  0xca   : > { %v737_v60 = vpop.f32.mrf.mxu3  ;;  %v535_v1 = vpop.f32.mrf.mxu1 }
  0xcb   : > { %v7996_v61 = vadd.f32 %v737_v60, %v641_v59  ;;  %v7998_v2 = vadd.f32 %v535_v1, %v422_v0 }
  0xcc   : > { %852 = vmatmul.bf16.gmra.mxu0 %v7815_v50  ;;  %2160 = vmatpush.bf16.msrb.mxu1 %v7034_v41 }
  0xcd   : > { %948 = vmatmul.bf16.gmra.mxu1 %v7818_v51 }
  0xce   : > { %1074 = vmatmul.bf16.gmra.mxu2 %v7891_v9 }
  0xcf   : > { %1193 = vmatmul.bf16.gmra.mxu3 %v7891_v9 }
  0xd0   : > { %2161 = vmatpush.bf16.msrb.mxu1 %v7033_v6 }
  0xd1   : > { %v644_v7 = vpop.f32.mrf.mxu2  ;;  %v424_v50 = vpop.f32.mrf.mxu0 }
  0xd2   : > { %v740_v10 = vpop.f32.mrf.mxu3  ;;  %v537_v51 = vpop.f32.mrf.mxu1 }
  0xd3   : > { %v8010_v11 = vadd.f32 %v740_v10, %v644_v7 }
  0xd9   : > { %v646_v15 = vpop.f32.mrf.mxu2  ;;  %v426_v19 = vpop.f32.mrf.mxu0 }
  0xda   : > { %v742_v16 = vpop.f32.mrf.mxu3  ;;  %v539_v20 = vpop.f32.mrf.mxu1 }
  0xdb   : > { %v8018_v17 = vadd.f32 %v742_v16, %v646_v15  ;;  %v8020_v23 = vadd.f32 %v539_v20, %v426_v19  ;;  %v6987_v19 = vld [vmem:[%s9565_s1] sm:$0xff] }
  0xdc   : > { %857 = vmatmul.bf16.gmra.mxu0 %v7837_v56  ;;  %v7019_v20 = vld [vmem:[%s9565_s1 + $0x100] sm:$0xff]  ;;  %1852 = vmatpush.bf16.msra.mxu2 %v6987_v19  ;;  %v7000_v19 = vld [vmem:[%s9565_s1 + $0x68] sm:$0xff] }
  0xdd   : > { %953 = vmatmul.bf16.gmra.mxu1 %v7840_v57  ;;  %1959 = vmatpush.bf16.msra.mxu3 %v7019_v20  ;;  %v7041_v20 = vld [vmem:[%s9565_s1 + $0x1b0] sm:$0xff] }
  0xde   : > { %1078 = vmatmul.bf16.gmra.mxu2 %v7881_v4 }
  0xdf   : > { %1198 = vmatmul.bf16.gmra.mxu3 %v7881_v4 }
  0xe1   : > { %v649_v26 = vpop.f32.mrf.mxu2  ;;  %v428_v56 = vpop.f32.mrf.mxu0 }
  0xe2   : > { %v745_v27 = vpop.f32.mrf.mxu3  ;;  %v541_v30 = vpop.f32.mrf.mxu1 }
  0xe3   : > { %v8032_v28 = vadd.f32 %v745_v27, %v649_v26  ;;  %v8040_v33 = vadd.f32 %v541_v30, %v428_v56  ;;  %v8095_v27 = vld [vmem:[%s7744_s6 + $0x48] sm:$0xff]  ;;  %v7002_v30 = vld [vmem:[%s9565_s1 + $0x78] sm:$0xff] }
  0xe4   : > { %2048 = vmatpush.bf16.msrb.mxu0 %v7002_v30 }
  0xe9   : > { %v651_v34 = vpop.f32.mrf.mxu2  ;;  %v431_v38 = vpop.f32.mrf.mxu0 }
  0xea   : > { %v747_v35 = vpop.f32.mrf.mxu3  ;;  %v544_v40 = vpop.f32.mrf.mxu1 }
  0xeb   : > { %v8042_v37 = vadd.f32 %v747_v35, %v651_v34 }
  0xec   : > { %862 = vmatmul.bf16.gmra.mxu0 %v7859_v62 }
  0xed   : > { %958 = vmatmul.bf16.gmra.mxu1 %v7862_v63 }
  0xee   : > { %1083 = vmatmul.bf16.gmra.mxu2 %v7884_v5 }
  0xef   : > { %1203 = vmatmul.bf16.gmra.mxu3 %v7884_v5 }
  0xf1   : > { %v654_v46 = vpop.f32.mrf.mxu2  ;;  %v432_v62 = vpop.f32.mrf.mxu0 }
  0xf2   : > { %v750_v47 = vpop.f32.mrf.mxu3  ;;  %v545_v49 = vpop.f32.mrf.mxu1 }
  0xf3   : > { %v8054_v48 = vadd.f32 %v750_v47, %v654_v46  ;;  %v8056_v52 = vadd.f32 %v545_v49, %v432_v62 }
  0xf9   : > { %v656_v55 = vpop.f32.mrf.mxu2  ;;  %v435_v60 = vpop.f32.mrf.mxu0 }
  0xfa   : > { %v752_v58 = vpop.f32.mrf.mxu3  ;;  %v548_v0 = vpop.f32.mrf.mxu1 }
  0xfb   : > { %v8064_v59 = vadd.f32 %v752_v58, %v656_v55  ;;  %v8066_v1 = vadd.f32 %v548_v0, %v435_v60  ;;  %v7001_v55 = vld [vmem:[%s9565_s1 + $0x70] sm:$0xff]  ;;  %v7042_v58 = vld [vmem:[%s9565_s1 + $0x1b8] sm:$0xff] }
  0xfc   : > { %867 = vmatmul.bf16.gmra.mxu0 %v7888_v8  ;;  %2382 = vmatpush.bf16.msrb.mxu3 %v7042_v58 }
  0xfd   : > { %963 = vmatmul.bf16.gmra.mxu1 %v7891_v9  ;;  %2049 = vmatpush.bf16.msrb.mxu0 %v7001_v55 }
  0xfe   : > { %1087 = vmatmul.bf16.gmra.mxu2 %v7926_v18 }
  0xff   : > { %1208 = vmatmul.bf16.gmra.mxu3 %v7926_v18 }
 0x100   : > { %2383 = vmatpush.bf16.msrb.mxu3 %v7041_v20 }
 0x101   : > { %v659_v7 = vpop.f32.mrf.mxu2  ;;  %v437_v50 = vpop.f32.mrf.mxu0  ;;  %2050 = vmatpush.bf16.msrb.mxu0 %v7000_v19  ;;  %v7008_v19 = vld [vmem:[%s9565_s1 + $0xa8] sm:$0xff] }
 0x102   : > { %v755_v10 = vpop.f32.mrf.mxu3  ;;  %v550_v51 = vpop.f32.mrf.mxu1 }
 0x103   : > { %v8078_v8 = vadd.f32 %v755_v10, %v659_v7  ;;  %v7010_v7 = vld [vmem:[%s9565_s1 + $0xb8] sm:$0xff] }
 0x104   : > { %2256 = vmatpush.bf16.msrb.mxu2 %v7010_v7 }
 0x109   : > { %v661_v15 = vpop.f32.mrf.mxu2  ;;  %v439_v25 = vpop.f32.mrf.mxu0 }
 0x10a   : > { %v757_v16 = vpop.f32.mrf.mxu3  ;;  %v552_v26 = vpop.f32.mrf.mxu1 }
 0x10b   : > { %v8092_v24 = vadd.f32 %v757_v16, %v661_v15  ;;  %v8097_v56 = vadd.f32 %v552_v26, %v439_v25  ;;  %v8140_v15 = vld [vmem:[%s7744_s6 + $0x3c] sm:$0xff] }
 0x10c   : > { %872 = vmatmul.bf16.gmra.mxu0 %v7910_v14  ;;  %v242_v14 = vld [vmem:[%s7744_s6 + $0x50] sm:$0xf] }
 0x10d   : > { %968 = vmatmul.bf16.gmra.mxu1 %v7881_v4  ;;  %v1000_v43 = vunpack.c.l.b16 %v242_v14  ;;  %v7009_v14 = vld [vmem:[%s9565_s1 + $0xb0] sm:$0xff] }
 0x10e   : > { %1091 = vmatmul.bf16.gmra.mxu2 %v8095_v27 }
 0x10f   : > { %1213 = vmatmul.bf16.gmra.mxu3 %v8095_v27  ;;  %v8116_v45 = vpack.c.b16 %v1000_v43, %v1000_v43  ;;  %2257 = vmatpush.bf16.msrb.mxu2 %v7009_v14  ;;  %v8205_v14 = vld [vmem:[%s7744_s6 + $0x4c] sm:$0xff]  }
 0x111   : > { %v664_v31 = vpop.f32.mrf.mxu2  ;;  %v441_v35 = vpop.f32.mrf.mxu0 }
 0x112   : > { %v760_v32 = vpop.f32.mrf.mxu3  ;;  %v554_v38 = vpop.f32.mrf.mxu1 }
 0x113   : > { %v8106_v34 = vadd.f32 %v760_v32, %v664_v31  ;;  %v8108_v40 = vadd.f32 %v554_v38, %v441_v35  ;;  %v7032_v38 = vld [vmem:[%s9565_s1 + $0x168] sm:$0xff]  ;;  %2258 = vmatpush.bf16.msrb.mxu2 %v7008_v19 }
 0x114   : > { %2162 = vmatpush.bf16.msrb.mxu1 %v7032_v38  ;;  %v8202_v38 = vld [vmem:[%s7744_s6 + $0x58] sm:$0xff]  }
 0x119   : > { %v666_v46 = vpop.f32.mrf.mxu2  ;;  %v444_v49 = vpop.f32.mrf.mxu0 }
 0x11a   : > { %v762_v47 = vpop.f32.mrf.mxu3  ;;  %v557_v44 = vpop.f32.mrf.mxu1  ;;  %v8167_v49 = vld [vmem:[%s7744_s6 + $0x50] sm:$0xff]  }
 0x11b   : > { %v8114_v62 = vadd.f32 %v762_v47, %v666_v46  ;;  %v8170_v44 = vld [vmem:[%s7744_s6 + $0x44] sm:$0xff]  }
 0x11c   : > { %877 = vmatmul.bf16.gmra.mxu0 %v7932_v21 }
 0x11d   : > { %973 = vmatmul.bf16.gmra.mxu1 %v7934_v22 }
 0x11e   : > { %1096 = vmatmul.bf16.gmra.mxu2 %v8116_v45 }
 0x11f   : > { %1218 = vmatmul.bf16.gmra.mxu3 %v8116_v45 }
 0x121   : > { %v669_v60 = vpop.f32.mrf.mxu2  ;;  %v445_v22 = vpop.f32.mrf.mxu0 }
 0x122   : > { %v765_v0 = vpop.f32.mrf.mxu3  ;;  %v558_v3 = vpop.f32.mrf.mxu1  ;;  %v7040_v22 = vld [vmem:[%s9565_s1 + $0x1a8] sm:$0xff] }
 0x123   : > { %v8128_v21 = vadd.f32 %v765_v0, %v669_v60  ;;  %2384 = vmatpush.bf16.msrb.mxu3 %v7040_v22 }
 0x129   : > { %v671_v10 = vpop.f32.mrf.mxu2  ;;  %v843_v51 = vpop.f32.mrf.mxu0 }
 0x12a   : > { %v767_v50 = vpop.f32.mrf.mxu3  ;;  %v939_v12 = vpop.f32.mrf.mxu1 }
 0x12b   : > { %v8142_v16 = vadd.f32 %v939_v12, %v843_v51  ;;  %v7031_v12 = vld [vmem:[%s9565_s1 + $0x160] sm:$0xff] }
 0x12c   : > { %1311 = vmatmul.bf16.vlgmr.msra.gmra.mxu0 %v7840_v57  ;;  %2163 = vmatpush.bf16.msrb.mxu1 %v7031_v12  ;;  %v8237_v12 = vld [vmem:[%s7744_s6 + $0x54] sm:$0xff]  }
 0x12d   : > { %1740 = vmatmul.bf16.vlgmr.msra.gmra.mxu1 %v8137_v13 }
 0x12e   : > { %1853 = vmatmul.bf16.vlgmr.msra.gmra.mxu2 %v8140_v15 }
 0x12f   : > { %1960 = vmatmul.bf16.vlgmr.msra.gmra.mxu3 %v8137_v13 }
 0x131   : > { %v1066_v25 = vpop.f32.mrf.mxu2  ;;  %v845_v31 = vpop.f32.mrf.mxu0 }
 0x132   : > { %v1184_v26 = vpop.f32.mrf.mxu3  ;;  %v1100_v57 = vadd.f32 %v1066_v25, %v7952_v29  ;;  %v941_v32 = vpop.f32.mrf.mxu1 }
 0x133   : > { %v1223_v30 = vadd.f32 %v1184_v26, %v7964_v36  ;;  %v8156_v35 = vadd.f32 %v941_v32, %v845_v31 }
 0x135   : > { %v1382_v58 = vrot.slane %v1223_v30, 1 }
 0x139   : > { %v1068_v41 = vpop.f32.mrf.mxu2  ;;  %v848_v46 = vpop.f32.mrf.mxu0 }
 0x13a   : > { %v1186_v43 = vpop.f32.mrf.mxu3  ;;  %v1101_v29 = vadd.f32 %v1068_v41, %v7972_v39  ;;  %v944_v47 = vpop.f32.mrf.mxu1 }
 0x13b   : > { %v1224_v36 = vadd.f32 %v1186_v43, %v7974_v42  ;;  %v8172_v55 = vadd.f32 %v944_v47, %v848_v46  ;;  %v6999_v42 = vld [vmem:[%s9565_s1 + $0x60] sm:$0xff] }
 0x13c   : > { %1316 = vmatmul.bf16.gmra.mxu0 %v7862_v63 }
 0x13d   : > { %v1383_v60 = vrot.slane %v1224_v36, 1  ;;  %1745 = vmatmul.bf16.gmra.mxu1 %v8167_v49  ;;  %2051 = vmatpush.bf16.msrb.mxu0 %v6999_v42 }
 0x13e   : > { %1858 = vmatmul.bf16.gmra.mxu2 %v8170_v44 }
 0x13f   : > { %v1384_v0 = vsel %vm1381_vm0, %v1382_v58, %v1383_v60  ;;  %1965 = vmatmul.bf16.gmra.mxu3 %v8167_v49 }
 0x140   : > { %v8179_v39 = vadd.f32 %v1384_v0, %v1100_v57 }
 0x141   : > { %v1071_v3 = vpop.f32.mrf.mxu2  ;;  %v850_v7 = vpop.f32.mrf.mxu0 }
 0x142   : > { %v1189_v63 = vpop.f32.mrf.mxu3  ;;  %v946_v10 = vpop.f32.mrf.mxu1  ;;  %v7030_v3 = vld [vmem:[%s9565_s1 + $0x158] sm:$0xff] }
 0x143   : > { %v1225_v6 = vadd.f32 %v1189_v63, %v7986_v53  ;;  %v8188_v50 = vadd.f32 %v946_v10, %v850_v7  ;;  %2164 = vmatpush.bf16.msrb.mxu1 %v7030_v3 }
 0x145   : > { %v1385_v51 = vrot.slane %v1225_v6, 1 }
 0x147   : > { %v1386_v20 = vsel %vm1381_vm0, %v1383_v60, %v1385_v51  ;;  %v8234_v51 = vld [vmem:[%s7744_s6 + $0x60] sm:$0xff]  }
 0x148   : > { %v8197_v53 = vadd.f32 %v1386_v20, %v1101_v29 }
 0x149   : > { %v1072_v25 = vpop.f32.mrf.mxu2  ;;  %v853_v31 = vpop.f32.mrf.mxu0 }
 0x14a   : > { %v1191_v26 = vpop.f32.mrf.mxu3  ;;  %v1102_v57 = vadd.f32 %v1072_v25, %v7988_v54  ;;  %v949_v32 = vpop.f32.mrf.mxu1  ;;  %v6998_v54 = vld [vmem:[%s9565_s1 + $0x58] sm:$0xff] }
 0x14b   : > { %v1226_v30 = vadd.f32 %v1191_v26, %v7996_v61  ;;  %v8207_v41 = vadd.f32 %v949_v32, %v853_v31  ;;  %v7039_v61 = vld [vmem:[%s9565_s1 + $0x1a0] sm:$0xff]  ;;  %2052 = vmatpush.bf16.msrb.mxu0 %v6998_v54  ;;  %v7038_v26 = vld [vmem:[%s9565_s1 + $0x198] sm:$0xff] }
 0x14c   : > { %1321 = vmatmul.bf16.gmra.mxu0 %v7891_v9  ;;  %2385 = vmatpush.bf16.msrb.mxu3 %v7039_v61 }
 0x14d   : > { %1749 = vmatmul.bf16.gmra.mxu1 %v8202_v38  ;;  %v1387_v60 = vrot.slane %v1226_v30, 1 }
 0x14e   : > { %1862 = vmatmul.bf16.gmra.mxu2 %v8205_v14 }
 0x14f   : > { %1970 = vmatmul.bf16.gmra.mxu3 %v8202_v38 }
 0x150   : > { %2386 = vmatpush.bf16.msrb.mxu3 %v7038_v26 }
 0x151   : > { %v1075_v43 = vpop.f32.mrf.mxu2  ;;  %v855_v46 = vpop.f32.mrf.mxu0 }
 0x152   : > { %v1194_v29 = vpop.f32.mrf.mxu3  ;;  %v1103_v9 = vadd.f32 %v1075_v43, %v7998_v2  ;;  %v951_v47 = vpop.f32.mrf.mxu1  ;;  %v7007_v2 = vld [vmem:[%s9565_s1 + $0xa0] sm:$0xff] }
 0x153   : > { %v1227_v36 = vadd.f32 %v1194_v29, %v8010_v11  ;;  %v8221_v58 = vadd.f32 %v951_v47, %v855_v46  ;;  %2259 = vmatpush.bf16.msrb.mxu2 %v7007_v2  ;;  %v7029_v29 = vld [vmem:[%s9565_s1 + $0x150] sm:$0xff] }
 0x154   : > { %2165 = vmatpush.bf16.msrb.mxu1 %v7029_v29 }
 0x155   : > { %v1388_v0 = vrot.slane %v1227_v36, 1 }
 0x157   : > { %v1389_v42 = vsel %vm1381_vm0, %v1387_v60, %v1388_v0 }
 0x158   : > { %v8224_v22 = vadd.f32 %v1389_v42, %v1102_v57  ;;  %v8270_v42 = vld [vmem:[%s7744_s6 + $0x5c] sm:$0xff]  }
 0x159   : > { %v1077_v11 = vpop.f32.mrf.mxu2  ;;  %v858_v7 = vpop.f32.mrf.mxu0 }
 0x15a   : > { %v1196_v63 = vpop.f32.mrf.mxu3  ;;  %v954_v10 = vpop.f32.mrf.mxu1 }
 0x15b   : > { %v1228_v6 = vadd.f32 %v1196_v63, %v8018_v17  ;;  %v8239_v19 = vadd.f32 %v954_v10, %v858_v7  ;;  %v6997_v17 = vld [vmem:[%s9565_s1 + $0x50] sm:$0xff] }
 0x15c   : > { %1326 = vmatmul.bf16.gmra.mxu0 %v7881_v4 }
 0x15d   : > { %v1390_v20 = vrot.slane %v1228_v6, 1  ;;  %1753 = vmatmul.bf16.gmra.mxu1 %v8234_v51  ;;  %2053 = vmatpush.bf16.msrb.mxu0 %v6997_v17  ;;  %v7037_v6 = vld [vmem:[%s9565_s1 + $0x190] sm:$0xff] }
 0x15e   : > { %1866 = vmatmul.bf16.gmra.mxu2 %v8237_v12  ;;  %2387 = vmatpush.bf16.msrb.mxu3 %v7037_v6 }
 0x15f   : > { %v1391_v25 = vsel %vm1381_vm0, %v1388_v0, %v1390_v20  ;;  %1975 = vmatmul.bf16.gmra.mxu3 %v8234_v51  ;;  %v8267_v0 = vld [vmem:[%s7744_s6 + $0x68] sm:$0xff]  }
 0x160   : > { %v8252_v57 = vadd.f32 %v1391_v25, %v1103_v9  ;;  %v7006_v9 = vld [vmem:[%s9565_s1 + $0x98] sm:$0xff] }
 0x161   : > { %v1079_v4 = vpop.f32.mrf.mxu2  ;;  %v860_v54 = vpop.f32.mrf.mxu0  ;;  %2260 = vmatpush.bf16.msrb.mxu2 %v7006_v9 }
 0x162   : > { %v1199_v30 = vpop.f32.mrf.mxu3  ;;  %v1104_v31 = vadd.f32 %v1079_v4, %v8020_v23  ;;  %v956_v61 = vpop.f32.mrf.mxu1  ;;  %v7028_v4 = vld [vmem:[%s9565_s1 + $0x148] sm:$0xff] }
 0x163   : > { %v1229_v32 = vadd.f32 %v1199_v30, %v8032_v28  ;;  %v8256_v43 = vadd.f32 %v956_v61, %v860_v54  ;;  %v7005_v30 = vld [vmem:[%s9565_s1 + $0x90] sm:$0xff]  ;;  %2166 = vmatpush.bf16.msrb.mxu1 %v7028_v4  ;;  %v7035_v4 = vld [vmem:[%s9565_s1 + $0x180] sm:$0xff] }
 0x165   : > { %v1392_v2 = vrot.slane %v1229_v32, 1  ;;  %2261 = vmatpush.bf16.msrb.mxu2 %v7005_v30 }
 0x169   : > { %v1081_v36 = vpop.f32.mrf.mxu2  ;;  %v863_v47 = vpop.f32.mrf.mxu0 }
 0x16a   : > { %v1201_v46 = vpop.f32.mrf.mxu3  ;;  %v1105_v23 = vadd.f32 %v1081_v36, %v8040_v33  ;;  %v959_v60 = vpop.f32.mrf.mxu1 }
 0x16b   : > { %v1230_v28 = vadd.f32 %v1201_v46, %v8042_v37  ;;  %v8272_v3 = vadd.f32 %v959_v60, %v863_v47  ;;  %v6996_v37 = vld [vmem:[%s9565_s1 + $0x48] sm:$0xff]  ;;  %v8302_v46 = vld [vmem:[%s7744_s6 + $0x70] sm:$0xff]  }
 0x16c   : > { %1331 = vmatmul.bf16.gmra.mxu0 %v7884_v5 }
 0x16d   : > { %v1393_v11 = vrot.slane %v1230_v28, 1  ;;  %1758 = vmatmul.bf16.gmra.mxu1 %v8267_v0  ;;  %2054 = vmatpush.bf16.msrb.mxu0 %v6996_v37  ;;  %v8305_v28 = vld [vmem:[%s7744_s6 + $0x64] sm:$0xff]  }
 0x16e   : > { %1871 = vmatmul.bf16.gmra.mxu2 %v8270_v42 }
 0x16f   : > { %v1394_v63 = vsel %vm1381_vm0, %v1392_v2, %v1393_v11  ;;  %1980 = vmatmul.bf16.gmra.mxu3 %v8267_v0 }
 0x170   : > { %v8279_v33 = vadd.f32 %v1394_v63, %v1104_v31 }
 0x171   : > { %v1084_v7 = vpop.f32.mrf.mxu2  ;;  %v865_v20 = vpop.f32.mrf.mxu0 }
 0x172   : > { %v1204_v5 = vpop.f32.mrf.mxu3  ;;  %v961_v25 = vpop.f32.mrf.mxu1 }
 0x173   : > { %v1231_v10 = vadd.f32 %v1204_v5, %v8054_v48  ;;  %v8288_v17 = vadd.f32 %v961_v25, %v865_v20  ;;  %v7004_v5 = vld [vmem:[%s9565_s1 + $0x88] sm:$0xff] }
 0x174   : > { %2262 = vmatpush.bf16.msrb.mxu2 %v7004_v5  ;;  %v8365_v5 = vunpack.c.h.b16 %v8302_v46 }
 0x175   : > { %v1395_v26 = vrot.slane %v1231_v10, 1 }
 0x177   : > { %v1396_v31 = vsel %vm1381_vm0, %v1393_v11, %v1395_v26  ;;  %v7003_v26 = vld [vmem:[%s9565_s1 + $0x80] sm:$0xff] }
 0x178   : > { %v8297_v48 = vadd.f32 %v1396_v31, %v1105_v23  ;;  %2263 = vmatpush.bf16.msrb.mxu2 %v7003_v26  ;;  %v8375_v26 = vpack.c.b16 %v8365_v5, %v8365_v5 }
 0x179   : > { %v1085_v32 = vpop.f32.mrf.mxu2  ;;  %v868_v9 = vpop.f32.mrf.mxu0 }
 0x17a   : > { %v1206_v54 = vpop.f32.mrf.mxu3  ;;  %v1106_v61 = vadd.f32 %v1085_v32, %v8056_v52  ;;  %v964_v36 = vpop.f32.mrf.mxu1  ;;  %v6995_v52 = vld [vmem:[%s9565_s1 + $0x40] sm:$0xff] }
 0x17b   : > { %v1232_v29 = vadd.f32 %v1206_v54, %v8064_v59  ;;  %v8307_v47 = vadd.f32 %v964_v36, %v868_v9  ;;  %v7036_v59 = vld [vmem:[%s9565_s1 + $0x188] sm:$0xff]  ;;  %2055 = vmatpush.bf16.msrb.mxu0 %v6995_v52  ;;  %v8340_v54 = vld [vmem:[%s7744_s6 + $0x78] sm:$0xff]  }
 0x17c   : > { %1336 = vmatmul.bf16.gmra.mxu0 %v7926_v18  ;;  %2388 = vmatpush.bf16.msrb.mxu3 %v7036_v59 }
 0x17d   : > { %1762 = vmatmul.bf16.gmra.mxu1 %v8302_v46  ;;  %v1397_v6 = vrot.slane %v1232_v29, 1 }
 0x17e   : > { %1875 = vmatmul.bf16.gmra.mxu2 %v8305_v28 }
 0x17f   : > { %1985 = vmatmul.bf16.gmra.mxu3 %v8302_v46 }
 0x180   : > { %2389 = vmatpush.bf16.msrb.mxu3 %v7035_v4 }
 0x181   : > { %v1088_v23 = vpop.f32.mrf.mxu2  ;;  %v870_v11 = vpop.f32.mrf.mxu0 }
 0x182   : > { %v1209_v60 = vpop.f32.mrf.mxu3  ;;  %v1107_v18 = vadd.f32 %v1088_v23, %v8066_v1  ;;  %v966_v63 = vpop.f32.mrf.mxu1  ;;  %v7027_v1 = vld [vmem:[%s9565_s1 + $0x140] sm:$0xff] }
 0x183   : > { %v1233_v2 = vadd.f32 %v1209_v60, %v8078_v8  ;;  %v8321_v37 = vadd.f32 %v966_v63, %v870_v11  ;;  %2167 = vmatpush.bf16.msrb.mxu1 %v7027_v1  ;;  %v5576_v63 = vld [vmem:[%s7744_s6 + $0x80] sm:$0xf] }
 0x185   : > { %v1398_v7 = vrot.slane %v1233_v2, 1 }
 0x187   : > { %v1399_v10 = vsel %vm1381_vm0, %v1397_v6, %v1398_v7 }
 0x188   : > { %v8327_v20 = vadd.f32 %v1399_v10, %v1106_v61  ;;  %v8343_v61 = vld [vmem:[%s7744_s6 + $0x6c] sm:$0xff]  }
 0x189   : > { %v1090_v8 = vpop.f32.mrf.mxu2  ;;  %v873_v31 = vpop.f32.mrf.mxu0 }
 0x18a   : > { %v1211_v25 = vpop.f32.mrf.mxu3  ;;  %v969_v32 = vpop.f32.mrf.mxu1 }
 0x18b   : > { %v1234_v30 = vadd.f32 %v1211_v25, %v8092_v24  ;;  %v8345_v29 = vadd.f32 %v969_v32, %v873_v31  ;;  %v7050_v24 = vld [vmem:[%s9565_s1 + $0x1f8] sm:$0xff] }
 0x18c   : > { %1341 = vmatmul.bf16.gmra.mxu0 %v8095_v27 }
 0x18d   : > { %v1400_v9 = vrot.slane %v1234_v30, 1  ;;  %1766 = vmatmul.bf16.gmra.mxu1 %v8340_v54  ;;  %2499 = vmatpush.bf16.msra.mxu0 %v7050_v24 }
 0x18e   : > { %1879 = vmatmul.bf16.gmra.mxu2 %v8343_v61 }
 0x18f   : > { %v1401_v36 = vsel %vm1381_vm0, %v1398_v7, %v1400_v9  ;;  %1990 = vmatmul.bf16.gmra.mxu3 %v8340_v54  ;;  %v8362_v7 = vunpack.c.l.b16 %v5576_v63 }
 0x190   : > { %v8355_v52 = vadd.f32 %v1401_v36, %v1107_v18 }
 0x191   : > { %v1092_v59 = vpop.f32.mrf.mxu2  ;;  %v875_v2 = vpop.f32.mrf.mxu0  ;;  %v8369_v1 = vpack.c.b16 %v8362_v7, %v8362_v7 }
 0x192   : > { %v1214_v23 = vpop.f32.mrf.mxu3  ;;  %v1108_v60 = vadd.f32 %v1092_v59, %v8097_v56  ;;  %v971_v11 = vpop.f32.mrf.mxu1 }
 0x193   : > { %v1235_v27 = vadd.f32 %v1214_v23, %v8106_v34  ;;  %v8360_v6 = vadd.f32 %v971_v11, %v875_v2 }
 0x195   : > { %v1402_v30 = vrot.slane %v1235_v27, 1 }
 0x199   : > { %v1094_v10 = vpop.f32.mrf.mxu2  ;;  %v878_v8 = vpop.f32.mrf.mxu0 }
 0x19a   : > { %v1216_v18 = vpop.f32.mrf.mxu3  ;;  %v1109_v56 = vadd.f32 %v1094_v10, %v8108_v40  ;;  %v974_v25 = vpop.f32.mrf.mxu1  ;;  %v7058_v40 = vld [vmem:[%s9565_s1 + $0x238] sm:$0xff]  ;;  %v7049_v10 = vld [vmem:[%s9565_s1 + $0x1f0] sm:$0xff] }
 0x19b   : > { %v1236_v34 = vadd.f32 %v1216_v18, %v8114_v62  ;;  %v8377_v4 = vadd.f32 %v974_v25, %v878_v8  ;;  %2626 = vmatpush.bf16.msra.mxu1 %v7058_v40  ;;  %2500 = vmatpush.bf16.msra.mxu0 %v7049_v10 }
 0x19c   : > { %1346 = vmatmul.bf16.gmra.mxu0 %v8116_v45 }
 0x19d   : > { %v1403_v31 = vrot.slane %v1236_v34, 1  ;;  %1771 = vmatmul.bf16.gmra.mxu1 %v8369_v1 }
 0x19e   : > { %1884 = vmatmul.bf16.gmra.mxu2 %v8375_v26 }
 0x19f   : > { %v1404_v32 = vsel %vm1381_vm0, %v1402_v30, %v1403_v31  ;;  %1995 = vmatmul.bf16.gmra.mxu3 %v8369_v1 }
 0x1a0   : > { %v8387_v62 = vadd.f32 %v1404_v32, %v1108_v60  ;;  %v7068_v60 = vld [vmem:[%s9565_s1 + $0x38] sm:$0xff] }
 0x1a1   : > { %v1097_v9 = vpop.f32.mrf.mxu2  ;;  %v880_v45 = vpop.f32.mrf.mxu0  ;;  %3167 = vmatpush.bf16.msra.mxu3 %v7068_v60 }
 0x1a2   : > { %v1219_v36 = vpop.f32.mrf.mxu3  ;;  %v976_v59 = vpop.f32.mrf.mxu1 }
 0x1a3   : > { %v1237_v24 = vadd.f32 %v1219_v36, %v8128_v21  ;;  %v7057_v21 = vld [vmem:[%s9565_s1 + $0x230] sm:$0xff] }
 0x1a4   : > { %2627 = vmatpush.bf16.msra.mxu1 %v7057_v21 }
 0x1a5   : > { %v1405_v23 = vrot.slane %v1237_v24, 1 }
 0x1a7   : > { %v1406_v27 = vsel %vm1381_vm0, %v1403_v31, %v1405_v23 }
 0x1a8   : > { %v8391_v2 = vadd.f32 %v1406_v27, %v1109_v56  ;;  %v7092_v56 = vld [vmem:[%s9565_s1 + $0xf8] sm:$0xff] }
 0x1a9   : > { %v1098_v11 = vpop.f32.mrf.mxu2  ;;  %v1312_v18 = vpop.f32.mrf.mxu0  ;;  %3054 = vmatpush.bf16.msra.mxu2 %v7092_v56 }
 0x1aa   : > { %v1221_v63 = vpop.f32.mrf.mxu3  ;;  %v1741_v34 = vpop.f32.mrf.mxu1  ;;  %v1351_v8 = vadd.f32 %v1312_v18, %v8142_v16 }
 0x1ac   : > { %2056 = vmatmul.bf16.vlgmr.msrb.gmra.mxu0 %v8140_v15  ;;  %v1443_v36 = vrot.slane %v1351_v8, 2 }
 0x1ad   : > { %2168 = vmatmul.bf16.vlgmr.msrb.gmra.mxu1 %v8137_v13  ;;  %v7048_v13 = vld [vmem:[%s9565_s1 + $0x1e8] sm:$0xff] }
 0x1ae   : > { %2264 = vmatmul.bf16.vlgmr.msrb.gmra.mxu2 %v8140_v15  ;;  %v7067_v15 = vld [vmem:[%s9565_s1 + $0x30] sm:$0xff]  ;;  %2501 = vmatpush.bf16.msra.mxu0 %v7048_v13 }
 0x1af   : > { %2390 = vmatmul.bf16.vlgmr.msrb.gmra.mxu3 %v8237_v12 }
 0x1b0   : > { %3168 = vmatpush.bf16.msra.mxu3 %v7067_v15 }
 0x1b1   : > { %v1854_v25 = vpop.f32.mrf.mxu2  ;;  %v1314_v32 = vpop.f32.mrf.mxu0 }
 0x1b2   : > { %v8410_v30 = vpop.f32.mrf.mxu3  ;;  %v8412_v31 = vadd.f32 %v1854_v25, %v1741_v34  ;;  %v1743_v40 = vpop.f32.mrf.mxu1  ;;  %v1352_v9 = vadd.f32 %v1314_v32, %v8156_v35  ;;  %v8428_v35 = vld [vmem:[%s9566_s2] ss:$0 sm:$0xff] }
 0x1b4   : > { %v1444_v24 = vrot.slane %v1352_v9, 2 }
 0x1b6   : > { %v1445_v16 = vsel %vm1442_vm1, %v1443_v36, %v1444_v24 }
 0x1b7   : > { %v1478_v45 = vadd.f32 %v1445_v16, %v8179_v39 }
 0x1b9   : > { %v1856_v59 = vpop.f32.mrf.mxu2  ;;  %v1317_v11 = vpop.f32.mrf.mxu0  ;;  %v1492_v39 = vadd.f32 %v8428_v35, %v1478_v45 }
 0x1ba   : > { %v8423_v23 = vpop.f32.mrf.mxu3  ;;  %v8430_v27 = vadd.f32 %v1856_v59, %v1743_v40  ;;  %v1746_v63 = vpop.f32.mrf.mxu1  ;;  %v1353_v10 = vadd.f32 %v1317_v11, %v8172_v55  ;;  %v7056_v55 = vld [vmem:[%s9565_s1 + $0x228] sm:$0xff] }
 0x1bb   : > { %v1512_v8 = vmul.f32 0.2, %v1492_v39  ;;  %v7066_v40 = vld [vmem:[%s9565_s1 + $0x28] sm:$0xff]  ;;  %vm1502_vm2 = vcmp.ge.f32.partialorder %v1492_v39, 0.0  ;;  %2628 = vmatpush.bf16.msra.mxu1 %v7056_v55 }
 0x1bc   : > { %v1446_v60 = vrot.slane %v1353_v10, 2  ;;  %2061 = vmatmul.bf16.gmra.mxu0 %v8170_v44  ;;  %3169 = vmatpush.bf16.msra.mxu3 %v7066_v40 }
 0x1bd   : > { %2173 = vmatmul.bf16.gmra.mxu1 %v8167_v49  ;;  %v7091_v49 = vld [vmem:[%s9565_s1 + $0xf0] sm:$0xff]  ;;  %v1522_v36 = vsel %vm1502_vm2, %v1492_v39, %v1512_v8 }
 0x1be   : > { %2269 = vmatmul.bf16.gmra.mxu2 %v8170_v44  ;;  %v1447_v21 = vsel %vm1442_vm1, %v1444_v24, %v1446_v60  ;;  %v7047_v44 = vld [vmem:[%s9565_s1 + $0x1e0] sm:$0xff] }
 0x1bf   : > { %2395 = vmatmul.bf16.gmra.mxu3 %v8270_v42  ;;  %v1479_v18 = vadd.f32 %v1447_v21, %v8197_v53  ;;  %3055 = vmatpush.bf16.msra.mxu2 %v7091_v49  ;;  %v7090_v21 = vld [vmem:[%s9565_s1 + $0xe8] sm:$0xff] }
 0x1c0   : > { %2502 = vmatpush.bf16.msra.mxu0 %v7047_v44 }
 0x1c1   : > { %v1859_v34 = vpop.f32.mrf.mxu2  ;;  %v1493_v25 = vadd.f32 %v8428_v35, %v1479_v18  ;;  %v1319_v32 = vpop.f32.mrf.mxu0 }
 0x1c2   : > { %v8440_v56 = vpop.f32.mrf.mxu3  ;;  %v1747_v53 = vpop.f32.mrf.mxu1  ;;  %v1354_v15 = vadd.f32 %v1319_v32, %v8188_v50  ;;  %v7055_v50 = vld [vmem:[%s9565_s1 + $0x220] sm:$0xff] }
 0x1c3   : > { %vm1503_vm3 = vcmp.ge.f32.partialorder %v1493_v25, 0.0  ;;  %v1513_v9 = vmul.f32 0.2, %v1493_v25  ;;  %2629 = vmatpush.bf16.msra.mxu1 %v7055_v50  ;;  %3056 = vmatpush.bf16.msra.mxu2 %v7090_v21 }
 0x1c4   : > { %v1448_v60 = vrot.slane %v1354_v15, 2 }
 0x1c5   : > { %v1523_v24 = vsel %vm1503_vm3, %v1493_v25, %v1513_v9  ;;  %v7046_v9 = vld [vmem:[%s9565_s1 + $0x1d8] sm:$0xff] }
 0x1c6   : > { %v7243_v13 = vpack.c.bf16 %v1523_v24, %v1522_v36  ;;  %v7065_v36 = vld [vmem:[%s9565_s1 + $0x20] sm:$0xff]  ;;  %2503 = vmatpush.bf16.msra.mxu0 %v7046_v9 }
 0x1c7   : > { %3170 = vmatpush.bf16.msra.mxu3 %v7065_v36 }
 0x1c8   : > { %7244 = vst [vmem:[%s8459_s16] sm:$0xff] %v7243_v13  }
 0x1c9   : > { %v1860_v16 = vpop.f32.mrf.mxu2  ;;  %v1322_v11 = vpop.f32.mrf.mxu0 }
 0x1ca   : > { %v8463_v45 = vpop.f32.mrf.mxu3  ;;  %v8465_v59 = vadd.f32 %v1860_v16, %v1747_v53  ;;  %v1750_v63 = vpop.f32.mrf.mxu1  ;;  %v1355_v10 = vadd.f32 %v1322_v11, %v8207_v41  ;;  %v7089_v16 = vld [vmem:[%s9565_s1 + $0xe0] sm:$0xff] }
 0x1cb   : > { %3057 = vmatpush.bf16.msra.mxu2 %v7089_v16 }
 0x1cc   : > { %v1449_v39 = vrot.slane %v1355_v10, 2  ;;  %2066 = vmatmul.bf16.gmra.mxu0 %v8205_v14 }
 0x1cd   : > { %2178 = vmatmul.bf16.gmra.mxu1 %v8202_v38 }
 0x1ce   : > { %2274 = vmatmul.bf16.gmra.mxu2 %v8205_v14  ;;  %v1450_v41 = vsel %vm1442_vm1, %v1448_v60, %v1449_v39 }
 0x1cf   : > { %2399 = vmatmul.bf16.gmra.mxu3 %v8305_v28  ;;  %v1480_v18 = vadd.f32 %v1450_v41, %v8224_v22 }
 0x1d1   : > { %v1863_v34 = vpop.f32.mrf.mxu2  ;;  %v1324_v55 = vpop.f32.mrf.mxu0  ;;  %v1494_v25 = vadd.f32 %v8428_v35, %v1480_v18 }
 0x1d2   : > { %v8480_v38 = vpop.f32.mrf.mxu3  ;;  %v8482_v14 = vadd.f32 %v1863_v34, %v1750_v63  ;;  %v1752_v49 = vpop.f32.mrf.mxu1  ;;  %v1356_v44 = vadd.f32 %v1324_v55, %v8221_v58  ;;  %v7054_v58 = vld [vmem:[%s9565_s1 + $0x218] sm:$0xff] }
 0x1d3   : > { %v1514_v24 = vmul.f32 0.2, %v1494_v25  ;;  %vm1504_vm4 = vcmp.ge.f32.partialorder %v1494_v25, 0.0  ;;  %2630 = vmatpush.bf16.msra.mxu1 %v7054_v58 }
 0x1d4   : > { %v1451_v8 = vrot.slane %v1356_v44, 2  ;;  %v7291_v44 = vunpack.c.l.b16 %v8340_v54 }
 0x1d5   : > { %v1524_v63 = vsel %vm1504_vm4, %v1494_v25, %v1514_v24 }
 0x1d6   : > { %v1452_v32 = vsel %vm1442_vm1, %v1449_v39, %v1451_v8  ;;  %v7045_v8 = vld [vmem:[%s9565_s1 + $0x1d0] sm:$0xff]  ;;  %v8528_v58 = vpack.c.b16 %v7291_v44, %v8365_v5 }
 0x1d7   : > { %v1481_v53 = vadd.f32 %v1452_v32, %v8252_v57  ;;  %2504 = vmatpush.bf16.msra.mxu0 %v7045_v8 }
 0x1d9   : > { %v1865_v40 = vpop.f32.mrf.mxu2  ;;  %v1495_v13 = vadd.f32 %v8428_v35, %v1481_v53  ;;  %v1327_v15 = vpop.f32.mrf.mxu0 }
 0x1da   : > { %v8488_v22 = vpop.f32.mrf.mxu3  ;;  %v1754_v57 = vpop.f32.mrf.mxu1  ;;  %v1357_v39 = vadd.f32 %v1327_v15, %v8239_v19  ;;  %v7064_v19 = vld [vmem:[%s9565_s1 + $0x18] sm:$0xff] }
 0x1db   : > { %vm1505_vm5 = vcmp.ge.f32.partialorder %v1495_v13, 0.0  ;;  %v1515_v11 = vmul.f32 0.2, %v1495_v13  ;;  %3171 = vmatpush.bf16.msra.mxu3 %v7064_v19 }
 0x1dc   : > { %2071 = vmatmul.bf16.gmra.mxu0 %v8237_v12 }
 0x1dd   : > { %2183 = vmatmul.bf16.gmra.mxu1 %v8234_v51  ;;  %v1525_v10 = vsel %vm1505_vm5, %v1495_v13, %v1515_v11  ;;  %v1453_v51 = vrot.slane %v1357_v39, 2  ;;  %v7044_v11 = vld [vmem:[%s9565_s1 + $0x1c8] sm:$0xff]  ;;  %v7063_v39 = vld [vmem:[%s9565_s1 + $0x10] sm:$0xff] }
 0x1de   : > { %2279 = vmatmul.bf16.gmra.mxu2 %v8237_v12  ;;  %v7248_v60 = vpack.c.bf16 %v1525_v10, %v1524_v63  ;;  %2505 = vmatpush.bf16.msra.mxu0 %v7044_v11  ;;  %v7062_v11 = vld [vmem:[%s9565_s1 + $0x8] sm:$0xff] }
 0x1df   : > { %2403 = vmatmul.bf16.gmra.mxu3 %v8343_v61 }
 0x1e0   : > { %7388 = vst [vmem:[%s8459_s16 + $0x8] sm:$0xff] %v7248_v60   ;;  %3172 = vmatpush.bf16.msra.mxu3 %v7063_v39  ;;  %v7043_v39 = vld [vmem:[%s9565_s1 + $0x1c0] sm:$0xff] }
 0x1e1   : > { %v1867_v50 = vpop.f32.mrf.mxu2  ;;  %v1329_v18 = vpop.f32.mrf.mxu0 }
 0x1e2   : > { %v8509_v21 = vpop.f32.mrf.mxu3  ;;  %v8511_v41 = vadd.f32 %v1867_v50, %v1754_v57  ;;  %v1756_v34 = vpop.f32.mrf.mxu1  ;;  %v1358_v55 = vadd.f32 %v1329_v18, %v8256_v43  ;;  %2506 = vmatpush.bf16.msra.mxu0 %v7043_v39 }
 0x1e4   : > { %v1454_v49 = vrot.slane %v1358_v55, 2  ;;  %v7292_v55 = vunpack.c.h.b16 %v8340_v54  ;;  %3173 = vmatpush.bf16.msra.mxu3 %v7062_v11 }
 0x1e6   : > { %v1455_v25 = vsel %vm1442_vm1, %v1453_v51, %v1454_v49 }
 0x1e7   : > { %v1482_v32 = vadd.f32 %v1455_v25, %v8279_v33 }
 0x1e9   : > { %v1869_v53 = vpop.f32.mrf.mxu2  ;;  %v1332_v9 = vpop.f32.mrf.mxu0  ;;  %v1496_v33 = vadd.f32 %v8428_v35, %v1482_v32 }
 0x1ea   : > { %v8523_v43 = vpop.f32.mrf.mxu3  ;;  %v8525_v40 = vadd.f32 %v1869_v53, %v1756_v34  ;;  %v1759_v36 = vpop.f32.mrf.mxu1  ;;  %v1359_v24 = vadd.f32 %v1332_v9, %v8272_v3  ;;  %v7053_v3 = vld [vmem:[%s9565_s1 + $0x210] sm:$0xff]  ;;  %v8561_v53 = vpack.c.b16 %v8362_v7, %v7292_v55 }
 0x1eb   : > { %v1516_v63 = vmul.f32 0.2, %v1496_v33  ;;  %vm1506_vm6 = vcmp.ge.f32.partialorder %v1496_v33, 0.0  ;;  %2631 = vmatpush.bf16.msra.mxu1 %v7053_v3  ;;  %v7087_v7 = vld [vmem:[%s9565_s1 + $0xd0] sm:$0xff] }
 0x1ec   : > { %v1456_v13 = vrot.slane %v1359_v24, 2  ;;  %2076 = vmatmul.bf16.gmra.mxu0 %v8270_v42 }
 0x1ed   : > { %2188 = vmatmul.bf16.gmra.mxu1 %v8267_v0  ;;  %v7088_v0 = vld [vmem:[%s9565_s1 + $0xd8] sm:$0xff]  ;;  %v1526_v18 = vsel %vm1506_vm6, %v1496_v33, %v1516_v63 }
 0x1ee   : > { %2284 = vmatmul.bf16.gmra.mxu2 %v8270_v42  ;;  %v1457_v15 = vsel %vm1442_vm1, %v1454_v49, %v1456_v13 }
 0x1ef   : > { %2408 = vmatmul.bf16.gmra.mxu3 %v8528_v58  ;;  %v1483_v57 = vadd.f32 %v1457_v15, %v8297_v48  ;;  %3058 = vmatpush.bf16.msra.mxu2 %v7088_v0 }
 0x1f1   : > { %v1872_v16 = vpop.f32.mrf.mxu2  ;;  %v1497_v10 = vadd.f32 %v8428_v35, %v1483_v57  ;;  %v1334_v48 = vpop.f32.mrf.mxu0 }
 0x1f2   : > { %v8538_v5 = vpop.f32.mrf.mxu3  ;;  %v1760_v60 = vpop.f32.mrf.mxu1  ;;  %v1360_v49 = vadd.f32 %v1334_v48, %v8288_v17  ;;  %v7052_v17 = vld [vmem:[%s9565_s1 + $0x208] sm:$0xff] }
 0x1f3   : > { %vm1507_vm7 = vcmp.ge.f32.partialorder %v1497_v10, 0.0  ;;  %v1517_v50 = vmul.f32 0.2, %v1497_v10  ;;  %2632 = vmatpush.bf16.msra.mxu1 %v7052_v17  ;;  %3059 = vmatpush.bf16.msra.mxu2 %v7087_v7 }
 0x1f4   : > { %v1458_v36 = vrot.slane %v1360_v49, 2  ;;  %v8603_v49 = vld [vmem:[%s7744_s6 + $0x84] sm:$0xff] }
 0x1f5   : > { %v1527_v34 = vsel %vm1507_vm7, %v1497_v10, %v1517_v50  ;;  %v7051_v50 = vld [vmem:[%s9565_s1 + $0x200] sm:$0xff] }
 0x1f6   : > { %v7253_v51 = vpack.c.bf16 %v1527_v34, %v1526_v18  ;;  %v7085_v18 = vld [vmem:[%s9565_s1 + $0xc0] sm:$0xff] }
 0x1f7   : > { %2633 = vmatpush.bf16.msra.mxu1 %v7051_v50 }
 0x1f8   : > { %7389 = vst [vmem:[%s8459_s16 + $0x10] sm:$0xff] %v7253_v51  }
 0x1f9   : > { %v1873_v44 = vpop.f32.mrf.mxu2  ;;  %v1337_v25 = vpop.f32.mrf.mxu0 }
 0x1fa   : > { %v8556_v8 = vpop.f32.mrf.mxu3  ;;  %v8558_v19 = vadd.f32 %v1873_v44, %v1760_v60  ;;  %v1763_v32 = vpop.f32.mrf.mxu1  ;;  %v1361_v9 = vadd.f32 %v1337_v25, %v8307_v47  ;;  %v7061_v44 = vld [vmem:[%s9565_s1] sm:$0xff] }
 0x1fb   : > { %9580 = vst [vmem:[#allocation2_spill] sm:$0xff] %v8556_v8  ;;  %3174 = vmatpush.bf16.msra.mxu3 %v7061_v44 }
 0x1fc   : > { %v1459_v24 = vrot.slane %v1361_v9, 2  ;;  %2081 = vmatmul.bf16.gmra.mxu0 %v8305_v28 }
 0x1fd   : > { %2193 = vmatmul.bf16.gmra.mxu1 %v8302_v46 }
 0x1fe   : > { %2289 = vmatmul.bf16.gmra.mxu2 %v8305_v28  ;;  %v1460_v47 = vsel %vm1442_vm1, %v1458_v36, %v1459_v24  ;;  %v7100_v36 = vld [vmem:[%s9565_s1 + $0x138] sm:$0xff] }
 0x1ff   : > { %2412 = vmatmul.bf16.gmra.mxu3 %v8561_v53  ;;  %v1484_v13 = vadd.f32 %v1460_v47, %v8327_v20  ;;  %v7086_v20 = vld [vmem:[%s9565_s1 + $0xc8] sm:$0xff]  ;;  %3274 = vmatpush.bf16.msrb.mxu0 %v7100_v36  ;;  %v7075_v36 = vld [vmem:[%s9565_s1 + $0x70] sm:$0xff] }
 0x200   : > { %3060 = vmatpush.bf16.msra.mxu2 %v7086_v20 }
 0x201   : > { %v1876_v33 = vpop.f32.mrf.mxu2  ;;  %v1339_v57 = vpop.f32.mrf.mxu0  ;;  %v1498_v63 = vadd.f32 %v8428_v35, %v1484_v13 }
 0x202   : > { %v8576_v46 = vpop.f32.mrf.mxu3  ;;  %v8578_v15 = vadd.f32 %v1876_v33, %v1763_v32  ;;  %v1765_v16 = vpop.f32.mrf.mxu1  ;;  %v1362_v3 = vadd.f32 %v1339_v57, %v8321_v37 }
 0x203   : > { %9581 = vst [vmem:[#allocation3_spill] sm:$0xff] %v8576_v46  ;;  %v1518_v34 = vmul.f32 0.2, %v1498_v63  ;;  %vm1508_vm8 = vcmp.ge.f32.partialorder %v1498_v63, 0.0  ;;  %v5579_v16 = vld [vmem:[%s7744_s6 + $0x8c] sm:$0xf] }
 0x204   : > { %v1461_v0 = vrot.slane %v1362_v3, 2  ;;  %3061 = vmatpush.bf16.msra.mxu2 %v7085_v18  ;;  %v7076_v3 = vld [vmem:[%s9565_s1 + $0x78] sm:$0xff]  ;;  %v2325_v20 = vunpack.c.l.b16 %v5579_v16 }
 0x205   : > { %v1528_v32 = vsel %vm1508_vm8, %v1498_v63, %v1518_v34  ;;  %3370 = vmatpush.bf16.msrb.mxu1 %v7076_v3  ;;  %v8661_v3 = vld [vmem:[%s7744_s6 + $0x84] sm:$0xff]  }
 0x206   : > { %v1462_v10 = vsel %vm1442_vm1, %v1459_v24, %v1461_v0  ;;  %v8632_v50 = vpack.c.b16 %v2325_v20, %v2325_v20  ;;  %v7083_v20 = vld [vmem:[%s9565_s1 + $0xb0] sm:$0xff] }
 0x207   : > { %v1485_v48 = vadd.f32 %v1462_v10, %v8355_v52 }
 0x209   : > { %v1878_v60 = vpop.f32.mrf.mxu2  ;;  %v1499_v55 = vadd.f32 %v8428_v35, %v1485_v48  ;;  %v1342_v51 = vpop.f32.mrf.mxu0  ;;  %3371 = vmatpush.bf16.msrb.mxu1 %v7075_v36 }
 0x20a   : > { %v8590_v37 = vpop.f32.mrf.mxu3  ;;  %v1767_v52 = vpop.f32.mrf.mxu1  ;;  %v1363_v17 = vadd.f32 %v1342_v51, %v8345_v29  ;;  %v7084_v51 = vld [vmem:[%s9565_s1 + $0xb8] sm:$0xff] }
 0x20b   : > { %9582 = vst [vmem:[#allocation4_spill] sm:$0xff] %v8590_v37  ;;  %vm1509_vm9 = vcmp.ge.f32.partialorder %v1499_v55, 0.0  ;;  %v1519_v25 = vmul.f32 0.2, %v1499_v55  ;;  %3578 = vmatpush.bf16.msrb.mxu3 %v7084_v51 }
 0x20c   : > { %2086 = vmatmul.bf16.gmra.mxu0 %v8343_v61  ;;  %v1463_v0 = vrot.slane %v1363_v17, 2 }
 0x20d   : > { %2198 = vmatmul.bf16.gmra.mxu1 %v8340_v54  ;;  %v1529_v9 = vsel %vm1509_vm9, %v1499_v55, %v1519_v25 }
 0x20e   : > { %2294 = vmatmul.bf16.gmra.mxu2 %v8343_v61  ;;  %v7258_v24 = vpack.c.bf16 %v1529_v9, %v1528_v32 }
 0x20f   : > { %2416 = vmatmul.bf16.gmra.mxu3 %v8603_v49 }
 0x210   : > { %7390 = vst [vmem:[%s8459_s16 + $0x18] sm:$0xff] %v7258_v24   ;;  %3579 = vmatpush.bf16.msrb.mxu3 %v7083_v20  ;;  %v8730_v20 = vld [vmem:[%s7744_s6 + $0x94] sm:$0xff]  }
 0x211   : > { %v1880_v7 = vpop.f32.mrf.mxu2  ;;  %v1344_v13 = vpop.f32.mrf.mxu0 }
 0x212   : > { %v8617_v47 = vpop.f32.mrf.mxu3  ;;  %v8619_v54 = vadd.f32 %v1880_v7, %v1767_v52  ;;  %v1769_v33 = vpop.f32.mrf.mxu1  ;;  %v1364_v57 = vadd.f32 %v1344_v13, %v8360_v6 }
 0x213   : > { %9583 = vst [vmem:[#allocation5_spill] sm:$0xff] %v8617_v47 }
 0x214   : > { %v1464_v11 = vrot.slane %v1364_v57, 2 }
 0x216   : > { %v1465_v29 = vsel %vm1442_vm1, %v1463_v0, %v1464_v11  ;;  %v8664_v0 = vld [vmem:[%s7744_s6 + $0x78] sm:$0xff] }
 0x217   : > { %v1486_v63 = vadd.f32 %v1465_v29, %v8387_v62  ;;  %v7099_v62 = vld [vmem:[%s9565_s1 + $0x130] sm:$0xff] }
 0x218   : > { %3275 = vmatpush.bf16.msrb.mxu0 %v7099_v62 }
 0x219   : > { %v1882_v10 = vpop.f32.mrf.mxu2  ;;  %v1347_v39 = vpop.f32.mrf.mxu0  ;;  %v1500_v55 = vadd.f32 %v8428_v35, %v1486_v63 }
 0x21a   : > { %v8628_v48 = vpop.f32.mrf.mxu3  ;;  %v8630_v60 = vadd.f32 %v1882_v10, %v1769_v33  ;;  %v1772_v6 = vpop.f32.mrf.mxu1  ;;  %v1365_v18 = vadd.f32 %v1347_v39, %v8377_v4 }
 0x21b   : > { %9584 = vst [vmem:[#allocation6_spill] sm:$0xff] %v8628_v48  ;;  %vm1510_vm10 = vcmp.ge.f32.partialorder %v1500_v55, 0.0  ;;  %v7070_v48 = vld [vmem:[%s9565_s1 + $0x48] sm:$0xff] }
 0x21c   : > { %v1466_v34 = vrot.slane %v1365_v18, 2  ;;  %2091 = vmatmul.bf16.gmra.mxu0 %v8375_v26  ;;  %v7074_v18 = vld [vmem:[%s9565_s1 + $0x68] sm:$0xff] }
 0x21d   : > { %2203 = vmatmul.bf16.gmra.mxu1 %v8369_v1 }
 0x21e   : > { %2299 = vmatmul.bf16.gmra.mxu2 %v8375_v26  ;;  %v1467_v4 = vsel %vm1442_vm1, %v1464_v11, %v1466_v34  ;;  %v1520_v26 = vmul.f32 0.2, %v1500_v55  ;;  %v7098_v11 = vld [vmem:[%s9565_s1 + $0x128] sm:$0xff]  ;;  %v7107_v34 = vld [vmem:[%s9565_s1 + $0x170] sm:$0xff]  ;;  %3372 = vmatpush.bf16.msrb.mxu1 %v7074_v18 }
 0x21f   : > { %2421 = vmatmul.bf16.gmra.mxu3 %v8632_v50  ;;  %v1487_v52 = vadd.f32 %v1467_v4, %v8391_v2  ;;  %v7108_v2 = vld [vmem:[%s9565_s1 + $0x178] sm:$0xff]  ;;  %3276 = vmatpush.bf16.msrb.mxu0 %v7098_v11 }
 0x220   : > { %3482 = vmatpush.bf16.msrb.mxu2 %v7108_v2  ;;  %v1530_v17 = vsel %vm1510_vm10, %v1500_v55, %v1520_v26  ;;  %v8700_v26 = vld [vmem:[%s7744_s6 + $0x80] sm:$0xff]  }
 0x221   : > { %v1885_v1 = vpop.f32.mrf.mxu2  ;;  %v1501_v25 = vadd.f32 %v8428_v35, %v1487_v52  ;;  %v1349_v32 = vpop.f32.mrf.mxu0 }
 0x222   : > { %v8648_v44 = vpop.f32.mrf.mxu3  ;;  %v1773_v9 = vpop.f32.mrf.mxu1  ;;  %v8697_v1 = vld [vmem:[%s7744_s6 + $0x8c] sm:$0xff]  }
 0x223   : > { %9585 = vst [vmem:[#allocation7_spill] sm:$0xff] %v8648_v44  ;;  %vm1511_vm11 = vcmp.ge.f32.partialorder %v1501_v25, 0.0  ;;  %v1521_v24 = vmul.f32 0.2, %v1501_v25  ;;  %v7439_v44 = vld [vmem:[%s7744_s6 + $0xb0] sm:$0xff]  }
 0x224   : > { %3483 = vmatpush.bf16.msrb.mxu2 %v7107_v34 }
 0x225   : > { %v1531_v7 = vsel %vm1511_vm11, %v1501_v25, %v1521_v24  ;;  %v7082_v25 = vld [vmem:[%s9565_s1 + $0xa8] sm:$0xff]  ;;  %v7073_v24 = vld [vmem:[%s9565_s1 + $0x60] sm:$0xff] }
 0x226   : > { %v7263_v35 = vpack.c.bf16 %v1531_v7, %v1530_v17  ;;  %3580 = vmatpush.bf16.msrb.mxu3 %v7082_v25  ;;  %v7106_v17 = vld [vmem:[%s9565_s1 + $0x168] sm:$0xff]  ;;  %3373 = vmatpush.bf16.msrb.mxu1 %v7073_v24  ;;  %v8763_v24 = vld [vmem:[%s7744_s6 + $0x9c] sm:$0xff]  }
 0x228   : > { %7391 = vst [vmem:[%s8459_s16 + $0x20] sm:$0xff] %v7263_v35   ;;  %3484 = vmatpush.bf16.msrb.mxu2 %v7106_v17  ;;  %v8766_v17 = vld [vmem:[%s7744_s6 + $0x90] sm:$0xff]  }
 0x229   : > { %v1886_v13 = vpop.f32.mrf.mxu2  ;;  %v8658_v57 = vpop.f32.mrf.mxu0 }
 0x22a   : > { %v1998_v33 = vpop.f32.mrf.mxu3  ;;  %v2169_v16 = vpop.f32.mrf.mxu1 }
 0x22c   : > { %2507 = vmatmul.bf16.vlgmr.msra.gmra.mxu0 %v8237_v12 }
 0x22d   : > { %2634 = vmatmul.bf16.vlgmr.msra.gmra.mxu1 %v8237_v12 }
 0x22e   : > { %3062 = vmatmul.bf16.vlgmr.msra.gmra.mxu2 %v8661_v3 }
 0x22f   : > { %3175 = vmatmul.bf16.vlgmr.msra.gmra.mxu3 %v8664_v0 }
 0x231   : > { %v2265_v29 = vpop.f32.mrf.mxu2  ;;  %v8681_v39 = vpop.f32.mrf.mxu0 }
 0x232   : > { %v2391_v63 = vpop.f32.mrf.mxu3  ;;  %v8676_v10 = vadd.f32 %v2265_v29, %v2169_v16  ;;  %v2171_v6 = vpop.f32.mrf.mxu1  ;;  %v8733_v29 = vld [vmem:[%s7744_s6 + $0x88] sm:$0xff]  }
 0x233   : > { %v8679_v12 = vadd.f32 %v2391_v63, %v8412_v31  ;;  %v7081_v63 = vld [vmem:[%s9565_s1 + $0xa0] sm:$0xff] }
 0x234   : > { %3581 = vmatpush.bf16.msrb.mxu3 %v7081_v63 }
 0x239   : > { %v2267_v55 = vpop.f32.mrf.mxu2  ;;  %v8694_v4 = vpop.f32.mrf.mxu0 }
 0x23a   : > { %v2393_v62 = vpop.f32.mrf.mxu3  ;;  %v8689_v51 = vadd.f32 %v2267_v55, %v2171_v6  ;;  %v2174_v52 = vpop.f32.mrf.mxu1 }
 0x23b   : > { %v8692_v31 = vadd.f32 %v2393_v62, %v8430_v27  ;;  %v7097_v27 = vld [vmem:[%s9565_s1 + $0x120] sm:$0xff] }
 0x23c   : > { %2512 = vmatmul.bf16.gmra.mxu0 %v8270_v42 }
 0x23d   : > { %2639 = vmatmul.bf16.gmra.mxu1 %v8270_v42  ;;  %3277 = vmatpush.bf16.msrb.mxu0 %v7097_v27  ;;  %v7105_v27 = vld [vmem:[%s9565_s1 + $0x160] sm:$0xff] }
 0x23e   : > { %3067 = vmatmul.bf16.gmra.mxu2 %v8697_v1 }
 0x23f   : > { %3180 = vmatmul.bf16.gmra.mxu3 %v8700_v26  ;;  %3485 = vmatpush.bf16.msrb.mxu2 %v7105_v27 }
 0x241   : > { %v2270_v32 = vpop.f32.mrf.mxu2  ;;  %v8714_v42 = vpop.f32.mrf.mxu0 }
 0x242   : > { %v2396_v9 = vpop.f32.mrf.mxu3  ;;  %v8712_v36 = vadd.f32 %v2270_v32, %v2174_v52  ;;  %v2176_v2 = vpop.f32.mrf.mxu1  ;;  %v7072_v52 = vld [vmem:[%s9565_s1 + $0x58] sm:$0xff] }
 0x243   : > { %3374 = vmatpush.bf16.msrb.mxu1 %v7072_v52  ;;  %v7104_v52 = vld [vmem:[%s9565_s1 + $0x158] sm:$0xff] }
 0x244   : > { %3486 = vmatpush.bf16.msrb.mxu2 %v7104_v52 }
 0x249   : > { %v2272_v7 = vpop.f32.mrf.mxu2  ;;  %v8727_v16 = vpop.f32.mrf.mxu0 }
 0x24a   : > { %v2397_v35 = vpop.f32.mrf.mxu3  ;;  %v8722_v13 = vadd.f32 %v2272_v7, %v2176_v2  ;;  %v2179_v11 = vpop.f32.mrf.mxu1  ;;  %v7095_v7 = vld [vmem:[%s9565_s1 + $0x110] sm:$0xff] }
 0x24b   : > { %v8725_v33 = vadd.f32 %v2397_v35, %v8465_v59  ;;  %v7096_v59 = vld [vmem:[%s9565_s1 + $0x118] sm:$0xff] }
 0x24c   : > { %2517 = vmatmul.bf16.gmra.mxu0 %v8305_v28  ;;  %v7080_v35 = vld [vmem:[%s9565_s1 + $0x98] sm:$0xff] }
 0x24d   : > { %2644 = vmatmul.bf16.gmra.mxu1 %v8305_v28  ;;  %3278 = vmatpush.bf16.msrb.mxu0 %v7096_v59 }
 0x24e   : > { %3071 = vmatmul.bf16.gmra.mxu2 %v8730_v20  ;;  %3582 = vmatpush.bf16.msrb.mxu3 %v7080_v35  ;;  %v8799_v35 = vld [vmem:[%s7744_s6 + $0xa4] sm:$0xff]  }
 0x24f   : > { %3184 = vmatmul.bf16.gmra.mxu3 %v8733_v29 }
 0x251   : > { %v2275_v6 = vpop.f32.mrf.mxu2  ;;  %v8750_v55 = vpop.f32.mrf.mxu0  ;;  %3279 = vmatpush.bf16.msrb.mxu0 %v7095_v7 }
 0x252   : > { %v2400_v18 = vpop.f32.mrf.mxu3  ;;  %v8745_v34 = vadd.f32 %v2275_v6, %v2179_v11  ;;  %v2181_v62 = vpop.f32.mrf.mxu1 }
 0x253   : > { %v8748_v28 = vadd.f32 %v2400_v18, %v8482_v14 }
 0x259   : > { %v2277_v25 = vpop.f32.mrf.mxu2  ;;  %v8760_v2 = vpop.f32.mrf.mxu0 }
 0x25a   : > { %v2402_v32 = vpop.f32.mrf.mxu3  ;;  %v8758_v9 = vadd.f32 %v2277_v25, %v2181_v62  ;;  %v2184_v14 = vpop.f32.mrf.mxu1  ;;  %v7071_v62 = vld [vmem:[%s9565_s1 + $0x50] sm:$0xff] }
 0x25b   : > { %3375 = vmatpush.bf16.msrb.mxu1 %v7071_v62 }
 0x25c   : > { %2522 = vmatmul.bf16.gmra.mxu0 %v8343_v61 }
 0x25d   : > { %2649 = vmatmul.bf16.gmra.mxu1 %v8343_v61 }
 0x25e   : > { %3075 = vmatmul.bf16.gmra.mxu2 %v8763_v24 }
 0x25f   : > { %3188 = vmatmul.bf16.gmra.mxu3 %v8766_v17  ;;  %3376 = vmatpush.bf16.msrb.mxu1 %v7070_v48  ;;  %v7078_v48 = vld [vmem:[%s9565_s1 + $0x88] sm:$0xff] }
 0x261   : > { %v2280_v11 = vpop.f32.mrf.mxu2  ;;  %v8783_v6 = vpop.f32.mrf.mxu0 }
 0x262   : > { %v2404_v59 = vpop.f32.mrf.mxu3  ;;  %v8778_v63 = vadd.f32 %v2280_v11, %v2184_v14  ;;  %v2186_v18 = vpop.f32.mrf.mxu1  ;;  %v8802_v11 = vld [vmem:[%s7744_s6 + $0x98] sm:$0xff]  }
 0x263   : > { %v8781_v61 = vadd.f32 %v2404_v59, %v8511_v41  ;;  %v7079_v59 = vld [vmem:[%s9565_s1 + $0x90] sm:$0xff] }
 0x264   : > { %3583 = vmatpush.bf16.msrb.mxu3 %v7079_v59  ;;  %v7344_v59 = vunpack.c.l.b16 %v7439_v44 }
 0x268   : > { %3584 = vmatpush.bf16.msrb.mxu3 %v7078_v48 }
 0x269   : > { %v2282_v27 = vpop.f32.mrf.mxu2  ;;  %v8796_v14 = vpop.f32.mrf.mxu0 }
 0x26a   : > { %v2406_v25 = vpop.f32.mrf.mxu3  ;;  %v8791_v32 = vadd.f32 %v2282_v27, %v2186_v18  ;;  %v2189_v7 = vpop.f32.mrf.mxu1 }
 0x26b   : > { %v8794_v41 = vadd.f32 %v2406_v25, %v8525_v40  ;;  %v7094_v40 = vld [vmem:[%s9565_s1 + $0x108] sm:$0xff] }
 0x26c   : > { %2527 = vmatmul.bf16.gmra.mxu0 %v8528_v58  ;;  %v8819_v25 = vld [vmem:[%s7744_s6 + $0xa8] sm:$0xff]  }
 0x26d   : > { %9586 = vst [vmem:[#allocation8_spill] sm:$0xff] %v8794_v41  ;;  %2654 = vmatmul.bf16.gmra.mxu1 %v8528_v58  ;;  %3280 = vmatpush.bf16.msrb.mxu0 %v7094_v40  ;;  %v7103_v40 = vld [vmem:[%s9565_s1 + $0x150] sm:$0xff]  ;;  %v8839_v41 = vld [vmem:[%s7744_s6 + $0xa0] sm:$0xff]  }
 0x26e   : > { %3080 = vmatmul.bf16.gmra.mxu2 %v8799_v35  ;;  %9588 = vst [vmem:[#allocation10_spill] sm:$0xff] %v8819_v25 }
 0x26f   : > { %3193 = vmatmul.bf16.gmra.mxu3 %v8802_v11  ;;  %3487 = vmatpush.bf16.msrb.mxu2 %v7103_v40  ;;  %9591 = vst [vmem:[#allocation13_spill] sm:$0xff] %v8839_v41 }
 0x271   : > { %v2285_v18 = vpop.f32.mrf.mxu2  ;;  %v8816_v27 = vpop.f32.mrf.mxu0 }
 0x272   : > { %v2409_v62 = vpop.f32.mrf.mxu3  ;;  %v8814_v52 = vadd.f32 %v2285_v18, %v2189_v7  ;;  %9587 = vst [vmem:[#allocation9_spill] sm:$0xff] %v8816_v27  ;;  %v2191_v58 = vpop.f32.mrf.mxu1  ;;  %v7341_v7 = vunpack.c.h.b16 %v8819_v25 }
 0x274   : > { %v8836_v8 = vpack.c.b16 %v7344_v59, %v7341_v7 }
 0x276   : > { %9590 = vst [vmem:[#allocation12_spill] sm:$0xff] %v8836_v8 }
 0x279   : > { %v2287_v18 = vpop.f32.mrf.mxu2  ;;  %v8834_v46 = vpop.f32.mrf.mxu0 }
 0x27a   : > { %v2410_v62 = vpop.f32.mrf.mxu3  ;;  %v8829_v47 = vadd.f32 %v2287_v18, %v2191_v58  ;;  %v2194_v27 = vpop.f32.mrf.mxu1 }
 0x27b   : > { %v8832_v37 = vadd.f32 %v2410_v62, %v8558_v19  ;;  %v7093_v19 = vld [vmem:[%s9565_s1 + $0x100] sm:$0xff] }
 0x27c   : > { %2532 = vmatmul.bf16.gmra.mxu0 %v8561_v53  ;;  %v7069_v62 = vld [vmem:[%s9565_s1 + $0x40] sm:$0xff] }
 0x27d   : > { %9589 = vst [vmem:[#allocation11_spill] sm:$0xff] %v8832_v37  ;;  %2659 = vmatmul.bf16.gmra.mxu1 %v8561_v53  ;;  %3281 = vmatpush.bf16.msrb.mxu0 %v7093_v19  ;;  %v7102_v19 = vld [vmem:[%s9565_s1 + $0x148] sm:$0xff] }
 0x27e   : > { %3084 = vmatmul.bf16.gmra.mxu2 %v8836_v8  ;;  %3377 = vmatpush.bf16.msrb.mxu1 %v7069_v62 }
 0x27f   : > { %3197 = vmatmul.bf16.gmra.mxu3 %v8839_v41  ;;  %3488 = vmatpush.bf16.msrb.mxu2 %v7102_v19 }
 0x281   : > { %v2290_v44 = vpop.f32.mrf.mxu2  ;;  %v8856_v7 = vpop.f32.mrf.mxu0 }
 0x282   : > { %v2413_v58 = vpop.f32.mrf.mxu3  ;;  %v8851_v40 = vadd.f32 %v2290_v44, %v2194_v27  ;;  %9593 = vst [vmem:[#allocation15_spill] sm:$0xff] %v8856_v7  ;;  %v2196_v18 = vpop.f32.mrf.mxu1  ;;  %v7077_v27 = vld [vmem:[%s9565_s1 + $0x80] sm:$0xff]  ;;  %v8875_v7 = vld [vmem:[%s7744_s6 + $0xb4] sm:$0xff]  }
 0x283   : > { %v8854_v53 = vadd.f32 %v2413_v58, %v8578_v15  ;;  %v7101_v15 = vld [vmem:[%s9565_s1 + $0x140] sm:$0xff]  ;;  %9596 = vst [vmem:[#allocation18_spill] sm:$0xff] %v8875_v7  ;;  %3585 = vmatpush.bf16.msrb.mxu3 %v7077_v27 }
 0x284   : > { %3489 = vmatpush.bf16.msrb.mxu2 %v7101_v15 }
 0x285   : > { %9592 = vst [vmem:[#allocation14_spill] sm:$0xff] %v8854_v53 }
 0x289   : > { %v2292_v48 = vpop.f32.mrf.mxu2  ;;  %v8872_v58 = vpop.f32.mrf.mxu0 }
 0x28a   : > { %v2415_v37 = vpop.f32.mrf.mxu3  ;;  %v8870_v44 = vadd.f32 %v2292_v48, %v2196_v18  ;;  %9595 = vst [vmem:[#allocation17_spill] sm:$0xff] %v8872_v58  ;;  %v2199_v53 = vpop.f32.mrf.mxu1 }
 0x28b   : > { %v7116_v37 = vld [vmem:[%s9565_s1 + $0x1b8] sm:$0xff] }
 0x28c   : > { %9594 = vst [vmem:[#allocation16_spill] sm:$0xff] %v8870_v44  ;;  %2537 = vmatmul.bf16.gmra.mxu0 %v8603_v49 }
 0x28d   : > { %2664 = vmatmul.bf16.gmra.mxu1 %v8603_v49  ;;  %3704 = vmatpush.bf16.msra.mxu0 %v7116_v37  ;;  %v7440_v49 = vld [vmem:[%s7744_s6 + $0xb8] sm:$0xff]  }
 0x28e   : > { %3088 = vmatmul.bf16.gmra.mxu2 %v8875_v7  ;;  %v7349_v58 = vunpack.c.h.b16 %v7440_v49 }
 0x28f   : > { %3201 = vmatmul.bf16.gmra.mxu3 %v8819_v25 }
 0x291   : > { %v2295_v18 = vpop.f32.mrf.mxu2  ;;  %v8889_v15 = vpop.f32.mrf.mxu0 }
 0x292   : > { %v2417_v62 = vpop.f32.mrf.mxu3  ;;  %v8884_v19 = vadd.f32 %v2295_v18, %v2199_v53  ;;  %v2201_v27 = vpop.f32.mrf.mxu1  ;;  %v8899_v53 = vpack.c.b16 %v7349_v58, %v7349_v58  ;;  %v8901_v18 = vpack.c.b16 %v7344_v59, %v7344_v59 }
 0x293   : > { %v8887_v48 = vadd.f32 %v2417_v62, %v8619_v54  ;;  %v7124_v54 = vld [vmem:[%s9565_s1 + $0x1f8] sm:$0xff] }
 0x294   : > { %9599 = vst [vmem:[#allocation21_spill] sm:$0xff] %v8899_v53  ;;  %3821 = vmatpush.bf16.msra.mxu1 %v7124_v54  ;;  %v7132_v54 = vld [vmem:[%s9565_s1 + $0x238] sm:$0xff] }
 0x295   : > { %9600 = vst [vmem:[#allocation22_spill] sm:$0xff] %v8901_v18  ;;  %3948 = vmatpush.bf16.msra.mxu2 %v7132_v54 }
 0x299   : > { %v2297_v7 = vpop.f32.mrf.mxu2  ;;  %v8897_v37 = vpop.f32.mrf.mxu0 }
 0x29a   : > { %v2419_v44 = vpop.f32.mrf.mxu3  ;;  %v8892_v25 = vadd.f32 %v2297_v7, %v2201_v27  ;;  %9598 = vst [vmem:[#allocation20_spill] sm:$0xff] %v8897_v37  ;;  %v2204_v8 = vpop.f32.mrf.mxu1 }
 0x29b   : > { %v8895_v41 = vadd.f32 %v2419_v44, %v8630_v60 }
 0x29c   : > { %2542 = vmatmul.bf16.gmra.mxu0 %v8632_v50 }
 0x29d   : > { %9597 = vst [vmem:[#allocation19_spill] sm:$0xff] %v8895_v41  ;;  %2669 = vmatmul.bf16.gmra.mxu1 %v8632_v50  ;;  %v7115_v50 = vld [vmem:[%s9565_s1 + $0x1b0] sm:$0xff] }
 0x29e   : > { %3093 = vmatmul.bf16.gmra.mxu2 %v8899_v53  ;;  %3705 = vmatpush.bf16.msra.mxu0 %v7115_v50 }
 0x29f   : > { %3206 = vmatmul.bf16.gmra.mxu3 %v8901_v18  ;;  %v7167_v18 = vld [vmem:[%s9565_s1 + $0xf8] sm:$0xff] }
 0x2a0   : > { %4328 = vmatpush.bf16.msra.mxu3 %v7167_v18 }
 0x2a1   : > { %v2300_v60 = vpop.f32.mrf.mxu2  ;;  %v2094_v58 = vpop.f32.mrf.mxu0 }
 0x2a2   : > { %v2422_v7 = vpop.f32.mrf.mxu3  ;;  %v8910_v44 = vadd.f32 %v2300_v60, %v2204_v8  ;;  %v2206_v62 = vpop.f32.mrf.mxu1  ;;  %v7123_v8 = vld [vmem:[%s9565_s1 + $0x1f0] sm:$0xff]  ;;  %v2058_v60 = vadd.f32 %v8658_v57, %v8410_v30 }
 0x2a3   : > { %3822 = vmatpush.bf16.msra.mxu1 %v7123_v8  ;;  %v2060_v7 = vadd.f32 %v8681_v39, %v8423_v23 }
 0x2a4   : > { %9601 = vst [vmem:[#allocation23_spill] sm:$0xff] %v8910_v44 }
 0x2a9   : > { %v2302_v59 = vpop.f32.mrf.mxu2  ;;  %v2508_v49 = vpop.f32.mrf.mxu0 }
 0x2aa   : > { %v2423_v27 = vpop.f32.mrf.mxu3  ;;  %v2635_v41 = vpop.f32.mrf.mxu1  ;;  %v2547_v58 = vadd.f32 %v2508_v49, %v2058_v60 }
 0x2ab   : > { %v2674_v62 = vadd.f32 %v2635_v41, %v8676_v10  ;;  %v7114_v10 = vld [vmem:[%s9565_s1 + $0x1a8] sm:$0xff]  ;;  %v7166_v41 = vld [vmem:[%s9565_s1 + $0xf0] sm:$0xff] }
 0x2ac   : > { %3282 = vmatmul.bf16.vlgmr.msrb.gmra.mxu0 %v8661_v3  ;;  %v2704_v30 = vrot.slane %v2547_v58, 1  ;;  %4329 = vmatpush.bf16.msra.mxu3 %v7166_v41  ;;  %v2065_v41 = vadd.f32 %v8714_v42, %v8463_v45 }
 0x2ad   : > { %3378 = vmatmul.bf16.vlgmr.msrb.gmra.mxu1 %v8664_v0  ;;  %v2764_v57 = vrot.slane %v2674_v62, 2  ;;  %3706 = vmatpush.bf16.msra.mxu0 %v7114_v10  ;;  %v8953_v62 = vld [vmem:[%s9566_s2] ss:$0 sm:$0xff] }
 0x2ae   : > { %3490 = vmatmul.bf16.vlgmr.msrb.gmra.mxu2 %v8661_v3 }
 0x2af   : > { %3586 = vmatmul.bf16.vlgmr.msrb.gmra.mxu3 %v8664_v0 }
 0x2b1   : > { %v3063_v59 = vpop.f32.mrf.mxu2  ;;  %v2510_v3 = vpop.f32.mrf.mxu0 }
 0x2b2   : > { %v3176_v27 = vpop.f32.mrf.mxu3  ;;  %v2637_v44 = vpop.f32.mrf.mxu1  ;;  %v2548_v0 = vadd.f32 %v2510_v3, %v2060_v7 }
 0x2b3   : > { %v8933_v53 = vadd.f32 %v3176_v27, %v3063_v59  ;;  %v2675_v37 = vadd.f32 %v2637_v44, %v8689_v51  ;;  %v2063_v51 = vadd.f32 %v8694_v4, %v8440_v56 }
 0x2b4   : > { %v2705_v18 = vrot.slane %v2548_v0, 1 }
 0x2b5   : > { %v2765_v50 = vrot.slane %v2675_v37, 2 }
 0x2b6   : > { %v2706_v8 = vsel %vm1381_vm0, %v2704_v30, %v2705_v18 }
 0x2b7   : > { %v2766_v23 = vsel %vm1442_vm1, %v2764_v57, %v2765_v50  ;;  %v2739_v39 = vadd.f32 %v2706_v8, %v8679_v12 }
 0x2b9   : > { %v3065_v44 = vpop.f32.mrf.mxu2  ;;  %v2799_v37 = vadd.f32 %v2766_v23, %v2739_v39  ;;  %v2513_v60 = vpop.f32.mrf.mxu0  ;;  %v7122_v39 = vld [vmem:[%s9565_s1 + $0x1e8] sm:$0xff] }
 0x2ba   : > { %v3178_v49 = vpop.f32.mrf.mxu3  ;;  %v2640_v7 = vpop.f32.mrf.mxu1  ;;  %v2549_v12 = vadd.f32 %v2513_v60, %v2063_v51  ;;  %3823 = vmatpush.bf16.msra.mxu1 %v7122_v39 }
 0x2bb   : > { %v8947_v54 = vadd.f32 %v3178_v49, %v3065_v44  ;;  %v2676_v58 = vadd.f32 %v2640_v7, %v8712_v36  ;;  %v2813_v36 = vadd.f32 %v8953_v62, %v2799_v37  ;;  %v2068_v49 = vadd.f32 %v8727_v16, %v8480_v38 }
 0x2bc   : > { %v2707_v59 = vrot.slane %v2549_v12, 1  ;;  %3287 = vmatmul.bf16.gmra.mxu0 %v8697_v1 }
 0x2bd   : > { %v2767_v27 = vrot.slane %v2676_v58, 2  ;;  %3383 = vmatmul.bf16.gmra.mxu1 %v8700_v26  ;;  %vm2823_vm12 = vcmp.ge.f32.partialorder %v2813_v36, 0.0 }
 0x2be   : > { %3495 = vmatmul.bf16.gmra.mxu2 %v8697_v1  ;;  %v2708_v56 = vsel %vm1381_vm0, %v2705_v18, %v2707_v59  ;;  %v7131_v1 = vld [vmem:[%s9565_s1 + $0x230] sm:$0xff]  ;;  %v2833_v18 = vmul.f32 0.2, %v2813_v36 }
 0x2bf   : > { %3591 = vmatmul.bf16.gmra.mxu3 %v8700_v26  ;;  %v2768_v4 = vsel %vm1442_vm1, %v2765_v50, %v2767_v27  ;;  %v2740_v3 = vadd.f32 %v2708_v56, %v8692_v31  ;;  %v7113_v26 = vld [vmem:[%s9565_s1 + $0x1a0] sm:$0xff]  ;;  %v7165_v50 = vld [vmem:[%s9565_s1 + $0xe8] sm:$0xff]  ;;  %3949 = vmatpush.bf16.msra.mxu2 %v7131_v1 }
 0x2c0   : > { %3707 = vmatpush.bf16.msra.mxu0 %v7113_v26  ;;  %4330 = vmatpush.bf16.msra.mxu3 %v7165_v50  ;;  %v2843_v51 = vsel %vm2823_vm12, %v2813_v36, %v2833_v18 }
 0x2c1   : > { %v3068_v0 = vpop.f32.mrf.mxu2  ;;  %v2800_v57 = vadd.f32 %v2768_v4, %v2740_v3  ;;  %v2515_v8 = vpop.f32.mrf.mxu0 }
 0x2c2   : > { %v3181_v30 = vpop.f32.mrf.mxu3  ;;  %v2642_v23 = vpop.f32.mrf.mxu1  ;;  %v2550_v60 = vadd.f32 %v2515_v8, %v2065_v41 }
 0x2c3   : > { %v2814_v31 = vadd.f32 %v8953_v62, %v2800_v57  ;;  %v2677_v7 = vadd.f32 %v2642_v23, %v8722_v13  ;;  %v7130_v30 = vld [vmem:[%s9565_s1 + $0x228] sm:$0xff]  ;;  %v2070_v57 = vadd.f32 %v8750_v55, %v8488_v22 }
 0x2c4   : > { %v2709_v45 = vrot.slane %v2550_v60, 1  ;;  %3950 = vmatpush.bf16.msra.mxu2 %v7130_v30  ;;  %v7112_v60 = vld [vmem:[%s9565_s1 + $0x198] sm:$0xff] }
 0x2c5   : > { %vm2824_vm13 = vcmp.ge.f32.partialorder %v2814_v31, 0.0  ;;  %v2834_v10 = vmul.f32 0.2, %v2814_v31  ;;  %v2769_v42 = vrot.slane %v2677_v7, 2  ;;  %3708 = vmatpush.bf16.msra.mxu0 %v7112_v60 }
 0x2c7   : > { %v2844_v44 = vsel %vm2824_vm13, %v2814_v31, %v2834_v10 }
 0x2c8   : > { %v7296_v37 = vpack.c.bf16 %v2844_v44, %v2843_v51 }
 0x2c9   : > { %v3069_v12 = vpop.f32.mrf.mxu2  ;;  %v2518_v27 = vpop.f32.mrf.mxu0 }
 0x2ca   : > { %v3182_v58 = vpop.f32.mrf.mxu3  ;;  %v2645_v56 = vpop.f32.mrf.mxu1  ;;  %7428 = vst [vmem:[%s8459_s16 + $0x28] sm:$0xff] %v7296_v37   ;;  %v2551_v4 = vadd.f32 %v2518_v27, %v2068_v49 }
 0x2cb   : > { %v8981_v59 = vadd.f32 %v3182_v58, %v3069_v12  ;;  %v2678_v3 = vadd.f32 %v2645_v56, %v8745_v34  ;;  %v7121_v34 = vld [vmem:[%s9565_s1 + $0x1e0] sm:$0xff]  ;;  %v2073_v56 = vadd.f32 %v8760_v2, %v8509_v21 }
 0x2cc   : > { %v2710_v36 = vrot.slane %v2551_v4, 1  ;;  %3292 = vmatmul.bf16.gmra.mxu0 %v8730_v20  ;;  %3824 = vmatpush.bf16.msra.mxu1 %v7121_v34  ;;  %v7129_v58 = vld [vmem:[%s9565_s1 + $0x220] sm:$0xff] }
 0x2cd   : > { %v2770_v0 = vrot.slane %v2678_v3, 2  ;;  %3388 = vmatmul.bf16.gmra.mxu1 %v8733_v29  ;;  %3951 = vmatpush.bf16.msra.mxu2 %v7129_v58 }
 0x2ce   : > { %3500 = vmatmul.bf16.gmra.mxu2 %v8730_v20  ;;  %v2711_v38 = vsel %vm1381_vm0, %v2709_v45, %v2710_v36  ;;  %v2075_v45 = vadd.f32 %v8783_v6, %v8523_v43 }
 0x2cf   : > { %3596 = vmatmul.bf16.gmra.mxu3 %v8733_v29  ;;  %v2771_v13 = vsel %vm1442_vm1, %v2769_v42, %v2770_v0  ;;  %v2741_v16 = vadd.f32 %v2711_v38, %v8725_v33 }
 0x2d1   : > { %v3072_v20 = vpop.f32.mrf.mxu2  ;;  %v2801_v29 = vadd.f32 %v2771_v13, %v2741_v16  ;;  %v2520_v39 = vpop.f32.mrf.mxu0 }
 0x2d2   : > { %v3185_v8 = vpop.f32.mrf.mxu3  ;;  %v2647_v1 = vpop.f32.mrf.mxu1  ;;  %v2552_v33 = vadd.f32 %v2520_v39, %v2070_v57  ;;  %v7163_v39 = vld [vmem:[%s9565_s1 + $0xd8] sm:$0xff] }
 0x2d3   : > { %v9000_v23 = vadd.f32 %v3185_v8, %v3072_v20  ;;  %v2679_v26 = vadd.f32 %v2647_v1, %v8758_v9  ;;  %v2815_v22 = vadd.f32 %v8953_v62, %v2801_v29  ;;  %v7164_v9 = vld [vmem:[%s9565_s1 + $0xe0] sm:$0xff]  ;;  %v7111_v29 = vld [vmem:[%s9565_s1 + $0x190] sm:$0xff] }
 0x2d4   : > { %v2712_v18 = vrot.slane %v2552_v33, 1  ;;  %4331 = vmatpush.bf16.msra.mxu3 %v7164_v9  ;;  %3709 = vmatpush.bf16.msra.mxu0 %v7111_v29 }
 0x2d5   : > { %v2772_v31 = vrot.slane %v2679_v26, 2  ;;  %v2835_v7 = vmul.f32 0.2, %v2815_v22  ;;  %vm2825_vm14 = vcmp.ge.f32.partialorder %v2815_v22, 0.0 }
 0x2d6   : > { %v2713_v50 = vsel %vm1381_vm0, %v2710_v36, %v2712_v18 }
 0x2d7   : > { %v2773_v10 = vsel %vm1442_vm1, %v2770_v0, %v2772_v31  ;;  %v2742_v55 = vadd.f32 %v2713_v50, %v8748_v28  ;;  %v7120_v28 = vld [vmem:[%s9565_s1 + $0x1d8] sm:$0xff]  ;;  %v2845_v4 = vsel %vm2825_vm14, %v2815_v22, %v2835_v7  ;;  %v7119_v7 = vld [vmem:[%s9565_s1 + $0x1d0] sm:$0xff] }
 0x2d8   : > { %3825 = vmatpush.bf16.msra.mxu1 %v7120_v28  ;;  %4332 = vmatpush.bf16.msra.mxu3 %v7163_v39 }
 0x2d9   : > { %v3074_v41 = vpop.f32.mrf.mxu2  ;;  %v2802_v44 = vadd.f32 %v2773_v10, %v2742_v55  ;;  %v2523_v49 = vpop.f32.mrf.mxu0 }
 0x2da   : > { %v3187_v51 = vpop.f32.mrf.mxu3  ;;  %v2650_v37 = vpop.f32.mrf.mxu1  ;;  %v2553_v36 = vadd.f32 %v2523_v49, %v2073_v56 }
 0x2db   : > { %v2816_v12 = vadd.f32 %v8953_v62, %v2802_v44  ;;  %v2680_v0 = vadd.f32 %v2650_v37, %v8778_v63  ;;  %v9602_v51 = vld [vmem:[#allocation8_spill] sm:$0xff] }
 0x2dc   : > { %3297 = vmatmul.bf16.gmra.mxu0 %v8763_v24  ;;  %v2714_v30 = vrot.slane %v2553_v36, 1  ;;  %3826 = vmatpush.bf16.msra.mxu1 %v7119_v7  ;;  %v7126_v7 = vld [vmem:[%s9565_s1 + $0x208] sm:$0xff] }
 0x2dd   : > { %3393 = vmatmul.bf16.gmra.mxu1 %v8766_v17  ;;  %vm2826_vm15 = vcmp.ge.f32.partialorder %v2816_v12, 0.0  ;;  %v2836_v27 = vmul.f32 0.2, %v2816_v12  ;;  %v2774_v57 = vrot.slane %v2680_v0, 2  ;;  %v9605_v0 = vld [vmem:[#allocation3_spill] sm:$0xff] }
 0x2de   : > { %3505 = vmatmul.bf16.gmra.mxu2 %v8763_v24 }
 0x2df   : > { %3601 = vmatmul.bf16.gmra.mxu3 %v8766_v17  ;;  %v2846_v3 = vsel %vm2826_vm15, %v2816_v12, %v2836_v27  ;;  %v7110_v12 = vld [vmem:[%s9565_s1 + $0x188] sm:$0xff]  ;;  %v7162_v27 = vld [vmem:[%s9565_s1 + $0xd0] sm:$0xff] }
 0x2e0   : > { %v7301_v42 = vpack.c.bf16 %v2846_v3, %v2845_v4  ;;  %3710 = vmatpush.bf16.msra.mxu0 %v7110_v12  ;;  %4333 = vmatpush.bf16.msra.mxu3 %v7162_v27  ;;  %v9603_v4 = vld [vmem:[#allocation2_spill] sm:$0xff]  ;;  %v9604_v3 = vld [vmem:[#allocation9_spill] sm:$0xff] }
 0x2e1   : > { %v3076_v24 = vpop.f32.mrf.mxu2  ;;  %v2525_v16 = vpop.f32.mrf.mxu0 }
 0x2e2   : > { %v3189_v38 = vpop.f32.mrf.mxu3  ;;  %v2652_v21 = vpop.f32.mrf.mxu1  ;;  %7429 = vst [vmem:[%s8459_s16 + $0x30] sm:$0xff] %v7301_v42   ;;  %v2554_v2 = vadd.f32 %v2525_v16, %v2075_v45  ;;  %v2080_v45 = vadd.f32 %v9604_v3, %v9603_v4  ;;  %v7109_v3 = vld [vmem:[%s9565_s1 + $0x180] sm:$0xff] }
 0x2e3   : > { %v9029_v13 = vadd.f32 %v3189_v38, %v3076_v24  ;;  %v2681_v34 = vadd.f32 %v2652_v21, %v8791_v32  ;;  %v2078_v32 = vadd.f32 %v8796_v14, %v8538_v5  ;;  %v2083_v24 = vadd.f32 %v8834_v46, %v9605_v0  ;;  %v9607_v46 = vld [vmem:[#allocation13_spill] sm:$0xff] }
 0x2e4   : > { %v2715_v20 = vrot.slane %v2554_v2, 1  ;;  %3711 = vmatpush.bf16.msra.mxu0 %v7109_v3 }
 0x2e5   : > { %v2775_v8 = vrot.slane %v2681_v34, 2 }
 0x2e6   : > { %v2716_v43 = vsel %vm1381_vm0, %v2714_v30, %v2715_v20 }
 0x2e7   : > { %v2776_v6 = vsel %vm1442_vm1, %v2774_v57, %v2775_v8  ;;  %v2743_v63 = vadd.f32 %v2716_v43, %v8781_v61 }
 0x2e9   : > { %v3078_v1 = vpop.f32.mrf.mxu2  ;;  %v2803_v26 = vadd.f32 %v2776_v6, %v2743_v63  ;;  %v2528_v31 = vpop.f32.mrf.mxu0 }
 0x2ea   : > { %v3191_v33 = vpop.f32.mrf.mxu3  ;;  %v2655_v50 = vpop.f32.mrf.mxu1  ;;  %v2555_v61 = vadd.f32 %v2528_v31, %v2078_v32  ;;  %v9606_v32 = vld [vmem:[#allocation12_spill] sm:$0xff] }
 0x2eb   : > { %v9044_v18 = vadd.f32 %v3191_v33, %v3078_v1  ;;  %v2682_v10 = vadd.f32 %v2655_v50, %v8814_v52  ;;  %v2817_v41 = vadd.f32 %v8953_v62, %v2803_v26  ;;  %v9608_v33 = vld [vmem:[#allocation11_spill] sm:$0xff]  ;;  %v7127_v31 = vld [vmem:[%s9565_s1 + $0x210] sm:$0xff] }
 0x2ec   : > { %v2717_v22 = vrot.slane %v2555_v61, 1  ;;  %3302 = vmatmul.bf16.gmra.mxu0 %v8799_v35  ;;  %v9609_v50 = vld [vmem:[#allocation4_spill] sm:$0xff]  ;;  %v9610_v61 = vld [vmem:[#allocation15_spill] sm:$0xff] }
 0x2ed   : > { %v2777_v55 = vrot.slane %v2682_v10, 2  ;;  %3398 = vmatmul.bf16.gmra.mxu1 %v8802_v11  ;;  %v2837_v28 = vmul.f32 0.2, %v2817_v41  ;;  %vm2827_vm2 = vcmp.ge.f32.partialorder %v2817_v41, 0.0  ;;  %v2085_v10 = vadd.f32 %v9610_v61, %v9609_v50  ;;  %v7142_v50 = vld [vmem:[%s9565_s1 + $0x30] sm:$0xff] }
 0x2ee   : > { %3510 = vmatmul.bf16.gmra.mxu2 %v8799_v35  ;;  %v2718_v5 = vsel %vm1381_vm0, %v2715_v20, %v2717_v22  ;;  %v7128_v35 = vld [vmem:[%s9565_s1 + $0x218] sm:$0xff] }
 0x2ef   : > { %3606 = vmatmul.bf16.gmra.mxu3 %v8802_v11  ;;  %v2778_v14 = vsel %vm1442_vm1, %v2775_v8, %v2777_v55  ;;  %v2744_v44 = vadd.f32 %v2718_v5, %v9602_v51  ;;  %3952 = vmatpush.bf16.msra.mxu2 %v7128_v35  ;;  %v2847_v42 = vsel %vm2827_vm2, %v2817_v41, %v2837_v28 }
 0x2f1   : > { %v3081_v49 = vpop.f32.mrf.mxu2  ;;  %v2804_v37 = vadd.f32 %v2778_v14, %v2744_v44  ;;  %v2530_v60 = vpop.f32.mrf.mxu0 }
 0x2f2   : > { %v3194_v52 = vpop.f32.mrf.mxu3  ;;  %v2657_v9 = vpop.f32.mrf.mxu1  ;;  %v2556_v16 = vadd.f32 %v2530_v60, %v2080_v45  ;;  %v9611_v49 = vld [vmem:[#allocation16_spill] sm:$0xff]  ;;  %v7117_v45 = vld [vmem:[%s9565_s1 + $0x1c0] sm:$0xff] }
 0x2f3   : > { %v2818_v58 = vadd.f32 %v8953_v62, %v2804_v37  ;;  %v2683_v21 = vadd.f32 %v2657_v9, %v8829_v47  ;;  %3953 = vmatpush.bf16.msra.mxu2 %v7127_v31  ;;  %v7161_v9 = vld [vmem:[%s9565_s1 + $0xc8] sm:$0xff] }
 0x2f4   : > { %v2719_v6 = vrot.slane %v2556_v16, 1  ;;  %4334 = vmatpush.bf16.msra.mxu3 %v7161_v9  ;;  %v9619_v9 = vld [vmem:[#allocation20_spill] sm:$0xff] }
 0x2f5   : > { %vm2828_vm3 = vcmp.ge.f32.partialorder %v2818_v58, 0.0  ;;  %v2838_v56 = vmul.f32 0.2, %v2818_v58  ;;  %v2779_v63 = vrot.slane %v2683_v21, 2 }
 0x2f7   : > { %v2848_v36 = vsel %vm2828_vm3, %v2818_v58, %v2838_v56  ;;  %3954 = vmatpush.bf16.msra.mxu2 %v7126_v7  ;;  %v9612_v58 = vld [vmem:[#allocation14_spill] sm:$0xff] }
 0x2f8   : > { %v7306_v38 = vpack.c.bf16 %v2848_v36, %v2847_v42  ;;  %v7125_v42 = vld [vmem:[%s9565_s1 + $0x200] sm:$0xff] }
 0x2f9   : > { %v3082_v2 = vpop.f32.mrf.mxu2  ;;  %v2533_v57 = vpop.f32.mrf.mxu0 }
 0x2fa   : > { %v3195_v34 = vpop.f32.mrf.mxu3  ;;  %v2660_v20 = vpop.f32.mrf.mxu1  ;;  %7430 = vst [vmem:[%s8459_s16 + $0x38] sm:$0xff] %v7306_v38   ;;  %v2557_v8 = vadd.f32 %v2533_v57, %v2083_v24  ;;  %v7160_v38 = vld [vmem:[%s9565_s1 + $0xc0] sm:$0xff]  ;;  %v7143_v57 = vld [vmem:[%s9565_s1 + $0x38] sm:$0xff] }
 0x2fb   : > { %v9073_v30 = vadd.f32 %v3195_v34, %v3082_v2  ;;  %v2684_v43 = vadd.f32 %v2660_v20, %v8851_v40  ;;  %v7118_v40 = vld [vmem:[%s9565_s1 + $0x1c8] sm:$0xff]  ;;  %3955 = vmatpush.bf16.msra.mxu2 %v7125_v42  ;;  %4335 = vmatpush.bf16.msra.mxu3 %v7160_v38  ;;  %v9613_v2 = vld [vmem:[#allocation18_spill] sm:$0xff]  ;;  %v7139_v38 = vld [vmem:[%s9565_s1 + $0x18] sm:$0xff] }
 0x2fc   : > { %v2720_v29 = vrot.slane %v2557_v8, 1  ;;  %3307 = vmatmul.bf16.gmra.mxu0 %v9606_v32  ;;  %3827 = vmatpush.bf16.msra.mxu1 %v7118_v40  ;;  %v9614_v34 = vld [vmem:[#allocation10_spill] sm:$0xff]  ;;  %v7183_v8 = vld [vmem:[%s9565_s1 + $0x178] sm:$0xff] }
 0x2fd   : > { %v2780_v39 = vrot.slane %v2684_v43, 2  ;;  %3403 = vmatmul.bf16.gmra.mxu1 %v9607_v46  ;;  %v9615_v43 = vld [vmem:[#allocation5_spill] sm:$0xff]  ;;  %4632 = vmatpush.bf16.msrb.mxu0 %v7183_v8 }
 0x2fe   : > { %3515 = vmatmul.bf16.gmra.mxu2 %v9606_v32  ;;  %v2721_v47 = vsel %vm1381_vm0, %v2719_v6, %v2720_v29  ;;  %v9616_v6 = vld [vmem:[#allocation17_spill] sm:$0xff]  ;;  %v9617_v32 = vld [vmem:[#allocation6_spill] sm:$0xff] }
 0x2ff   : > { %3611 = vmatmul.bf16.gmra.mxu3 %v9607_v46  ;;  %v2781_v1 = vsel %vm1442_vm1, %v2779_v63, %v2780_v39  ;;  %v2745_v26 = vadd.f32 %v2721_v47, %v9608_v33  ;;  %v2088_v63 = vadd.f32 %v9616_v6, %v9615_v43  ;;  %v2090_v47 = vadd.f32 %v8889_v15, %v9617_v32  ;;  %v7159_v15 = vld [vmem:[%s9565_s1 + $0xb8] sm:$0xff]  ;;  %v7138_v6 = vld [vmem:[%s9565_s1 + $0x10] sm:$0xff] }
 0x300   : > { %3828 = vmatpush.bf16.msra.mxu1 %v7117_v45  ;;  %4403 = vmatpush.bf16.msrb.mxu3 %v7143_v57  ;;  %v9620_v45 = vld [vmem:[#allocation23_spill] sm:$0xff]  ;;  %v7158_v32 = vld [vmem:[%s9565_s1 + $0xb0] sm:$0xff] }
 0x301   : > { %v3085_v22 = vpop.f32.mrf.mxu2  ;;  %v2805_v5 = vadd.f32 %v2781_v1, %v2745_v26  ;;  %v2535_v41 = vpop.f32.mrf.mxu0  ;;  %v9623_v57 = vld [vmem:[#allocation19_spill] sm:$0xff] }
 0x302   : > { %v3198_v55 = vpop.f32.mrf.mxu3  ;;  %v2662_v51 = vpop.f32.mrf.mxu1  ;;  %v2558_v44 = vadd.f32 %v2535_v41, %v2085_v10 }
 0x303   : > { %v9092_v14 = vadd.f32 %v3198_v55, %v3085_v22  ;;  %v2685_v52 = vadd.f32 %v2662_v51, %v9611_v49  ;;  %v2819_v28 = vadd.f32 %v8953_v62, %v2805_v5 }
 0x304   : > { %v2722_v37 = vrot.slane %v2558_v44, 1  ;;  %4404 = vmatpush.bf16.msrb.mxu3 %v7142_v50  ;;  %4698 = vmatpush.bf16.msrb.mxu1 %v7159_v15 }
 0x305   : > { %v2782_v60 = vrot.slane %v2685_v52, 2  ;;  %v2839_v16 = vmul.f32 0.2, %v2819_v28  ;;  %vm2829_vm4 = vcmp.ge.f32.partialorder %v2819_v28, 0.0 }
 0x306   : > { %v2723_v35 = vsel %vm1381_vm0, %v2720_v29, %v2722_v37 }
 0x307   : > { %v2783_v12 = vsel %vm1442_vm1, %v2780_v39, %v2782_v60  ;;  %v2746_v27 = vadd.f32 %v2723_v35, %v9612_v58  ;;  %v2849_v29 = vsel %vm2829_vm4, %v2819_v28, %v2839_v16  ;;  %v9618_v60 = vld [vmem:[#allocation7_spill] sm:$0xff]  ;;  %v7140_v28 = vld [vmem:[%s9565_s1 + $0x20] sm:$0xff]  ;;  %v7182_v16 = vld [vmem:[%s9565_s1 + $0x170] sm:$0xff] }
 0x308   : > { %v2093_v7 = vadd.f32 %v9619_v9, %v9618_v60  ;;  %4633 = vmatpush.bf16.msrb.mxu0 %v7182_v16  ;;  %4699 = vmatpush.bf16.msrb.mxu1 %v7158_v32 }
 0x309   : > { %v3087_v56 = vpop.f32.mrf.mxu2  ;;  %v2806_v36 = vadd.f32 %v2783_v12, %v2746_v27  ;;  %v2538_v0 = vpop.f32.mrf.mxu0 }
 0x30a   : > { %v3200_v4 = vpop.f32.mrf.mxu3  ;;  %v2665_v24 = vpop.f32.mrf.mxu1  ;;  %v2559_v33 = vadd.f32 %v2538_v0, %v2088_v63  ;;  %v9621_v0 = vld [vmem:[#allocation21_spill] sm:$0xff] }
 0x30b   : > { %v2820_v21 = vadd.f32 %v8953_v62, %v2806_v36  ;;  %v2686_v26 = vadd.f32 %v2665_v24, %v8884_v19  ;;  %v7141_v19 = vld [vmem:[%s9565_s1 + $0x28] sm:$0xff]  ;;  %v9622_v24 = vld [vmem:[#allocation22_spill] sm:$0xff] }
 0x30c   : > { %3312 = vmatmul.bf16.gmra.mxu0 %v9613_v2  ;;  %v2724_v41 = vrot.slane %v2559_v33, 1  ;;  %4405 = vmatpush.bf16.msrb.mxu3 %v7141_v19 }
 0x30d   : > { %3408 = vmatmul.bf16.gmra.mxu1 %v9614_v34  ;;  %vm2830_vm5 = vcmp.ge.f32.partialorder %v2820_v21, 0.0  ;;  %v2840_v20 = vmul.f32 0.2, %v2820_v21  ;;  %v2784_v51 = vrot.slane %v2686_v26, 2 }
 0x30e   : > { %3520 = vmatmul.bf16.gmra.mxu2 %v9613_v2 }
 0x30f   : > { %3616 = vmatmul.bf16.gmra.mxu3 %v9614_v34  ;;  %v2850_v39 = vsel %vm2830_vm5, %v2820_v21, %v2840_v20 }
 0x310   : > { %v7311_v1 = vpack.c.bf16 %v2850_v39, %v2849_v29  ;;  %4406 = vmatpush.bf16.msrb.mxu3 %v7140_v28  ;;  %v7190_v28 = vld [vmem:[%s9565_s1 + $0x1b0] sm:$0xff] }
 0x311   : > { %v3089_v40 = vpop.f32.mrf.mxu2  ;;  %v2540_v10 = vpop.f32.mrf.mxu0 }
 0x312   : > { %v3202_v31 = vpop.f32.mrf.mxu3  ;;  %v2667_v22 = vpop.f32.mrf.mxu1  ;;  %7431 = vst [vmem:[%s8459_s16 + $0x40] sm:$0xff] %v7311_v1   ;;  %v2560_v55 = vadd.f32 %v2540_v10, %v2090_v47  ;;  %v7137_v47 = vld [vmem:[%s9565_s1 + $0x8] sm:$0xff]  ;;  %v7191_v1 = vld [vmem:[%s9565_s1 + $0x1b8] sm:$0xff] }
 0x313   : > { %v9136_v61 = vadd.f32 %v3202_v31, %v3089_v40  ;;  %v2687_v5 = vadd.f32 %v2667_v22, %v8892_v25  ;;  %4790 = vmatpush.bf16.msrb.mxu2 %v7191_v1 }
 0x314   : > { %v2725_v44 = vrot.slane %v2560_v55, 1  ;;  %4407 = vmatpush.bf16.msrb.mxu3 %v7139_v38  ;;  %v7180_v38 = vld [vmem:[%s9565_s1 + $0x160] sm:$0xff] }
 0x315   : > { %v2785_v49 = vrot.slane %v2687_v5, 2  ;;  %v7136_v5 = vld [vmem:[%s9565_s1] sm:$0xff] }
 0x316   : > { %v2726_v52 = vsel %vm1381_vm0, %v2724_v41, %v2725_v44  ;;  %v9188_v41 = vld [vmem:[%s7744_s6 + $0xc0] sm:$0xff] }
 0x317   : > { %v2786_v37 = vsel %vm1442_vm1, %v2784_v51, %v2785_v49  ;;  %v2747_v25 = vadd.f32 %v2726_v52, %v8887_v48  ;;  %v7175_v51 = vld [vmem:[%s9565_s1 + $0x138] sm:$0xff]  ;;  %4791 = vmatpush.bf16.msrb.mxu2 %v7190_v28 }
 0x318   : > { %4408 = vmatpush.bf16.msrb.mxu3 %v7138_v6  ;;  %v7189_v6 = vld [vmem:[%s9565_s1 + $0x1a8] sm:$0xff] }
 0x319   : > { %v3091_v35 = vpop.f32.mrf.mxu2  ;;  %v2807_v58 = vadd.f32 %v2786_v37, %v2747_v25  ;;  %v2543_v56 = vpop.f32.mrf.mxu0  ;;  %v7174_v37 = vld [vmem:[%s9565_s1 + $0x130] sm:$0xff] }
 0x31a   : > { %v3204_v12 = vpop.f32.mrf.mxu3  ;;  %v2670_v4 = vpop.f32.mrf.mxu1  ;;  %v2561_v3 = vadd.f32 %v2543_v56, %v2093_v7  ;;  %v6474_v7 = vld [vmem:[%s7744_s6 + $0xc8] sm:$0xf] }
 0x31b   : > { %v9154_v27 = vadd.f32 %v3204_v12, %v3091_v35  ;;  %v2688_v42 = vadd.f32 %v2670_v4, %v9620_v45  ;;  %v2821_v34 = vadd.f32 %v8953_v62, %v2807_v58  ;;  %v7157_v35 = vld [vmem:[%s9565_s1 + $0xa8] sm:$0xff]  ;;  %v4275_v58 = vunpack.c.l.b16 %v6474_v7  ;;  %4792 = vmatpush.bf16.msrb.mxu2 %v7189_v6 }
 0x31c   : > { %v2727_v36 = vrot.slane %v2561_v3, 1  ;;  %3317 = vmatmul.bf16.gmra.mxu0 %v9621_v0  ;;  %4409 = vmatpush.bf16.msrb.mxu3 %v7137_v47  ;;  %v7173_v12 = vld [vmem:[%s9565_s1 + $0x128] sm:$0xff]  ;;  %v7172_v3 = vld [vmem:[%s9565_s1 + $0x120] sm:$0xff] }
 0x31d   : > { %v2787_v48 = vrot.slane %v2688_v42, 2  ;;  %3413 = vmatmul.bf16.gmra.mxu1 %v9622_v24  ;;  %v2841_v33 = vmul.f32 0.2, %v2821_v34  ;;  %vm2831_vm6 = vcmp.ge.f32.partialorder %v2821_v34, 0.0 }
 0x31e   : > { %3525 = vmatmul.bf16.gmra.mxu2 %v9621_v0  ;;  %v2728_v21 = vsel %vm1381_vm0, %v2725_v44, %v2727_v36  ;;  %v7181_v44 = vld [vmem:[%s9565_s1 + $0x168] sm:$0xff]  ;;  %4700 = vmatpush.bf16.msrb.mxu1 %v7157_v35 }
 0x31f   : > { %3621 = vmatmul.bf16.gmra.mxu3 %v9622_v24  ;;  %v2788_v2 = vsel %vm1442_vm1, %v2785_v49, %v2787_v48  ;;  %v2748_v20 = vadd.f32 %v2728_v21, %v9623_v57  ;;  %v2851_v31 = vsel %vm2831_vm6, %v2821_v34, %v2841_v33  ;;  %4634 = vmatpush.bf16.msrb.mxu0 %v7181_v44  ;;  %v7171_v24 = vld [vmem:[%s9565_s1 + $0x118] sm:$0xff]  ;;  %v7149_v44 = vld [vmem:[%s9565_s1 + $0x68] sm:$0xff] }
 0x320   : > { %4410 = vmatpush.bf16.msrb.mxu3 %v7136_v5  ;;  %v9225_v48 = vpack.c.b16 %v4275_v58, %v4275_v58  ;;  %v9261_v33 = vld [vmem:[%s7744_s6 + $0xb4] sm:$0xff] }
 0x321   : > { %v3094_v8 = vpop.f32.mrf.mxu2  ;;  %v2808_v63 = vadd.f32 %v2788_v2, %v2748_v20  ;;  %v2545_v29 = vpop.f32.mrf.mxu0  ;;  %v7170_v2 = vld [vmem:[%s9565_s1 + $0x110] sm:$0xff] }
 0x322   : > { %v3207_v43 = vpop.f32.mrf.mxu3  ;;  %v2672_v39 = vpop.f32.mrf.mxu1  ;;  %v7156_v8 = vld [vmem:[%s9565_s1 + $0xa0] sm:$0xff] }
 0x323   : > { %v2822_v26 = vadd.f32 %v8953_v62, %v2808_v63  ;;  %4635 = vmatpush.bf16.msrb.mxu0 %v7180_v38  ;;  %v7169_v43 = vld [vmem:[%s9565_s1 + $0x108] sm:$0xff]  ;;  %4701 = vmatpush.bf16.msrb.mxu1 %v7156_v8  ;;  %v7168_v39 = vld [vmem:[%s9565_s1 + $0x100] sm:$0xff]  ;;  %v7187_v8 = vld [vmem:[%s9565_s1 + $0x198] sm:$0xff] }
 0x325   : > { %vm2832_vm7 = vcmp.ge.f32.partialorder %v2822_v26, 0.0  ;;  %v2842_v40 = vmul.f32 0.2, %v2822_v26 }
 0x327   : > { %v2852_v50 = vsel %vm2832_vm7, %v2822_v26, %v2842_v40  ;;  %v7151_v40 = vld [vmem:[%s9565_s1 + $0x78] sm:$0xff] }
 0x328   : > { %v7316_v10 = vpack.c.bf16 %v2852_v50, %v2851_v31  ;;  %v7179_v31 = vld [vmem:[%s9565_s1 + $0x158] sm:$0xff] }
 0x329   : > { %v3095_v22 = vpop.f32.mrf.mxu2  ;;  %v3283_v15 = vpop.f32.mrf.mxu0  ;;  %4636 = vmatpush.bf16.msrb.mxu0 %v7179_v31  ;;  %v7199_v31 = vld [vmem:[%s9565_s1 + $0x1f8] sm:$0xff] }
 0x32a   : > { %v3208_v55 = vpop.f32.mrf.mxu3  ;;  %v3379_v19 = vpop.f32.mrf.mxu1  ;;  %7432 = vst [vmem:[%s8459_s16 + $0x48] sm:$0xff] %v7316_v10   ;;  %v7150_v22 = vld [vmem:[%s9565_s1 + $0x70] sm:$0xff] }
 0x32b   : > { %v9191_v62 = vadd.f32 %v3379_v19, %v3283_v15  ;;  %v6471_v19 = vld [vmem:[%s7744_s6 + $0xbc] sm:$0xf] }
 0x32c   : > { %3712 = vmatmul.bf16.vlgmr.msra.gmra.mxu0 %v8766_v17 }
 0x32d   : > { %3829 = vmatmul.bf16.vlgmr.msra.gmra.mxu1 %v8766_v17 }
 0x32e   : > { %3956 = vmatmul.bf16.vlgmr.msra.gmra.mxu2 %v8766_v17 }
 0x32f   : > { %4336 = vmatmul.bf16.vlgmr.msra.gmra.mxu3 %v9188_v41 }
 0x330   : > { %4484 = vmatpush.bf16.msra.mxu3 %v7175_v51  ;;  %v7155_v51 = vld [vmem:[%s9565_s1 + $0x98] sm:$0xff] }
 0x331   : > { %v3491_v49 = vpop.f32.mrf.mxu2  ;;  %v3285_v60 = vpop.f32.mrf.mxu0  ;;  %4702 = vmatpush.bf16.msrb.mxu1 %v7155_v51 }
 0x332   : > { %v3587_v52 = vpop.f32.mrf.mxu3  ;;  %v3381_v9 = vpop.f32.mrf.mxu1 }
 0x333   : > { %v9206_v25 = vadd.f32 %v3587_v52, %v3491_v49  ;;  %v9209_v17 = vadd.f32 %v3381_v9, %v3285_v60  ;;  %v7188_v49 = vld [vmem:[%s9565_s1 + $0x1a0] sm:$0xff]  ;;  %v4350_v52 = vunpack.c.l.b16 %v6471_v19 }
 0x334   : > { %4485 = vmatpush.bf16.msra.mxu3 %v7174_v37  ;;  %4793 = vmatpush.bf16.msrb.mxu2 %v7188_v49  ;;  %v7148_v9 = vld [vmem:[%s9565_s1 + $0x60] sm:$0xff]  ;;  %v7153_v49 = vld [vmem:[%s9565_s1 + $0x88] sm:$0xff] }
 0x335   : > { %v9297_v28 = vpack.c.b16 %v4350_v52, %v4350_v52  ;;  %v7186_v52 = vld [vmem:[%s9565_s1 + $0x190] sm:$0xff] }
 0x338   : > { %4486 = vmatpush.bf16.msra.mxu3 %v7173_v12  ;;  %4794 = vmatpush.bf16.msrb.mxu2 %v7187_v8 }
 0x339   : > { %v3493_v56 = vpop.f32.mrf.mxu2  ;;  %v3288_v42 = vpop.f32.mrf.mxu0 }
 0x33a   : > { %v3589_v4 = vpop.f32.mrf.mxu3  ;;  %v3384_v36 = vpop.f32.mrf.mxu1 }
 0x33b   : > { %v9223_v45 = vadd.f32 %v3589_v4, %v3493_v56  ;;  %v9227_v0 = vadd.f32 %v3384_v36, %v3288_v42  ;;  %v7579_v56 = vld [vmem:[%s7744_s6 + $0xa8] sm:$0xff]   ;;  %v7147_v4 = vld [vmem:[%s9565_s1 + $0x58] sm:$0xff] }
 0x33c   : > { %4487 = vmatpush.bf16.msra.mxu3 %v7172_v3  ;;  %3717 = vmatmul.bf16.gmra.mxu0 %v8802_v11  ;;  %v7178_v3 = vld [vmem:[%s9565_s1 + $0x150] sm:$0xff] }
 0x33d   : > { %3834 = vmatmul.bf16.gmra.mxu1 %v8802_v11  ;;  %4637 = vmatpush.bf16.msrb.mxu0 %v7178_v3 }
 0x33e   : > { %3961 = vmatmul.bf16.gmra.mxu2 %v8802_v11 }
 0x33f   : > { %4341 = vmatmul.bf16.gmra.mxu3 %v9225_v48  ;;  %4795 = vmatpush.bf16.msrb.mxu2 %v7186_v52  ;;  %v7207_v52 = vld [vmem:[%s9565_s1 + $0x238] sm:$0xff] }
 0x340   : > { %4488 = vmatpush.bf16.msra.mxu3 %v7171_v24  ;;  %v7146_v24 = vld [vmem:[%s9565_s1 + $0x50] sm:$0xff] }
 0x341   : > { %v3496_v16 = vpop.f32.mrf.mxu2  ;;  %v3290_v57 = vpop.f32.mrf.mxu0 }
 0x342   : > { %v3592_v21 = vpop.f32.mrf.mxu3  ;;  %v3386_v20 = vpop.f32.mrf.mxu1 }
 0x343   : > { %v9242_v34 = vadd.f32 %v3592_v21, %v3496_v16  ;;  %v9244_v11 = vadd.f32 %v3386_v20, %v3290_v57  ;;  %v7154_v57 = vld [vmem:[%s9565_s1 + $0x90] sm:$0xff]  ;;  %v7145_v20 = vld [vmem:[%s9565_s1 + $0x48] sm:$0xff] }
 0x344   : > { %4489 = vmatpush.bf16.msra.mxu3 %v7170_v2  ;;  %4703 = vmatpush.bf16.msrb.mxu1 %v7154_v57  ;;  %v7194_v57 = vld [vmem:[%s9565_s1 + $0x1d0] sm:$0xff] }
 0x348   : > { %4490 = vmatpush.bf16.msra.mxu3 %v7169_v43  ;;  %4704 = vmatpush.bf16.msrb.mxu1 %v7153_v49 }
 0x349   : > { %v3498_v63 = vpop.f32.mrf.mxu2  ;;  %v3293_v47 = vpop.f32.mrf.mxu0 }
 0x34a   : > { %v3594_v29 = vpop.f32.mrf.mxu3  ;;  %v3389_v1 = vpop.f32.mrf.mxu1 }
 0x34b   : > { %v9258_v32 = vadd.f32 %v3594_v29, %v3498_v63  ;;  %v9263_v26 = vadd.f32 %v3389_v1, %v3293_v47  ;;  %v7144_v63 = vld [vmem:[%s9565_s1 + $0x40] sm:$0xff] }
 0x34c   : > { %4491 = vmatpush.bf16.msra.mxu3 %v7168_v39  ;;  %3721 = vmatmul.bf16.gmra.mxu0 %v9607_v46 }
 0x34d   : > { %3839 = vmatmul.bf16.gmra.mxu1 %v9607_v46 }
 0x34e   : > { %3966 = vmatmul.bf16.gmra.mxu2 %v9607_v46 }
 0x34f   : > { %4411 = vmatmul.bf16.vlgmr.msrb.gmra.mxu3 %v9261_v33 }
 0x350   : > { %4550 = vmatpush.bf16.msrb.mxu3 %v7151_v40  ;;  %v7580_v40 = vld [vmem:[%s7744_s6 + $0xb0] sm:$0xff]  }
 0x351   : > { %v3501_v50 = vpop.f32.mrf.mxu2  ;;  %v3295_v5 = vpop.f32.mrf.mxu0 }
 0x352   : > { %v3597_v10 = vpop.f32.mrf.mxu3  ;;  %v3391_v15 = vpop.f32.mrf.mxu1 }
 0x353   : > { %v9278_v55 = vadd.f32 %v3597_v10, %v3501_v50  ;;  %v9281_v46 = vadd.f32 %v3391_v15, %v3295_v5  ;;  %v7177_v50 = vld [vmem:[%s9565_s1 + $0x148] sm:$0xff]  ;;  %v7198_v5 = vld [vmem:[%s9565_s1 + $0x1f0] sm:$0xff] }
 0x354   : > { %4551 = vmatpush.bf16.msrb.mxu3 %v7150_v22  ;;  %4638 = vmatpush.bf16.msrb.mxu0 %v7177_v50  ;;  %v7060_v50 = vld [vmem:[%s7744_s6 + $0xc0] sm:$0xff] }
 0x358   : > { %4552 = vmatpush.bf16.msrb.mxu3 %v7149_v44 }
 0x359   : > { %v3503_v37 = vpop.f32.mrf.mxu2  ;;  %v3298_v35 = vpop.f32.mrf.mxu0 }
 0x35a   : > { %v3599_v60 = vpop.f32.mrf.mxu3  ;;  %v3394_v12 = vpop.f32.mrf.mxu1 }
 0x35b   : > { %v9295_v7 = vadd.f32 %v3599_v60, %v3503_v37  ;;  %v9299_v58 = vadd.f32 %v3394_v12, %v3298_v35  ;;  %v7197_v37 = vld [vmem:[%s9565_s1 + $0x1e8] sm:$0xff]  ;;  %v7196_v35 = vld [vmem:[%s9565_s1 + $0x1e0] sm:$0xff] }
 0x35c   : > { %4553 = vmatpush.bf16.msrb.mxu3 %v7148_v9  ;;  %3725 = vmatmul.bf16.gmra.mxu0 %v7579_v56 }
 0x35d   : > { %3844 = vmatmul.bf16.gmra.mxu1 %v7579_v56 }
 0x35e   : > { %3971 = vmatmul.bf16.gmra.mxu2 %v7579_v56 }
 0x35f   : > { %4416 = vmatmul.bf16.gmra.mxu3 %v9297_v28 }
 0x360   : > { %4554 = vmatpush.bf16.msrb.mxu3 %v7147_v4 }
 0x361   : > { %v3506_v42 = vpop.f32.mrf.mxu2  ;;  %v3300_v16 = vpop.f32.mrf.mxu0 }
 0x362   : > { %v3602_v36 = vpop.f32.mrf.mxu3  ;;  %v3396_v21 = vpop.f32.mrf.mxu1 }
 0x363   : > { %v9312_v38 = vadd.f32 %v3602_v36, %v3506_v42  ;;  %v9314_v2 = vadd.f32 %v3396_v21, %v3300_v16  ;;  %v7581_v42 = vld [vmem:[%s7744_s6 + $0xb8] sm:$0xff]  }
 0x364   : > { %4555 = vmatpush.bf16.msrb.mxu3 %v7146_v24  ;;  %v7195_v36 = vld [vmem:[%s9565_s1 + $0x1d8] sm:$0xff]  ;;  %v7176_v24 = vld [vmem:[%s9565_s1 + $0x140] sm:$0xff] }
 0x365   : > { %4639 = vmatpush.bf16.msrb.mxu0 %v7176_v24 }
 0x368   : > { %4556 = vmatpush.bf16.msrb.mxu3 %v7145_v20 }
 0x369   : > { %v3508_v43 = vpop.f32.mrf.mxu2  ;;  %v3303_v39 = vpop.f32.mrf.mxu0  ;;  %4958 = vmatpush.bf16.msra.mxu0 %v7207_v52 }
 0x36a   : > { %v3604_v6 = vpop.f32.mrf.mxu3  ;;  %v3399_v47 = vpop.f32.mrf.mxu1 }
 0x36b   : > { %v9328_v29 = vadd.f32 %v3604_v6, %v3508_v43  ;;  %v9330_v1 = vadd.f32 %v3399_v47, %v3303_v39  ;;  %v7152_v6 = vld [vmem:[%s9565_s1 + $0x80] sm:$0xff]  ;;  %v7193_v47 = vld [vmem:[%s9565_s1 + $0x1c8] sm:$0xff] }
 0x36c   : > { %4557 = vmatpush.bf16.msrb.mxu3 %v7144_v63  ;;  %3730 = vmatmul.bf16.gmra.mxu0 %v7580_v40  ;;  %v7185_v63 = vld [vmem:[%s9565_s1 + $0x188] sm:$0xff] }
 0x36d   : > { %3849 = vmatmul.bf16.gmra.mxu1 %v7580_v40  ;;  %4796 = vmatpush.bf16.msrb.mxu2 %v7185_v63 }
 0x36e   : > { %3976 = vmatmul.bf16.gmra.mxu2 %v7580_v40  ;;  %4705 = vmatpush.bf16.msrb.mxu1 %v7152_v6 }
 0x36f   : > { %4492 = vmatmul.bf16.vlgmr.msra.gmra.mxu3 %v9188_v41 }
 0x370   : > { %4873 = vmatpush.bf16.msra.mxu3 %v7199_v31 }
 0x371   : > { %v3511_v10 = vpop.f32.mrf.mxu2  ;;  %v3305_v19 = vpop.f32.mrf.mxu0 }
 0x372   : > { %v3607_v22 = vpop.f32.mrf.mxu3  ;;  %v3401_v51 = vpop.f32.mrf.mxu1  ;;  %7518 = vmatpush.bf16.msra.mxu1 %v7207_v52 }
 0x373   : > { %v9343_v15 = vadd.f32 %v3607_v22, %v3511_v10  ;;  %v9345_v44 = vadd.f32 %v3401_v51, %v3305_v19  ;;  %v7184_v10 = vld [vmem:[%s9565_s1 + $0x180] sm:$0xff] }
 0x374   : > { %4874 = vmatpush.bf16.msra.mxu3 %v7198_v5  ;;  %v7192_v22 = vld [vmem:[%s9565_s1 + $0x1c0] sm:$0xff]  ;;  %4797 = vmatpush.bf16.msrb.mxu2 %v7184_v10 }
 0x378   : > { %4875 = vmatpush.bf16.msra.mxu3 %v7197_v37 }
 0x379   : > { %v3513_v60 = vpop.f32.mrf.mxu2  ;;  %v3308_v56 = vpop.f32.mrf.mxu0 }
 0x37a   : > { %v3609_v9 = vpop.f32.mrf.mxu3  ;;  %v3404_v4 = vpop.f32.mrf.mxu1 }
 0x37b   : > { %v9359_v12 = vadd.f32 %v3609_v9, %v3513_v60  ;;  %v9361_v3 = vadd.f32 %v3404_v4, %v3308_v56  ;;  %v7206_v9 = vld [vmem:[%s9565_s1 + $0x230] sm:$0xff] }
 0x37c   : > { %4876 = vmatpush.bf16.msra.mxu3 %v7196_v35  ;;  %3734 = vmatmul.bf16.gmra.mxu0 %v7581_v42 }
 0x37d   : > { %3854 = vmatmul.bf16.gmra.mxu1 %v7581_v42  ;;  %4959 = vmatpush.bf16.msra.mxu0 %v7206_v9 }
 0x37e   : > { %3981 = vmatmul.bf16.gmra.mxu2 %v7581_v42  ;;  %v6034_v42 = vld [vmem:[%s7744_s6 + $0xc8] sm:$0xf]  ;;  %7519 = vmatpush.bf16.msra.mxu1 %v7206_v9 }
 0x37f   : > { %4497 = vmatmul.bf16.gmra.mxu3 %v9225_v48  ;;  %v3647_v24 = vunpack.c.l.b16 %v6034_v42 }
 0x380   : > { %4877 = vmatpush.bf16.msra.mxu3 %v7195_v36 }
 0x381   : > { %v3516_v16 = vpop.f32.mrf.mxu2  ;;  %v3310_v8 = vpop.f32.mrf.mxu0 }
 0x382   : > { %v3612_v21 = vpop.f32.mrf.mxu3  ;;  %v3406_v43 = vpop.f32.mrf.mxu1 }
 0x383   : > { %v9374_v20 = vadd.f32 %v3612_v21, %v3516_v16  ;;  %v9382_v39 = vadd.f32 %v3406_v43, %v3310_v8  ;;  %v7205_v16 = vld [vmem:[%s9565_s1 + $0x228] sm:$0xff]  ;;  %v3651_v8 = vpack.c.b16 %v3647_v24, %v3647_v24  ;;  %v7204_v43 = vld [vmem:[%s9565_s1 + $0x220] sm:$0xff] }
 0x384   : > { %4878 = vmatpush.bf16.msra.mxu3 %v7194_v57  ;;  %4960 = vmatpush.bf16.msra.mxu0 %v7205_v16  ;;  %v9436_v24 = vld [vmem:[%s7744_s6 + $0xcc] sm:$0xff] }
 0x385   : > { %7520 = vmatpush.bf16.msra.mxu1 %v7205_v16 }
 0x388   : > { %4879 = vmatpush.bf16.msra.mxu3 %v7193_v47  ;;  %4961 = vmatpush.bf16.msra.mxu0 %v7204_v43 }
 0x389   : > { %v3518_v40 = vpop.f32.mrf.mxu2  ;;  %v3313_v19 = vpop.f32.mrf.mxu0  ;;  %7521 = vmatpush.bf16.msra.mxu1 %v7204_v43 }
 0x38a   : > { %v3614_v31 = vpop.f32.mrf.mxu3  ;;  %v3409_v51 = vpop.f32.mrf.mxu1 }
 0x38b   : > { %v9394_v5 = vadd.f32 %v3614_v31, %v3518_v40  ;;  %v9396_v49 = vadd.f32 %v3409_v51, %v3313_v19  ;;  %v7203_v31 = vld [vmem:[%s9565_s1 + $0x218] sm:$0xff] }
 0x38c   : > { %4880 = vmatpush.bf16.msra.mxu3 %v7192_v22  ;;  %3738 = vmatmul.bf16.gmra.mxu0 %v7060_v50  ;;  %v7202_v22 = vld [vmem:[%s9565_s1 + $0x210] sm:$0xff] }
 0x38d   : > { %3859 = vmatmul.bf16.gmra.mxu1 %v7060_v50  ;;  %4962 = vmatpush.bf16.msra.mxu0 %v7203_v31 }
 0x38e   : > { %3986 = vmatmul.bf16.gmra.mxu2 %v7060_v50  ;;  %7522 = vmatpush.bf16.msra.mxu1 %v7203_v31 }
 0x38f   : > { %4558 = vmatmul.bf16.vlgmr.msrb.gmra.mxu3 %v9261_v33 }
 0x391   : > { %v3521_v37 = vpop.f32.mrf.mxu2  ;;  %v3315_v56 = vpop.f32.mrf.mxu0  ;;  %4963 = vmatpush.bf16.msra.mxu0 %v7202_v22 }
 0x392   : > { %v3617_v60 = vpop.f32.mrf.mxu3  ;;  %v3411_v4 = vpop.f32.mrf.mxu1  ;;  %7523 = vmatpush.bf16.msra.mxu1 %v7202_v22 }
 0x393   : > { %v9405_v35 = vadd.f32 %v3617_v60, %v3521_v37  ;;  %v9408_v36 = vadd.f32 %v3411_v4, %v3315_v56  ;;  %v7201_v37 = vld [vmem:[%s9565_s1 + $0x208] sm:$0xff]  ;;  %v7200_v56 = vld [vmem:[%s9565_s1 + $0x200] sm:$0xff] }
 0x395   : > { %4964 = vmatpush.bf16.msra.mxu0 %v7201_v37 }
 0x396   : > { %7524 = vmatpush.bf16.msra.mxu1 %v7201_v37 }
 0x399   : > { %v3523_v21 = vpop.f32.mrf.mxu2  ;;  %v3318_v63 = vpop.f32.mrf.mxu0  ;;  %4965 = vmatpush.bf16.msra.mxu0 %v7200_v56 }
 0x39a   : > { %v3619_v57 = vpop.f32.mrf.mxu3  ;;  %v3414_v47 = vpop.f32.mrf.mxu1  ;;  %7525 = vmatpush.bf16.msra.mxu1 %v7200_v56 }
 0x39b   : > { %v9416_v6 = vadd.f32 %v3619_v57, %v3523_v21  ;;  %v9418_v40 = vadd.f32 %v3414_v47, %v3318_v63  ;;  %v6477_v47 = vld [vmem:[%s7744_s6 + $0xd4] sm:$0xf] }
 0x39c   : > { %3743 = vmatmul.bf16.gmra.mxu0 %v3651_v8 }
 0x39d   : > { %3864 = vmatmul.bf16.gmra.mxu1 %v3651_v8 }
 0x39e   : > { %3991 = vmatmul.bf16.gmra.mxu2 %v3651_v8 }
 0x39f   : > { %4563 = vmatmul.bf16.gmra.mxu3 %v9297_v28 }
 0x3a1   : > { %v3526_v50 = vpop.f32.mrf.mxu2  ;;  %v3320_v51 = vpop.f32.mrf.mxu0 }
 0x3a2   : > { %v3622_v10 = vpop.f32.mrf.mxu3  ;;  %v3416_v52 = vpop.f32.mrf.mxu1 }
 0x3a3   : > { %v9427_v19 = vadd.f32 %v3622_v10, %v3526_v50  ;;  %v4737_v10 = vunpack.c.l.b16 %v6477_v47 }
 0x3a5   : > { %v4739_v56 = vpack.c.b16 %v4737_v10, %v4737_v10 }
 0x3a9   : > { %v3528_v60 = vpop.f32.mrf.mxu2  ;;  %v3713_v4 = vpop.f32.mrf.mxu0 }
 0x3aa   : > { %v3624_v9 = vpop.f32.mrf.mxu3  ;;  %v3830_v42 = vpop.f32.mrf.mxu1 }
 0x3ab   : > { %v3869_v16 = vadd.f32 %v3830_v42, %v9191_v62 }
 0x3ac   : > { %4640 = vmatmul.bf16.vlgmr.msrb.gmra.mxu0 %v9188_v41  ;;  %v3747_v41 = vadd.f32 %v3713_v4, %v8933_v53 }
 0x3ad   : > { %4706 = vmatmul.bf16.vlgmr.msrb.gmra.mxu1 %v9261_v33  ;;  %v4026_v31 = vrot.slane %v3869_v16, 1 }
 0x3ae   : > { %4798 = vmatmul.bf16.vlgmr.msrb.gmra.mxu2 %v9436_v24 }
 0x3af   : > { %4881 = vmatmul.bf16.vlgmr.msra.gmra.mxu3 %v9436_v24 }
 0x3b1   : > { %v3957_v21 = vpop.f32.mrf.mxu2  ;;  %v3715_v8 = vpop.f32.mrf.mxu0 }
 0x3b2   : > { %v9443_v57 = vpop.f32.mrf.mxu3  ;;  %v3832_v43 = vpop.f32.mrf.mxu1  ;;  %v3996_v22 = vadd.f32 %v3957_v21, %v9206_v25  ;;  %v3748_v53 = vadd.f32 %v3715_v8, %v8947_v54 }
 0x3b3   : > { %v3870_v63 = vadd.f32 %v3832_v43, %v9209_v17 }
 0x3b4   : > { %v4086_v42 = vrot.slane %v3996_v22, 2 }
 0x3b5   : > { %v4027_v50 = vrot.slane %v3870_v63, 1 }
 0x3b7   : > { %v4028_v33 = vsel %vm1381_vm0, %v4026_v31, %v4027_v50 }
 0x3b8   : > { %v4061_v51 = vadd.f32 %v4028_v33, %v3747_v41 }
 0x3b9   : > { %v3959_v52 = vpop.f32.mrf.mxu2  ;;  %v3718_v60 = vpop.f32.mrf.mxu0 }
 0x3ba   : > { %v9450_v62 = vpop.f32.mrf.mxu3  ;;  %v3997_v37 = vadd.f32 %v3959_v52, %v9223_v45  ;;  %v3835_v9 = vpop.f32.mrf.mxu1 }
 0x3bb   : > { %v3871_v17 = vadd.f32 %v3835_v9, %v9227_v0  ;;  %v9462_v0 = vld [vmem:[%s9566_s2] ss:$0 sm:$0xff] }
 0x3bc   : > { %v4087_v16 = vrot.slane %v3997_v37, 2  ;;  %4645 = vmatmul.bf16.gmra.mxu0 %v9225_v48 }
 0x3bd   : > { %v4029_v43 = vrot.slane %v3871_v17, 1  ;;  %4711 = vmatmul.bf16.gmra.mxu1 %v9297_v28 }
 0x3be   : > { %v4088_v25 = vsel %vm1442_vm1, %v4086_v42, %v4087_v16  ;;  %4803 = vmatmul.bf16.gmra.mxu2 %v4739_v56 }
 0x3bf   : > { %4886 = vmatmul.bf16.gmra.mxu3 %v4739_v56  ;;  %v4121_v4 = vadd.f32 %v4088_v25, %v4061_v51  ;;  %v4030_v45 = vsel %vm1381_vm0, %v4027_v50, %v4029_v43 }
 0x3c0   : > { %v4062_v21 = vadd.f32 %v4030_v45, %v3748_v53 }
 0x3c1   : > { %v3962_v63 = vpop.f32.mrf.mxu2  ;;  %v3719_v28 = vpop.f32.mrf.mxu0  ;;  %v4135_v8 = vadd.f32 %v9462_v0, %v4121_v4 }
 0x3c2   : > { %v4342_v47 = vpop.f32.mrf.mxu3  ;;  %v3998_v48 = vadd.f32 %v3962_v63, %v9242_v34  ;;  %v3837_v31 = vpop.f32.mrf.mxu1 }
 0x3c3   : > { %v4155_v33 = vmul.f32 0.2, %v4135_v8  ;;  %v3872_v22 = vadd.f32 %v3837_v31, %v9244_v11  ;;  %vm4145_vm8 = vcmp.ge.f32.partialorder %v4135_v8, 0.0  ;;  %v3749_v11 = vadd.f32 %v3719_v28, %v8981_v59 }
 0x3c4   : > { %v4089_v54 = vrot.slane %v3998_v48, 2 }
 0x3c5   : > { %v4165_v17 = vsel %vm4145_vm8, %v4135_v8, %v4155_v33  ;;  %v4031_v43 = vrot.slane %v3872_v22, 1 }
 0x3c6   : > { %v4090_v41 = vsel %vm1442_vm1, %v4087_v16, %v4089_v54 }
 0x3c7   : > { %v4122_v10 = vadd.f32 %v4090_v41, %v4062_v21 }
 0x3c9   : > { %v4136_v50 = vadd.f32 %v9462_v0, %v4122_v10  ;;  %v3964_v51 = vpop.f32.mrf.mxu2  ;;  %v3722_v37 = vpop.f32.mrf.mxu0 }
 0x3ca   : > { %v4343_v52 = vpop.f32.mrf.mxu3  ;;  %v3840_v60 = vpop.f32.mrf.mxu1  ;;  %v3999_v4 = vadd.f32 %v3964_v51, %v9258_v32  ;;  %v3750_v28 = vadd.f32 %v3722_v37, %v9000_v23 }
 0x3cb   : > { %vm4146_vm9 = vcmp.ge.f32.partialorder %v4136_v50, 0.0  ;;  %v4156_v34 = vmul.f32 0.2, %v4136_v50  ;;  %v3873_v9 = vadd.f32 %v3840_v60, %v9263_v26 }
 0x3cc   : > { %4966 = vmatmul.bf16.vlgmr.msra.gmra.mxu0 %v9436_v24 }
 0x3cd   : > { %v4166_v42 = vsel %vm4146_vm9, %v4136_v50, %v4156_v34  ;;  %v4032_v16 = vrot.slane %v3873_v9, 1  ;;  %4971 = vmatmul.bf16.vlgmr.msra.gmra.mxu1 %v4739_v56  ;;  %v4091_v56 = vrot.slane %v3999_v4, 2 }
 0x3ce   : > { %v7353_v53 = vpack.c.bf16 %v4166_v42, %v4165_v17 }
 0x3cf   : > { %v4033_v25 = vsel %vm1381_vm0, %v4031_v43, %v4032_v16 }
 0x3d0   : > { %7441 = vst [vmem:[%s8459_s16 + $0x50] sm:$0xff] %v7353_v53   ;;  %v4063_v45 = vadd.f32 %v4033_v25, %v3749_v11 }
 0x3d1   : > { %v3967_v21 = vpop.f32.mrf.mxu2  ;;  %v3724_v48 = vpop.f32.mrf.mxu0 }
 0x3d2   : > { %v4412_v63 = vpop.f32.mrf.mxu3  ;;  %v4000_v26 = vadd.f32 %v3967_v21, %v9278_v55  ;;  %v3842_v31 = vpop.f32.mrf.mxu1 }
 0x3d3   : > { %v9477_v47 = vadd.f32 %v4412_v63, %v9443_v57  ;;  %v3874_v24 = vadd.f32 %v3842_v31, %v9281_v46 }
 0x3d4   : > { %v4092_v54 = vrot.slane %v4000_v26, 2 }
 0x3d5   : > { %v4034_v59 = vrot.slane %v3874_v24, 1 }
 0x3d6   : > { %v4093_v8 = vsel %vm1442_vm1, %v4091_v56, %v4092_v54 }
 0x3d7   : > { %v4123_v32 = vadd.f32 %v4093_v8, %v4063_v45  ;;  %v4035_v41 = vsel %vm1381_vm0, %v4032_v16, %v4034_v59 }
 0x3d8   : > { %v4064_v10 = vadd.f32 %v4035_v41, %v3750_v28 }
 0x3d9   : > { %v3969_v33 = vpop.f32.mrf.mxu2  ;;  %v3726_v22 = vpop.f32.mrf.mxu0  ;;  %v4137_v52 = vadd.f32 %v9462_v0, %v4123_v32 }
 0x3da   : > { %v4414_v55 = vpop.f32.mrf.mxu3  ;;  %v4001_v57 = vadd.f32 %v3969_v33, %v9295_v7  ;;  %v3845_v46 = vpop.f32.mrf.mxu1  ;;  %v3751_v21 = vadd.f32 %v3726_v22, %v9029_v13 }
 0x3db   : > { %v9485_v50 = vadd.f32 %v4414_v55, %v9450_v62  ;;  %v4157_v60 = vmul.f32 0.2, %v4137_v52  ;;  %v3875_v9 = vadd.f32 %v3845_v46, %v9299_v58  ;;  %vm4147_vm10 = vcmp.ge.f32.partialorder %v4137_v52, 0.0 }
 0x3dc   : > { %v4094_v51 = vrot.slane %v4001_v57, 2 }
 0x3dd   : > { %v4167_v53 = vsel %vm4147_vm10, %v4137_v52, %v4157_v60  ;;  %v4036_v25 = vrot.slane %v3875_v9, 1 }
 0x3de   : > { %v4095_v23 = vsel %vm1442_vm1, %v4092_v54, %v4094_v51 }
 0x3df   : > { %v4124_v37 = vadd.f32 %v4095_v23, %v4064_v10 }
 0x3e1   : > { %v4138_v34 = vadd.f32 %v9462_v0, %v4124_v37  ;;  %v3972_v17 = vpop.f32.mrf.mxu2  ;;  %v3728_v7 = vpop.f32.mrf.mxu0 }
 0x3e2   : > { %v4417_v42 = vpop.f32.mrf.mxu3  ;;  %v3847_v62 = vpop.f32.mrf.mxu1  ;;  %v4002_v58 = vadd.f32 %v3972_v17, %v9312_v38  ;;  %v3752_v32 = vadd.f32 %v3728_v7, %v9044_v18 }
 0x3e3   : > { %vm4148_vm11 = vcmp.ge.f32.partialorder %v4138_v34, 0.0  ;;  %v4158_v43 = vmul.f32 0.2, %v4138_v34  ;;  %v3876_v16 = vadd.f32 %v3847_v62, %v9314_v2 }
 0x3e4   : > { %v4096_v59 = vrot.slane %v4002_v58, 2 }
 0x3e5   : > { %v4168_v11 = vsel %vm4148_vm11, %v4138_v34, %v4158_v43  ;;  %v4037_v4 = vrot.slane %v3876_v16, 1 }
 0x3e6   : > { %v7358_v45 = vpack.c.bf16 %v4168_v11, %v4167_v53 }
 0x3e7   : > { %v4038_v63 = vsel %vm1381_vm0, %v4036_v25, %v4037_v4 }
 0x3e8   : > { %7442 = vst [vmem:[%s8459_s16 + $0x58] sm:$0xff] %v7358_v45   ;;  %v4065_v26 = vadd.f32 %v4038_v63, %v3751_v21 }
 0x3e9   : > { %v3974_v48 = vpop.f32.mrf.mxu2  ;;  %v3731_v56 = vpop.f32.mrf.mxu0 }
 0x3ea   : > { %v4418_v31 = vpop.f32.mrf.mxu3  ;;  %v4003_v24 = vadd.f32 %v3974_v48, %v9328_v29  ;;  %v3850_v54 = vpop.f32.mrf.mxu1 }
 0x3eb   : > { %v3877_v2 = vadd.f32 %v3850_v54, %v9330_v1 }
 0x3ec   : > { %v4097_v28 = vrot.slane %v4003_v24, 2 }
 0x3ed   : > { %v4039_v8 = vrot.slane %v3877_v2, 1 }
 0x3ee   : > { %v4098_v13 = vsel %vm1442_vm1, %v4096_v59, %v4097_v28 }
 0x3ef   : > { %v4125_v41 = vadd.f32 %v4098_v13, %v4065_v26  ;;  %v4040_v10 = vsel %vm1381_vm0, %v4037_v4, %v4039_v8 }
 0x3f0   : > { %v4066_v38 = vadd.f32 %v4040_v10, %v3752_v32 }
 0x3f1   : > { %v3977_v33 = vpop.f32.mrf.mxu2  ;;  %v3732_v57 = vpop.f32.mrf.mxu0  ;;  %v4139_v1 = vadd.f32 %v9462_v0, %v4125_v41 }
 0x3f2   : > { %v9501_v55 = vpop.f32.mrf.mxu3  ;;  %v4004_v29 = vadd.f32 %v3977_v33, %v9343_v15  ;;  %v3852_v22 = vpop.f32.mrf.mxu1  ;;  %v3753_v11 = vadd.f32 %v3732_v57, %v9073_v30 }
 0x3f3   : > { %v4159_v18 = vmul.f32 0.2, %v4139_v1  ;;  %v3878_v37 = vadd.f32 %v3852_v22, %v9345_v44  ;;  %vm4149_vm12 = vcmp.ge.f32.partialorder %v4139_v1, 0.0 }
 0x3f4   : > { %v4099_v46 = vrot.slane %v4004_v29, 2 }
 0x3f5   : > { %v4169_v7 = vsel %vm4149_vm12, %v4139_v1, %v4159_v18  ;;  %v4041_v43 = vrot.slane %v3878_v37, 1 }
 0x3f6   : > { %v4100_v51 = vsel %vm1442_vm1, %v4097_v28, %v4099_v46 }
 0x3f7   : > { %v4126_v52 = vadd.f32 %v4100_v51, %v4066_v38 }
 0x3f9   : > { %v4140_v23 = vadd.f32 %v9462_v0, %v4126_v52  ;;  %v3979_v60 = vpop.f32.mrf.mxu2  ;;  %v3735_v9 = vpop.f32.mrf.mxu0 }
 0x3fa   : > { %v9508_v34 = vpop.f32.mrf.mxu3  ;;  %v3855_v15 = vpop.f32.mrf.mxu1  ;;  %v4005_v25 = vadd.f32 %v3979_v60, %v9359_v12  ;;  %v3754_v30 = vadd.f32 %v3735_v9, %v9092_v14 }
 0x3fb   : > { %vm4150_vm13 = vcmp.ge.f32.partialorder %v4140_v23, 0.0  ;;  %v4160_v17 = vmul.f32 0.2, %v4140_v23  ;;  %v3879_v42 = vadd.f32 %v3855_v15, %v9361_v3 }
 0x3fc   : > { %v4101_v48 = vrot.slane %v4005_v25, 2 }
 0x3fd   : > { %v4170_v62 = vsel %vm4150_vm13, %v4140_v23, %v4160_v17  ;;  %v4042_v16 = vrot.slane %v3879_v42, 1 }
 0x3fe   : > { %v7363_v53 = vpack.c.bf16 %v4170_v62, %v4169_v7 }
 0x3ff   : > { %v4043_v44 = vsel %vm1381_vm0, %v4041_v43, %v4042_v16 }
 0x400   : > { %7443 = vst [vmem:[%s8459_s16 + $0x60] sm:$0xff] %v7363_v53   ;;  %v4067_v4 = vadd.f32 %v4043_v44, %v3753_v11 }
 0x401   : > { %v3982_v45 = vpop.f32.mrf.mxu2  ;;  %v3737_v58 = vpop.f32.mrf.mxu0 }
 0x402   : > { %v9515_v21 = vpop.f32.mrf.mxu3  ;;  %v4006_v63 = vadd.f32 %v3982_v45, %v9374_v20  ;;  %v3857_v3 = vpop.f32.mrf.mxu1 }
 0x403   : > { %v3880_v26 = vadd.f32 %v3857_v3, %v9382_v39 }
 0x404   : > { %v4102_v31 = vrot.slane %v4006_v63, 2 }
 0x405   : > { %v4044_v24 = vrot.slane %v3880_v26, 1 }
 0x406   : > { %v4103_v56 = vsel %vm1442_vm1, %v4101_v48, %v4102_v31 }
 0x407   : > { %v4127_v54 = vadd.f32 %v4103_v56, %v4067_v4  ;;  %v4045_v12 = vsel %vm1381_vm0, %v4042_v16, %v4044_v24 }
 0x408   : > { %v4068_v2 = vadd.f32 %v4045_v12, %v3754_v30 }
 0x409   : > { %v3984_v59 = vpop.f32.mrf.mxu2  ;;  %v3739_v20 = vpop.f32.mrf.mxu0  ;;  %v4141_v39 = vadd.f32 %v9462_v0, %v4127_v54 }
 0x40a   : > { %v4500_v28 = vpop.f32.mrf.mxu3  ;;  %v4007_v8 = vadd.f32 %v3984_v59, %v9394_v5  ;;  %v3860_v32 = vpop.f32.mrf.mxu1  ;;  %v3755_v60 = vadd.f32 %v3739_v20, %v9136_v61 }
 0x40b   : > { %v4161_v38 = vmul.f32 0.2, %v4141_v39  ;;  %v3881_v33 = vadd.f32 %v3860_v32, %v9396_v49  ;;  %vm4151_vm14 = vcmp.ge.f32.partialorder %v4141_v39, 0.0 }
 0x40c   : > { %v4104_v13 = vrot.slane %v4007_v8, 2 }
 0x40d   : > { %v4171_v51 = vsel %vm4151_vm14, %v4141_v39, %v4161_v38  ;;  %v4046_v18 = vrot.slane %v3881_v33, 1 }
 0x40e   : > { %v4105_v41 = vsel %vm1442_vm1, %v4102_v31, %v4104_v13 }
 0x40f   : > { %v4128_v10 = vadd.f32 %v4105_v41, %v4068_v2 }
 0x411   : > { %v4142_v14 = vadd.f32 %v9462_v0, %v4128_v10  ;;  %v3987_v29 = vpop.f32.mrf.mxu2  ;;  %v3741_v22 = vpop.f32.mrf.mxu0 }
 0x412   : > { %v4559_v57 = vpop.f32.mrf.mxu3  ;;  %v3862_v46 = vpop.f32.mrf.mxu1  ;;  %v4008_v49 = vadd.f32 %v3987_v29, %v9405_v35  ;;  %v3756_v44 = vadd.f32 %v3741_v22, %v9154_v27 }
 0x413   : > { %vm4152_vm15 = vcmp.ge.f32.partialorder %v4142_v14, 0.0  ;;  %v4162_v5 = vmul.f32 0.2, %v4142_v14  ;;  %v3882_v1 = vadd.f32 %v3862_v46, %v9408_v36  ;;  %v4560_v39 = vadd.f32 %v4559_v57, %v9501_v55 }
 0x414   : > { %v4106_v16 = vrot.slane %v4008_v49, 2 }
 0x415   : > { %v4172_v52 = vsel %vm4152_vm15, %v4142_v14, %v4162_v5  ;;  %v4047_v23 = vrot.slane %v3882_v1, 1 }
 0x416   : > { %v7368_v37 = vpack.c.bf16 %v4172_v52, %v4171_v51 }
 0x417   : > { %v4048_v9 = vsel %vm1381_vm0, %v4046_v18, %v4047_v23 }
 0x418   : > { %7444 = vst [vmem:[%s8459_s16 + $0x68] sm:$0xff] %v7368_v37   ;;  %v4069_v15 = vadd.f32 %v4048_v9, %v3755_v60 }
 0x419   : > { %v3989_v17 = vpop.f32.mrf.mxu2  ;;  %v3744_v62 = vpop.f32.mrf.mxu0 }
 0x41a   : > { %v4561_v42 = vpop.f32.mrf.mxu3  ;;  %v4009_v7 = vadd.f32 %v3989_v17, %v9416_v6  ;;  %v3865_v43 = vpop.f32.mrf.mxu1 }
 0x41b   : > { %v3883_v36 = vadd.f32 %v3865_v43, %v9418_v40  ;;  %v4562_v41 = vadd.f32 %v4561_v42, %v9508_v34 }
 0x41c   : > { %v4107_v53 = vrot.slane %v4009_v7, 2 }
 0x41d   : > { %v4049_v11 = vrot.slane %v3883_v36, 1 }
 0x41e   : > { %v4108_v61 = vsel %vm1442_vm1, %v4106_v16, %v4107_v53 }
 0x41f   : > { %v4129_v25 = vadd.f32 %v4108_v61, %v4069_v15  ;;  %v4050_v4 = vsel %vm1381_vm0, %v4047_v23, %v4049_v11 }
 0x420   : > { %v4070_v35 = vadd.f32 %v4050_v4, %v3756_v44 }
 0x421   : > { %v3992_v45 = vpop.f32.mrf.mxu2  ;;  %v3745_v6 = vpop.f32.mrf.mxu0  ;;  %v4143_v40 = vadd.f32 %v9462_v0, %v4129_v25 }
 0x422   : > { %v4564_v63 = vpop.f32.mrf.mxu3  ;;  %v4010_v58 = vadd.f32 %v3992_v45, %v9427_v19  ;;  %v3867_v3 = vpop.f32.mrf.mxu1 }
 0x423   : > { %v4163_v27 = vmul.f32 0.2, %v4143_v40  ;;  %vm4153_vm2 = vcmp.ge.f32.partialorder %v4143_v40, 0.0  ;;  %v4565_v52 = vadd.f32 %v4564_v63, %v9515_v21 }
 0x424   : > { %v4109_v26 = vrot.slane %v4010_v58, 2 }
 0x425   : > { %v4173_v19 = vsel %vm4153_vm2, %v4143_v40, %v4163_v27 }
 0x426   : > { %v4110_v48 = vsel %vm1442_vm1, %v4107_v53, %v4109_v26 }
 0x427   : > { %v4130_v31 = vadd.f32 %v4110_v48, %v4070_v35 }
 0x429   : > { %v4144_v24 = vadd.f32 %v9462_v0, %v4130_v31  ;;  %v3994_v30 = vpop.f32.mrf.mxu2  ;;  %v4641_v54 = vpop.f32.mrf.mxu0 }
 0x42a   : > { %v4566_v56 = vpop.f32.mrf.mxu3  ;;  %v4707_v12 = vpop.f32.mrf.mxu1 }
 0x42b   : > { %vm4154_vm3 = vcmp.ge.f32.partialorder %v4144_v24, 0.0  ;;  %v4164_v2 = vmul.f32 0.2, %v4144_v24  ;;  %v4708_v7 = vadd.f32 %v4707_v12, %v4641_v54 }
 0x42d   : > { %v4174_v59 = vsel %vm4154_vm3, %v4144_v24, %v4164_v2 }
 0x42e   : > { %v7373_v28 = vpack.c.bf16 %v4174_v59, %v4173_v19 }
 0x430   : > { %7445 = vst [vmem:[%s8459_s16 + $0x70] sm:$0xff] %v7373_v28  }
 0x431   : > { %v4799_v8 = vpop.f32.mrf.mxu2  ;;  %v4643_v32 = vpop.f32.mrf.mxu0 }
 0x432   : > { %v4882_v20 = vpop.f32.mrf.mxu3  ;;  %v4709_v13 = vpop.f32.mrf.mxu1  ;;  %v4807_v5 = vadd.f32 %v4799_v8, %v9477_v47 }
 0x433   : > { %v4891_v0 = vadd.f32 %v4882_v20, %v4560_v39  ;;  %v4710_v43 = vadd.f32 %v4709_v13, %v4643_v32 }
 0x435   : > { %v4982_v22 = vrot.slane %v4891_v0, 1 }
 0x439   : > { %v4801_v10 = vpop.f32.mrf.mxu2  ;;  %v4646_v33 = vpop.f32.mrf.mxu0 }
 0x43a   : > { %v4884_v38 = vpop.f32.mrf.mxu3  ;;  %v4712_v29 = vpop.f32.mrf.mxu1  ;;  %v4808_v60 = vadd.f32 %v4801_v10, %v9485_v50  ;;  %v7578_v50 = vld [vmem:[%s9566_s2] ss:$0 sm:$0xff] }
 0x43b   : > { %v4892_v14 = vadd.f32 %v4884_v38, %v4562_v41  ;;  %v4713_v62 = vadd.f32 %v4712_v29, %v4646_v33 }
 0x43d   : > { %v4983_v46 = vrot.slane %v4892_v14, 1 }
 0x43f   : > { %v4984_v1 = vsel %vm1381_vm0, %v4982_v22, %v4983_v46 }
 0x440   : > { %v4989_v51 = vadd.f32 %v4984_v1, %v4807_v5 }
 0x441   : > { %v4804_v23 = vpop.f32.mrf.mxu2  ;;  %v4648_v57 = vpop.f32.mrf.mxu0 }
 0x442   : > { %v4887_v18 = vpop.f32.mrf.mxu3  ;;  %v4714_v34 = vpop.f32.mrf.mxu1 }
 0x443   : > { %v4893_v55 = vadd.f32 %v4887_v18, %v4565_v52 }
 0x445   : > { %v4985_v37 = vrot.slane %v4893_v55, 1 }
 0x447   : > { %v4986_v9 = vsel %vm1381_vm0, %v4983_v46, %v4985_v37 }
 0x448   : > { %v4990_v49 = vadd.f32 %v4986_v9, %v4808_v60 }
 0x449   : > { %v4805_v17 = vpop.f32.mrf.mxu2  ;;  %v4967_v42 = vpop.f32.mrf.mxu0 }
 0x44a   : > { %v4889_v15 = vpop.f32.mrf.mxu3  ;;  %v4972_v47 = vpop.f32.mrf.mxu1  ;;  %v4976_v36 = vadd.f32 %v4967_v42, %v4708_v7 }
 0x44b   : > { %v4978_v21 = vadd.f32 %v4972_v47, %v4713_v62 }
 0x44c   : > { %v4994_v44 = vrot.slane %v4976_v36, 2 }
 0x44d   : > { %v4997_v61 = vrot.slane %v4978_v21, 2 }
 0x451   : > { %v4969_v16 = vpop.f32.mrf.mxu0 }
 0x452   : > { %v4974_v53 = vpop.f32.mrf.mxu1  ;;  %v4977_v11 = vadd.f32 %v4969_v16, %v4710_v43 }
 0x454   : > { %v4995_v25 = vrot.slane %v4977_v11, 2 }
 0x456   : > { %v4996_v4 = vsel %vm1442_vm1, %v4994_v44, %v4995_v25  ;;  %v4998_v35 = vsel %vm1442_vm1, %v4995_v25, %v4997_v61 }
 0x457   : > { %v5001_v45 = vadd.f32 %v4996_v4, %v4989_v51  ;;  %v5002_v63 = vadd.f32 %v4998_v35, %v4990_v49 }
 0x459   : > { %v5007_v58 = vadd.f32 %v7578_v50, %v5001_v45  ;;  %v5008_v6 = vadd.f32 %v7578_v50, %v5002_v63 }
 0x45b   : > { %vm5009_vm0 = vcmp.ge.f32.partialorder %v5007_v58, 0.0  ;;  %vm5010_vm4 = vcmp.ge.f32.partialorder %v5008_v6, 0.0  ;;  %v5011_v3 = vmul.f32 0.2, %v5007_v58  ;;  %v5012_v26 = vmul.f32 0.2, %v5008_v6 }
 0x45d   : > { %v5013_v40 = vsel %vm5009_vm0, %v5007_v58, %v5011_v3  ;;  %v5014_v48 = vsel %vm5010_vm4, %v5008_v6, %v5012_v26 }
 0x45e   : > { %v7378_v31 = vpack.c.bf16 %v5014_v48, %v5013_v40 }
 0x460   : > { %7446 = vst [vmem:[%s8459_s16 + $0x78] sm:$0xff] %v7378_v31  }
 0x461 PF: > { %s13_s14 = sadd.s32 1, %s7604_s14   ;;  %s9624_s12 = smov %s7600_s13 }
 0x462   : > { %p10_p5 = scmp.ge.s32.totalorder %s13_s14, 4   ;;  %s9625_s13 = smov %s9627_s15 }
 0x464   :  { %12 = sbr.rel (!%p10_p5) target bundleno = 2 (0x2), region = 82 }

// kernel: discriminator_block.3
= control target key start
LH: loop header
LB: loop body
LE: loop exit
PB: predicated region body
PF: predicated region fallthrough
CT: control target
= control target key end

     0   :  { %s16900_s18 = smov 0   ;;  %s16902_s19 = smov 0   ;;  %s20645_s0 = inlined_call_operand.vmem [shape: bf16[2,10,16,512], index: 0, kind: input, shape index: {}]   ;;  %s20646_s1 = inlined_call_operand.vmem [shape: bf16[3,3,512,128], index: 1, kind: input, shape index: {}]   ;;  %s20647_s2 = inlined_call_operand.vmem [shape: f32[1,128], index: 2, kind: input, shape index: {}]   ;;  %s20648_s3 = inlined_call_operand.vmem [shape: bf16[2,9,16,512], index: 3, kind: input, shape index: {}]   ;;  %s20649_s4 = inlined_call_operand.vmem [shape: bf16[2,2,512,128], index: 4, kind: input, shape index: {}]   ;;  %s20650_s5 = inlined_call_operand.vmem [shape: f32[2,8,8,128], index: 5, kind: output, shape index: {}]  }
   0x1   :  { %s16904_s20 = smov 0  }
   0x2 LB: > { %s24_s21 = sadd.s32 1, %s16864_s19  ;;  %p10772_p0 = scmp.ge.s32.totalorder %s16868_s20, 1  ;;  %s16868_s20 = sphi %s16904_s20, %s15_s20   ;;  %s16864_s19 = sphi %s16902_s19, %s20666_s19   ;;  %s16860_s18 = sphi %s16900_s18, %s20665_s18  }
   0x3   : > { %p25_p1 = scmp.ge.s32.totalorder %s24_s21, 2  ;;  %p237_p2 = scmp.lt.s32.totalorder %s16868_s20, 3 }
   0x5   : > { %s20668_s21 = smov (%p25_p1, %s24_s21), 0  ;;  %p238_p3 = pnand %p10772_p0, %p237_p2 }
   0x7   : > { %241 = sbr.rel (%p238_p3) target bundleno = 1846 (0x736), region = 40 }
   0xc   : > { %v16033_v0 = vld [vmem:[%s20646_s1 + $0x338] sm:$0xff]  ;;  %v16032_v4 = vld [vmem:[%s20646_s1 + $0x330] sm:$0xff]  ;;  %v16031_v8 = vld [vmem:[%s20646_s1 + $0x328] sm:$0xff]  ;;  %p284_p4 = scmp.lt.s32.totalorder %s16860_s18, 1  ;;  %vm4191_vm0 = vcmask 1046528   ;;  %vm4234_vm1 = vcmask 1045504  }
   0xd   : > { %v16041_v1 = vld [vmem:[%s20646_s1 + $0x378] sm:$0xff]  ;;  %916 = vmatpush.bf16.msra.mxu0 %v16033_v0  ;;  %v16040_v5 = vld [vmem:[%s20646_s1 + $0x370] sm:$0xff]  ;;  %v16039_v9 = vld [vmem:[%s20646_s1 + $0x368] sm:$0xff] }
   0xe   : > { %v16049_v2 = vld [vmem:[%s20646_s1 + $0x3b8] sm:$0xff]  ;;  %949 = vmatpush.bf16.msra.mxu1 %v16041_v1  ;;  %v16048_v6 = vld [vmem:[%s20646_s1 + $0x3b0] sm:$0xff]  ;;  %v16047_v10 = vld [vmem:[%s20646_s1 + $0x3a8] sm:$0xff]  ;;  %s20670_s18 = smov (!%p284_p4, %s16860_s18), 1 }
   0xf   : > { %v16057_v3 = vld [vmem:[%s20646_s1 + $0x3f8] sm:$0xff]  ;;  %982 = vmatpush.bf16.msra.mxu2 %v16049_v2  ;;  %v16056_v7 = vld [vmem:[%s20646_s1 + $0x3f0] sm:$0xff]  ;;  %v16055_v11 = vld [vmem:[%s20646_s1 + $0x3e8] sm:$0xff]  ;;  %s16818_s24 = smul.u32 320, %s20670_s18  ;;  %s15897_s7 = sshll.u32 %s20670_s18, 6 }
  0x10   : > { %1015 = vmatpush.bf16.msra.mxu3 %v16057_v3  ;;  %v16030_v12 = vld [vmem:[%s20646_s1 + $0x320] sm:$0xff]  ;;  %v16029_v16 = vld [vmem:[%s20646_s1 + $0x318] sm:$0xff]  ;;  %v16028_v20 = vld [vmem:[%s20646_s1 + $0x310] sm:$0xff]  ;;  %s16819_s6 = smul.u32 288, %s20670_s18  ;;  %s19467_s23 = scalar_lea.vmem %s20650_s5, %s15897_s7 }
  0x11   : > { %917 = vmatpush.bf16.msra.mxu0 %v16032_v4  ;;  %v16038_v13 = vld [vmem:[%s20646_s1 + $0x360] sm:$0xff]  ;;  %v16037_v17 = vld [vmem:[%s20646_s1 + $0x358] sm:$0xff]  ;;  %v16036_v21 = vld [vmem:[%s20646_s1 + $0x350] sm:$0xff]  ;;  %s17006_s10 = scalar_lea.vmem %s20645_s0, %s16818_s24 }
  0x12   : > { %950 = vmatpush.bf16.msra.mxu1 %v16040_v5  ;;  %v16046_v14 = vld [vmem:[%s20646_s1 + $0x3a0] sm:$0xff]  ;;  %v16045_v18 = vld [vmem:[%s20646_s1 + $0x398] sm:$0xff]  ;;  %v16044_v22 = vld [vmem:[%s20646_s1 + $0x390] sm:$0xff]  ;;  %s18433_s9 = scalar_lea.vmem %s20648_s3, %s16819_s6 }
  0x13   : > { %983 = vmatpush.bf16.msra.mxu2 %v16048_v6  ;;  %v16054_v15 = vld [vmem:[%s20646_s1 + $0x3e0] sm:$0xff]  ;;  %v16053_v19 = vld [vmem:[%s20646_s1 + $0x3d8] sm:$0xff]  ;;  %v16052_v23 = vld [vmem:[%s20646_s1 + $0x3d0] sm:$0xff] }
  0x14   : > { %1016 = vmatpush.bf16.msra.mxu3 %v16056_v7  ;;  %v16027_v24 = vld [vmem:[%s20646_s1 + $0x308] sm:$0xff]  ;;  %v16026_v28 = vld [vmem:[%s20646_s1 + $0x300] sm:$0xff]  ;;  %v15904_v33 = vld [vmem:[%s17006_s10 + $0x2c] sm:$0xf0] }
  0x15   : > { %918 = vmatpush.bf16.msra.mxu0 %v16031_v8  ;;  %v16035_v25 = vld [vmem:[%s20646_s1 + $0x348] sm:$0xff]  ;;  %v16034_v29 = vld [vmem:[%s20646_s1 + $0x340] sm:$0xff]  ;;  %v10973_v35 = vld [vmem:[%s17006_s10 + $0x30] sm:$0xf0] }
  0x16   : > { %951 = vmatpush.bf16.msra.mxu1 %v16039_v9  ;;  %v16043_v26 = vld [vmem:[%s20646_s1 + $0x388] sm:$0xff]  ;;  %v16042_v30 = vld [vmem:[%s20646_s1 + $0x380] sm:$0xff]  ;;  %v15905_v37 = vld [vmem:[%s17006_s10 + $0x34] sm:$0xf0] }
  0x17   : > { %984 = vmatpush.bf16.msra.mxu2 %v16047_v10  ;;  %v16051_v27 = vld [vmem:[%s20646_s1 + $0x3c8] sm:$0xff]  ;;  %v16050_v31 = vld [vmem:[%s20646_s1 + $0x3c0] sm:$0xff]  ;;  %v10981_v39 = vld [vmem:[%s17006_s10 + $0x38] sm:$0xf0] }
  0x18   : > { %1017 = vmatpush.bf16.msra.mxu3 %v16055_v11  ;;  %v10971_v32 = vld [vmem:[%s17006_s10 + $0x20] sm:$0xf]  ;;  %v15902_v34 = vld [vmem:[%s17006_s10 + $0x24] sm:$0xf]  ;;  %v10979_v36 = vld [vmem:[%s17006_s10 + $0x28] sm:$0xf] }
  0x19   : > { %919 = vmatpush.bf16.msra.mxu0 %v16030_v12  ;;  %v15903_v38 = vld [vmem:[%s17006_s10 + $0x2c] sm:$0xf]  ;;  %v15953_v40 = vld [vmem:[%s20646_s1 + $0xb8] sm:$0xff]  ;;  %v17040_v42 = vor.u32 %v15904_v33, %v10971_v32  ;;  %v17042_v43 = vor.u32 %v15902_v34, %v10973_v35  ;;  %v17044_v44 = vor.u32 %v15905_v37, %v10979_v36  ;;  %v15952_v48 = vld [vmem:[%s20646_s1 + $0xb0] sm:$0xff] }
  0x1a   : > { %952 = vmatpush.bf16.msra.mxu1 %v16038_v13  ;;  %v15937_v41 = vld [vmem:[%s20646_s1 + $0x38] sm:$0xff]  ;;  %v17046_v45 = vor.u32 %v15903_v38, %v10981_v39  ;;  %v15936_v49 = vld [vmem:[%s20646_s1 + $0x30] sm:$0xff]  ;;  %v15951_v52 = vld [vmem:[%s20646_s1 + $0xa8] sm:$0xff] }
  0x1b   : > { %985 = vmatpush.bf16.msra.mxu2 %v16046_v14  ;;  %v15961_v46 = vld [vmem:[%s20646_s1 + $0xf8] sm:$0xff]  ;;  %v15960_v50 = vld [vmem:[%s20646_s1 + $0xf0] sm:$0xff]  ;;  %v15935_v53 = vld [vmem:[%s20646_s1 + $0x28] sm:$0xff] }
  0x1c   : > { %1018 = vmatpush.bf16.msra.mxu3 %v16054_v15  ;;  %v15945_v47 = vld [vmem:[%s20646_s1 + $0x78] sm:$0xff]  ;;  %v15944_v51 = vld [vmem:[%s20646_s1 + $0x70] sm:$0xff]  ;;  %v15959_v54 = vld [vmem:[%s20646_s1 + $0xe8] sm:$0xff] }
  0x1d   : > { %920 = vmatpush.bf16.msra.mxu0 %v16029_v16  ;;  %v15943_v55 = vld [vmem:[%s20646_s1 + $0x68] sm:$0xff]  ;;  %v10987_v56 = vld [vmem:[%s17006_s10 + $0x40] sm:$0xf]  ;;  %v15908_v59 = vld [vmem:[%s17006_s10 + $0x4c] sm:$0xf0] }
  0x1e   : > { %953 = vmatpush.bf16.msra.mxu1 %v16037_v17  ;;  %v15950_v57 = vld [vmem:[%s20646_s1 + $0xa0] sm:$0xff]  ;;  %v10989_v61 = vld [vmem:[%s17006_s10 + $0x50] sm:$0xf0]  ;;  %v10995_v62 = vld [vmem:[%s17006_s10 + $0x48] sm:$0xf]  ;;  %v17102_v4 = vor.u32 %v15908_v59, %v10987_v56 }
  0x1f   : > { %986 = vmatpush.bf16.msra.mxu2 %v16045_v18  ;;  %v15934_v58 = vld [vmem:[%s20646_s1 + $0x20] sm:$0xff]  ;;  %v15909_v63 = vld [vmem:[%s17006_s10 + $0x54] sm:$0xf0]  ;;  %v15907_v0 = vld [vmem:[%s17006_s10 + $0x4c] sm:$0xf] }
  0x20   : > { %1019 = vmatpush.bf16.msra.mxu3 %v16053_v19  ;;  %v15906_v60 = vld [vmem:[%s17006_s10 + $0x44] sm:$0xf]  ;;  %v10997_v1 = vld [vmem:[%s17006_s10 + $0x58] sm:$0xf0]  ;;  %v17106_v6 = vor.u32 %v15909_v63, %v10995_v62  ;;  %v15948_v12 = vld [vmem:[%s20646_s1 + $0x90] sm:$0xff] }
  0x21   : > { %921 = vmatpush.bf16.msra.mxu0 %v16028_v20  ;;  %v15958_v2 = vld [vmem:[%s20646_s1 + $0xe0] sm:$0xff]  ;;  %v17104_v5 = vor.u32 %v15906_v60, %v10989_v61  ;;  %v17108_v7 = vor.u32 %v15907_v0, %v10997_v1  ;;  %v15949_v8 = vld [vmem:[%s20646_s1 + $0x98] sm:$0xff]  ;;  %v15932_v13 = vld [vmem:[%s20646_s1 + $0x10] sm:$0xff] }
  0x22   : > { %954 = vmatpush.bf16.msra.mxu1 %v16036_v21  ;;  %v15942_v3 = vld [vmem:[%s20646_s1 + $0x60] sm:$0xff]  ;;  %v15933_v9 = vld [vmem:[%s20646_s1 + $0x18] sm:$0xff]  ;;  %v15956_v14 = vld [vmem:[%s20646_s1 + $0xd0] sm:$0xff] }
  0x23   : > { %987 = vmatpush.bf16.msra.mxu2 %v16044_v22  ;;  %v15957_v10 = vld [vmem:[%s20646_s1 + $0xd8] sm:$0xff]  ;;  %v11003_v15 = vld [vmem:[%s17006_s10 + $0x60] sm:$0xf]  ;;  %v15912_v16 = vld [vmem:[%s17006_s10 + $0x6c] sm:$0xf0] }
  0x24   : > { %1020 = vmatpush.bf16.msra.mxu3 %v16052_v23  ;;  %v15941_v11 = vld [vmem:[%s20646_s1 + $0x58] sm:$0xff]  ;;  %v15910_v17 = vld [vmem:[%s17006_s10 + $0x64] sm:$0xf]  ;;  %v11005_v18 = vld [vmem:[%s17006_s10 + $0x70] sm:$0xf0]  ;;  %v17143_v23 = vor.u32 %v15912_v16, %v11003_v15 }
  0x25   : > { %922 = vmatpush.bf16.msra.mxu0 %v16027_v24  ;;  %v11011_v19 = vld [vmem:[%s17006_s10 + $0x68] sm:$0xf]  ;;  %v15913_v20 = vld [vmem:[%s17006_s10 + $0x74] sm:$0xf0]  ;;  %v15911_v21 = vld [vmem:[%s17006_s10 + $0x6c] sm:$0xf]  ;;  %v17145_v24 = vor.u32 %v15910_v17, %v11005_v18 }
  0x26   : > { %955 = vmatpush.bf16.msra.mxu1 %v16035_v25  ;;  %v11013_v22 = vld [vmem:[%s17006_s10 + $0x78] sm:$0xf0]  ;;  %v17147_v25 = vor.u32 %v15913_v20, %v11011_v19  ;;  %v11019_v32 = vld [vmem:[%s17006_s10 + $0x80] sm:$0xf]  ;;  %v15916_v33 = vld [vmem:[%s17006_s10 + $0x8c] sm:$0xf0] }
  0x27   : > { %988 = vmatpush.bf16.msra.mxu2 %v16043_v26  ;;  %v17149_v26 = vor.u32 %v15911_v21, %v11013_v22  ;;  %v15914_v34 = vld [vmem:[%s17006_s10 + $0x84] sm:$0xf]  ;;  %v11021_v35 = vld [vmem:[%s17006_s10 + $0x90] sm:$0xf0]  ;;  %v11027_v36 = vld [vmem:[%s17006_s10 + $0x88] sm:$0xf] }
  0x28   : > { %1021 = vmatpush.bf16.msra.mxu3 %v16051_v27  ;;  %v15940_v27 = vld [vmem:[%s20646_s1 + $0x50] sm:$0xff]  ;;  %v15917_v37 = vld [vmem:[%s17006_s10 + $0x94] sm:$0xf0]  ;;  %v15915_v38 = vld [vmem:[%s17006_s10 + $0x8c] sm:$0xf] }
  0x29   : > { %923 = vmatpush.bf16.msra.mxu0 %v16026_v28  ;;  %v15947_v28 = vld [vmem:[%s20646_s1 + $0x88] sm:$0xff]  ;;  %v11029_v39 = vld [vmem:[%s17006_s10 + $0x98] sm:$0xf0]  ;;  %v15925_v16 = vld [vmem:[%s17006_s10 + $0xd4] sm:$0xf0] }
  0x2a   : > { %956 = vmatpush.bf16.msra.mxu1 %v16034_v29  ;;  %v15931_v29 = vld [vmem:[%s20646_s1 + $0x8] sm:$0xff]  ;;  %v11045_v59 = vld [vmem:[%s17006_s10 + $0xb8] sm:$0xf0] }
  0x2b   : > { %989 = vmatpush.bf16.msra.mxu2 %v16042_v30  ;;  %v15955_v30 = vld [vmem:[%s20646_s1 + $0xc8] sm:$0xff]  ;;  %v16081_v0 = vld [vmem:[%s20646_s1 + $0x4b8] sm:$0xff] }
  0x2c   : > { %1022 = vmatpush.bf16.msra.mxu3 %v16050_v31  ;;  %924 = vmatmul.bf16.vlgmr.msra.gmra.mxu0 %v17040_v42  ;;  %v15939_v31 = vld [vmem:[%s20646_s1 + $0x48] sm:$0xff]  ;;  %v16065_v1 = vld [vmem:[%s20646_s1 + $0x438] sm:$0xff] }
  0x2d   : > { %1260 = vmatpush.bf16.msrb.mxu0 %v15937_v41  ;;  %957 = vmatmul.bf16.vlgmr.msra.gmra.mxu1 %v17042_v43  ;;  %v17180_v41 = vor.u32 %v15914_v34, %v11021_v35  ;;  %v11043_v56 = vld [vmem:[%s17006_s10 + $0xa8] sm:$0xf]  ;;  %v15923_v17 = vld [vmem:[%s17006_s10 + $0xcc] sm:$0xf]  ;;  %v11061_v18 = vld [vmem:[%s17006_s10 + $0xd8] sm:$0xf0] }
  0x2e   : > { %990 = vmatmul.bf16.vlgmr.msra.gmra.mxu2 %v17044_v44  ;;  %1293 = vmatpush.bf16.msrb.mxu1 %v15945_v47  ;;  %v17184_v47 = vor.u32 %v15915_v38, %v11029_v39  ;;  %v11059_v15 = vld [vmem:[%s17006_s10 + $0xc8] sm:$0xf]  ;;  %v17257_v22 = vor.u32 %v15923_v17, %v11061_v18  ;;  %v15898_v34 = vld [vmem:[%s17006_s10 + $0x4] sm:$0xf]  ;;  %v11197_v35 = vld [vmem:[%s17006_s10 + $0x10] sm:$0xf0] }
  0x2f   : > { %1326 = vmatpush.bf16.msrb.mxu2 %v15953_v40  ;;  %1023 = vmatmul.bf16.vlgmr.msra.gmra.mxu3 %v17046_v45  ;;  %v17178_v40 = vor.u32 %v15916_v33, %v11019_v32  ;;  %v17255_v21 = vor.u32 %v15925_v16, %v11059_v15  ;;  %v11195_v32 = vld [vmem:[%s17006_s10] sm:$0xf]  ;;  %v15900_v33 = vld [vmem:[%s17006_s10 + $0xc] sm:$0xf0]  ;;  %v15899_v38 = vld [vmem:[%s17006_s10 + $0xc] sm:$0xf] }
  0x30   : > { %1359 = vmatpush.bf16.msrb.mxu3 %v15961_v46  ;;  %v17182_v46 = vor.u32 %v15917_v37, %v11027_v36  ;;  %v11203_v36 = vld [vmem:[%s17006_s10 + $0x8] sm:$0xf]  ;;  %v15901_v37 = vld [vmem:[%s17006_s10 + $0x14] sm:$0xf0]  ;;  %v11205_v39 = vld [vmem:[%s17006_s10 + $0x18] sm:$0xf0] }
  0x31   : > { %1261 = vmatpush.bf16.msrb.mxu0 %v15936_v49  ;;  %v15930_v49 = vld [vmem:[%s20646_s1] sm:$0xff]  ;;  %v16075_v17 = vld [vmem:[%s20646_s1 + $0x488] sm:$0xff] }
  0x32   : > { %1294 = vmatpush.bf16.msrb.mxu1 %v15944_v51  ;;  %v15938_v51 = vld [vmem:[%s20646_s1 + $0x40] sm:$0xff]  ;;  %v16059_v18 = vld [vmem:[%s20646_s1 + $0x408] sm:$0xff] }
  0x33   : > { %1327 = vmatpush.bf16.msrb.mxu2 %v15952_v48  ;;  %v15946_v48 = vld [vmem:[%s20646_s1 + $0x80] sm:$0xff] }
  0x34   : > { %1360 = vmatpush.bf16.msrb.mxu3 %v15960_v50  ;;  %v15954_v50 = vld [vmem:[%s20646_s1 + $0xc0] sm:$0xff] }
  0x35   : > { %1262 = vmatpush.bf16.msrb.mxu0 %v15935_v53  ;;  %v15920_v53 = vld [vmem:[%s17006_s10 + $0xac] sm:$0xf0] }
  0x36   : > { %1295 = vmatpush.bf16.msrb.mxu1 %v15943_v55  ;;  %v11037_v55 = vld [vmem:[%s17006_s10 + $0xb0] sm:$0xf0] }
  0x37   : > { %1328 = vmatpush.bf16.msrb.mxu2 %v15951_v52  ;;  %v11035_v52 = vld [vmem:[%s17006_s10 + $0xa0] sm:$0xf] }
  0x38   : > { %1361 = vmatpush.bf16.msrb.mxu3 %v15959_v54  ;;  %v15918_v54 = vld [vmem:[%s17006_s10 + $0xa4] sm:$0xf]  ;;  %v17210_v60 = vor.u32 %v15920_v53, %v11035_v52 }
  0x39   : > { %1263 = vmatpush.bf16.msrb.mxu0 %v15934_v58  ;;  %v15919_v58 = vld [vmem:[%s17006_s10 + $0xac] sm:$0xf]  ;;  %v17212_v61 = vor.u32 %v15918_v54, %v11037_v55  ;;  %v16078_v52 = vld [vmem:[%s20646_s1 + $0x4a0] sm:$0xff] }
  0x3a   : > { %1296 = vmatpush.bf16.msrb.mxu1 %v15942_v3  ;;  %v17216_v63 = vor.u32 %v15919_v58, %v11045_v59  ;;  %v16073_v3 = vld [vmem:[%s20646_s1 + $0x478] sm:$0xff]  ;;  %v16062_v53 = vld [vmem:[%s20646_s1 + $0x420] sm:$0xff] }
  0x3b   : > { %1329 = vmatpush.bf16.msrb.mxu2 %v15950_v57  ;;  %v15921_v57 = vld [vmem:[%s17006_s10 + $0xb4] sm:$0xf0]  ;;  %v16086_v54 = vld [vmem:[%s20646_s1 + $0x4e0] sm:$0xff] }
  0x3c   : > { %1362 = vmatpush.bf16.msrb.mxu3 %v15958_v2  ;;  %928 = vmatmul.bf16.gmra.mxu0 %v17102_v4  ;;  %v17214_v62 = vor.u32 %v15921_v57, %v11043_v56  ;;  %v16089_v2 = vld [vmem:[%s20646_s1 + $0x4f8] sm:$0xff]  ;;  %v16070_v55 = vld [vmem:[%s20646_s1 + $0x460] sm:$0xff] }
  0x3d   : > { %961 = vmatmul.bf16.gmra.mxu1 %v17104_v5  ;;  %1264 = vmatpush.bf16.msrb.mxu0 %v15933_v9  ;;  %v16064_v9 = vld [vmem:[%s20646_s1 + $0x430] sm:$0xff]  ;;  %v16077_v56 = vld [vmem:[%s20646_s1 + $0x498] sm:$0xff] }
  0x3e   : > { %994 = vmatmul.bf16.gmra.mxu2 %v17106_v6  ;;  %1297 = vmatpush.bf16.msrb.mxu1 %v15941_v11  ;;  %v11051_v11 = vld [vmem:[%s17006_s10 + $0xc0] sm:$0xf]  ;;  %v16061_v57 = vld [vmem:[%s20646_s1 + $0x418] sm:$0xff] }
  0x3f   : > { %1027 = vmatmul.bf16.gmra.mxu3 %v17108_v7  ;;  %1330 = vmatpush.bf16.msrb.mxu2 %v15949_v8  ;;  %v16080_v8 = vld [vmem:[%s20646_s1 + $0x4b0] sm:$0xff]  ;;  %v16085_v58 = vld [vmem:[%s20646_s1 + $0x4d8] sm:$0xff] }
  0x40   : > { %1363 = vmatpush.bf16.msrb.mxu3 %v15957_v10  ;;  %v16088_v10 = vld [vmem:[%s20646_s1 + $0x4f0] sm:$0xff]  ;;  %v16069_v59 = vld [vmem:[%s20646_s1 + $0x458] sm:$0xff] }
  0x41   : > { %1265 = vmatpush.bf16.msrb.mxu0 %v15932_v13  ;;  %v15922_v13 = vld [vmem:[%s17006_s10 + $0xc4] sm:$0xf] }
  0x42   : > { %1298 = vmatpush.bf16.msrb.mxu1 %v15940_v27  ;;  %v16072_v27 = vld [vmem:[%s20646_s1 + $0x470] sm:$0xff] }
  0x43   : > { %1331 = vmatpush.bf16.msrb.mxu2 %v15948_v12  ;;  %v15924_v12 = vld [vmem:[%s17006_s10 + $0xcc] sm:$0xf0] }
  0x44   : > { %1364 = vmatpush.bf16.msrb.mxu3 %v15956_v14  ;;  %v11053_v14 = vld [vmem:[%s17006_s10 + $0xd0] sm:$0xf0]  ;;  %v17251_v19 = vor.u32 %v15924_v12, %v11051_v11 }
  0x45   : > { %1266 = vmatpush.bf16.msrb.mxu0 %v15931_v29  ;;  %v17253_v20 = vor.u32 %v15922_v13, %v11053_v14  ;;  %v16063_v29 = vld [vmem:[%s20646_s1 + $0x428] sm:$0xff] }
  0x46   : > { %1299 = vmatpush.bf16.msrb.mxu1 %v15939_v31  ;;  %v16071_v31 = vld [vmem:[%s20646_s1 + $0x468] sm:$0xff] }
  0x47   : > { %1332 = vmatpush.bf16.msrb.mxu2 %v15947_v28  ;;  %v16079_v28 = vld [vmem:[%s20646_s1 + $0x4a8] sm:$0xff] }
  0x48   : > { %1365 = vmatpush.bf16.msrb.mxu3 %v15955_v30  ;;  %v16087_v30 = vld [vmem:[%s20646_s1 + $0x4e8] sm:$0xff] }
  0x49   : > { %1267 = vmatpush.bf16.msrb.mxu0 %v15930_v49  ;;  %v17288_v49 = vor.u32 %v15898_v34, %v11197_v35 }
  0x4a   : > { %1300 = vmatpush.bf16.msrb.mxu1 %v15938_v51  ;;  %v17292_v51 = vor.u32 %v15899_v38, %v11205_v39 }
  0x4b   : > { %1333 = vmatpush.bf16.msrb.mxu2 %v15946_v48  ;;  %v17286_v48 = vor.u32 %v15900_v33, %v11195_v32 }
  0x4c   : > { %932 = vmatmul.bf16.gmra.mxu0 %v17143_v23  ;;  %1366 = vmatpush.bf16.msrb.mxu3 %v15954_v50  ;;  %v17290_v50 = vor.u32 %v15901_v37, %v11203_v36 }
  0x4d   : > { %965 = vmatmul.bf16.gmra.mxu1 %v17145_v24  ;;  %1649 = vmatpush.bf16.msra.mxu0 %v16065_v1 }
  0x4e   : > { %998 = vmatmul.bf16.gmra.mxu2 %v17147_v25  ;;  %1688 = vmatpush.bf16.msra.mxu1 %v16073_v3 }
  0x4f   : > { %1031 = vmatmul.bf16.gmra.mxu3 %v17149_v26  ;;  %1727 = vmatpush.bf16.msra.mxu2 %v16081_v0  ;;  %v16076_v0 = vld [vmem:[%s20646_s1 + $0x490] sm:$0xff] }
  0x50   : > { %1766 = vmatpush.bf16.msra.mxu3 %v16089_v2 }
  0x51   : > { %1650 = vmatpush.bf16.msra.mxu0 %v16064_v9  ;;  %v16084_v9 = vld [vmem:[%s20646_s1 + $0x4d0] sm:$0xff] }
  0x52   : > { %1689 = vmatpush.bf16.msra.mxu1 %v16072_v27  ;;  %v16083_v27 = vld [vmem:[%s20646_s1 + $0x4c8] sm:$0xff] }
  0x53   : > { %1728 = vmatpush.bf16.msra.mxu2 %v16080_v8  ;;  %v16060_v8 = vld [vmem:[%s20646_s1 + $0x410] sm:$0xff] }
  0x54   : > { %1767 = vmatpush.bf16.msra.mxu3 %v16088_v10  ;;  %v16068_v10 = vld [vmem:[%s20646_s1 + $0x450] sm:$0xff] }
  0x55   : > { %1651 = vmatpush.bf16.msra.mxu0 %v16063_v29 }
  0x56   : > { %1690 = vmatpush.bf16.msra.mxu1 %v16071_v31 }
  0x57   : > { %1729 = vmatpush.bf16.msra.mxu2 %v16079_v28 }
  0x58   : > { %1768 = vmatpush.bf16.msra.mxu3 %v16087_v30  ;;  %v16067_v30 = vld [vmem:[%s20646_s1 + $0x448] sm:$0xff] }
  0x59   : > { %1652 = vmatpush.bf16.msra.mxu0 %v16062_v53  ;;  %v16058_v53 = vld [vmem:[%s20646_s1 + $0x400] sm:$0xff] }
  0x5a   : > { %1691 = vmatpush.bf16.msra.mxu1 %v16070_v55  ;;  %v16066_v55 = vld [vmem:[%s20646_s1 + $0x440] sm:$0xff] }
  0x5b   : > { %1730 = vmatpush.bf16.msra.mxu2 %v16078_v52  ;;  %v16074_v52 = vld [vmem:[%s20646_s1 + $0x480] sm:$0xff] }
  0x5c   : > { %936 = vmatmul.bf16.gmra.mxu0 %v17178_v40  ;;  %1769 = vmatpush.bf16.msra.mxu3 %v16086_v54  ;;  %v16082_v54 = vld [vmem:[%s20646_s1 + $0x4c0] sm:$0xff] }
  0x5d   : > { %969 = vmatmul.bf16.gmra.mxu1 %v17180_v41  ;;  %1653 = vmatpush.bf16.msra.mxu0 %v16061_v57 }
  0x5e   : > { %1002 = vmatmul.bf16.gmra.mxu2 %v17182_v46  ;;  %1692 = vmatpush.bf16.msra.mxu1 %v16069_v59 }
  0x5f   : > { %1035 = vmatmul.bf16.gmra.mxu3 %v17184_v47  ;;  %1731 = vmatpush.bf16.msra.mxu2 %v16077_v56 }
  0x60   : > { %1770 = vmatpush.bf16.msra.mxu3 %v16085_v58 }
  0x61   : > { %1654 = vmatpush.bf16.msra.mxu0 %v16060_v8 }
  0x62   : > { %1693 = vmatpush.bf16.msra.mxu1 %v16068_v10 }
  0x63   : > { %1732 = vmatpush.bf16.msra.mxu2 %v16076_v0 }
  0x64   : > { %1771 = vmatpush.bf16.msra.mxu3 %v16084_v9 }
  0x65   : > { %1655 = vmatpush.bf16.msra.mxu0 %v16059_v18  ;;  %v15984_v18 = vld [vmem:[%s20646_s1 + $0x1b0] sm:$0xff] }
  0x66   : > { %1694 = vmatpush.bf16.msra.mxu1 %v16067_v30  ;;  %v15968_v30 = vld [vmem:[%s20646_s1 + $0x130] sm:$0xff] }
  0x67   : > { %1733 = vmatpush.bf16.msra.mxu2 %v16075_v17 }
  0x68   : > { %1772 = vmatpush.bf16.msra.mxu3 %v16083_v27 }
  0x69   : > { %1656 = vmatpush.bf16.msra.mxu0 %v16058_v53  ;;  %v15967_v53 = vld [vmem:[%s20646_s1 + $0x128] sm:$0xff] }
  0x6a   : > { %1695 = vmatpush.bf16.msra.mxu1 %v16066_v55 }
  0x6b   : > { %1734 = vmatpush.bf16.msra.mxu2 %v16074_v52  ;;  %v15983_v52 = vld [vmem:[%s20646_s1 + $0x1a8] sm:$0xff] }
  0x6c   : > { %940 = vmatmul.bf16.gmra.mxu0 %v17210_v60  ;;  %1773 = vmatpush.bf16.msra.mxu3 %v16082_v54  ;;  %v15991_v54 = vld [vmem:[%s20646_s1 + $0x1e8] sm:$0xff] }
  0x6d   : > { %973 = vmatmul.bf16.gmra.mxu1 %v17212_v61 }
  0x6e   : > { %1006 = vmatmul.bf16.gmra.mxu2 %v17214_v62 }
  0x6f   : > { %1039 = vmatmul.bf16.gmra.mxu3 %v17216_v63 }
  0x7c   : > { %944 = vmatmul.bf16.gmra.mxu0 %v17251_v19 }
  0x7d   : > { %977 = vmatmul.bf16.gmra.mxu1 %v17253_v20 }
  0x7e   : > { %1010 = vmatmul.bf16.gmra.mxu2 %v17255_v21 }
  0x7f   : > { %1043 = vmatmul.bf16.gmra.mxu3 %v17257_v22 }
  0x8c   : > { %1268 = vmatmul.bf16.vlgmr.msrb.gmra.mxu0 %v17286_v48 }
  0x8d   : > { %1301 = vmatmul.bf16.vlgmr.msrb.gmra.mxu1 %v17288_v49 }
  0x8e   : > { %1334 = vmatmul.bf16.vlgmr.msrb.gmra.mxu2 %v17290_v50 }
  0x8f   : > { %1367 = vmatmul.bf16.vlgmr.msrb.gmra.mxu3 %v17292_v51 }
  0x9c   : > { %1272 = vmatmul.bf16.gmra.mxu0 %v17040_v42 }
  0x9d   : > { %1305 = vmatmul.bf16.gmra.mxu1 %v17042_v43 }
  0x9e   : > { %1338 = vmatmul.bf16.gmra.mxu2 %v17044_v44 }
  0x9f   : > { %1371 = vmatmul.bf16.gmra.mxu3 %v17046_v45 }
  0xa9   : > { %v925_v1 = vpop.f32.mrf.mxu0 }
  0xaa   : > { %v958_v2 = vpop.f32.mrf.mxu1 }
  0xab   : > { %v959_v3 = vadd.f32 %v958_v2, %v925_v1  ;;  %v15985_v1 = vld [vmem:[%s20646_s1 + $0x1b8] sm:$0xff] }
  0xac   : > { %1276 = vmatmul.bf16.gmra.mxu0 %v17102_v4  ;;  %v15969_v2 = vld [vmem:[%s20646_s1 + $0x138] sm:$0xff]  ;;  %2075 = vmatpush.bf16.msrb.mxu2 %v15985_v1 }
  0xad   : > { %1309 = vmatmul.bf16.gmra.mxu1 %v17104_v5  ;;  %1997 = vmatpush.bf16.msrb.mxu0 %v15969_v2 }
  0xae   : > { %1342 = vmatmul.bf16.gmra.mxu2 %v17106_v6 }
  0xaf   : > { %1375 = vmatmul.bf16.gmra.mxu3 %v17108_v7 }
  0xb0   : > { %2076 = vmatpush.bf16.msrb.mxu2 %v15984_v18 }
  0xb1   : > { %v991_v11 = vpop.f32.mrf.mxu2  ;;  %v927_v14 = vpop.f32.mrf.mxu0  ;;  %1998 = vmatpush.bf16.msrb.mxu0 %v15968_v30  ;;  %v15981_v30 = vld [vmem:[%s20646_s1 + $0x198] sm:$0xff] }
  0xb2   : > { %v1024_v12 = vpop.f32.mrf.mxu3  ;;  %v992_v13 = vadd.f32 %v991_v11, %v959_v3  ;;  %v960_v15 = vpop.f32.mrf.mxu1  ;;  %v15993_v3 = vld [vmem:[%s20646_s1 + $0x1f8] sm:$0xff] }
  0xb3   : > { %2114 = vmatpush.bf16.msrb.mxu3 %v15993_v3  ;;  %v15977_v14 = vld [vmem:[%s20646_s1 + $0x178] sm:$0xff] }
  0xb4   : > { %v17342_v16 = vadd.f32 %v1024_v12, %v992_v13  ;;  %2036 = vmatpush.bf16.msrb.mxu1 %v15977_v14  ;;  %2077 = vmatpush.bf16.msrb.mxu2 %v15983_v52  ;;  %v15990_v14 = vld [vmem:[%s20646_s1 + $0x1e0] sm:$0xff] }
  0xb5   : > { %1999 = vmatpush.bf16.msrb.mxu0 %v15967_v53  ;;  %v15973_v53 = vld [vmem:[%s20646_s1 + $0x158] sm:$0xff] }
  0xb9   : > { %v993_v28 = vpop.f32.mrf.mxu2  ;;  %v929_v31 = vpop.f32.mrf.mxu0 }
  0xba   : > { %v1026_v29 = vpop.f32.mrf.mxu3  ;;  %v962_v32 = vpop.f32.mrf.mxu1 }
  0xbb   : > { %v963_v33 = vadd.f32 %v962_v32, %v929_v31  ;;  %v15992_v31 = vld [vmem:[%s20646_s1 + $0x1f0] sm:$0xff] }
  0xbc   : > { %1280 = vmatmul.bf16.gmra.mxu0 %v17143_v23  ;;  %v15976_v32 = vld [vmem:[%s20646_s1 + $0x170] sm:$0xff]  ;;  %2115 = vmatpush.bf16.msrb.mxu3 %v15992_v31  ;;  %v15965_v31 = vld [vmem:[%s20646_s1 + $0x118] sm:$0xff] }
  0xbd   : > { %1313 = vmatmul.bf16.gmra.mxu1 %v17145_v24 }
  0xbe   : > { %1346 = vmatmul.bf16.gmra.mxu2 %v17147_v25  ;;  %2037 = vmatpush.bf16.msrb.mxu1 %v15976_v32  ;;  %v15989_v32 = vld [vmem:[%s20646_s1 + $0x1d8] sm:$0xff] }
  0xbf   : > { %1379 = vmatmul.bf16.gmra.mxu3 %v17149_v26 }
  0xc0   : > { %2116 = vmatpush.bf16.msrb.mxu3 %v15991_v54 }
  0xc1   : > { %v995_v34 = vpop.f32.mrf.mxu2  ;;  %v931_v37 = vpop.f32.mrf.mxu0 }
  0xc2   : > { %v1028_v35 = vpop.f32.mrf.mxu3  ;;  %v996_v36 = vadd.f32 %v995_v34, %v963_v33  ;;  %v964_v38 = vpop.f32.mrf.mxu1 }
  0xc4   : > { %v17360_v39 = vadd.f32 %v1028_v35, %v996_v36  ;;  %2117 = vmatpush.bf16.msrb.mxu3 %v15990_v14 }
  0xc8   : > { %2118 = vmatpush.bf16.msrb.mxu3 %v15989_v32 }
  0xc9   : > { %v997_v56 = vpop.f32.mrf.mxu2  ;;  %v933_v58 = vpop.f32.mrf.mxu0 }
  0xca   : > { %v1030_v57 = vpop.f32.mrf.mxu3  ;;  %v966_v59 = vpop.f32.mrf.mxu1 }
  0xcb   : > { %v967_v0 = vadd.f32 %v966_v59, %v933_v58  ;;  %v15975_v57 = vld [vmem:[%s20646_s1 + $0x168] sm:$0xff] }
  0xcc   : > { %1284 = vmatmul.bf16.gmra.mxu0 %v17178_v40  ;;  %2038 = vmatpush.bf16.msrb.mxu1 %v15975_v57 }
  0xcd   : > { %1317 = vmatmul.bf16.gmra.mxu1 %v17180_v41 }
  0xce   : > { %1350 = vmatmul.bf16.gmra.mxu2 %v17182_v46 }
  0xcf   : > { %1383 = vmatmul.bf16.gmra.mxu3 %v17184_v47 }
  0xd1   : > { %v999_v8 = vpop.f32.mrf.mxu2  ;;  %v935_v11 = vpop.f32.mrf.mxu0 }
  0xd2   : > { %v1032_v9 = vpop.f32.mrf.mxu3  ;;  %v1000_v10 = vadd.f32 %v999_v8, %v967_v0  ;;  %v968_v12 = vpop.f32.mrf.mxu1  ;;  %v15982_v11 = vld [vmem:[%s20646_s1 + $0x1a0] sm:$0xff] }
  0xd3   : > { %v15966_v12 = vld [vmem:[%s20646_s1 + $0x120] sm:$0xff]  ;;  %2078 = vmatpush.bf16.msrb.mxu2 %v15982_v11 }
  0xd4   : > { %v17387_v13 = vadd.f32 %v1032_v9, %v1000_v10  ;;  %2000 = vmatpush.bf16.msrb.mxu0 %v15966_v12 }
  0xd7   : > { %2079 = vmatpush.bf16.msrb.mxu2 %v15981_v30 }
  0xd8   : > { %2001 = vmatpush.bf16.msrb.mxu0 %v15965_v31 }
  0xd9   : > { %v1001_v15 = vpop.f32.mrf.mxu2  ;;  %v937_v27 = vpop.f32.mrf.mxu0 }
  0xda   : > { %v1034_v17 = vpop.f32.mrf.mxu3  ;;  %v970_v28 = vpop.f32.mrf.mxu1  ;;  %v15974_v15 = vld [vmem:[%s20646_s1 + $0x160] sm:$0xff] }
  0xdb   : > { %v971_v29 = vadd.f32 %v970_v28, %v937_v27  ;;  %2039 = vmatpush.bf16.msrb.mxu1 %v15974_v15  ;;  %v15979_v15 = vld [vmem:[%s20646_s1 + $0x188] sm:$0xff] }
  0xdc   : > { %1288 = vmatmul.bf16.gmra.mxu0 %v17210_v60 }
  0xdd   : > { %1321 = vmatmul.bf16.gmra.mxu1 %v17212_v61 }
  0xde   : > { %1354 = vmatmul.bf16.gmra.mxu2 %v17214_v62 }
  0xdf   : > { %1387 = vmatmul.bf16.gmra.mxu3 %v17216_v63  ;;  %2040 = vmatpush.bf16.msrb.mxu1 %v15973_v53 }
  0xe1   : > { %v1003_v33 = vpop.f32.mrf.mxu2  ;;  %v939_v36 = vpop.f32.mrf.mxu0 }
  0xe2   : > { %v1036_v34 = vpop.f32.mrf.mxu3  ;;  %v1004_v35 = vadd.f32 %v1003_v33, %v971_v29  ;;  %v972_v37 = vpop.f32.mrf.mxu1 }
  0xe4   : > { %v17408_v38 = vadd.f32 %v1036_v34, %v1004_v35 }
  0xe9   : > { %v1005_v55 = vpop.f32.mrf.mxu2  ;;  %v941_v58 = vpop.f32.mrf.mxu0 }
  0xea   : > { %v1038_v56 = vpop.f32.mrf.mxu3  ;;  %v974_v59 = vpop.f32.mrf.mxu1 }
  0xeb   : > { %v975_v0 = vadd.f32 %v974_v59, %v941_v58  ;;  %v15980_v56 = vld [vmem:[%s20646_s1 + $0x190] sm:$0xff] }
  0xec   : > { %1657 = vmatmul.bf16.vlgmr.msra.gmra.mxu0 %v17040_v42  ;;  %2080 = vmatpush.bf16.msrb.mxu2 %v15980_v56  ;;  %v15986_v56 = vld [vmem:[%s20646_s1 + $0x1c0] sm:$0xff] }
  0xed   : > { %1696 = vmatmul.bf16.vlgmr.msra.gmra.mxu1 %v17042_v43 }
  0xee   : > { %1735 = vmatmul.bf16.vlgmr.msra.gmra.mxu2 %v17044_v44 }
  0xef   : > { %1774 = vmatmul.bf16.vlgmr.msra.gmra.mxu3 %v17046_v45 }
  0xf0   : > { %2081 = vmatpush.bf16.msrb.mxu2 %v15979_v15 }
  0xf1   : > { %v1007_v1 = vpop.f32.mrf.mxu2  ;;  %v943_v8 = vpop.f32.mrf.mxu0 }
  0xf2   : > { %v1040_v2 = vpop.f32.mrf.mxu3  ;;  %v1008_v3 = vadd.f32 %v1007_v1, %v975_v0  ;;  %v976_v9 = vpop.f32.mrf.mxu1  ;;  %v15964_v1 = vld [vmem:[%s20646_s1 + $0x110] sm:$0xff] }
  0xf3   : > { %2002 = vmatpush.bf16.msrb.mxu0 %v15964_v1 }
  0xf4   : > { %v17426_v10 = vadd.f32 %v1040_v2, %v1008_v3  ;;  %v15988_v2 = vld [vmem:[%s20646_s1 + $0x1d0] sm:$0xff] }
  0xf5   : > { %2119 = vmatpush.bf16.msrb.mxu3 %v15988_v2 }
  0xf9   : > { %v1009_v17 = vpop.f32.mrf.mxu2  ;;  %v945_v27 = vpop.f32.mrf.mxu0 }
  0xfa   : > { %v1042_v18 = vpop.f32.mrf.mxu3  ;;  %v978_v28 = vpop.f32.mrf.mxu1  ;;  %v15963_v17 = vld [vmem:[%s20646_s1 + $0x108] sm:$0xff] }
  0xfb   : > { %v979_v29 = vadd.f32 %v978_v28, %v945_v27  ;;  %v15987_v18 = vld [vmem:[%s20646_s1 + $0x1c8] sm:$0xff]  ;;  %2003 = vmatpush.bf16.msrb.mxu0 %v15963_v17 }
  0xfc   : > { %1662 = vmatmul.bf16.gmra.mxu0 %v17102_v4  ;;  %2120 = vmatpush.bf16.msrb.mxu3 %v15987_v18 }
  0xfd   : > { %1701 = vmatmul.bf16.gmra.mxu1 %v17104_v5 }
  0xfe   : > { %1740 = vmatmul.bf16.gmra.mxu2 %v17106_v6 }
  0xff   : > { %1779 = vmatmul.bf16.gmra.mxu3 %v17108_v7 }
 0x100   : > { %2121 = vmatpush.bf16.msrb.mxu3 %v15986_v56 }
 0x101   : > { %v1011_v33 = vpop.f32.mrf.mxu2  ;;  %v947_v36 = vpop.f32.mrf.mxu0 }
 0x102   : > { %v1044_v34 = vpop.f32.mrf.mxu3  ;;  %v1012_v35 = vadd.f32 %v1011_v33, %v979_v29  ;;  %v980_v37 = vpop.f32.mrf.mxu1  ;;  %v15971_v29 = vld [vmem:[%s20646_s1 + $0x148] sm:$0xff] }
 0x104   : > { %v17453_v52 = vadd.f32 %v1044_v34, %v1012_v35 }
 0x109   : > { %v1013_v54 = vpop.f32.mrf.mxu2  ;;  %v1269_v57 = vpop.f32.mrf.mxu0 }
 0x10a   : > { %v1046_v55 = vpop.f32.mrf.mxu3  ;;  %v1302_v58 = vpop.f32.mrf.mxu1  ;;  %v1270_v59 = vadd.f32 %v1269_v57, %v17342_v16  ;;  %v15972_v16 = vld [vmem:[%s20646_s1 + $0x150] sm:$0xff]  ;;  %v15970_v57 = vld [vmem:[%s20646_s1 + $0x140] sm:$0xff] }
 0x10b   : > { %2041 = vmatpush.bf16.msrb.mxu1 %v15972_v16  ;;  %v15962_v55 = vld [vmem:[%s20646_s1 + $0x100] sm:$0xff] }
 0x10c   : > { %v1303_v0 = vadd.f32 %v1302_v58, %v1270_v59  ;;  %1667 = vmatmul.bf16.gmra.mxu0 %v17143_v23 }
 0x10d   : > { %1706 = vmatmul.bf16.gmra.mxu1 %v17145_v24  ;;  %2004 = vmatpush.bf16.msrb.mxu0 %v15962_v55 }
 0x10e   : > { %1745 = vmatmul.bf16.gmra.mxu2 %v17147_v25 }
 0x10f   : > { %1784 = vmatmul.bf16.gmra.mxu3 %v17149_v26  ;;  %2042 = vmatpush.bf16.msrb.mxu1 %v15971_v29 }
 0x111   : > { %v1335_v3 = vpop.f32.mrf.mxu2  ;;  %v1271_v11 = vpop.f32.mrf.mxu0 }
 0x112   : > { %v1368_v8 = vpop.f32.mrf.mxu3  ;;  %v1336_v9 = vadd.f32 %v1335_v3, %v1303_v0  ;;  %v1304_v12 = vpop.f32.mrf.mxu1  ;;  %v16113_v3 = vld [vmem:[%s20646_s1 + $0x5b8] sm:$0xff] }
 0x113   : > { %2043 = vmatpush.bf16.msrb.mxu1 %v15970_v57 }
 0x114   : > { %v17475_v14 = vadd.f32 %v1368_v8, %v1336_v9  ;;  %v16097_v8 = vld [vmem:[%s20646_s1 + $0x538] sm:$0xff] }
 0x115   : > { %2410 = vmatpush.bf16.msra.mxu0 %v16097_v8 }
 0x119   : > { %v1337_v27 = vpop.f32.mrf.mxu2  ;;  %v1273_v30 = vpop.f32.mrf.mxu0 }
 0x11a   : > { %v1370_v28 = vpop.f32.mrf.mxu3  ;;  %v1306_v31 = vpop.f32.mrf.mxu1  ;;  %v1274_v32 = vadd.f32 %v1273_v30, %v17360_v39  ;;  %v15978_v39 = vld [vmem:[%s20646_s1 + $0x180] sm:$0xff]  ;;  %v16105_v27 = vld [vmem:[%s20646_s1 + $0x578] sm:$0xff]  ;;  %v16112_v30 = vld [vmem:[%s20646_s1 + $0x5b0] sm:$0xff] }
 0x11b   : > { %2082 = vmatpush.bf16.msrb.mxu2 %v15978_v39  ;;  %2449 = vmatpush.bf16.msra.mxu1 %v16105_v27 }
 0x11c   : > { %v1307_v33 = vadd.f32 %v1306_v31, %v1274_v32  ;;  %1672 = vmatmul.bf16.gmra.mxu0 %v17178_v40 }
 0x11d   : > { %1711 = vmatmul.bf16.gmra.mxu1 %v17180_v41 }
 0x11e   : > { %1750 = vmatmul.bf16.gmra.mxu2 %v17182_v46 }
 0x11f   : > { %1789 = vmatmul.bf16.gmra.mxu3 %v17184_v47  ;;  %2488 = vmatpush.bf16.msra.mxu2 %v16113_v3 }
 0x121   : > { %v1339_v34 = vpop.f32.mrf.mxu2  ;;  %v1275_v37 = vpop.f32.mrf.mxu0 }
 0x122   : > { %v1372_v35 = vpop.f32.mrf.mxu3  ;;  %v1340_v36 = vadd.f32 %v1339_v34, %v1307_v33  ;;  %v1308_v53 = vpop.f32.mrf.mxu1 }
 0x123   : > { %2489 = vmatpush.bf16.msra.mxu2 %v16112_v30  ;;  %v16118_v30 = vld [vmem:[%s20646_s1 + $0x5e0] sm:$0xff] }
 0x124   : > { %v17494_v54 = vadd.f32 %v1372_v35, %v1340_v36  ;;  %v16096_v35 = vld [vmem:[%s20646_s1 + $0x530] sm:$0xff] }
 0x125   : > { %v16120_v36 = vld [vmem:[%s20646_s1 + $0x5f0] sm:$0xff]  ;;  %2411 = vmatpush.bf16.msra.mxu0 %v16096_v35 }
 0x129   : > { %v1341_v58 = vpop.f32.mrf.mxu2  ;;  %v1277_v0 = vpop.f32.mrf.mxu0 }
 0x12a   : > { %v1374_v59 = vpop.f32.mrf.mxu3  ;;  %v1310_v1 = vpop.f32.mrf.mxu1  ;;  %v1278_v2 = vadd.f32 %v1277_v0, %v17387_v13  ;;  %v16121_v13 = vld [vmem:[%s20646_s1 + $0x5f8] sm:$0xff]  ;;  %v16111_v58 = vld [vmem:[%s20646_s1 + $0x5a8] sm:$0xff] }
 0x12b   : > { %2527 = vmatpush.bf16.msra.mxu3 %v16121_v13  ;;  %v16095_v59 = vld [vmem:[%s20646_s1 + $0x528] sm:$0xff]  ;;  %2490 = vmatpush.bf16.msra.mxu2 %v16111_v58 }
 0x12c   : > { %v1311_v16 = vadd.f32 %v1310_v1, %v1278_v2  ;;  %1677 = vmatmul.bf16.gmra.mxu0 %v17210_v60  ;;  %v16119_v0 = vld [vmem:[%s20646_s1 + $0x5e8] sm:$0xff] }
 0x12d   : > { %1716 = vmatmul.bf16.gmra.mxu1 %v17212_v61  ;;  %2412 = vmatpush.bf16.msra.mxu0 %v16095_v59 }
 0x12e   : > { %1755 = vmatmul.bf16.gmra.mxu2 %v17214_v62 }
 0x12f   : > { %1794 = vmatmul.bf16.gmra.mxu3 %v17216_v63 }
 0x130   : > { %2528 = vmatpush.bf16.msra.mxu3 %v16120_v36 }
 0x131   : > { %v1343_v9 = vpop.f32.mrf.mxu2  ;;  %v1279_v15 = vpop.f32.mrf.mxu0 }
 0x132   : > { %v1376_v11 = vpop.f32.mrf.mxu3  ;;  %v1344_v12 = vadd.f32 %v1343_v9, %v1311_v16  ;;  %v1312_v17 = vpop.f32.mrf.mxu1  ;;  %v16103_v16 = vld [vmem:[%s20646_s1 + $0x568] sm:$0xff] }
 0x134   : > { %v17522_v18 = vadd.f32 %v1376_v11, %v1344_v12  ;;  %2529 = vmatpush.bf16.msra.mxu3 %v16119_v0 }
 0x138   : > { %2530 = vmatpush.bf16.msra.mxu3 %v16118_v30 }
 0x139   : > { %v1345_v28 = vpop.f32.mrf.mxu2  ;;  %v1281_v31 = vpop.f32.mrf.mxu0 }
 0x13a   : > { %v1378_v29 = vpop.f32.mrf.mxu3  ;;  %v1314_v32 = vpop.f32.mrf.mxu1  ;;  %v1282_v33 = vadd.f32 %v1281_v31, %v17408_v38  ;;  %v16104_v38 = vld [vmem:[%s20646_s1 + $0x570] sm:$0xff]  ;;  %v16102_v31 = vld [vmem:[%s20646_s1 + $0x560] sm:$0xff] }
 0x13b   : > { %2450 = vmatpush.bf16.msra.mxu1 %v16104_v38  ;;  %v16094_v29 = vld [vmem:[%s20646_s1 + $0x520] sm:$0xff] }
 0x13c   : > { %v1315_v34 = vadd.f32 %v1314_v32, %v1282_v33  ;;  %1682 = vmatmul.bf16.gmra.mxu0 %v17251_v19 }
 0x13d   : > { %1721 = vmatmul.bf16.gmra.mxu1 %v17253_v20  ;;  %2413 = vmatpush.bf16.msra.mxu0 %v16094_v29 }
 0x13e   : > { %1760 = vmatmul.bf16.gmra.mxu2 %v17255_v21 }
 0x13f   : > { %1799 = vmatmul.bf16.gmra.mxu3 %v17257_v22  ;;  %2451 = vmatpush.bf16.msra.mxu1 %v16103_v16 }
 0x141   : > { %v1347_v37 = vpop.f32.mrf.mxu2  ;;  %v1283_v55 = vpop.f32.mrf.mxu0 }
 0x142   : > { %v1380_v53 = vpop.f32.mrf.mxu3  ;;  %v1348_v39 = vadd.f32 %v1347_v37, %v1315_v34  ;;  %v1316_v56 = vpop.f32.mrf.mxu1  ;;  %v16109_v37 = vld [vmem:[%s20646_s1 + $0x598] sm:$0xff] }
 0x143   : > { %2452 = vmatpush.bf16.msra.mxu1 %v16102_v31 }
 0x144   : > { %v17544_v57 = vadd.f32 %v1380_v53, %v1348_v39  ;;  %v16093_v53 = vld [vmem:[%s20646_s1 + $0x518] sm:$0xff] }
 0x145   : > { %2414 = vmatpush.bf16.msra.mxu0 %v16093_v53 }
 0x149   : > { %v1349_v1 = vpop.f32.mrf.mxu2  ;;  %v1285_v3 = vpop.f32.mrf.mxu0 }
 0x14a   : > { %v1382_v2 = vpop.f32.mrf.mxu3  ;;  %v1318_v8 = vpop.f32.mrf.mxu1  ;;  %v1286_v13 = vadd.f32 %v1285_v3, %v17426_v10  ;;  %v16110_v10 = vld [vmem:[%s20646_s1 + $0x5a0] sm:$0xff]  ;;  %v16101_v1 = vld [vmem:[%s20646_s1 + $0x558] sm:$0xff] }
 0x14b   : > { %2491 = vmatpush.bf16.msra.mxu2 %v16110_v10  ;;  %2453 = vmatpush.bf16.msra.mxu1 %v16101_v1 }
 0x14c   : > { %v1319_v9 = vadd.f32 %v1318_v8, %v1286_v13  ;;  %2005 = vmatmul.bf16.vlgmr.msrb.gmra.mxu0 %v17286_v48 }
 0x14d   : > { %2044 = vmatmul.bf16.vlgmr.msrb.gmra.mxu1 %v17288_v49 }
 0x14e   : > { %2083 = vmatmul.bf16.vlgmr.msrb.gmra.mxu2 %v17290_v50 }
 0x14f   : > { %2122 = vmatmul.bf16.vlgmr.msrb.gmra.mxu3 %v17292_v51  ;;  %2492 = vmatpush.bf16.msra.mxu2 %v16109_v37 }
 0x151   : > { %v1351_v11 = vpop.f32.mrf.mxu2  ;;  %v1287_v17 = vpop.f32.mrf.mxu0 }
 0x152   : > { %v1384_v12 = vpop.f32.mrf.mxu3  ;;  %v1352_v15 = vadd.f32 %v1351_v11, %v1319_v9  ;;  %v1320_v27 = vpop.f32.mrf.mxu1  ;;  %v16108_v9 = vld [vmem:[%s20646_s1 + $0x590] sm:$0xff] }
 0x153   : > { %v16092_v11 = vld [vmem:[%s20646_s1 + $0x510] sm:$0xff]  ;;  %2493 = vmatpush.bf16.msra.mxu2 %v16108_v9  ;;  %v16090_v9 = vld [vmem:[%s20646_s1 + $0x500] sm:$0xff] }
 0x154   : > { %v17563_v28 = vadd.f32 %v1384_v12, %v1352_v15  ;;  %v16116_v12 = vld [vmem:[%s20646_s1 + $0x5d0] sm:$0xff]  ;;  %2415 = vmatpush.bf16.msra.mxu0 %v16092_v11  ;;  %v16114_v11 = vld [vmem:[%s20646_s1 + $0x5c0] sm:$0xff] }
 0x155   : > { %v16100_v15 = vld [vmem:[%s20646_s1 + $0x550] sm:$0xff] }
 0x156   : > { %2454 = vmatpush.bf16.msra.mxu1 %v16100_v15 }
 0x159   : > { %v1353_v32 = vpop.f32.mrf.mxu2  ;;  %v1289_v34 = vpop.f32.mrf.mxu0 }
 0x15a   : > { %v1386_v33 = vpop.f32.mrf.mxu3  ;;  %v1322_v35 = vpop.f32.mrf.mxu1  ;;  %v1290_v36 = vadd.f32 %v1289_v34, %v17453_v52  ;;  %v16117_v52 = vld [vmem:[%s20646_s1 + $0x5d8] sm:$0xff]  ;;  %v16091_v34 = vld [vmem:[%s20646_s1 + $0x508] sm:$0xff] }
 0x15b   : > { %2531 = vmatpush.bf16.msra.mxu3 %v16117_v52  ;;  %v16107_v33 = vld [vmem:[%s20646_s1 + $0x588] sm:$0xff]  ;;  %2416 = vmatpush.bf16.msra.mxu0 %v16091_v34  ;;  %v16001_v34 = vld [vmem:[%s20646_s1 + $0x238] sm:$0xff] }
 0x15c   : > { %v1323_v38 = vadd.f32 %v1322_v35, %v1290_v36  ;;  %2010 = vmatmul.bf16.gmra.mxu0 %v17040_v42  ;;  %v16115_v35 = vld [vmem:[%s20646_s1 + $0x5c8] sm:$0xff]  ;;  %2494 = vmatpush.bf16.msra.mxu2 %v16107_v33  ;;  %v16017_v33 = vld [vmem:[%s20646_s1 + $0x2b8] sm:$0xff] }
 0x15d   : > { %2049 = vmatmul.bf16.gmra.mxu1 %v17042_v43 }
 0x15e   : > { %2088 = vmatmul.bf16.gmra.mxu2 %v17044_v44 }
 0x15f   : > { %2127 = vmatmul.bf16.gmra.mxu3 %v17046_v45  ;;  %2417 = vmatpush.bf16.msra.mxu0 %v16090_v9 }
 0x160   : > { %2532 = vmatpush.bf16.msra.mxu3 %v16116_v12  ;;  %v16098_v12 = vld [vmem:[%s20646_s1 + $0x540] sm:$0xff] }
 0x161   : > { %v1355_v39 = vpop.f32.mrf.mxu2  ;;  %v1291_v58 = vpop.f32.mrf.mxu0 }
 0x162   : > { %v1388_v55 = vpop.f32.mrf.mxu3  ;;  %v1356_v56 = vadd.f32 %v1355_v39, %v1323_v38  ;;  %v1324_v59 = vpop.f32.mrf.mxu1 }
 0x163   : > { %2758 = vmatpush.bf16.msrb.mxu0 %v16001_v34 }
 0x164   : > { %v17591_v0 = vadd.f32 %v1388_v55, %v1356_v56  ;;  %2533 = vmatpush.bf16.msra.mxu3 %v16115_v35  ;;  %v16099_v56 = vld [vmem:[%s20646_s1 + $0x548] sm:$0xff]  ;;  %v16025_v35 = vld [vmem:[%s20646_s1 + $0x2f8] sm:$0xff] }
 0x165   : > { %2455 = vmatpush.bf16.msra.mxu1 %v16099_v56 }
 0x168   : > { %2534 = vmatpush.bf16.msra.mxu3 %v16114_v11  ;;  %v16016_v11 = vld [vmem:[%s20646_s1 + $0x2b0] sm:$0xff] }
 0x169   : > { %v1357_v2 = vpop.f32.mrf.mxu2  ;;  %v1658_v3 = vpop.f32.mrf.mxu0  ;;  %2456 = vmatpush.bf16.msra.mxu1 %v16098_v12  ;;  %v16000_v12 = vld [vmem:[%s20646_s1 + $0x230] sm:$0xff] }
 0x16a   : > { %v1390_v16 = vpop.f32.mrf.mxu3  ;;  %v1697_v8 = vpop.f32.mrf.mxu1  ;;  %2759 = vmatpush.bf16.msrb.mxu0 %v16000_v12 }
 0x16b   : > { %v1698_v13 = vadd.f32 %v1697_v8, %v1658_v3 }
 0x16c   : > { %2015 = vmatmul.bf16.gmra.mxu0 %v17102_v4  ;;  %2875 = vmatpush.bf16.msrb.mxu3 %v16025_v35 }
 0x16d   : > { %2054 = vmatmul.bf16.gmra.mxu1 %v17104_v5 }
 0x16e   : > { %2093 = vmatmul.bf16.gmra.mxu2 %v17106_v6 }
 0x16f   : > { %2132 = vmatmul.bf16.gmra.mxu3 %v17108_v7 }
 0x171   : > { %v1736_v17 = vpop.f32.mrf.mxu2  ;;  %v1660_v29 = vpop.f32.mrf.mxu0 }
 0x172   : > { %v1775_v27 = vpop.f32.mrf.mxu3  ;;  %v1737_v10 = vadd.f32 %v1736_v17, %v1698_v13  ;;  %v1699_v30 = vpop.f32.mrf.mxu1  ;;  %v16106_v13 = vld [vmem:[%s20646_s1 + $0x580] sm:$0xff] }
 0x173   : > { %v1700_v31 = vadd.f32 %v1699_v30, %v1660_v29  ;;  %2495 = vmatpush.bf16.msra.mxu2 %v16106_v13 }
 0x174   : > { %v17612_v32 = vadd.f32 %v1775_v27, %v1737_v10 }
 0x177   : > { %2836 = vmatpush.bf16.msrb.mxu2 %v16017_v33 }
 0x179   : > { %v1738_v36 = vpop.f32.mrf.mxu2  ;;  %v1663_v53 = vpop.f32.mrf.mxu0 }
 0x17a   : > { %v1777_v38 = vpop.f32.mrf.mxu3  ;;  %v1739_v37 = vadd.f32 %v1738_v36, %v1700_v31  ;;  %v1702_v52 = vpop.f32.mrf.mxu1 }
 0x17b   : > { %v1703_v39 = vadd.f32 %v1702_v52, %v1663_v53  ;;  %2837 = vmatpush.bf16.msrb.mxu2 %v16016_v11 }
 0x17c   : > { %v17623_v55 = vadd.f32 %v1777_v38, %v1739_v37  ;;  %2020 = vmatmul.bf16.gmra.mxu0 %v17143_v23 }
 0x17d   : > { %2059 = vmatmul.bf16.gmra.mxu1 %v17145_v24 }
 0x17e   : > { %2098 = vmatmul.bf16.gmra.mxu2 %v17147_v25 }
 0x17f   : > { %2137 = vmatmul.bf16.gmra.mxu3 %v17149_v26 }
 0x181   : > { %v1741_v58 = vpop.f32.mrf.mxu2  ;;  %v1665_v2 = vpop.f32.mrf.mxu0 }
 0x182   : > { %v1780_v59 = vpop.f32.mrf.mxu3  ;;  %v1742_v1 = vadd.f32 %v1741_v58, %v1703_v39  ;;  %v1704_v16 = vpop.f32.mrf.mxu1  ;;  %v16009_v58 = vld [vmem:[%s20646_s1 + $0x278] sm:$0xff] }
 0x183   : > { %v1705_v3 = vadd.f32 %v1704_v16, %v1665_v2  ;;  %2797 = vmatpush.bf16.msrb.mxu1 %v16009_v58 }
 0x184   : > { %v17632_v8 = vadd.f32 %v1780_v59, %v1742_v1 }
 0x189   : > { %v1743_v15 = vpop.f32.mrf.mxu2  ;;  %v1668_v10 = vpop.f32.mrf.mxu0 }
 0x18a   : > { %v1782_v17 = vpop.f32.mrf.mxu3  ;;  %v1744_v27 = vadd.f32 %v1743_v15, %v1705_v3  ;;  %v1707_v29 = vpop.f32.mrf.mxu1  ;;  %v16024_v15 = vld [vmem:[%s20646_s1 + $0x2f0] sm:$0xff] }
 0x18b   : > { %v1708_v30 = vadd.f32 %v1707_v29, %v1668_v10  ;;  %2876 = vmatpush.bf16.msrb.mxu3 %v16024_v15 }
 0x18c   : > { %v17646_v31 = vadd.f32 %v1782_v17, %v1744_v27  ;;  %2025 = vmatmul.bf16.gmra.mxu0 %v17178_v40  ;;  %v16008_v17 = vld [vmem:[%s20646_s1 + $0x270] sm:$0xff] }
 0x18d   : > { %2064 = vmatmul.bf16.gmra.mxu1 %v17180_v41 }
 0x18e   : > { %2103 = vmatmul.bf16.gmra.mxu2 %v17182_v46  ;;  %2798 = vmatpush.bf16.msrb.mxu1 %v16008_v17 }
 0x18f   : > { %2142 = vmatmul.bf16.gmra.mxu3 %v17184_v47 }
 0x191   : > { %v1746_v36 = vpop.f32.mrf.mxu2  ;;  %v1670_v53 = vpop.f32.mrf.mxu0 }
 0x192   : > { %v1785_v38 = vpop.f32.mrf.mxu3  ;;  %v1747_v37 = vadd.f32 %v1746_v36, %v1708_v30  ;;  %v1709_v52 = vpop.f32.mrf.mxu1  ;;  %v16015_v36 = vld [vmem:[%s20646_s1 + $0x2a8] sm:$0xff] }
 0x193   : > { %v1710_v39 = vadd.f32 %v1709_v52, %v1670_v53  ;;  %2838 = vmatpush.bf16.msrb.mxu2 %v16015_v36 }
 0x194   : > { %v17661_v56 = vadd.f32 %v1785_v38, %v1747_v37  ;;  %v15999_v38 = vld [vmem:[%s20646_s1 + $0x228] sm:$0xff] }
 0x195   : > { %v16023_v37 = vld [vmem:[%s20646_s1 + $0x2e8] sm:$0xff]  ;;  %2760 = vmatpush.bf16.msrb.mxu0 %v15999_v38 }
 0x196   : > { %2877 = vmatpush.bf16.msrb.mxu3 %v16023_v37 }
 0x199   : > { %v1748_v59 = vpop.f32.mrf.mxu2  ;;  %v1673_v16 = vpop.f32.mrf.mxu0 }
 0x19a   : > { %v1787_v1 = vpop.f32.mrf.mxu3  ;;  %v1749_v2 = vadd.f32 %v1748_v59, %v1710_v39  ;;  %v1712_v3 = vpop.f32.mrf.mxu1 }
 0x19b   : > { %v1713_v13 = vadd.f32 %v1712_v3, %v1673_v16  ;;  %v16007_v16 = vld [vmem:[%s20646_s1 + $0x268] sm:$0xff] }
 0x19c   : > { %v17666_v9 = vadd.f32 %v1787_v1, %v1749_v2  ;;  %2030 = vmatmul.bf16.gmra.mxu0 %v17210_v60  ;;  %2799 = vmatpush.bf16.msrb.mxu1 %v16007_v16 }
 0x19d   : > { %2069 = vmatmul.bf16.gmra.mxu1 %v17212_v61 }
 0x19e   : > { %2108 = vmatmul.bf16.gmra.mxu2 %v17214_v62 }
 0x19f   : > { %2147 = vmatmul.bf16.gmra.mxu3 %v17216_v63 }
 0x1a1   : > { %v1751_v27 = vpop.f32.mrf.mxu2  ;;  %v1675_v30 = vpop.f32.mrf.mxu0 }
 0x1a2   : > { %v1790_v10 = vpop.f32.mrf.mxu3  ;;  %v1752_v29 = vadd.f32 %v1751_v27, %v1713_v13  ;;  %v1714_v33 = vpop.f32.mrf.mxu1 }
 0x1a3   : > { %v1715_v34 = vadd.f32 %v1714_v33, %v1675_v30  ;;  %v16022_v30 = vld [vmem:[%s20646_s1 + $0x2e0] sm:$0xff] }
 0x1a4   : > { %v17684_v35 = vadd.f32 %v1790_v10, %v1752_v29  ;;  %v16014_v10 = vld [vmem:[%s20646_s1 + $0x2a0] sm:$0xff]  ;;  %2878 = vmatpush.bf16.msrb.mxu3 %v16022_v30 }
 0x1a5   : > { %v15998_v29 = vld [vmem:[%s20646_s1 + $0x220] sm:$0xff]  ;;  %2839 = vmatpush.bf16.msrb.mxu2 %v16014_v10  ;;  %v16005_v10 = vld [vmem:[%s20646_s1 + $0x258] sm:$0xff] }
 0x1a6   : > { %v16006_v33 = vld [vmem:[%s20646_s1 + $0x260] sm:$0xff]  ;;  %2761 = vmatpush.bf16.msrb.mxu0 %v15998_v29 }
 0x1a7   : > { %2800 = vmatpush.bf16.msrb.mxu1 %v16006_v33 }
 0x1a9   : > { %v1753_v53 = vpop.f32.mrf.mxu2  ;;  %v1678_v58 = vpop.f32.mrf.mxu0 }
 0x1aa   : > { %v1792_v52 = vpop.f32.mrf.mxu3  ;;  %v1754_v39 = vadd.f32 %v1753_v53, %v1715_v34  ;;  %v1717_v59 = vpop.f32.mrf.mxu1 }
 0x1ab   : > { %v1718_v1 = vadd.f32 %v1717_v59, %v1678_v58  ;;  %v16013_v58 = vld [vmem:[%s20646_s1 + $0x298] sm:$0xff]  ;;  %2801 = vmatpush.bf16.msrb.mxu1 %v16005_v10 }
 0x1ac   : > { %v17695_v2 = vadd.f32 %v1792_v52, %v1754_v39  ;;  %2418 = vmatmul.bf16.vlgmr.msra.gmra.mxu0 %v17040_v42  ;;  %v15997_v59 = vld [vmem:[%s20646_s1 + $0x218] sm:$0xff]  ;;  %2840 = vmatpush.bf16.msrb.mxu2 %v16013_v58  ;;  %v15996_v58 = vld [vmem:[%s20646_s1 + $0x210] sm:$0xff] }
 0x1ad   : > { %2457 = vmatmul.bf16.vlgmr.msra.gmra.mxu1 %v17042_v43  ;;  %2762 = vmatpush.bf16.msrb.mxu0 %v15997_v59  ;;  %v16020_v59 = vld [vmem:[%s20646_s1 + $0x2d0] sm:$0xff] }
 0x1ae   : > { %2496 = vmatmul.bf16.vlgmr.msra.gmra.mxu2 %v17044_v44 }
 0x1af   : > { %2535 = vmatmul.bf16.vlgmr.msra.gmra.mxu3 %v17046_v45 }
 0x1b1   : > { %v1756_v3 = vpop.f32.mrf.mxu2  ;;  %v1680_v12 = vpop.f32.mrf.mxu0  ;;  %2763 = vmatpush.bf16.msrb.mxu0 %v15996_v58 }
 0x1b2   : > { %v1795_v13 = vpop.f32.mrf.mxu3  ;;  %v1757_v11 = vadd.f32 %v1756_v3, %v1718_v1  ;;  %v1719_v15 = vpop.f32.mrf.mxu1  ;;  %v16021_v1 = vld [vmem:[%s20646_s1 + $0x2d8] sm:$0xff] }
 0x1b3   : > { %v1720_v17 = vadd.f32 %v1719_v15, %v1680_v12  ;;  %2879 = vmatpush.bf16.msrb.mxu3 %v16021_v1 }
 0x1b4   : > { %v17704_v27 = vadd.f32 %v1795_v13, %v1757_v11 }
 0x1b7   : > { %2880 = vmatpush.bf16.msrb.mxu3 %v16020_v59  ;;  %v16003_v59 = vld [vmem:[%s20646_s1 + $0x248] sm:$0xff] }
 0x1b9   : > { %v1758_v34 = vpop.f32.mrf.mxu2  ;;  %v1683_v37 = vpop.f32.mrf.mxu0 }
 0x1ba   : > { %v1797_v36 = vpop.f32.mrf.mxu3  ;;  %v1759_v38 = vadd.f32 %v1758_v34, %v1720_v17  ;;  %v1722_v53 = vpop.f32.mrf.mxu1 }
 0x1bb   : > { %v1723_v52 = vadd.f32 %v1722_v53, %v1683_v37  ;;  %v16012_v53 = vld [vmem:[%s20646_s1 + $0x290] sm:$0xff] }
 0x1bc   : > { %v17718_v39 = vadd.f32 %v1797_v36, %v1759_v38  ;;  %2423 = vmatmul.bf16.gmra.mxu0 %v17102_v4  ;;  %2841 = vmatpush.bf16.msrb.mxu2 %v16012_v53 }
 0x1bd   : > { %2462 = vmatmul.bf16.gmra.mxu1 %v17104_v5 }
 0x1be   : > { %2501 = vmatmul.bf16.gmra.mxu2 %v17106_v6 }
 0x1bf   : > { %2540 = vmatmul.bf16.gmra.mxu3 %v17108_v7 }
 0x1c1   : > { %v1761_v16 = vpop.f32.mrf.mxu2  ;;  %v1685_v11 = vpop.f32.mrf.mxu0 }
 0x1c2   : > { %v1800_v3 = vpop.f32.mrf.mxu3  ;;  %v1762_v13 = vadd.f32 %v1761_v16, %v1723_v52  ;;  %v1724_v12 = vpop.f32.mrf.mxu1 }
 0x1c3   : > { %v1725_v15 = vadd.f32 %v1724_v12, %v1685_v11 }
 0x1c4   : > { %v17733_v17 = vadd.f32 %v1800_v3, %v1762_v13 }
 0x1c9   : > { %v1763_v29 = vpop.f32.mrf.mxu2  ;;  %v2006_v34 = vpop.f32.mrf.mxu0 }
 0x1ca   : > { %v1802_v30 = vpop.f32.mrf.mxu3  ;;  %v1764_v33 = vadd.f32 %v1763_v29, %v1725_v15  ;;  %v2045_v36 = vpop.f32.mrf.mxu1  ;;  %v2007_v38 = vadd.f32 %v2006_v34, %v17612_v32  ;;  %v16004_v32 = vld [vmem:[%s20646_s1 + $0x250] sm:$0xff]  ;;  %v16011_v29 = vld [vmem:[%s20646_s1 + $0x288] sm:$0xff] }
 0x1cb   : > { %2802 = vmatpush.bf16.msrb.mxu1 %v16004_v32  ;;  %2842 = vmatpush.bf16.msrb.mxu2 %v16011_v29 }
 0x1cc   : > { %v17739_v37 = vadd.f32 %v1802_v30, %v1764_v33  ;;  %v2046_v52 = vadd.f32 %v2045_v36, %v2007_v38  ;;  %2428 = vmatmul.bf16.gmra.mxu0 %v17143_v23  ;;  %v15995_v30 = vld [vmem:[%s20646_s1 + $0x208] sm:$0xff] }
 0x1cd   : > { %2467 = vmatmul.bf16.gmra.mxu1 %v17145_v24  ;;  %v16019_v33 = vld [vmem:[%s20646_s1 + $0x2c8] sm:$0xff]  ;;  %2764 = vmatpush.bf16.msrb.mxu0 %v15995_v30  ;;  %v15994_v30 = vld [vmem:[%s20646_s1 + $0x200] sm:$0xff] }
 0x1ce   : > { %2506 = vmatmul.bf16.gmra.mxu2 %v17147_v25  ;;  %2881 = vmatpush.bf16.msrb.mxu3 %v16019_v33  ;;  %v16018_v33 = vld [vmem:[%s20646_s1 + $0x2c0] sm:$0xff] }
 0x1cf   : > { %2545 = vmatmul.bf16.gmra.mxu3 %v17149_v26  ;;  %2803 = vmatpush.bf16.msrb.mxu1 %v16003_v59 }
 0x1d1   : > { %v2084_v1 = vpop.f32.mrf.mxu2  ;;  %v2008_v13 = vpop.f32.mrf.mxu0  ;;  %2765 = vmatpush.bf16.msrb.mxu0 %v15994_v30 }
 0x1d2   : > { %v2123_v16 = vpop.f32.mrf.mxu3  ;;  %v2085_v3 = vadd.f32 %v2084_v1, %v2046_v52  ;;  %v2047_v11 = vpop.f32.mrf.mxu1  ;;  %v2009_v12 = vadd.f32 %v2008_v13, %v17623_v55  ;;  %2882 = vmatpush.bf16.msrb.mxu3 %v16018_v33  ;;  %v16137_v33 = vld [vmem:[%s20646_s1 + $0x678] sm:$0xff] }
 0x1d4   : > { %v17758_v15 = vadd.f32 %v2123_v16, %v2085_v3  ;;  %v2048_v10 = vadd.f32 %v2047_v11, %v2009_v12 }
 0x1d9   : > { %v2086_v34 = vpop.f32.mrf.mxu2  ;;  %v2011_v38 = vpop.f32.mrf.mxu0 }
 0x1da   : > { %v2125_v55 = vpop.f32.mrf.mxu3  ;;  %v2087_v36 = vadd.f32 %v2086_v34, %v2048_v10  ;;  %v2050_v53 = vpop.f32.mrf.mxu1  ;;  %v2012_v52 = vadd.f32 %v2011_v38, %v17632_v8  ;;  %v16010_v10 = vld [vmem:[%s20646_s1 + $0x280] sm:$0xff] }
 0x1db   : > { %v16002_v34 = vld [vmem:[%s20646_s1 + $0x240] sm:$0xff]  ;;  %2843 = vmatpush.bf16.msrb.mxu2 %v16010_v10 }
 0x1dc   : > { %v17770_v58 = vadd.f32 %v2125_v55, %v2087_v36  ;;  %v2051_v32 = vadd.f32 %v2050_v53, %v2012_v52  ;;  %2433 = vmatmul.bf16.gmra.mxu0 %v17178_v40  ;;  %2804 = vmatpush.bf16.msrb.mxu1 %v16002_v34 }
 0x1dd   : > { %2472 = vmatmul.bf16.gmra.mxu1 %v17180_v41 }
 0x1de   : > { %2511 = vmatmul.bf16.gmra.mxu2 %v17182_v46 }
 0x1df   : > { %2550 = vmatmul.bf16.gmra.mxu3 %v17184_v47 }
 0x1e0   : > { %3224 = vmatpush.bf16.msra.mxu1 %v16137_v33 }
 0x1e1   : > { %v2089_v1 = vpop.f32.mrf.mxu2  ;;  %v2013_v8 = vpop.f32.mrf.mxu0 }
 0x1e2   : > { %v2128_v16 = vpop.f32.mrf.mxu3  ;;  %v2090_v3 = vadd.f32 %v2089_v1, %v2051_v32  ;;  %v2052_v13 = vpop.f32.mrf.mxu1  ;;  %v2014_v11 = vadd.f32 %v2013_v8, %v17646_v31  ;;  %v16145_v1 = vld [vmem:[%s20646_s1 + $0x6b8] sm:$0xff] }
 0x1e3   : > { %3257 = vmatpush.bf16.msra.mxu2 %v16145_v1 }
 0x1e4   : > { %v17780_v12 = vadd.f32 %v2128_v16, %v2090_v3  ;;  %v2053_v29 = vadd.f32 %v2052_v13, %v2014_v11  ;;  %v16129_v16 = vld [vmem:[%s20646_s1 + $0x638] sm:$0xff] }
 0x1e5   : > { %3191 = vmatpush.bf16.msra.mxu0 %v16129_v16  ;;  %v16128_v16 = vld [vmem:[%s20646_s1 + $0x630] sm:$0xff] }
 0x1e9   : > { %v2091_v31 = vpop.f32.mrf.mxu2  ;;  %v2016_v38 = vpop.f32.mrf.mxu0  ;;  %3192 = vmatpush.bf16.msra.mxu0 %v16128_v16 }
 0x1ea   : > { %v2130_v55 = vpop.f32.mrf.mxu3  ;;  %v2092_v36 = vadd.f32 %v2091_v31, %v2053_v29  ;;  %v2055_v53 = vpop.f32.mrf.mxu1  ;;  %v2017_v52 = vadd.f32 %v2016_v38, %v17661_v56  ;;  %v16153_v56 = vld [vmem:[%s20646_s1 + $0x6f8] sm:$0xff] }
 0x1eb   : > { %3290 = vmatpush.bf16.msra.mxu3 %v16153_v56  ;;  %v16152_v56 = vld [vmem:[%s20646_s1 + $0x6f0] sm:$0xff] }
 0x1ec   : > { %v17795_v59 = vadd.f32 %v2130_v55, %v2092_v36  ;;  %v2056_v32 = vadd.f32 %v2055_v53, %v2017_v52  ;;  %2438 = vmatmul.bf16.gmra.mxu0 %v17210_v60 }
 0x1ed   : > { %2477 = vmatmul.bf16.gmra.mxu1 %v17212_v61 }
 0x1ee   : > { %2516 = vmatmul.bf16.gmra.mxu2 %v17214_v62 }
 0x1ef   : > { %2555 = vmatmul.bf16.gmra.mxu3 %v17216_v63 }
 0x1f0   : > { %3291 = vmatpush.bf16.msra.mxu3 %v16152_v56  ;;  %v16135_v56 = vld [vmem:[%s20646_s1 + $0x668] sm:$0xff] }
 0x1f1   : > { %v2094_v3 = vpop.f32.mrf.mxu2  ;;  %v2018_v11 = vpop.f32.mrf.mxu0 }
 0x1f2   : > { %v2133_v8 = vpop.f32.mrf.mxu3  ;;  %v2095_v13 = vadd.f32 %v2094_v3, %v2056_v32  ;;  %v2057_v10 = vpop.f32.mrf.mxu1  ;;  %v2019_v29 = vadd.f32 %v2018_v11, %v17666_v9  ;;  %v16144_v9 = vld [vmem:[%s20646_s1 + $0x6b0] sm:$0xff] }
 0x1f3   : > { %3258 = vmatpush.bf16.msra.mxu2 %v16144_v9 }
 0x1f4   : > { %v17811_v30 = vadd.f32 %v2133_v8, %v2095_v13  ;;  %v2058_v34 = vadd.f32 %v2057_v10, %v2019_v29 }
 0x1f9   : > { %v2096_v31 = vpop.f32.mrf.mxu2  ;;  %v2021_v38 = vpop.f32.mrf.mxu0 }
 0x1fa   : > { %v2135_v55 = vpop.f32.mrf.mxu3  ;;  %v2097_v36 = vadd.f32 %v2096_v31, %v2058_v34  ;;  %v2060_v53 = vpop.f32.mrf.mxu1  ;;  %v2022_v52 = vadd.f32 %v2021_v38, %v17684_v35  ;;  %v16136_v35 = vld [vmem:[%s20646_s1 + $0x670] sm:$0xff]  ;;  %v16143_v31 = vld [vmem:[%s20646_s1 + $0x6a8] sm:$0xff] }
 0x1fb   : > { %3225 = vmatpush.bf16.msra.mxu1 %v16136_v35  ;;  %3259 = vmatpush.bf16.msra.mxu2 %v16143_v31 }
 0x1fc   : > { %v17817_v32 = vadd.f32 %v2135_v55, %v2097_v36  ;;  %v2061_v1 = vadd.f32 %v2060_v53, %v2022_v52  ;;  %2443 = vmatmul.bf16.gmra.mxu0 %v17251_v19  ;;  %v16127_v55 = vld [vmem:[%s20646_s1 + $0x628] sm:$0xff] }
 0x1fd   : > { %2482 = vmatmul.bf16.gmra.mxu1 %v17253_v20  ;;  %v16151_v36 = vld [vmem:[%s20646_s1 + $0x6e8] sm:$0xff]  ;;  %3193 = vmatpush.bf16.msra.mxu0 %v16127_v55 }
 0x1fe   : > { %2521 = vmatmul.bf16.gmra.mxu2 %v17255_v21  ;;  %3292 = vmatpush.bf16.msra.mxu3 %v16151_v36 }
 0x1ff   : > { %2560 = vmatmul.bf16.gmra.mxu3 %v17257_v22  ;;  %3226 = vmatpush.bf16.msra.mxu1 %v16135_v56 }
 0x201   : > { %v2099_v3 = vpop.f32.mrf.mxu2  ;;  %v2023_v11 = vpop.f32.mrf.mxu0 }
 0x202   : > { %v2138_v8 = vpop.f32.mrf.mxu3  ;;  %v2100_v13 = vadd.f32 %v2099_v3, %v2061_v1  ;;  %v2062_v10 = vpop.f32.mrf.mxu1  ;;  %v2024_v29 = vadd.f32 %v2023_v11, %v17695_v2 }
 0x204   : > { %v17836_v33 = vadd.f32 %v2138_v8, %v2100_v13  ;;  %v2063_v34 = vadd.f32 %v2062_v10, %v2024_v29 }
 0x209   : > { %v2101_v38 = vpop.f32.mrf.mxu2  ;;  %v2026_v52 = vpop.f32.mrf.mxu0 }
 0x20a   : > { %v2140_v2 = vpop.f32.mrf.mxu3  ;;  %v2102_v53 = vadd.f32 %v2101_v38, %v2063_v34  ;;  %v2065_v9 = vpop.f32.mrf.mxu1  ;;  %v2027_v1 = vadd.f32 %v2026_v52, %v17704_v27  ;;  %v16134_v34 = vld [vmem:[%s20646_s1 + $0x660] sm:$0xff] }
 0x20b   : > { %3227 = vmatpush.bf16.msra.mxu1 %v16134_v34  ;;  %v16124_v34 = vld [vmem:[%s20646_s1 + $0x610] sm:$0xff] }
 0x20c   : > { %v17848_v16 = vadd.f32 %v2140_v2, %v2102_v53  ;;  %v2066_v35 = vadd.f32 %v2065_v9, %v2027_v1  ;;  %2766 = vmatmul.bf16.vlgmr.msrb.gmra.mxu0 %v17286_v48  ;;  %v16142_v48 = vld [vmem:[%s20646_s1 + $0x6a0] sm:$0xff]  ;;  %v16141_v9 = vld [vmem:[%s20646_s1 + $0x698] sm:$0xff] }
 0x20d   : > { %2805 = vmatmul.bf16.vlgmr.msrb.gmra.mxu1 %v17288_v49  ;;  %v16126_v49 = vld [vmem:[%s20646_s1 + $0x620] sm:$0xff]  ;;  %3260 = vmatpush.bf16.msra.mxu2 %v16142_v48  ;;  %v16125_v1 = vld [vmem:[%s20646_s1 + $0x618] sm:$0xff] }
 0x20e   : > { %2844 = vmatmul.bf16.vlgmr.msrb.gmra.mxu2 %v17290_v50  ;;  %v16150_v50 = vld [vmem:[%s20646_s1 + $0x6e0] sm:$0xff]  ;;  %3194 = vmatpush.bf16.msra.mxu0 %v16126_v49 }
 0x20f   : > { %2883 = vmatmul.bf16.vlgmr.msrb.gmra.mxu3 %v17292_v51 }
 0x210   : > { %3293 = vmatpush.bf16.msra.mxu3 %v16150_v50 }
 0x211   : > { %v2104_v3 = vpop.f32.mrf.mxu2  ;;  %v2028_v27 = vpop.f32.mrf.mxu0  ;;  %3261 = vmatpush.bf16.msra.mxu2 %v16141_v9 }
 0x212   : > { %v2143_v8 = vpop.f32.mrf.mxu3  ;;  %v2105_v13 = vadd.f32 %v2104_v3, %v2066_v35  ;;  %v2067_v11 = vpop.f32.mrf.mxu1  ;;  %v2029_v10 = vadd.f32 %v2028_v27, %v17718_v39  ;;  %3195 = vmatpush.bf16.msra.mxu0 %v16125_v1 }
 0x214   : > { %v17858_v29 = vadd.f32 %v2143_v8, %v2105_v13  ;;  %v2068_v51 = vadd.f32 %v2067_v11, %v2029_v10  ;;  %v16133_v8 = vld [vmem:[%s20646_s1 + $0x658] sm:$0xff] }
 0x215   : > { %3228 = vmatpush.bf16.msra.mxu1 %v16133_v8 }
 0x216   : > { %3196 = vmatpush.bf16.msra.mxu0 %v16124_v34 }
 0x219   : > { %v2106_v39 = vpop.f32.mrf.mxu2  ;;  %v2031_v36 = vpop.f32.mrf.mxu0 }
 0x21a   : > { %v2145_v31 = vpop.f32.mrf.mxu3  ;;  %v2107_v55 = vadd.f32 %v2106_v39, %v2068_v51  ;;  %v2070_v38 = vpop.f32.mrf.mxu1  ;;  %v2032_v2 = vadd.f32 %v2031_v36, %v17733_v17  ;;  %v16149_v17 = vld [vmem:[%s20646_s1 + $0x6d8] sm:$0xff]  ;;  %v16148_v39 = vld [vmem:[%s20646_s1 + $0x6d0] sm:$0xff] }
 0x21b   : > { %3294 = vmatpush.bf16.msra.mxu3 %v16149_v17  ;;  %v16139_v17 = vld [vmem:[%s20646_s1 + $0x688] sm:$0xff] }
 0x21c   : > { %v17873_v53 = vadd.f32 %v2145_v31, %v2107_v55  ;;  %v2071_v52 = vadd.f32 %v2070_v38, %v2032_v2  ;;  %2771 = vmatmul.bf16.gmra.mxu0 %v17040_v42  ;;  %v16132_v31 = vld [vmem:[%s20646_s1 + $0x650] sm:$0xff] }
 0x21d   : > { %2810 = vmatmul.bf16.gmra.mxu1 %v17042_v43 }
 0x21e   : > { %2849 = vmatmul.bf16.gmra.mxu2 %v17044_v44  ;;  %3229 = vmatpush.bf16.msra.mxu1 %v16132_v31  ;;  %v16138_v31 = vld [vmem:[%s20646_s1 + $0x680] sm:$0xff] }
 0x21f   : > { %2888 = vmatmul.bf16.gmra.mxu3 %v17046_v45 }
 0x220   : > { %3295 = vmatpush.bf16.msra.mxu3 %v16148_v39 }
 0x221   : > { %v2109_v42 = vpop.f32.mrf.mxu2  ;;  %v2033_v56 = vpop.f32.mrf.mxu0 }
 0x222   : > { %v2148_v43 = vpop.f32.mrf.mxu3  ;;  %v2110_v44 = vadd.f32 %v2109_v42, %v2071_v52  ;;  %v2072_v45 = vpop.f32.mrf.mxu1  ;;  %v2034_v35 = vadd.f32 %v2033_v56, %v17739_v37  ;;  %v16140_v37 = vld [vmem:[%s20646_s1 + $0x690] sm:$0xff]  ;;  %v16123_v42 = vld [vmem:[%s20646_s1 + $0x608] sm:$0xff] }
 0x223   : > { %3262 = vmatpush.bf16.msra.mxu2 %v16140_v37  ;;  %3197 = vmatpush.bf16.msra.mxu0 %v16123_v42 }
 0x224   : > { %v17889_v3 = vadd.f32 %v2148_v43, %v2110_v44  ;;  %v2073_v13 = vadd.f32 %v2072_v45, %v2034_v35  ;;  %v16147_v43 = vld [vmem:[%s20646_s1 + $0x6c8] sm:$0xff] }
 0x225   : > { %3296 = vmatpush.bf16.msra.mxu3 %v16147_v43 }
 0x226   : > { %20651 = vst [vmem:[#allocation2_spill] sm:$0xff] %v17889_v3 }
 0x227   : > { %3263 = vmatpush.bf16.msra.mxu2 %v16139_v17 }
 0x229   : > { %v2111_v27 = vpop.f32.mrf.mxu2  ;;  %v2419_v48 = vpop.f32.mrf.mxu0 }
 0x22a   : > { %v2150_v11 = vpop.f32.mrf.mxu3  ;;  %v2112_v10 = vadd.f32 %v2111_v27, %v2073_v13  ;;  %v2458_v49 = vpop.f32.mrf.mxu1 }
 0x22b   : > { %v2459_v50 = vadd.f32 %v2458_v49, %v2419_v48  ;;  %3264 = vmatpush.bf16.msra.mxu2 %v16138_v31 }
 0x22c   : > { %v17894_v51 = vadd.f32 %v2150_v11, %v2112_v10  ;;  %2776 = vmatmul.bf16.gmra.mxu0 %v17102_v4  ;;  %v16131_v11 = vld [vmem:[%s20646_s1 + $0x648] sm:$0xff] }
 0x22d   : > { %2815 = vmatmul.bf16.gmra.mxu1 %v17104_v5 }
 0x22e   : > { %20652 = vst [vmem:[#allocation3_spill] sm:$0xff] %v17894_v51  ;;  %2854 = vmatmul.bf16.gmra.mxu2 %v17106_v6  ;;  %3230 = vmatpush.bf16.msra.mxu1 %v16131_v11 }
 0x22f   : > { %2893 = vmatmul.bf16.gmra.mxu3 %v17108_v7 }
 0x231   : > { %v2497_v55 = vpop.f32.mrf.mxu2  ;;  %v2421_v2 = vpop.f32.mrf.mxu0 }
 0x232   : > { %v2536_v36 = vpop.f32.mrf.mxu3  ;;  %v2498_v38 = vadd.f32 %v2497_v55, %v2459_v50  ;;  %v2460_v52 = vpop.f32.mrf.mxu1  ;;  %v16122_v55 = vld [vmem:[%s20646_s1 + $0x600] sm:$0xff] }
 0x233   : > { %v2461_v9 = vadd.f32 %v2460_v52, %v2421_v2  ;;  %3198 = vmatpush.bf16.msra.mxu0 %v16122_v55 }
 0x234   : > { %v17912_v1 = vadd.f32 %v2536_v36, %v2498_v38  ;;  %v16146_v36 = vld [vmem:[%s20646_s1 + $0x6c0] sm:$0xff] }
 0x235   : > { %v16130_v38 = vld [vmem:[%s20646_s1 + $0x640] sm:$0xff]  ;;  %3297 = vmatpush.bf16.msra.mxu3 %v16146_v36 }
 0x236   : > { %3231 = vmatpush.bf16.msra.mxu1 %v16130_v38 }
 0x239   : > { %v2499_v44 = vpop.f32.mrf.mxu2  ;;  %v2424_v35 = vpop.f32.mrf.mxu0 }
 0x23a   : > { %v2538_v56 = vpop.f32.mrf.mxu3  ;;  %v2500_v45 = vadd.f32 %v2499_v44, %v2461_v9  ;;  %v2463_v8 = vpop.f32.mrf.mxu1 }
 0x23b   : > { %v2464_v13 = vadd.f32 %v2463_v8, %v2424_v35  ;;  %v16185_v35 = vld [vmem:[%s20646_s1 + $0x7f8] sm:$0xff] }
 0x23c   : > { %v17923_v27 = vadd.f32 %v2538_v56, %v2500_v45  ;;  %2781 = vmatmul.bf16.gmra.mxu0 %v17143_v23  ;;  %v16177_v56 = vld [vmem:[%s20646_s1 + $0x7b8] sm:$0xff]  ;;  %3703 = vmatpush.bf16.msrb.mxu3 %v16185_v35 }
 0x23d   : > { %2820 = vmatmul.bf16.gmra.mxu1 %v17145_v24  ;;  %v16161_v45 = vld [vmem:[%s20646_s1 + $0x738] sm:$0xff]  ;;  %3664 = vmatpush.bf16.msrb.mxu2 %v16177_v56 }
 0x23e   : > { %2859 = vmatmul.bf16.gmra.mxu2 %v17147_v25  ;;  %3586 = vmatpush.bf16.msrb.mxu0 %v16161_v45 }
 0x23f   : > { %2898 = vmatmul.bf16.gmra.mxu3 %v17149_v26 }
 0x241   : > { %v2502_v10 = vpop.f32.mrf.mxu2  ;;  %v2426_v50 = vpop.f32.mrf.mxu0 }
 0x242   : > { %v2541_v48 = vpop.f32.mrf.mxu3  ;;  %v2503_v49 = vadd.f32 %v2502_v10, %v2464_v13  ;;  %v2465_v37 = vpop.f32.mrf.mxu1 }
 0x243   : > { %v2466_v34 = vadd.f32 %v2465_v37, %v2426_v50  ;;  %v16169_v37 = vld [vmem:[%s20646_s1 + $0x778] sm:$0xff] }
 0x244   : > { %v17932_v39 = vadd.f32 %v2541_v48, %v2503_v49  ;;  %3625 = vmatpush.bf16.msrb.mxu1 %v16169_v37  ;;  %v16183_v37 = vld [vmem:[%s20646_s1 + $0x7e8] sm:$0xff] }
 0x249   : > { %v2504_v2 = vpop.f32.mrf.mxu2  ;;  %v2429_v17 = vpop.f32.mrf.mxu0 }
 0x24a   : > { %v2543_v52 = vpop.f32.mrf.mxu3  ;;  %v2505_v9 = vadd.f32 %v2504_v2, %v2466_v34  ;;  %v2468_v42 = vpop.f32.mrf.mxu1 }
 0x24b   : > { %v2469_v43 = vadd.f32 %v2468_v42, %v2429_v17  ;;  %v16160_v17 = vld [vmem:[%s20646_s1 + $0x730] sm:$0xff] }
 0x24c   : > { %v17946_v44 = vadd.f32 %v2543_v52, %v2505_v9  ;;  %2786 = vmatmul.bf16.gmra.mxu0 %v17178_v40  ;;  %v16176_v9 = vld [vmem:[%s20646_s1 + $0x7b0] sm:$0xff] }
 0x24d   : > { %2825 = vmatmul.bf16.gmra.mxu1 %v17180_v41  ;;  %v16184_v42 = vld [vmem:[%s20646_s1 + $0x7f0] sm:$0xff]  ;;  %3665 = vmatpush.bf16.msrb.mxu2 %v16176_v9 }
 0x24e   : > { %2864 = vmatmul.bf16.gmra.mxu2 %v17182_v46  ;;  %3587 = vmatpush.bf16.msrb.mxu0 %v16160_v17  ;;  %v16167_v17 = vld [vmem:[%s20646_s1 + $0x768] sm:$0xff] }
 0x24f   : > { %2903 = vmatmul.bf16.gmra.mxu3 %v17184_v47 }
 0x250   : > { %3704 = vmatpush.bf16.msrb.mxu3 %v16184_v42 }
 0x251   : > { %v2507_v8 = vpop.f32.mrf.mxu2  ;;  %v2431_v10 = vpop.f32.mrf.mxu0 }
 0x252   : > { %v2546_v13 = vpop.f32.mrf.mxu3  ;;  %v2508_v11 = vadd.f32 %v2507_v8, %v2469_v43  ;;  %v2470_v48 = vpop.f32.mrf.mxu1  ;;  %v16168_v43 = vld [vmem:[%s20646_s1 + $0x770] sm:$0xff] }
 0x253   : > { %v2471_v49 = vadd.f32 %v2470_v48, %v2431_v10  ;;  %3626 = vmatpush.bf16.msrb.mxu1 %v16168_v43  ;;  %v16175_v48 = vld [vmem:[%s20646_s1 + $0x7a8] sm:$0xff] }
 0x254   : > { %v17961_v50 = vadd.f32 %v2546_v13, %v2508_v11  ;;  %3666 = vmatpush.bf16.msrb.mxu2 %v16175_v48  ;;  %3705 = vmatpush.bf16.msrb.mxu3 %v16183_v37  ;;  %v16158_v48 = vld [vmem:[%s20646_s1 + $0x720] sm:$0xff] }
 0x255   : > { %v16166_v37 = vld [vmem:[%s20646_s1 + $0x760] sm:$0xff] }
 0x257   : > { %3627 = vmatpush.bf16.msrb.mxu1 %v16167_v17 }
 0x259   : > { %v2509_v34 = vpop.f32.mrf.mxu2  ;;  %v2434_v36 = vpop.f32.mrf.mxu0 }
 0x25a   : > { %v2548_v31 = vpop.f32.mrf.mxu3  ;;  %v2510_v55 = vadd.f32 %v2509_v34, %v2471_v49  ;;  %v2473_v38 = vpop.f32.mrf.mxu1  ;;  %v16159_v49 = vld [vmem:[%s20646_s1 + $0x728] sm:$0xff] }
 0x25b   : > { %v2474_v2 = vadd.f32 %v2473_v38, %v2434_v36  ;;  %3588 = vmatpush.bf16.msrb.mxu0 %v16159_v49  ;;  %v16182_v49 = vld [vmem:[%s20646_s1 + $0x7e0] sm:$0xff]  ;;  %3628 = vmatpush.bf16.msrb.mxu1 %v16166_v37 }
 0x25c   : > { %v17966_v52 = vadd.f32 %v2548_v31, %v2510_v55  ;;  %2791 = vmatmul.bf16.gmra.mxu0 %v17210_v60  ;;  %3706 = vmatpush.bf16.msrb.mxu3 %v16182_v49 }
 0x25d   : > { %2830 = vmatmul.bf16.gmra.mxu1 %v17212_v61 }
 0x25e   : > { %2869 = vmatmul.bf16.gmra.mxu2 %v17214_v62 }
 0x25f   : > { %2908 = vmatmul.bf16.gmra.mxu3 %v17216_v63  ;;  %3589 = vmatpush.bf16.msrb.mxu0 %v16158_v48 }
 0x261   : > { %v2512_v56 = vpop.f32.mrf.mxu2  ;;  %v2436_v8 = vpop.f32.mrf.mxu0 }
 0x262   : > { %v2551_v45 = vpop.f32.mrf.mxu3  ;;  %v2513_v35 = vadd.f32 %v2512_v56, %v2474_v2  ;;  %v2475_v13 = vpop.f32.mrf.mxu1 }
 0x263   : > { %v2476_v11 = vadd.f32 %v2475_v13, %v2436_v8 }
 0x264   : > { %v17984_v10 = vadd.f32 %v2551_v45, %v2513_v35 }
 0x269   : > { %v2514_v34 = vpop.f32.mrf.mxu2  ;;  %v2439_v36 = vpop.f32.mrf.mxu0 }
 0x26a   : > { %v2553_v31 = vpop.f32.mrf.mxu3  ;;  %v2515_v55 = vadd.f32 %v2514_v34, %v2476_v11  ;;  %v2478_v38 = vpop.f32.mrf.mxu1  ;;  %v16174_v11 = vld [vmem:[%s20646_s1 + $0x7a0] sm:$0xff] }
 0x26b   : > { %v2479_v2 = vadd.f32 %v2478_v38, %v2439_v36  ;;  %3667 = vmatpush.bf16.msrb.mxu2 %v16174_v11 }
 0x26c   : > { %v17995_v9 = vadd.f32 %v2553_v31, %v2515_v55  ;;  %3199 = vmatmul.bf16.vlgmr.msra.gmra.mxu0 %v17102_v4 }
 0x26d   : > { %3232 = vmatmul.bf16.vlgmr.msra.gmra.mxu1 %v17104_v5 }
 0x26e   : > { %3265 = vmatmul.bf16.vlgmr.msra.gmra.mxu2 %v17106_v6 }
 0x26f   : > { %3298 = vmatmul.bf16.vlgmr.msra.gmra.mxu3 %v17108_v7 }
 0x271   : > { %v2517_v42 = vpop.f32.mrf.mxu2  ;;  %v2441_v45 = vpop.f32.mrf.mxu0 }
 0x272   : > { %v2556_v43 = vpop.f32.mrf.mxu3  ;;  %v2518_v56 = vadd.f32 %v2517_v42, %v2479_v2  ;;  %v2480_v35 = vpop.f32.mrf.mxu1  ;;  %v16173_v42 = vld [vmem:[%s20646_s1 + $0x798] sm:$0xff] }
 0x273   : > { %v2481_v8 = vadd.f32 %v2480_v35, %v2441_v45  ;;  %3668 = vmatpush.bf16.msrb.mxu2 %v16173_v42 }
 0x274   : > { %v18004_v13 = vadd.f32 %v2556_v43, %v2518_v56  ;;  %v16157_v43 = vld [vmem:[%s20646_s1 + $0x718] sm:$0xff] }
 0x275   : > { %v16181_v56 = vld [vmem:[%s20646_s1 + $0x7d8] sm:$0xff]  ;;  %3590 = vmatpush.bf16.msrb.mxu0 %v16157_v43 }
 0x276   : > { %3707 = vmatpush.bf16.msrb.mxu3 %v16181_v56 }
 0x279   : > { %v2519_v34 = vpop.f32.mrf.mxu2  ;;  %v2444_v36 = vpop.f32.mrf.mxu0 }
 0x27a   : > { %v2558_v31 = vpop.f32.mrf.mxu3  ;;  %v2520_v55 = vadd.f32 %v2519_v34, %v2481_v8  ;;  %v2483_v38 = vpop.f32.mrf.mxu1  ;;  %v16165_v34 = vld [vmem:[%s20646_s1 + $0x758] sm:$0xff] }
 0x27b   : > { %v2484_v2 = vadd.f32 %v2483_v38, %v2444_v36  ;;  %3629 = vmatpush.bf16.msrb.mxu1 %v16165_v34 }
 0x27c   : > { %v18018_v17 = vadd.f32 %v2558_v31, %v2520_v55  ;;  %3203 = vmatmul.bf16.gmra.mxu0 %v17143_v23 }
 0x27d   : > { %3236 = vmatmul.bf16.gmra.mxu1 %v17145_v24 }
 0x27e   : > { %3269 = vmatmul.bf16.gmra.mxu2 %v17147_v25 }
 0x27f   : > { %3302 = vmatmul.bf16.gmra.mxu3 %v17149_v26 }
 0x281   : > { %v2522_v45 = vpop.f32.mrf.mxu2  ;;  %v2446_v11 = vpop.f32.mrf.mxu0 }
 0x282   : > { %v2561_v35 = vpop.f32.mrf.mxu3  ;;  %v2523_v8 = vadd.f32 %v2522_v45, %v2484_v2  ;;  %v2485_v48 = vpop.f32.mrf.mxu1  ;;  %v16172_v2 = vld [vmem:[%s20646_s1 + $0x790] sm:$0xff] }
 0x283   : > { %v2486_v49 = vadd.f32 %v2485_v48, %v2446_v11  ;;  %v16156_v45 = vld [vmem:[%s20646_s1 + $0x710] sm:$0xff]  ;;  %3669 = vmatpush.bf16.msrb.mxu2 %v16172_v2 }
 0x284   : > { %v18033_v37 = vadd.f32 %v2561_v35, %v2523_v8  ;;  %v16180_v35 = vld [vmem:[%s20646_s1 + $0x7d0] sm:$0xff]  ;;  %3591 = vmatpush.bf16.msrb.mxu0 %v16156_v45 }
 0x285   : > { %3708 = vmatpush.bf16.msrb.mxu3 %v16180_v35 }
 0x289   : > { %v2524_v31 = vpop.f32.mrf.mxu2  ;;  %v2767_v38 = vpop.f32.mrf.mxu0 }
 0x28a   : > { %v2563_v55 = vpop.f32.mrf.mxu3  ;;  %v2525_v36 = vadd.f32 %v2524_v31, %v2486_v49  ;;  %v2806_v42 = vpop.f32.mrf.mxu1  ;;  %v2768_v43 = vadd.f32 %v2767_v38, %v17912_v1  ;;  %v16164_v1 = vld [vmem:[%s20646_s1 + $0x750] sm:$0xff]  ;;  %v16171_v38 = vld [vmem:[%s20646_s1 + $0x788] sm:$0xff] }
 0x28b   : > { %3630 = vmatpush.bf16.msrb.mxu1 %v16164_v1  ;;  %3670 = vmatpush.bf16.msrb.mxu2 %v16171_v38 }
 0x28c   : > { %v18039_v51 = vadd.f32 %v2563_v55, %v2525_v36  ;;  %v2807_v56 = vadd.f32 %v2806_v42, %v2768_v43  ;;  %3207 = vmatmul.bf16.gmra.mxu0 %v17178_v40  ;;  %v16155_v42 = vld [vmem:[%s20646_s1 + $0x708] sm:$0xff] }
 0x28d   : > { %3240 = vmatmul.bf16.gmra.mxu1 %v17180_v41  ;;  %v16179_v43 = vld [vmem:[%s20646_s1 + $0x7c8] sm:$0xff]  ;;  %3592 = vmatpush.bf16.msrb.mxu0 %v16155_v42 }
 0x28e   : > { %3273 = vmatmul.bf16.gmra.mxu2 %v17182_v46  ;;  %3709 = vmatpush.bf16.msrb.mxu3 %v16179_v43  ;;  %v16170_v43 = vld [vmem:[%s20646_s1 + $0x780] sm:$0xff] }
 0x28f   : > { %3306 = vmatmul.bf16.gmra.mxu3 %v17184_v47  ;;  %3671 = vmatpush.bf16.msrb.mxu2 %v16170_v43 }
 0x291   : > { %v2845_v8 = vpop.f32.mrf.mxu2  ;;  %v2769_v49 = vpop.f32.mrf.mxu0 }
 0x292   : > { %v2884_v11 = vpop.f32.mrf.mxu3  ;;  %v2846_v48 = vadd.f32 %v2845_v8, %v2807_v56  ;;  %v2808_v34 = vpop.f32.mrf.mxu1  ;;  %v2770_v31 = vadd.f32 %v2769_v49, %v17923_v27 }
 0x294   : > { %v18058_v55 = vadd.f32 %v2884_v11, %v2846_v48  ;;  %v2809_v36 = vadd.f32 %v2808_v34, %v2770_v31  ;;  %v16163_v11 = vld [vmem:[%s20646_s1 + $0x748] sm:$0xff] }
 0x295   : > { %3631 = vmatpush.bf16.msrb.mxu1 %v16163_v11 }
 0x296   : > { %20653 = vst [vmem:[#allocation4_spill] sm:$0xff] %v18058_v55 }
 0x299   : > { %v2847_v2 = vpop.f32.mrf.mxu2  ;;  %v2772_v45 = vpop.f32.mrf.mxu0 }
 0x29a   : > { %v2886_v27 = vpop.f32.mrf.mxu3  ;;  %v2848_v56 = vadd.f32 %v2847_v2, %v2809_v36  ;;  %v2811_v35 = vpop.f32.mrf.mxu1  ;;  %v2773_v1 = vadd.f32 %v2772_v45, %v17932_v39  ;;  %v16162_v45 = vld [vmem:[%s20646_s1 + $0x740] sm:$0xff] }
 0x29b   : > { %3632 = vmatpush.bf16.msrb.mxu1 %v16162_v45 }
 0x29c   : > { %v18070_v8 = vadd.f32 %v2886_v27, %v2848_v56  ;;  %v2812_v48 = vadd.f32 %v2811_v35, %v2773_v1  ;;  %3211 = vmatmul.bf16.gmra.mxu0 %v17210_v60  ;;  %v16154_v27 = vld [vmem:[%s20646_s1 + $0x700] sm:$0xff] }
 0x29d   : > { %3244 = vmatmul.bf16.gmra.mxu1 %v17212_v61  ;;  %v16178_v56 = vld [vmem:[%s20646_s1 + $0x7c0] sm:$0xff]  ;;  %3593 = vmatpush.bf16.msrb.mxu0 %v16154_v27 }
 0x29e   : > { %20654 = vst [vmem:[#allocation5_spill] sm:$0xff] %v18070_v8  ;;  %3277 = vmatmul.bf16.gmra.mxu2 %v17214_v62  ;;  %3710 = vmatpush.bf16.msrb.mxu3 %v16178_v56 }
 0x29f   : > { %3310 = vmatmul.bf16.gmra.mxu3 %v17216_v63 }
 0x2a1   : > { %v2850_v49 = vpop.f32.mrf.mxu2  ;;  %v2774_v39 = vpop.f32.mrf.mxu0 }
 0x2a2   : > { %v2889_v34 = vpop.f32.mrf.mxu3  ;;  %v2851_v31 = vadd.f32 %v2850_v49, %v2812_v48  ;;  %v2813_v36 = vpop.f32.mrf.mxu1  ;;  %v2775_v38 = vadd.f32 %v2774_v39, %v17946_v44  ;;  %v16209_v39 = vld [vmem:[%s20646_s1 + $0x8b8] sm:$0xff] }
 0x2a3   : > { %4089 = vmatpush.bf16.msra.mxu2 %v16209_v39  ;;  %v12045_v39 = vld [vmem:[%s17006_s10 + $0xf0] sm:$0xf0] }
 0x2a4   : > { %v18080_v42 = vadd.f32 %v2889_v34, %v2851_v31  ;;  %v2814_v2 = vadd.f32 %v2813_v36, %v2775_v38  ;;  %v16217_v36 = vld [vmem:[%s20646_s1 + $0x8f8] sm:$0xff] }
 0x2a5   : > { %4128 = vmatpush.bf16.msra.mxu3 %v16217_v36  ;;  %v15929_v36 = vld [vmem:[%s17006_s10 + $0xf4] sm:$0xf0] }
 0x2a6   : > { %20655 = vst [vmem:[#allocation6_spill] sm:$0xff] %v18080_v42 }
 0x2a9   : > { %v2852_v44 = vpop.f32.mrf.mxu2  ;;  %v2777_v11 = vpop.f32.mrf.mxu0 }
 0x2aa   : > { %v2891_v35 = vpop.f32.mrf.mxu3  ;;  %v2853_v1 = vadd.f32 %v2852_v44, %v2814_v2  ;;  %v2816_v48 = vpop.f32.mrf.mxu1  ;;  %v2778_v49 = vadd.f32 %v2777_v11, %v17961_v50  ;;  %v16193_v50 = vld [vmem:[%s20646_s1 + $0x838] sm:$0xff]  ;;  %v12043_v11 = vld [vmem:[%s17006_s10 + $0xe0] sm:$0xf] }
 0x2ab   : > { %4011 = vmatpush.bf16.msra.mxu0 %v16193_v50  ;;  %v12051_v50 = vld [vmem:[%s17006_s10 + $0xe8] sm:$0xf] }
 0x2ac   : > { %v18095_v34 = vadd.f32 %v2891_v35, %v2853_v1  ;;  %v2817_v31 = vadd.f32 %v2816_v48, %v2778_v49  ;;  %3215 = vmatmul.bf16.gmra.mxu0 %v17251_v19  ;;  %v16201_v35 = vld [vmem:[%s20646_s1 + $0x878] sm:$0xff]  ;;  %v15928_v48 = vld [vmem:[%s17006_s10 + $0xec] sm:$0xf0]  ;;  %v15926_v49 = vld [vmem:[%s17006_s10 + $0xe4] sm:$0xf] }
 0x2ad   : > { %3248 = vmatmul.bf16.gmra.mxu1 %v17253_v20  ;;  %v18124_v8 = vor.u32 %v15928_v48, %v12043_v11 }
 0x2ae   : > { %20656 = vst [vmem:[#allocation7_spill] sm:$0xff] %v18095_v34  ;;  %3281 = vmatmul.bf16.gmra.mxu2 %v17255_v21  ;;  %4050 = vmatpush.bf16.msra.mxu1 %v16201_v35  ;;  %v15927_v34 = vld [vmem:[%s17006_s10 + $0xec] sm:$0xf]  ;;  %v16208_v35 = vld [vmem:[%s20646_s1 + $0x8b0] sm:$0xff] }
 0x2af   : > { %3314 = vmatmul.bf16.gmra.mxu3 %v17257_v22  ;;  %4090 = vmatpush.bf16.msra.mxu2 %v16208_v35 }
 0x2b1   : > { %v2855_v38 = vpop.f32.mrf.mxu2  ;;  %v2779_v27 = vpop.f32.mrf.mxu0 }
 0x2b2   : > { %v2894_v43 = vpop.f32.mrf.mxu3  ;;  %v2856_v2 = vadd.f32 %v2855_v38, %v2817_v31  ;;  %v2818_v56 = vpop.f32.mrf.mxu1  ;;  %v2780_v45 = vadd.f32 %v2779_v27, %v17966_v52  ;;  %v12053_v31 = vld [vmem:[%s17006_s10 + $0xf8] sm:$0xf0]  ;;  %v18126_v52 = vor.u32 %v15926_v49, %v12045_v39 }
 0x2b4   : > { %v18111_v44 = vadd.f32 %v2894_v43, %v2856_v2  ;;  %v2819_v1 = vadd.f32 %v2818_v56, %v2780_v45  ;;  %v18130_v56 = vor.u32 %v15927_v34, %v12053_v31  ;;  %v16216_v34 = vld [vmem:[%s20646_s1 + $0x8f0] sm:$0xff] }
 0x2b5   : > { %4129 = vmatpush.bf16.msra.mxu3 %v16216_v34 }
 0x2b6   : > { %20657 = vst [vmem:[#allocation8_spill] sm:$0xff] %v18111_v44  ;;  %v18128_v44 = vor.u32 %v15929_v36, %v12051_v50 }
 0x2b9   : > { %v2857_v38 = vpop.f32.mrf.mxu2  ;;  %v2782_v2 = vpop.f32.mrf.mxu0 }
 0x2ba   : > { %v2896_v42 = vpop.f32.mrf.mxu3  ;;  %v2858_v43 = vadd.f32 %v2857_v38, %v2819_v1  ;;  %v2821_v27 = vpop.f32.mrf.mxu1  ;;  %v2783_v45 = vadd.f32 %v2782_v2, %v17984_v10  ;;  %v16192_v1 = vld [vmem:[%s20646_s1 + $0x830] sm:$0xff]  ;;  %v16207_v38 = vld [vmem:[%s20646_s1 + $0x8a8] sm:$0xff] }
 0x2bb   : > { %v16200_v10 = vld [vmem:[%s20646_s1 + $0x870] sm:$0xff]  ;;  %4012 = vmatpush.bf16.msra.mxu0 %v16192_v1  ;;  %v16215_v2 = vld [vmem:[%s20646_s1 + $0x8e8] sm:$0xff]  ;;  %4091 = vmatpush.bf16.msra.mxu2 %v16207_v38 }
 0x2bc   : > { %v18133_v55 = vadd.f32 %v2896_v42, %v2858_v43  ;;  %v2822_v3 = vadd.f32 %v2821_v27, %v2783_v45  ;;  %3219 = vmatmul.bf16.gmra.mxu0 %v18124_v8  ;;  %4051 = vmatpush.bf16.msra.mxu1 %v16200_v10  ;;  %v16191_v43 = vld [vmem:[%s20646_s1 + $0x828] sm:$0xff] }
 0x2bd   : > { %3252 = vmatmul.bf16.gmra.mxu1 %v18126_v52  ;;  %4130 = vmatpush.bf16.msra.mxu3 %v16215_v2  ;;  %v16199_v10 = vld [vmem:[%s20646_s1 + $0x868] sm:$0xff]  ;;  %v16190_v2 = vld [vmem:[%s20646_s1 + $0x820] sm:$0xff] }
 0x2be   : > { %3285 = vmatmul.bf16.gmra.mxu2 %v18128_v44 }
 0x2bf   : > { %3318 = vmatmul.bf16.gmra.mxu3 %v18130_v56  ;;  %4013 = vmatpush.bf16.msra.mxu0 %v16191_v43  ;;  %v16206_v43 = vld [vmem:[%s20646_s1 + $0x8a0] sm:$0xff] }
 0x2c0   : > { %4052 = vmatpush.bf16.msra.mxu1 %v16199_v10  ;;  %4092 = vmatpush.bf16.msra.mxu2 %v16206_v43 }
 0x2c1   : > { %v2860_v42 = vpop.f32.mrf.mxu2  ;;  %v2784_v49 = vpop.f32.mrf.mxu0 }
 0x2c2   : > { %v2899_v11 = vpop.f32.mrf.mxu3  ;;  %v2861_v48 = vadd.f32 %v2860_v42, %v2822_v3  ;;  %v2823_v39 = vpop.f32.mrf.mxu1  ;;  %v2785_v50 = vadd.f32 %v2784_v49, %v17995_v9 }
 0x2c3   : > { %4014 = vmatpush.bf16.msra.mxu0 %v16190_v2 }
 0x2c4   : > { %v18152_v36 = vadd.f32 %v2899_v11, %v2861_v48  ;;  %v2824_v31 = vadd.f32 %v2823_v39, %v2785_v50 }
 0x2c9   : > { %v2862_v3 = vpop.f32.mrf.mxu2  ;;  %v2787_v45 = vpop.f32.mrf.mxu0 }
 0x2ca   : > { %v2901_v9 = vpop.f32.mrf.mxu3  ;;  %v2863_v27 = vadd.f32 %v2862_v3, %v2824_v31  ;;  %v2826_v35 = vpop.f32.mrf.mxu1  ;;  %v2788_v1 = vadd.f32 %v2787_v45, %v18004_v13  ;;  %v16214_v3 = vld [vmem:[%s20646_s1 + $0x8e0] sm:$0xff] }
 0x2cb   : > { %4131 = vmatpush.bf16.msra.mxu3 %v16214_v3 }
 0x2cc   : > { %v18164_v34 = vadd.f32 %v2901_v9, %v2863_v27  ;;  %v2827_v42 = vadd.f32 %v2826_v35, %v2788_v1  ;;  %3594 = vmatmul.bf16.vlgmr.msrb.gmra.mxu0 %v17102_v4  ;;  %v16198_v9 = vld [vmem:[%s20646_s1 + $0x860] sm:$0xff] }
 0x2cd   : > { %3633 = vmatmul.bf16.vlgmr.msrb.gmra.mxu1 %v17104_v5 }
 0x2ce   : > { %3672 = vmatmul.bf16.vlgmr.msrb.gmra.mxu2 %v17106_v6  ;;  %4053 = vmatpush.bf16.msra.mxu1 %v16198_v9 }
 0x2cf   : > { %3711 = vmatmul.bf16.vlgmr.msrb.gmra.mxu3 %v17108_v7 }
 0x2d1   : > { %v2865_v11 = vpop.f32.mrf.mxu2  ;;  %v2789_v13 = vpop.f32.mrf.mxu0 }
 0x2d2   : > { %v2904_v48 = vpop.f32.mrf.mxu3  ;;  %v2866_v49 = vadd.f32 %v2865_v11, %v2827_v42  ;;  %v2828_v39 = vpop.f32.mrf.mxu1  ;;  %v2790_v50 = vadd.f32 %v2789_v13, %v18018_v17 }
 0x2d4   : > { %v18174_v31 = vadd.f32 %v2904_v48, %v2866_v49  ;;  %v2829_v38 = vadd.f32 %v2828_v39, %v2790_v50  ;;  %v16205_v48 = vld [vmem:[%s20646_s1 + $0x898] sm:$0xff] }
 0x2d5   : > { %v16189_v49 = vld [vmem:[%s20646_s1 + $0x818] sm:$0xff]  ;;  %4093 = vmatpush.bf16.msra.mxu2 %v16205_v48 }
 0x2d6   : > { %4015 = vmatpush.bf16.msra.mxu0 %v16189_v49  ;;  %v16212_v49 = vld [vmem:[%s20646_s1 + $0x8d0] sm:$0xff] }
 0x2d9   : > { %v2867_v17 = vpop.f32.mrf.mxu2  ;;  %v2792_v35 = vpop.f32.mrf.mxu0 }
 0x2da   : > { %v2906_v27 = vpop.f32.mrf.mxu3  ;;  %v2868_v45 = vadd.f32 %v2867_v17, %v2829_v38  ;;  %v2831_v1 = vpop.f32.mrf.mxu1  ;;  %v2793_v10 = vadd.f32 %v2792_v35, %v18033_v37  ;;  %v16213_v37 = vld [vmem:[%s20646_s1 + $0x8d8] sm:$0xff]  ;;  %v16204_v35 = vld [vmem:[%s20646_s1 + $0x890] sm:$0xff] }
 0x2db   : > { %4132 = vmatpush.bf16.msra.mxu3 %v16213_v37  ;;  %v16197_v17 = vld [vmem:[%s20646_s1 + $0x858] sm:$0xff]  ;;  %4094 = vmatpush.bf16.msra.mxu2 %v16204_v35  ;;  %v16211_v35 = vld [vmem:[%s20646_s1 + $0x8c8] sm:$0xff] }
 0x2dc   : > { %v18189_v42 = vadd.f32 %v2906_v27, %v2868_v45  ;;  %v2832_v11 = vadd.f32 %v2831_v1, %v2793_v10  ;;  %3599 = vmatmul.bf16.gmra.mxu0 %v17143_v23  ;;  %4054 = vmatpush.bf16.msra.mxu1 %v16197_v17 }
 0x2dd   : > { %3638 = vmatmul.bf16.gmra.mxu1 %v17145_v24 }
 0x2de   : > { %3677 = vmatmul.bf16.gmra.mxu2 %v17147_v25 }
 0x2df   : > { %3716 = vmatmul.bf16.gmra.mxu3 %v17149_v26 }
 0x2e0   : > { %4133 = vmatpush.bf16.msra.mxu3 %v16212_v49 }
 0x2e1   : > { %v2870_v13 = vpop.f32.mrf.mxu2  ;;  %v2794_v38 = vpop.f32.mrf.mxu0 }
 0x2e2   : > { %v2909_v39 = vpop.f32.mrf.mxu3  ;;  %v2871_v50 = vadd.f32 %v2870_v13, %v2832_v11  ;;  %v2833_v43 = vpop.f32.mrf.mxu1  ;;  %v2795_v2 = vadd.f32 %v2794_v38, %v18039_v51  ;;  %v16188_v51 = vld [vmem:[%s20646_s1 + $0x810] sm:$0xff] }
 0x2e3   : > { %v16196_v13 = vld [vmem:[%s20646_s1 + $0x850] sm:$0xff]  ;;  %4016 = vmatpush.bf16.msra.mxu0 %v16188_v51 }
 0x2e4   : > { %v18205_v3 = vadd.f32 %v2909_v39, %v2871_v50  ;;  %v2834_v9 = vadd.f32 %v2833_v43, %v2795_v2  ;;  %4055 = vmatpush.bf16.msra.mxu1 %v16196_v13  ;;  %4134 = vmatpush.bf16.msra.mxu3 %v16211_v35  ;;  %v16194_v35 = vld [vmem:[%s20646_s1 + $0x840] sm:$0xff] }
 0x2e9   : > { %v2872_v27 = vpop.f32.mrf.mxu2  ;;  %v3200_v10 = vpop.f32.mrf.mxu0 }
 0x2ea   : > { %v2911_v45 = vpop.f32.mrf.mxu3  ;;  %v2873_v1 = vadd.f32 %v2872_v27, %v2834_v9  ;;  %v3233_v11 = vpop.f32.mrf.mxu1  ;;  %v16203_v27 = vld [vmem:[%s20646_s1 + $0x888] sm:$0xff] }
 0x2eb   : > { %v3234_v48 = vadd.f32 %v3233_v11, %v3200_v10  ;;  %4095 = vmatpush.bf16.msra.mxu2 %v16203_v27  ;;  %v16186_v27 = vld [vmem:[%s20646_s1 + $0x800] sm:$0xff] }
 0x2ec   : > { %v18219_v37 = vadd.f32 %v2911_v45, %v2873_v1  ;;  %3604 = vmatmul.bf16.gmra.mxu0 %v17178_v40  ;;  %v16187_v45 = vld [vmem:[%s20646_s1 + $0x808] sm:$0xff] }
 0x2ed   : > { %3643 = vmatmul.bf16.gmra.mxu1 %v17180_v41  ;;  %4017 = vmatpush.bf16.msra.mxu0 %v16187_v45  ;;  %v16210_v45 = vld [vmem:[%s20646_s1 + $0x8c0] sm:$0xff] }
 0x2ee   : > { %3682 = vmatmul.bf16.gmra.mxu2 %v17182_v46  ;;  %4135 = vmatpush.bf16.msra.mxu3 %v16210_v45  ;;  %v16325_v45 = vld [vmem:[%s20649_s4 + $0x278] sm:$0xff] }
 0x2ef   : > { %3721 = vmatmul.bf16.gmra.mxu3 %v17184_v47 }
 0x2f1   : > { %v3266_v39 = vpop.f32.mrf.mxu2  ;;  %v3202_v43 = vpop.f32.mrf.mxu0  ;;  %4018 = vmatpush.bf16.msra.mxu0 %v16186_v27 }
 0x2f2   : > { %v3299_v50 = vpop.f32.mrf.mxu3  ;;  %v3267_v38 = vadd.f32 %v3266_v39, %v3234_v48  ;;  %v3235_v2 = vpop.f32.mrf.mxu1 }
 0x2f4   : > { %v3300_v9 = vadd.f32 %v3299_v50, %v3267_v38 }
 0x2f6   : > { %v18229_v17 = vadd.f32 %v3300_v9, %v17475_v14  ;;  %v16195_v14 = vld [vmem:[%s20646_s1 + $0x848] sm:$0xff]  ;;  %v16202_v9 = vld [vmem:[%s20646_s1 + $0x880] sm:$0xff] }
 0x2f7   : > { %4056 = vmatpush.bf16.msra.mxu1 %v16195_v14  ;;  %4096 = vmatpush.bf16.msra.mxu2 %v16202_v9 }
 0x2f9   : > { %v3268_v1 = vpop.f32.mrf.mxu2  ;;  %v3204_v11 = vpop.f32.mrf.mxu0 }
 0x2fa   : > { %v3301_v10 = vpop.f32.mrf.mxu3  ;;  %v3237_v48 = vpop.f32.mrf.mxu1 }
 0x2fb   : > { %v3238_v51 = vadd.f32 %v3237_v48, %v3204_v11  ;;  %4057 = vmatpush.bf16.msra.mxu1 %v16194_v35  ;;  %v16333_v48 = vld [vmem:[%s20649_s4 + $0x2b8] sm:$0xff] }
 0x2fc   : > { %3609 = vmatmul.bf16.gmra.mxu0 %v17210_v60  ;;  %4893 = vmatpush.bf16.msrb.mxu2 %v16333_v48  ;;  %v16340_v48 = vld [vmem:[%s20649_s4 + $0x2f0] sm:$0xff] }
 0x2fd   : > { %3648 = vmatmul.bf16.gmra.mxu1 %v17212_v61 }
 0x2fe   : > { %3687 = vmatmul.bf16.gmra.mxu2 %v17214_v62 }
 0x2ff   : > { %3726 = vmatmul.bf16.gmra.mxu3 %v17216_v63  ;;  %4860 = vmatpush.bf16.msrb.mxu1 %v16325_v45  ;;  %v16331_v45 = vld [vmem:[%s20649_s4 + $0x2a8] sm:$0xff] }
 0x301   : > { %v3270_v49 = vpop.f32.mrf.mxu2  ;;  %v3206_v50 = vpop.f32.mrf.mxu0 }
 0x302   : > { %v3303_v13 = vpop.f32.mrf.mxu3  ;;  %v3271_v39 = vadd.f32 %v3270_v49, %v3238_v51  ;;  %v3239_v38 = vpop.f32.mrf.mxu1  ;;  %v16317_v51 = vld [vmem:[%s20649_s4 + $0x238] sm:$0xff] }
 0x303   : > { %v16341_v49 = vld [vmem:[%s20649_s4 + $0x2f8] sm:$0xff]  ;;  %4827 = vmatpush.bf16.msrb.mxu0 %v16317_v51  ;;  %v16324_v51 = vld [vmem:[%s20649_s4 + $0x270] sm:$0xff] }
 0x304   : > { %v3304_v43 = vadd.f32 %v3303_v13, %v3271_v39  ;;  %4926 = vmatpush.bf16.msrb.mxu3 %v16341_v49  ;;  %4861 = vmatpush.bf16.msrb.mxu1 %v16324_v51 }
 0x306   : > { %v18248_v2 = vadd.f32 %v3304_v43, %v17494_v54 }
 0x308   : > { %4927 = vmatpush.bf16.msrb.mxu3 %v16340_v48 }
 0x309   : > { %v3272_v54 = vpop.f32.mrf.mxu2  ;;  %v3208_v10 = vpop.f32.mrf.mxu0 }
 0x30a   : > { %v3305_v1 = vpop.f32.mrf.mxu3  ;;  %v3241_v14 = vpop.f32.mrf.mxu1 }
 0x30b   : > { %v3242_v11 = vadd.f32 %v3241_v14, %v3208_v10  ;;  %v16332_v1 = vld [vmem:[%s20649_s4 + $0x2b0] sm:$0xff] }
 0x30c   : > { %3614 = vmatmul.bf16.gmra.mxu0 %v17251_v19  ;;  %4894 = vmatpush.bf16.msrb.mxu2 %v16332_v1 }
 0x30d   : > { %3653 = vmatmul.bf16.gmra.mxu1 %v17253_v20 }
 0x30e   : > { %3692 = vmatmul.bf16.gmra.mxu2 %v17255_v21 }
 0x30f   : > { %3731 = vmatmul.bf16.gmra.mxu3 %v17257_v22 }
 0x310   : > { %4895 = vmatpush.bf16.msrb.mxu2 %v16331_v45  ;;  %v16322_v45 = vld [vmem:[%s20649_s4 + $0x260] sm:$0xff] }
 0x311   : > { %v3274_v13 = vpop.f32.mrf.mxu2  ;;  %v3210_v38 = vpop.f32.mrf.mxu0 }
 0x312   : > { %v3307_v39 = vpop.f32.mrf.mxu3  ;;  %v3275_v50 = vadd.f32 %v3274_v13, %v3242_v11  ;;  %v3243_v43 = vpop.f32.mrf.mxu1 }
 0x314   : > { %v3308_v9 = vadd.f32 %v3307_v39, %v3275_v50 }
 0x316   : > { %v18276_v27 = vadd.f32 %v3308_v9, %v17522_v18  ;;  %v16316_v18 = vld [vmem:[%s20649_s4 + $0x230] sm:$0xff] }
 0x317   : > { %4828 = vmatpush.bf16.msrb.mxu0 %v16316_v18 }
 0x319   : > { %v3276_v35 = vpop.f32.mrf.mxu2  ;;  %v3212_v10 = vpop.f32.mrf.mxu0 }
 0x31a   : > { %v3309_v54 = vpop.f32.mrf.mxu3  ;;  %v3245_v14 = vpop.f32.mrf.mxu1  ;;  %v16315_v35 = vld [vmem:[%s20649_s4 + $0x228] sm:$0xff] }
 0x31b   : > { %v3246_v11 = vadd.f32 %v3245_v14, %v3212_v10  ;;  %v16339_v54 = vld [vmem:[%s20649_s4 + $0x2e8] sm:$0xff]  ;;  %4829 = vmatpush.bf16.msrb.mxu0 %v16315_v35 }
 0x31c   : > { %3619 = vmatmul.bf16.gmra.mxu0 %v18124_v8  ;;  %4928 = vmatpush.bf16.msrb.mxu3 %v16339_v54 }
 0x31d   : > { %3658 = vmatmul.bf16.gmra.mxu1 %v18126_v52 }
 0x31e   : > { %3697 = vmatmul.bf16.gmra.mxu2 %v18128_v44 }
 0x31f   : > { %3736 = vmatmul.bf16.gmra.mxu3 %v18130_v56 }
 0x321   : > { %v3278_v49 = vpop.f32.mrf.mxu2  ;;  %v3214_v50 = vpop.f32.mrf.mxu0 }
 0x322   : > { %v3311_v13 = vpop.f32.mrf.mxu3  ;;  %v3279_v39 = vadd.f32 %v3278_v49, %v3246_v11  ;;  %v3247_v38 = vpop.f32.mrf.mxu1 }
 0x324   : > { %v3312_v43 = vadd.f32 %v3311_v13, %v3279_v39 }
 0x326   : > { %v18298_v9 = vadd.f32 %v3312_v43, %v17544_v57  ;;  %v16323_v57 = vld [vmem:[%s20649_s4 + $0x268] sm:$0xff]  ;;  %v16330_v43 = vld [vmem:[%s20649_s4 + $0x2a0] sm:$0xff] }
 0x327   : > { %4862 = vmatpush.bf16.msrb.mxu1 %v16323_v57  ;;  %4896 = vmatpush.bf16.msrb.mxu2 %v16330_v43 }
 0x329   : > { %v3280_v1 = vpop.f32.mrf.mxu2  ;;  %v3216_v14 = vpop.f32.mrf.mxu0 }
 0x32a   : > { %v3313_v10 = vpop.f32.mrf.mxu3  ;;  %v3249_v11 = vpop.f32.mrf.mxu1 }
 0x32b   : > { %v3250_v18 = vadd.f32 %v3249_v11, %v3216_v14  ;;  %4863 = vmatpush.bf16.msrb.mxu1 %v16322_v45  ;;  %v16328_v45 = vld [vmem:[%s20649_s4 + $0x290] sm:$0xff] }
 0x32c   : > { %4019 = vmatmul.bf16.vlgmr.msra.gmra.mxu0 %v17102_v4  ;;  %v16314_v4 = vld [vmem:[%s20649_s4 + $0x220] sm:$0xff] }
 0x32d   : > { %4058 = vmatmul.bf16.vlgmr.msra.gmra.mxu1 %v17104_v5  ;;  %v16338_v5 = vld [vmem:[%s20649_s4 + $0x2e0] sm:$0xff]  ;;  %4830 = vmatpush.bf16.msrb.mxu0 %v16314_v4 }
 0x32e   : > { %4097 = vmatmul.bf16.vlgmr.msra.gmra.mxu2 %v17106_v6  ;;  %4929 = vmatpush.bf16.msrb.mxu3 %v16338_v5 }
 0x32f   : > { %4136 = vmatmul.bf16.vlgmr.msra.gmra.mxu3 %v17108_v7 }
 0x331   : > { %v3282_v48 = vpop.f32.mrf.mxu2  ;;  %v3218_v13 = vpop.f32.mrf.mxu0 }
 0x332   : > { %v3315_v51 = vpop.f32.mrf.mxu3  ;;  %v3283_v49 = vadd.f32 %v3282_v48, %v3250_v18  ;;  %v3251_v39 = vpop.f32.mrf.mxu1  ;;  %v16329_v18 = vld [vmem:[%s20649_s4 + $0x298] sm:$0xff] }
 0x333   : > { %v16313_v48 = vld [vmem:[%s20649_s4 + $0x218] sm:$0xff]  ;;  %4897 = vmatpush.bf16.msrb.mxu2 %v16329_v18 }
 0x334   : > { %v3316_v50 = vadd.f32 %v3315_v51, %v3283_v49  ;;  %4831 = vmatpush.bf16.msrb.mxu0 %v16313_v48 }
 0x336   : > { %v18317_v38 = vadd.f32 %v3316_v50, %v17563_v28 }
 0x337   : > { %4898 = vmatpush.bf16.msrb.mxu2 %v16328_v45 }
 0x339   : > { %v3284_v6 = vpop.f32.mrf.mxu2  ;;  %v3220_v28 = vpop.f32.mrf.mxu0 }
 0x33a   : > { %v3317_v7 = vpop.f32.mrf.mxu3  ;;  %v3253_v35 = vpop.f32.mrf.mxu1 }
 0x33b   : > { %v3254_v54 = vadd.f32 %v3253_v35, %v3220_v28  ;;  %v16327_v35 = vld [vmem:[%s20649_s4 + $0x288] sm:$0xff] }
 0x33c   : > { %4024 = vmatmul.bf16.gmra.mxu0 %v17143_v23  ;;  %v16337_v23 = vld [vmem:[%s20649_s4 + $0x2d8] sm:$0xff]  ;;  %4899 = vmatpush.bf16.msrb.mxu2 %v16327_v35 }
 0x33d   : > { %4063 = vmatmul.bf16.gmra.mxu1 %v17145_v24  ;;  %4930 = vmatpush.bf16.msrb.mxu3 %v16337_v23 }
 0x33e   : > { %4102 = vmatmul.bf16.gmra.mxu2 %v17147_v25 }
 0x33f   : > { %4141 = vmatmul.bf16.gmra.mxu3 %v17149_v26  ;;  %v16321_v26 = vld [vmem:[%s20649_s4 + $0x258] sm:$0xff] }
 0x340   : > { %4864 = vmatpush.bf16.msrb.mxu1 %v16321_v26 }
 0x341   : > { %v3286_v1 = vpop.f32.mrf.mxu2  ;;  %v3222_v14 = vpop.f32.mrf.mxu0 }
 0x342   : > { %v3319_v10 = vpop.f32.mrf.mxu3  ;;  %v3287_v57 = vadd.f32 %v3286_v1, %v3254_v54  ;;  %v3255_v11 = vpop.f32.mrf.mxu1  ;;  %v16311_v54 = vld [vmem:[%s20649_s4 + $0x208] sm:$0xff] }
 0x343   : > { %v16335_v1 = vld [vmem:[%s20649_s4 + $0x2c8] sm:$0xff] }
 0x344   : > { %v3320_v24 = vadd.f32 %v3319_v10, %v3287_v57 }
 0x346   : > { %v18345_v25 = vadd.f32 %v3320_v24, %v17591_v0 }
 0x349   : > { %v3288_v51 = vpop.f32.mrf.mxu2  ;;  %v3595_v13 = vpop.f32.mrf.mxu0 }
 0x34a   : > { %v3321_v49 = vpop.f32.mrf.mxu3  ;;  %v3634_v39 = vpop.f32.mrf.mxu1 }
 0x34b   : > { %v3635_v50 = vadd.f32 %v3634_v39, %v3595_v13 }
 0x34c   : > { %4029 = vmatmul.bf16.gmra.mxu0 %v17178_v40  ;;  %v16312_v40 = vld [vmem:[%s20649_s4 + $0x210] sm:$0xff] }
 0x34d   : > { %4068 = vmatmul.bf16.gmra.mxu1 %v17180_v41  ;;  %v16336_v41 = vld [vmem:[%s20649_s4 + $0x2d0] sm:$0xff]  ;;  %4832 = vmatpush.bf16.msrb.mxu0 %v16312_v40 }
 0x34e   : > { %4107 = vmatmul.bf16.gmra.mxu2 %v17182_v46  ;;  %4931 = vmatpush.bf16.msrb.mxu3 %v16336_v41 }
 0x34f   : > { %4146 = vmatmul.bf16.gmra.mxu3 %v17184_v47  ;;  %v16320_v47 = vld [vmem:[%s20649_s4 + $0x250] sm:$0xff] }
 0x350   : > { %4865 = vmatpush.bf16.msrb.mxu1 %v16320_v47 }
 0x351   : > { %v3673_v0 = vpop.f32.mrf.mxu2  ;;  %v3597_v5 = vpop.f32.mrf.mxu0  ;;  %4833 = vmatpush.bf16.msrb.mxu0 %v16311_v54 }
 0x352   : > { %v3712_v43 = vpop.f32.mrf.mxu3  ;;  %v3674_v4 = vadd.f32 %v3673_v0, %v3635_v50  ;;  %v3636_v6 = vpop.f32.mrf.mxu1  ;;  %4932 = vmatpush.bf16.msrb.mxu3 %v16335_v1 }
 0x353   : > { %v3637_v7 = vadd.f32 %v3636_v6, %v3597_v5 }
 0x354   : > { %v3713_v46 = vadd.f32 %v3712_v43, %v3674_v4  ;;  %v16326_v43 = vld [vmem:[%s20649_s4 + $0x280] sm:$0xff] }
 0x355   : > { %v16310_v4 = vld [vmem:[%s20649_s4 + $0x200] sm:$0xff]  ;;  %4900 = vmatpush.bf16.msrb.mxu2 %v16326_v43 }
 0x356   : > { %v3742_v28 = vadd.f32 %v3713_v46, %v17758_v15  ;;  %4834 = vmatpush.bf16.msrb.mxu0 %v16310_v4 }
 0x358   : > { %v4192_v24 = vrot.slane %v3742_v28, 1 }
 0x359   : > { %v3675_v10 = vpop.f32.mrf.mxu2  ;;  %v3600_v11 = vpop.f32.mrf.mxu0 }
 0x35a   : > { %v3714_v57 = vpop.f32.mrf.mxu3  ;;  %v3676_v14 = vadd.f32 %v3675_v10, %v3637_v7  ;;  %v3639_v18 = vpop.f32.mrf.mxu1  ;;  %v16318_v7 = vld [vmem:[%s20649_s4 + $0x240] sm:$0xff] }
 0x35b   : > { %v3640_v15 = vadd.f32 %v3639_v18, %v3600_v11 }
 0x35c   : > { %v3715_v48 = vadd.f32 %v3714_v57, %v3676_v14  ;;  %4034 = vmatmul.bf16.gmra.mxu0 %v17210_v60 }
 0x35d   : > { %4073 = vmatmul.bf16.gmra.mxu1 %v17212_v61 }
 0x35e   : > { %v3743_v23 = vadd.f32 %v3715_v48, %v17770_v58  ;;  %4112 = vmatmul.bf16.gmra.mxu2 %v17214_v62  ;;  %v16319_v62 = vld [vmem:[%s20649_s4 + $0x248] sm:$0xff] }
 0x35f   : > { %4151 = vmatmul.bf16.gmra.mxu3 %v17216_v63  ;;  %4866 = vmatpush.bf16.msrb.mxu1 %v16319_v62 }
 0x360   : > { %v4193_v26 = vrot.slane %v3743_v23, 1 }
 0x361   : > { %v3678_v51 = vpop.f32.mrf.mxu2  ;;  %v3602_v50 = vpop.f32.mrf.mxu0 }
 0x362   : > { %v3717_v49 = vpop.f32.mrf.mxu3  ;;  %v4194_v13 = vsel %vm4191_vm0, %v4192_v24, %v4193_v26  ;;  %v3679_v39 = vadd.f32 %v3678_v51, %v3640_v15  ;;  %v3641_v0 = vpop.f32.mrf.mxu1 }
 0x363   : > { %v18383_v60 = vadd.f32 %v4194_v13, %v18229_v17  ;;  %v3642_v61 = vadd.f32 %v3641_v0, %v3602_v50  ;;  %v16334_v17 = vld [vmem:[%s20649_s4 + $0x2c0] sm:$0xff]  ;;  %4867 = vmatpush.bf16.msrb.mxu1 %v16318_v7 }
 0x364   : > { %v3718_v58 = vadd.f32 %v3717_v49, %v3679_v39  ;;  %4933 = vmatpush.bf16.msrb.mxu3 %v16334_v17  ;;  %v12699_v17 = vld [vmem:[%s18433_s9 + $0x20] sm:$0xf]  ;;  %v16222_v7 = vld [vmem:[%s18433_s9 + $0x24] sm:$0xf] }
 0x366   : > { %v3744_v63 = vadd.f32 %v3718_v58, %v17780_v12 }
 0x368   : > { %v4195_v28 = vrot.slane %v3744_v63, 1 }
 0x369   : > { %v3680_v5 = vpop.f32.mrf.mxu2  ;;  %v3605_v12 = vpop.f32.mrf.mxu0 }
 0x36a   : > { %v3719_v6 = vpop.f32.mrf.mxu3  ;;  %v3681_v45 = vadd.f32 %v3680_v5, %v3642_v61  ;;  %v3644_v40 = vpop.f32.mrf.mxu1  ;;  %v16224_v5 = vld [vmem:[%s18433_s9 + $0x2c] sm:$0xf0] }
 0x36b   : > { %v3645_v41 = vadd.f32 %v3644_v40, %v3605_v12  ;;  %v12707_v12 = vld [vmem:[%s18433_s9 + $0x28] sm:$0xf]  ;;  %v16225_v40 = vld [vmem:[%s18433_s9 + $0x34] sm:$0xf0] }
 0x36c   : > { %v3720_v46 = vadd.f32 %v3719_v6, %v3681_v45  ;;  %4039 = vmatmul.bf16.gmra.mxu0 %v17251_v19  ;;  %v12701_v45 = vld [vmem:[%s18433_s9 + $0x30] sm:$0xf0] }
 0x36d   : > { %4078 = vmatmul.bf16.gmra.mxu1 %v17253_v20  ;;  %v16269_v20 = vld [vmem:[%s20649_s4 + $0xb8] sm:$0xff] }
 0x36e   : > { %v3745_v47 = vadd.f32 %v3720_v46, %v17795_v59  ;;  %4117 = vmatmul.bf16.gmra.mxu2 %v17255_v21  ;;  %v16253_v21 = vld [vmem:[%s20649_s4 + $0x38] sm:$0xff] }
 0x36f   : > { %4156 = vmatmul.bf16.gmra.mxu3 %v17257_v22  ;;  %v16277_v22 = vld [vmem:[%s20649_s4 + $0xf8] sm:$0xff]  ;;  %5237 = vmatpush.bf16.msra.mxu2 %v16269_v20 }
 0x370   : > { %v4196_v35 = vrot.slane %v3745_v47, 1  ;;  %5171 = vmatpush.bf16.msra.mxu0 %v16253_v21  ;;  %5270 = vmatpush.bf16.msra.mxu3 %v16277_v22  ;;  %v12709_v46 = vld [vmem:[%s18433_s9 + $0x38] sm:$0xf0]  ;;  %v16267_v47 = vld [vmem:[%s20649_s4 + $0xa8] sm:$0xff] }
 0x371   : > { %v3683_v54 = vpop.f32.mrf.mxu2  ;;  %v3607_v14 = vpop.f32.mrf.mxu0 }
 0x372   : > { %v3722_v1 = vpop.f32.mrf.mxu3  ;;  %v4197_v10 = vsel %vm4191_vm0, %v4195_v28, %v4196_v35  ;;  %v3684_v57 = vadd.f32 %v3683_v54, %v3645_v41  ;;  %v3646_v11 = vpop.f32.mrf.mxu1  ;;  %v16223_v41 = vld [vmem:[%s18433_s9 + $0x2c] sm:$0xf] }
 0x373   : > { %v18408_v18 = vadd.f32 %v4197_v10, %v18248_v2  ;;  %v3647_v19 = vadd.f32 %v3646_v11, %v3607_v14  ;;  %v16261_v2 = vld [vmem:[%s20649_s4 + $0x78] sm:$0xff]  ;;  %v16251_v28 = vld [vmem:[%s20649_s4 + $0x28] sm:$0xff]  ;;  %v18470_v10 = vor.u32 %v16222_v7, %v12701_v45  ;;  %v18474_v20 = vor.u32 %v16223_v41, %v12709_v46 }
 0x374   : > { %v3723_v59 = vadd.f32 %v3722_v1, %v3684_v57  ;;  %5204 = vmatpush.bf16.msra.mxu1 %v16261_v2  ;;  %v18468_v1 = vor.u32 %v16224_v5, %v12699_v17  ;;  %v16258_v5 = vld [vmem:[%s20649_s4 + $0x60] sm:$0xff] }
 0x376   : > { %v3746_v15 = vadd.f32 %v3723_v59, %v17811_v30 }
 0x378   : > { %v4198_v39 = vrot.slane %v3746_v15, 1 }
 0x379   : > { %v3685_v48 = vpop.f32.mrf.mxu2  ;;  %v3610_v26 = vpop.f32.mrf.mxu0 }
 0x37a   : > { %v3724_v23 = vpop.f32.mrf.mxu3  ;;  %v3686_v24 = vadd.f32 %v3685_v48, %v3647_v19  ;;  %v3649_v51 = vpop.f32.mrf.mxu1  ;;  %v18472_v19 = vor.u32 %v16225_v40, %v12707_v12 }
 0x37b   : > { %v3650_v49 = vadd.f32 %v3649_v51, %v3610_v26 }
 0x37c   : > { %v3725_v13 = vadd.f32 %v3724_v23, %v3686_v24  ;;  %4044 = vmatmul.bf16.gmra.mxu0 %v18124_v8 }
 0x37d   : > { %4083 = vmatmul.bf16.gmra.mxu1 %v18126_v52  ;;  %v16252_v52 = vld [vmem:[%s20649_s4 + $0x30] sm:$0xff] }
 0x37e   : > { %v3747_v30 = vadd.f32 %v3725_v13, %v17817_v32  ;;  %4122 = vmatmul.bf16.gmra.mxu2 %v18128_v44  ;;  %v16268_v44 = vld [vmem:[%s20649_s4 + $0xb0] sm:$0xff]  ;;  %5172 = vmatpush.bf16.msra.mxu0 %v16252_v52  ;;  %v16250_v52 = vld [vmem:[%s20649_s4 + $0x20] sm:$0xff] }
 0x37f   : > { %4161 = vmatmul.bf16.gmra.mxu3 %v18130_v56  ;;  %v16276_v56 = vld [vmem:[%s20649_s4 + $0xf0] sm:$0xff]  ;;  %5238 = vmatpush.bf16.msra.mxu2 %v16268_v44  ;;  %v12725_v44 = vld [vmem:[%s18433_s9 + $0x58] sm:$0xf0] }
 0x380   : > { %v4199_v50 = vrot.slane %v3747_v30, 1  ;;  %5271 = vmatpush.bf16.msra.mxu3 %v16276_v56  ;;  %v16259_v30 = vld [vmem:[%s20649_s4 + $0x68] sm:$0xff]  ;;  %v16274_v56 = vld [vmem:[%s20649_s4 + $0xe0] sm:$0xff] }
 0x381   : > { %v3688_v0 = vpop.f32.mrf.mxu2  ;;  %v3612_v63 = vpop.f32.mrf.mxu0 }
 0x382   : > { %v3727_v61 = vpop.f32.mrf.mxu3  ;;  %v4200_v62 = vsel %vm4191_vm0, %v4198_v39, %v4199_v50  ;;  %v3689_v58 = vadd.f32 %v3688_v0, %v3650_v49  ;;  %v3651_v43 = vpop.f32.mrf.mxu1  ;;  %5173 = vmatpush.bf16.msra.mxu0 %v16251_v28  ;;  %v12715_v50 = vld [vmem:[%s18433_s9 + $0x40] sm:$0xf]  ;;  %v16228_v0 = vld [vmem:[%s18433_s9 + $0x4c] sm:$0xf0] }
 0x383   : > { %v18436_v32 = vadd.f32 %v4200_v62, %v18276_v27  ;;  %v3652_v8 = vadd.f32 %v3651_v43, %v3612_v63  ;;  %v16260_v27 = vld [vmem:[%s20649_s4 + $0x70] sm:$0xff]  ;;  %5239 = vmatpush.bf16.msra.mxu2 %v16267_v47  ;;  %v16226_v62 = vld [vmem:[%s18433_s9 + $0x44] sm:$0xf]  ;;  %v12723_v63 = vld [vmem:[%s18433_s9 + $0x48] sm:$0xf] }
 0x384   : > { %v3728_v4 = vadd.f32 %v3727_v61, %v3689_v58  ;;  %5205 = vmatpush.bf16.msra.mxu1 %v16260_v27  ;;  %v12717_v58 = vld [vmem:[%s18433_s9 + $0x50] sm:$0xf0]  ;;  %v16229_v43 = vld [vmem:[%s18433_s9 + $0x54] sm:$0xf0]  ;;  %v18506_v27 = vor.u32 %v16228_v0, %v12715_v50  ;;  %v12741_v50 = vld [vmem:[%s18433_s9 + $0x78] sm:$0xf0] }
 0x385   : > { %v18508_v17 = vor.u32 %v16226_v62, %v12717_v58  ;;  %v18513_v12 = vor.u32 %v16229_v43, %v12723_v63  ;;  %v16257_v0 = vld [vmem:[%s20649_s4 + $0x58] sm:$0xff] }
 0x386   : > { %v3748_v6 = vadd.f32 %v3728_v4, %v17836_v33  ;;  %v16275_v33 = vld [vmem:[%s20649_s4 + $0xe8] sm:$0xff]  ;;  %5174 = vmatpush.bf16.msra.mxu0 %v16250_v52 }
 0x387   : > { %5272 = vmatpush.bf16.msra.mxu3 %v16275_v33 }
 0x388   : > { %v4201_v15 = vrot.slane %v3748_v6, 1  ;;  %5206 = vmatpush.bf16.msra.mxu1 %v16259_v30  ;;  %v16233_v30 = vld [vmem:[%s18433_s9 + $0x74] sm:$0xf0] }
 0x389   : > { %v3690_v35 = vpop.f32.mrf.mxu2  ;;  %v3615_v14 = vpop.f32.mrf.mxu0 }
 0x38a   : > { %v3729_v54 = vpop.f32.mrf.mxu3  ;;  %v3691_v57 = vadd.f32 %v3690_v35, %v3652_v8  ;;  %v3654_v11 = vpop.f32.mrf.mxu1  ;;  %v16227_v8 = vld [vmem:[%s18433_s9 + $0x4c] sm:$0xf] }
 0x38b   : > { %v3655_v21 = vadd.f32 %v3654_v11, %v3615_v14  ;;  %v18515_v40 = vor.u32 %v16227_v8, %v12725_v44  ;;  %5273 = vmatpush.bf16.msra.mxu3 %v16274_v56 }
 0x38c   : > { %v3730_v22 = vadd.f32 %v3729_v54, %v3691_v57  ;;  %4835 = vmatmul.bf16.vlgmr.msrb.gmra.mxu0 %v18468_v1  ;;  %5207 = vmatpush.bf16.msra.mxu1 %v16258_v5 }
 0x38d   : > { %4868 = vmatmul.bf16.vlgmr.msrb.gmra.mxu1 %v18470_v10 }
 0x38e   : > { %v3749_v59 = vadd.f32 %v3730_v22, %v17848_v16  ;;  %4901 = vmatmul.bf16.vlgmr.msrb.gmra.mxu2 %v18472_v19 }
 0x38f   : > { %4934 = vmatmul.bf16.vlgmr.msrb.gmra.mxu3 %v18474_v20 }
 0x390   : > { %v4202_v2 = vrot.slane %v3749_v59, 1  ;;  %5208 = vmatpush.bf16.msra.mxu1 %v16257_v0 }
 0x391   : > { %v3693_v48 = vpop.f32.mrf.mxu2  ;;  %v3617_v51 = vpop.f32.mrf.mxu0 }
 0x392   : > { %v3732_v23 = vpop.f32.mrf.mxu3  ;;  %v4203_v24 = vsel %vm4191_vm0, %v4201_v15, %v4202_v2  ;;  %v3694_v26 = vadd.f32 %v3693_v48, %v3655_v21  ;;  %v3656_v16 = vpop.f32.mrf.mxu1  ;;  %v12731_v15 = vld [vmem:[%s18433_s9 + $0x60] sm:$0xf]  ;;  %v16232_v2 = vld [vmem:[%s18433_s9 + $0x6c] sm:$0xf0]  ;;  %v16265_v48 = vld [vmem:[%s20649_s4 + $0x98] sm:$0xff] }
 0x393   : > { %v18483_v49 = vadd.f32 %v4203_v24, %v18298_v9  ;;  %v3657_v13 = vadd.f32 %v3656_v16, %v3617_v51  ;;  %v16266_v9 = vld [vmem:[%s20649_s4 + $0xa0] sm:$0xff]  ;;  %v16273_v24 = vld [vmem:[%s20649_s4 + $0xd8] sm:$0xff]  ;;  %v12733_v16 = vld [vmem:[%s18433_s9 + $0x70] sm:$0xf0]  ;;  %v18547_v58 = vor.u32 %v16232_v2, %v12731_v15 }
 0x394   : > { %v3733_v39 = vadd.f32 %v3732_v23, %v3694_v26  ;;  %5240 = vmatpush.bf16.msra.mxu2 %v16266_v9  ;;  %v16249_v23 = vld [vmem:[%s20649_s4 + $0x18] sm:$0xff]  ;;  %v20658_v26 = vld [vmem:[#allocation2_spill] sm:$0xff]  ;;  %5274 = vmatpush.bf16.msra.mxu3 %v16273_v24  ;;  %v16272_v15 = vld [vmem:[%s20649_s4 + $0xd0] sm:$0xff] }
 0x395   : > { %5175 = vmatpush.bf16.msra.mxu0 %v16249_v23  ;;  %v20660_v2 = vld [vmem:[#allocation4_spill] sm:$0xff]  ;;  %v12755_v23 = vld [vmem:[%s18433_s9 + $0x88] sm:$0xf] }
 0x396   : > { %v3750_v61 = vadd.f32 %v3733_v39, %v17858_v29  ;;  %v16231_v39 = vld [vmem:[%s18433_s9 + $0x6c] sm:$0xf]  ;;  %v16256_v24 = vld [vmem:[%s20649_s4 + $0x50] sm:$0xff] }
 0x397   : > { %v18553_v52 = vor.u32 %v16231_v39, %v12741_v50  ;;  %5209 = vmatpush.bf16.msra.mxu1 %v16256_v24  ;;  %v16241_v24 = vld [vmem:[%s18433_s9 + $0xb4] sm:$0xf0] }
 0x398   : > { %v4204_v28 = vrot.slane %v3750_v61, 1  ;;  %5241 = vmatpush.bf16.msra.mxu2 %v16265_v48  ;;  %v12749_v48 = vld [vmem:[%s18433_s9 + $0x90] sm:$0xf0]  ;;  %5275 = vmatpush.bf16.msra.mxu3 %v16272_v15  ;;  %v20662_v15 = vld [vmem:[#allocation6_spill] sm:$0xff] }
 0x399   : > { %v3695_v4 = vpop.f32.mrf.mxu2  ;;  %v3620_v7 = vpop.f32.mrf.mxu0 }
 0x39a   : > { %v3734_v29 = vpop.f32.mrf.mxu3  ;;  %v3696_v6 = vadd.f32 %v3695_v4, %v3657_v13  ;;  %v3659_v45 = vpop.f32.mrf.mxu1  ;;  %v12739_v13 = vld [vmem:[%s18433_s9 + $0x68] sm:$0xf] }
 0x39b   : > { %v3660_v41 = vadd.f32 %v3659_v45, %v3620_v7  ;;  %v18551_v9 = vor.u32 %v16233_v30, %v12739_v13  ;;  %v16247_v13 = vld [vmem:[%s20649_s4 + $0x8] sm:$0xff] }
 0x39c   : > { %v3735_v46 = vadd.f32 %v3734_v29, %v3696_v6  ;;  %4839 = vmatmul.bf16.gmra.mxu0 %v18506_v27  ;;  %v20659_v29 = vld [vmem:[#allocation3_spill] sm:$0xff] }
 0x39d   : > { %4872 = vmatmul.bf16.gmra.mxu1 %v18508_v17  ;;  %v16271_v30 = vld [vmem:[%s20649_s4 + $0xc8] sm:$0xff] }
 0x39e   : > { %v3751_v47 = vadd.f32 %v3735_v46, %v17873_v53  ;;  %4905 = vmatmul.bf16.gmra.mxu2 %v18513_v12  ;;  %5276 = vmatpush.bf16.msra.mxu3 %v16271_v30 }
 0x39f   : > { %4938 = vmatmul.bf16.gmra.mxu3 %v18515_v40 }
 0x3a0   : > { %v4205_v33 = vrot.slane %v3751_v47, 1 }
 0x3a1   : > { %v3698_v35 = vpop.f32.mrf.mxu2  ;;  %v3622_v11 = vpop.f32.mrf.mxu0 }
 0x3a2   : > { %v3737_v54 = vpop.f32.mrf.mxu3  ;;  %v4206_v57 = vsel %vm4191_vm0, %v4204_v28, %v4205_v33  ;;  %v3699_v14 = vadd.f32 %v3698_v35, %v3660_v41  ;;  %v3661_v21 = vpop.f32.mrf.mxu1 }
 0x3a3   : > { %v18524_v53 = vadd.f32 %v4206_v57, %v18317_v38  ;;  %v3662_v22 = vadd.f32 %v3661_v21, %v3622_v11  ;;  %v16230_v38 = vld [vmem:[%s18433_s9 + $0x64] sm:$0xf]  ;;  %v16236_v11 = vld [vmem:[%s18433_s9 + $0x8c] sm:$0xf0] }
 0x3a4   : > { %v3738_v59 = vadd.f32 %v3737_v54, %v3699_v14  ;;  %v18549_v63 = vor.u32 %v16230_v38, %v12733_v16  ;;  %v12747_v14 = vld [vmem:[%s18433_s9 + $0x80] sm:$0xf]  ;;  %v16234_v21 = vld [vmem:[%s18433_s9 + $0x84] sm:$0xf]  ;;  %v12757_v38 = vld [vmem:[%s18433_s9 + $0x98] sm:$0xf0] }
 0x3a5   : > { %v16263_v16 = vld [vmem:[%s20649_s4 + $0x88] sm:$0xff]  ;;  %v18594_v0 = vor.u32 %v16236_v11, %v12747_v14 }
 0x3a6   : > { %v3752_v51 = vadd.f32 %v3738_v59, %v20658_v26  ;;  %v16248_v59 = vld [vmem:[%s20649_s4 + $0x10] sm:$0xff]  ;;  %v16237_v26 = vld [vmem:[%s18433_s9 + $0x94] sm:$0xf0] }
 0x3a7   : > { %5176 = vmatpush.bf16.msra.mxu0 %v16248_v59  ;;  %v16255_v59 = vld [vmem:[%s20649_s4 + $0x48] sm:$0xff] }
 0x3a8   : > { %v4207_v6 = vrot.slane %v3752_v51, 1  ;;  %v16235_v51 = vld [vmem:[%s18433_s9 + $0x8c] sm:$0xf]  ;;  %5210 = vmatpush.bf16.msra.mxu1 %v16255_v59 }
 0x3a9   : > { %v3700_v61 = vpop.f32.mrf.mxu2  ;;  %v4020_v8 = vpop.f32.mrf.mxu0 }
 0x3aa   : > { %v3739_v62 = vpop.f32.mrf.mxu3  ;;  %v3701_v43 = vadd.f32 %v3700_v61, %v3662_v22  ;;  %v4059_v44 = vpop.f32.mrf.mxu1  ;;  %v16264_v22 = vld [vmem:[%s20649_s4 + $0x90] sm:$0xff]  ;;  %v18596_v61 = vor.u32 %v16234_v21, %v12749_v48  ;;  %v12763_v21 = vld [vmem:[%s18433_s9 + $0xa0] sm:$0xf] }
 0x3ab   : > { %v4060_v56 = vadd.f32 %v4059_v44, %v4020_v8  ;;  %5242 = vmatpush.bf16.msra.mxu2 %v16264_v22  ;;  %v18598_v44 = vor.u32 %v16237_v26, %v12755_v23  ;;  %5177 = vmatpush.bf16.msra.mxu0 %v16247_v13  ;;  %v16240_v22 = vld [vmem:[%s18433_s9 + $0xac] sm:$0xf0]  ;;  %v12765_v48 = vld [vmem:[%s18433_s9 + $0xb0] sm:$0xf0]  ;;  %v12771_v23 = vld [vmem:[%s18433_s9 + $0xa8] sm:$0xf] }
 0x3ac   : > { %v3740_v4 = vadd.f32 %v3739_v62, %v3701_v43  ;;  %4843 = vmatmul.bf16.gmra.mxu0 %v18547_v58  ;;  %v16239_v26 = vld [vmem:[%s18433_s9 + $0xac] sm:$0xf] }
 0x3ad   : > { %4876 = vmatmul.bf16.gmra.mxu1 %v18549_v63 }
 0x3ae   : > { %v3753_v5 = vadd.f32 %v3740_v4, %v20659_v29  ;;  %4909 = vmatmul.bf16.gmra.mxu2 %v18551_v9 }
 0x3af   : > { %4942 = vmatmul.bf16.gmra.mxu3 %v18553_v52  ;;  %5243 = vmatpush.bf16.msra.mxu2 %v16263_v16  ;;  %v16270_v16 = vld [vmem:[%s20649_s4 + $0xc0] sm:$0xff] }
 0x3b0   : > { %v4208_v7 = vrot.slane %v3753_v5, 1  ;;  %v20661_v5 = vld [vmem:[#allocation5_spill] sm:$0xff]  ;;  %5277 = vmatpush.bf16.msra.mxu3 %v16270_v16 }
 0x3b1   : > { %v4098_v45 = vpop.f32.mrf.mxu2  ;;  %v4022_v28 = vpop.f32.mrf.mxu0  ;;  %v16245_v16 = vld [vmem:[%s18433_s9 + $0xd4] sm:$0xf0] }
 0x3b2   : > { %v4137_v41 = vpop.f32.mrf.mxu3  ;;  %v4209_v46 = vsel %vm4191_vm0, %v4207_v6, %v4208_v7  ;;  %v4099_v47 = vadd.f32 %v4098_v45, %v4060_v56  ;;  %v4061_v33 = vpop.f32.mrf.mxu1  ;;  %v18600_v56 = vor.u32 %v16235_v51, %v12757_v38  ;;  %v12773_v51 = vld [vmem:[%s18433_s9 + $0xb8] sm:$0xf0]  ;;  %v16246_v38 = vld [vmem:[%s20649_s4] sm:$0xff] }
 0x3b3   : > { %v18562_v35 = vadd.f32 %v4209_v46, %v18345_v25  ;;  %v4062_v54 = vadd.f32 %v4061_v33, %v4022_v28  ;;  %5178 = vmatpush.bf16.msra.mxu0 %v16246_v38  ;;  %v12787_v38 = vld [vmem:[%s18433_s9 + $0xc8] sm:$0xf] }
 0x3b4   : > { %v4138_v57 = vadd.f32 %v4137_v41, %v4099_v47 }
 0x3b6   : > { %v4167_v25 = vadd.f32 %v4138_v57, %v20660_v2 }
 0x3b8   : > { %v4235_v7 = vrot.slane %v4167_v25, 2  ;;  %v16238_v25 = vld [vmem:[%s18433_s9 + $0xa4] sm:$0xf] }
 0x3b9   : > { %v4100_v39 = vpop.f32.mrf.mxu2  ;;  %v4025_v43 = vpop.f32.mrf.mxu0 }
 0x3ba   : > { %v4139_v50 = vpop.f32.mrf.mxu3  ;;  %v4101_v62 = vadd.f32 %v4100_v39, %v4062_v54  ;;  %v4064_v8 = vpop.f32.mrf.mxu1  ;;  %v18632_v39 = vor.u32 %v16240_v22, %v12763_v21 }
 0x3bb   : > { %v4065_v4 = vadd.f32 %v4064_v8, %v4025_v43 }
 0x3bc   : > { %v4140_v29 = vadd.f32 %v4139_v50, %v4101_v62  ;;  %4847 = vmatmul.bf16.gmra.mxu0 %v18594_v0  ;;  %v18634_v50 = vor.u32 %v16238_v25, %v12765_v48  ;;  %v16254_v62 = vld [vmem:[%s20649_s4 + $0x40] sm:$0xff]  ;;  %v16244_v25 = vld [vmem:[%s18433_s9 + $0xcc] sm:$0xf0]  ;;  %v16365_v48 = vld [vmem:[%s20649_s4 + $0x3b8] sm:$0xff] }
 0x3bd   : > { %4880 = vmatmul.bf16.gmra.mxu1 %v18596_v61 }
 0x3be   : > { %v4168_v6 = vadd.f32 %v4140_v29, %v20661_v5  ;;  %4913 = vmatmul.bf16.gmra.mxu2 %v18598_v44  ;;  %v18639_v29 = vor.u32 %v16241_v24, %v12771_v23  ;;  %v18641_v5 = vor.u32 %v16239_v26, %v12773_v51  ;;  %5211 = vmatpush.bf16.msra.mxu1 %v16254_v62  ;;  %v16349_v23 = vld [vmem:[%s20649_s4 + $0x338] sm:$0xff]  ;;  %v20664_v26 = vld [vmem:[#allocation8_spill] sm:$0xff] }
 0x3bf   : > { %4946 = vmatmul.bf16.gmra.mxu3 %v18600_v56  ;;  %v16373_v24 = vld [vmem:[%s20649_s4 + $0x3f8] sm:$0xff]  ;;  %5560 = vmatpush.bf16.msrb.mxu0 %v16349_v23 }
 0x3c0   : > { %v4236_v45 = vrot.slane %v4168_v6, 2  ;;  %5677 = vmatpush.bf16.msrb.mxu3 %v16373_v24  ;;  %v16357_v62 = vld [vmem:[%s20649_s4 + $0x378] sm:$0xff] }
 0x3c1   : > { %v4103_v41 = vpop.f32.mrf.mxu2  ;;  %v4027_v33 = vpop.f32.mrf.mxu0 }
 0x3c2   : > { %v4142_v46 = vpop.f32.mrf.mxu3  ;;  %v4237_v47 = vsel %vm4234_vm1, %v4235_v7, %v4236_v45  ;;  %v4104_v28 = vadd.f32 %v4103_v41, %v4065_v4  ;;  %v4066_v54 = vpop.f32.mrf.mxu1  ;;  %v20663_v45 = vld [vmem:[#allocation7_spill] sm:$0xff]  ;;  %5599 = vmatpush.bf16.msrb.mxu1 %v16357_v62  ;;  %v16356_v62 = vld [vmem:[%s20649_s4 + $0x370] sm:$0xff] }
 0x3c3   : > { %v18609_v57 = vadd.f32 %v4237_v47, %v18383_v60  ;;  %v4067_v14 = vadd.f32 %v4066_v54, %v4027_v33  ;;  %v16262_v60 = vld [vmem:[%s20649_s4 + $0x80] sm:$0xff] }
 0x3c4   : > { %v4143_v11 = vadd.f32 %v4142_v46, %v4104_v28  ;;  %5244 = vmatpush.bf16.msra.mxu2 %v16262_v60  ;;  %v12781_v60 = vld [vmem:[%s18433_s9 + $0xd0] sm:$0xf0] }
 0x3c6   : > { %v4169_v2 = vadd.f32 %v4143_v11, %v20662_v15  ;;  %5600 = vmatpush.bf16.msrb.mxu1 %v16356_v62 }
 0x3c8   : > { %v4238_v46 = vrot.slane %v4169_v2, 2  ;;  %v12779_v2 = vld [vmem:[%s18433_s9 + $0xc0] sm:$0xf]  ;;  %5638 = vmatpush.bf16.msrb.mxu2 %v16365_v48 }
 0x3c9   : > { %v4105_v13 = vpop.f32.mrf.mxu2  ;;  %v4030_v8 = vpop.f32.mrf.mxu0 }
 0x3ca   : > { %v4144_v30 = vpop.f32.mrf.mxu3  ;;  %v4106_v43 = vadd.f32 %v4105_v13, %v4067_v14  ;;  %v4069_v4 = vpop.f32.mrf.mxu1  ;;  %v16243_v13 = vld [vmem:[%s18433_s9 + $0xcc] sm:$0xf] }
 0x3cb   : > { %v4070_v6 = vadd.f32 %v4069_v4, %v4030_v8  ;;  %v18673_v4 = vor.u32 %v16244_v25, %v12779_v2 }
 0x3cc   : > { %v4145_v7 = vadd.f32 %v4144_v30, %v4106_v43  ;;  %4851 = vmatmul.bf16.gmra.mxu0 %v18632_v39  ;;  %v12789_v30 = vld [vmem:[%s18433_s9 + $0xd8] sm:$0xf0] }
 0x3cd   : > { %4884 = vmatmul.bf16.gmra.mxu1 %v18634_v50 }
 0x3ce   : > { %v4170_v41 = vadd.f32 %v4145_v7, %v20663_v45  ;;  %4917 = vmatmul.bf16.gmra.mxu2 %v18639_v29 }
 0x3cf   : > { %4950 = vmatmul.bf16.gmra.mxu3 %v18641_v5 }
 0x3d0   : > { %v4239_v47 = vrot.slane %v4170_v41, 2 }
 0x3d1   : > { %v4108_v28 = vpop.f32.mrf.mxu2  ;;  %v4032_v11 = vpop.f32.mrf.mxu0 }
 0x3d2   : > { %v4147_v33 = vpop.f32.mrf.mxu3  ;;  %v4240_v54 = vsel %vm4234_vm1, %v4238_v46, %v4239_v47  ;;  %v4109_v14 = vadd.f32 %v4108_v28, %v4070_v6  ;;  %v4071_v21 = vpop.f32.mrf.mxu1  ;;  %v18677_v46 = vor.u32 %v16245_v16, %v12787_v38  ;;  %v18679_v47 = vor.u32 %v16243_v13, %v12789_v30  ;;  %v16348_v38 = vld [vmem:[%s20649_s4 + $0x330] sm:$0xff]  ;;  %v12931_v30 = vld [vmem:[%s18433_s9 + $0x8] sm:$0xf] }
 0x3d3   : > { %v18650_v22 = vadd.f32 %v4240_v54, %v18408_v18  ;;  %v4072_v59 = vadd.f32 %v4071_v21, %v4032_v11  ;;  %v16242_v18 = vld [vmem:[%s18433_s9 + $0xc4] sm:$0xf]  ;;  %v16372_v16 = vld [vmem:[%s20649_s4 + $0x3f0] sm:$0xff]  ;;  %5561 = vmatpush.bf16.msrb.mxu0 %v16348_v38 }
 0x3d4   : > { %v4148_v15 = vadd.f32 %v4147_v33, %v4109_v14  ;;  %v18675_v6 = vor.u32 %v16242_v18, %v12781_v60  ;;  %v16218_v18 = vld [vmem:[%s18433_s9 + $0x4] sm:$0xf]  ;;  %v16364_v60 = vld [vmem:[%s20649_s4 + $0x3b0] sm:$0xff]  ;;  %5678 = vmatpush.bf16.msrb.mxu3 %v16372_v16 }
 0x3d5   : > { %v12925_v13 = vld [vmem:[%s18433_s9 + $0x10] sm:$0xf0]  ;;  %5639 = vmatpush.bf16.msrb.mxu2 %v16364_v60 }
 0x3d6   : > { %v4171_v51 = vadd.f32 %v4148_v15, %v20664_v26  ;;  %v12923_v26 = vld [vmem:[%s18433_s9] sm:$0xf] }
 0x3d8   : > { %v4241_v14 = vrot.slane %v4171_v51, 2  ;;  %v16220_v51 = vld [vmem:[%s18433_s9 + $0xc] sm:$0xf0] }
 0x3d9   : > { %v4110_v43 = vpop.f32.mrf.mxu2  ;;  %v4035_v45 = vpop.f32.mrf.mxu0 }
 0x3da   : > { %v4149_v8 = vpop.f32.mrf.mxu3  ;;  %v4111_v7 = vadd.f32 %v4110_v43, %v4072_v59  ;;  %v4074_v41 = vpop.f32.mrf.mxu1  ;;  %v16221_v43 = vld [vmem:[%s18433_s9 + $0x14] sm:$0xf0] }
 0x3db   : > { %v4075_v28 = vadd.f32 %v4074_v41, %v4035_v45  ;;  %v16363_v45 = vld [vmem:[%s20649_s4 + $0x3a8] sm:$0xff] }
 0x3dc   : > { %v4150_v33 = vadd.f32 %v4149_v8, %v4111_v7  ;;  %4855 = vmatmul.bf16.gmra.mxu0 %v18673_v4  ;;  %v16219_v8 = vld [vmem:[%s18433_s9 + $0xc] sm:$0xf]  ;;  %v12933_v7 = vld [vmem:[%s18433_s9 + $0x18] sm:$0xf0]  ;;  %5640 = vmatpush.bf16.msrb.mxu2 %v16363_v45  ;;  %v16354_v45 = vld [vmem:[%s20649_s4 + $0x360] sm:$0xff] }
 0x3dd   : > { %4888 = vmatmul.bf16.gmra.mxu1 %v18675_v6  ;;  %v16371_v41 = vld [vmem:[%s20649_s4 + $0x3e8] sm:$0xff] }
 0x3de   : > { %v4172_v54 = vadd.f32 %v4150_v33, %v18133_v55  ;;  %4921 = vmatmul.bf16.gmra.mxu2 %v18677_v46  ;;  %5679 = vmatpush.bf16.msrb.mxu3 %v16371_v41 }
 0x3df   : > { %4954 = vmatmul.bf16.gmra.mxu3 %v18679_v47 }
 0x3e0   : > { %v4242_v11 = vrot.slane %v4172_v54, 2  ;;  %v18720_v54 = vor.u32 %v16220_v51, %v12923_v26 }
 0x3e1   : > { %v4113_v21 = vpop.f32.mrf.mxu2  ;;  %v4037_v25 = vpop.f32.mrf.mxu0 }
 0x3e2   : > { %v4152_v59 = vpop.f32.mrf.mxu3  ;;  %v4243_v15 = vsel %vm4234_vm1, %v4241_v14, %v4242_v11  ;;  %v4114_v2 = vadd.f32 %v4113_v21, %v4075_v28  ;;  %v4076_v48 = vpop.f32.mrf.mxu1  ;;  %v18722_v14 = vor.u32 %v16218_v18, %v12925_v13 }
 0x3e3   : > { %v18688_v55 = vadd.f32 %v4243_v15, %v18436_v32  ;;  %v4077_v23 = vadd.f32 %v4076_v48, %v4037_v25  ;;  %v18724_v15 = vor.u32 %v16221_v43, %v12931_v30 }
 0x3e4   : > { %v4153_v24 = vadd.f32 %v4152_v59, %v4114_v2  ;;  %v18726_v2 = vor.u32 %v16219_v8, %v12933_v7  ;;  %v16346_v8 = vld [vmem:[%s20649_s4 + $0x320] sm:$0xff] }
 0x3e6   : > { %v4173_v32 = vadd.f32 %v4153_v24, %v18152_v36  ;;  %v16347_v36 = vld [vmem:[%s20649_s4 + $0x328] sm:$0xff] }
 0x3e7   : > { %5562 = vmatpush.bf16.msrb.mxu0 %v16347_v36 }
 0x3e9   : > { %v4115_v28 = vpop.f32.mrf.mxu2  ;;  %v4040_v21 = vpop.f32.mrf.mxu0 }
 0x3ea   : > { %v4154_v33 = vpop.f32.mrf.mxu3  ;;  %v4116_v11 = vadd.f32 %v4115_v28, %v4077_v23  ;;  %v4079_v59 = vpop.f32.mrf.mxu1  ;;  %v4244_v23 = vrot.slane %v4173_v32, 2  ;;  %v16362_v32 = vld [vmem:[%s20649_s4 + $0x3a0] sm:$0xff] }
 0x3eb   : > { %v4080_v25 = vadd.f32 %v4079_v59, %v4040_v21  ;;  %5641 = vmatpush.bf16.msrb.mxu2 %v16362_v32  ;;  %5563 = vmatpush.bf16.msrb.mxu0 %v16346_v8 }
 0x3ec   : > { %v4155_v48 = vadd.f32 %v4154_v33, %v4116_v11  ;;  %5179 = vmatmul.bf16.vlgmr.msra.gmra.mxu0 %v18720_v54 }
 0x3ed   : > { %5212 = vmatmul.bf16.vlgmr.msra.gmra.mxu1 %v18722_v14 }
 0x3ee   : > { %v4174_v24 = vadd.f32 %v4155_v48, %v18164_v34  ;;  %5245 = vmatmul.bf16.vlgmr.msra.gmra.mxu2 %v18724_v15  ;;  %v16355_v34 = vld [vmem:[%s20649_s4 + $0x368] sm:$0xff]  ;;  %v16345_v48 = vld [vmem:[%s20649_s4 + $0x318] sm:$0xff] }
 0x3ef   : > { %5278 = vmatmul.bf16.vlgmr.msra.gmra.mxu3 %v18726_v2  ;;  %5601 = vmatpush.bf16.msrb.mxu1 %v16355_v34  ;;  %v16353_v34 = vld [vmem:[%s20649_s4 + $0x358] sm:$0xff] }
 0x3f0   : > { %v4245_v26 = vrot.slane %v4174_v24, 2  ;;  %v16369_v24 = vld [vmem:[%s20649_s4 + $0x3d8] sm:$0xff]  ;;  %5564 = vmatpush.bf16.msrb.mxu0 %v16345_v48 }
 0x3f1   : > { %v4118_v51 = vpop.f32.mrf.mxu2  ;;  %v4042_v16 = vpop.f32.mrf.mxu0 }
 0x3f2   : > { %v4157_v18 = vpop.f32.mrf.mxu3  ;;  %v4246_v60 = vsel %vm4234_vm1, %v4244_v23, %v4245_v26  ;;  %v4119_v38 = vadd.f32 %v4118_v51, %v4080_v25  ;;  %v4081_v13 = vpop.f32.mrf.mxu1  ;;  %v16361_v25 = vld [vmem:[%s20649_s4 + $0x398] sm:$0xff] }
 0x3f3   : > { %v18735_v30 = vadd.f32 %v4246_v60, %v18483_v49  ;;  %v4082_v62 = vadd.f32 %v4081_v13, %v4042_v16  ;;  %v16370_v49 = vld [vmem:[%s20649_s4 + $0x3e0] sm:$0xff]  ;;  %5602 = vmatpush.bf16.msrb.mxu1 %v16354_v45  ;;  %5642 = vmatpush.bf16.msrb.mxu2 %v16361_v25 }
 0x3f4   : > { %v4158_v43 = vadd.f32 %v4157_v18, %v4119_v38  ;;  %5680 = vmatpush.bf16.msrb.mxu3 %v16370_v49  ;;  %v16360_v49 = vld [vmem:[%s20649_s4 + $0x390] sm:$0xff] }
 0x3f6   : > { %v4175_v7 = vadd.f32 %v4158_v43, %v18174_v31 }
 0x3f7   : > { %5603 = vmatpush.bf16.msrb.mxu1 %v16353_v34  ;;  %5643 = vmatpush.bf16.msrb.mxu2 %v16360_v49 }
 0x3f8   : > { %v4247_v23 = vrot.slane %v4175_v7, 2  ;;  %5681 = vmatpush.bf16.msrb.mxu3 %v16369_v24 }
 0x3f9   : > { %v4120_v36 = vpop.f32.mrf.mxu2  ;;  %v4045_v33 = vpop.f32.mrf.mxu0 }
 0x3fa   : > { %v4159_v41 = vpop.f32.mrf.mxu3  ;;  %v4121_v28 = vadd.f32 %v4120_v36, %v4082_v62  ;;  %v4084_v11 = vpop.f32.mrf.mxu1 }
 0x3fb   : > { %v4085_v21 = vadd.f32 %v4084_v11, %v4045_v33 }
 0x3fc   : > { %v4160_v31 = vadd.f32 %v4159_v41, %v4121_v28  ;;  %5183 = vmatmul.bf16.gmra.mxu0 %v18468_v1  ;;  %v16344_v28 = vld [vmem:[%s20649_s4 + $0x310] sm:$0xff] }
 0x3fd   : > { %5216 = vmatmul.bf16.gmra.mxu1 %v18470_v10  ;;  %5565 = vmatpush.bf16.msrb.mxu0 %v16344_v28  ;;  %v16342_v28 = vld [vmem:[%s20649_s4 + $0x300] sm:$0xff] }
 0x3fe   : > { %v4176_v59 = vadd.f32 %v4160_v31, %v18189_v42  ;;  %5249 = vmatmul.bf16.gmra.mxu2 %v18472_v19 }
 0x3ff   : > { %5282 = vmatmul.bf16.gmra.mxu3 %v18474_v20 }
 0x400   : > { %v4248_v26 = vrot.slane %v4176_v59, 2 }
 0x401   : > { %v4123_v42 = vpop.f32.mrf.mxu2  ;;  %v4047_v38 = vpop.f32.mrf.mxu0 }
 0x402   : > { %v4162_v51 = vpop.f32.mrf.mxu3  ;;  %v4249_v18 = vsel %vm4234_vm1, %v4247_v23, %v4248_v26  ;;  %v4124_v60 = vadd.f32 %v4123_v42, %v4085_v21  ;;  %v4086_v16 = vpop.f32.mrf.mxu1  ;;  %v16352_v21 = vld [vmem:[%s20649_s4 + $0x350] sm:$0xff] }
 0x403   : > { %v18769_v13 = vadd.f32 %v4249_v18, %v18524_v53  ;;  %v4087_v62 = vadd.f32 %v4086_v16, %v4047_v38  ;;  %5604 = vmatpush.bf16.msrb.mxu1 %v16352_v21  ;;  %v16359_v18 = vld [vmem:[%s20649_s4 + $0x388] sm:$0xff] }
 0x404   : > { %v4163_v43 = vadd.f32 %v4162_v51, %v4124_v60  ;;  %v16343_v60 = vld [vmem:[%s20649_s4 + $0x308] sm:$0xff]  ;;  %5644 = vmatpush.bf16.msrb.mxu2 %v16359_v18 }
 0x405   : > { %v16367_v38 = vld [vmem:[%s20649_s4 + $0x3c8] sm:$0xff]  ;;  %5566 = vmatpush.bf16.msrb.mxu0 %v16343_v60 }
 0x406   : > { %v4177_v32 = vadd.f32 %v4163_v43, %v18205_v3  ;;  %v16368_v3 = vld [vmem:[%s20649_s4 + $0x3d0] sm:$0xff] }
 0x407   : > { %5682 = vmatpush.bf16.msrb.mxu3 %v16368_v3  ;;  %v16366_v3 = vld [vmem:[%s20649_s4 + $0x3c0] sm:$0xff] }
 0x408   : > { %v4250_v31 = vrot.slane %v4177_v32, 2 }
 0x409   : > { %v4125_v8 = vpop.f32.mrf.mxu2  ;;  %v4836_v36 = vpop.f32.mrf.mxu0  ;;  %5567 = vmatpush.bf16.msrb.mxu0 %v16342_v28 }
 0x40a   : > { %v4164_v7 = vpop.f32.mrf.mxu3  ;;  %v4126_v45 = vadd.f32 %v4125_v8, %v4087_v62  ;;  %v4869_v41 = vpop.f32.mrf.mxu1  ;;  %v16351_v62 = vld [vmem:[%s20649_s4 + $0x348] sm:$0xff] }
 0x40b   : > { %v4870_v53 = vadd.f32 %v4869_v41, %v4836_v36  ;;  %5683 = vmatpush.bf16.msrb.mxu3 %v16367_v38  ;;  %5605 = vmatpush.bf16.msrb.mxu1 %v16351_v62 }
 0x40c   : > { %v4165_v33 = vadd.f32 %v4164_v7, %v4126_v45  ;;  %5187 = vmatmul.bf16.gmra.mxu0 %v18506_v27 }
 0x40d   : > { %5220 = vmatmul.bf16.gmra.mxu1 %v18508_v17 }
 0x40e   : > { %v4178_v11 = vadd.f32 %v4165_v33, %v18219_v37  ;;  %5253 = vmatmul.bf16.gmra.mxu2 %v18513_v12  ;;  %v16350_v33 = vld [vmem:[%s20649_s4 + $0x340] sm:$0xff] }
 0x40f   : > { %5286 = vmatmul.bf16.gmra.mxu3 %v18515_v40  ;;  %5606 = vmatpush.bf16.msrb.mxu1 %v16350_v33 }
 0x410   : > { %v4251_v59 = vrot.slane %v4178_v11, 2  ;;  %5684 = vmatpush.bf16.msrb.mxu3 %v16366_v3 }
 0x411   : > { %v4902_v25 = vpop.f32.mrf.mxu2  ;;  %v4838_v26 = vpop.f32.mrf.mxu0 }
 0x412   : > { %v4935_v48 = vpop.f32.mrf.mxu3  ;;  %v4252_v24 = vsel %vm4234_vm1, %v4250_v31, %v4251_v59  ;;  %v4903_v23 = vadd.f32 %v4902_v25, %v4870_v53  ;;  %v4871_v37 = vpop.f32.mrf.mxu1  ;;  %v16358_v53 = vld [vmem:[%s20649_s4 + $0x380] sm:$0xff] }
 0x413   : > { %v18794_v42 = vadd.f32 %v4252_v24, %v18562_v35  ;;  %5645 = vmatpush.bf16.msrb.mxu2 %v16358_v53  ;;  %v16285_v24 = vld [vmem:[%s20649_s4 + $0x138] sm:$0xff] }
 0x414   : > { %v18796_v51 = vadd.f32 %v4935_v48, %v4903_v23  ;;  %v16301_v48 = vld [vmem:[%s20649_s4 + $0x1b8] sm:$0xff]  ;;  %5908 = vmatpush.bf16.msra.mxu0 %v16285_v24 }
 0x415   : > { %v16309_v23 = vld [vmem:[%s20649_s4 + $0x1f8] sm:$0xff] }
 0x416   : > { %6025 = vmatpush.bf16.msra.mxu3 %v16309_v23  ;;  %v16291_v23 = vld [vmem:[%s20649_s4 + $0x168] sm:$0xff] }
 0x417   : > { %5986 = vmatpush.bf16.msra.mxu2 %v16301_v48 }
 0x419   : > { %v4904_v16 = vpop.f32.mrf.mxu2  ;;  %v4840_v43 = vpop.f32.mrf.mxu0 }
 0x41a   : > { %v4937_v35 = vpop.f32.mrf.mxu3  ;;  %v4873_v34 = vpop.f32.mrf.mxu1 }
 0x41b   : > { %v4874_v32 = vadd.f32 %v4873_v34, %v4840_v43  ;;  %v16293_v35 = vld [vmem:[%s20649_s4 + $0x178] sm:$0xff]  ;;  %v16300_v34 = vld [vmem:[%s20649_s4 + $0x1b0] sm:$0xff] }
 0x41c   : > { %5191 = vmatmul.bf16.gmra.mxu0 %v18547_v58  ;;  %5947 = vmatpush.bf16.msra.mxu1 %v16293_v35 }
 0x41d   : > { %5224 = vmatmul.bf16.gmra.mxu1 %v18549_v63  ;;  %5987 = vmatpush.bf16.msra.mxu2 %v16300_v34 }
 0x41e   : > { %5257 = vmatmul.bf16.gmra.mxu2 %v18551_v9 }
 0x41f   : > { %5290 = vmatmul.bf16.gmra.mxu3 %v18553_v52 }
 0x421   : > { %v4906_v8 = vpop.f32.mrf.mxu2  ;;  %v4842_v45 = vpop.f32.mrf.mxu0 }
 0x422   : > { %v4939_v7 = vpop.f32.mrf.mxu3  ;;  %v4907_v49 = vadd.f32 %v4906_v8, %v4874_v32  ;;  %v4875_v36 = vpop.f32.mrf.mxu1  ;;  %v16308_v45 = vld [vmem:[%s20649_s4 + $0x1f0] sm:$0xff] }
 0x423   : > { %v16292_v36 = vld [vmem:[%s20649_s4 + $0x170] sm:$0xff]  ;;  %6026 = vmatpush.bf16.msra.mxu3 %v16308_v45 }
 0x424   : > { %v18814_v41 = vadd.f32 %v4939_v7, %v4907_v49  ;;  %v16284_v49 = vld [vmem:[%s20649_s4 + $0x130] sm:$0xff]  ;;  %5948 = vmatpush.bf16.msra.mxu1 %v16292_v36 }
 0x425   : > { %5909 = vmatpush.bf16.msra.mxu0 %v16284_v49  ;;  %v16290_v49 = vld [vmem:[%s20649_s4 + $0x160] sm:$0xff] }
 0x428   : > { %5949 = vmatpush.bf16.msra.mxu1 %v16291_v23 }
 0x429   : > { %v4908_v11 = vpop.f32.mrf.mxu2  ;;  %v4844_v31 = vpop.f32.mrf.mxu0 }
 0x42a   : > { %v4941_v21 = vpop.f32.mrf.mxu3  ;;  %v4877_v59 = vpop.f32.mrf.mxu1 }
 0x42b   : > { %v4878_v25 = vadd.f32 %v4877_v59, %v4844_v31  ;;  %v16299_v31 = vld [vmem:[%s20649_s4 + $0x1a8] sm:$0xff] }
 0x42c   : > { %5195 = vmatmul.bf16.gmra.mxu0 %v18594_v0  ;;  %v16283_v59 = vld [vmem:[%s20649_s4 + $0x128] sm:$0xff]  ;;  %5988 = vmatpush.bf16.msra.mxu2 %v16299_v31  ;;  %v16305_v31 = vld [vmem:[%s20649_s4 + $0x1d8] sm:$0xff] }
 0x42d   : > { %5228 = vmatmul.bf16.gmra.mxu1 %v18596_v61  ;;  %5910 = vmatpush.bf16.msra.mxu0 %v16283_v59 }
 0x42e   : > { %5261 = vmatmul.bf16.gmra.mxu2 %v18598_v44  ;;  %5950 = vmatpush.bf16.msra.mxu1 %v16290_v49 }
 0x42f   : > { %5294 = vmatmul.bf16.gmra.mxu3 %v18600_v56 }
 0x431   : > { %v4910_v26 = vpop.f32.mrf.mxu2  ;;  %v4846_v60 = vpop.f32.mrf.mxu0 }
 0x432   : > { %v4943_v37 = vpop.f32.mrf.mxu3  ;;  %v4911_v18 = vadd.f32 %v4910_v26, %v4878_v25  ;;  %v4879_v38 = vpop.f32.mrf.mxu1  ;;  %v16307_v25 = vld [vmem:[%s20649_s4 + $0x1e8] sm:$0xff] }
 0x433   : > { %6027 = vmatpush.bf16.msra.mxu3 %v16307_v25 }
 0x434   : > { %v18841_v16 = vadd.f32 %v4943_v37, %v4911_v18 }
 0x439   : > { %v4912_v62 = vpop.f32.mrf.mxu2  ;;  %v4848_v32 = vpop.f32.mrf.mxu0 }
 0x43a   : > { %v4945_v43 = vpop.f32.mrf.mxu3  ;;  %v4881_v8 = vpop.f32.mrf.mxu1 }
 0x43b   : > { %v4882_v7 = vadd.f32 %v4881_v8, %v4848_v32  ;;  %v16298_v32 = vld [vmem:[%s20649_s4 + $0x1a0] sm:$0xff] }
 0x43c   : > { %5199 = vmatmul.bf16.gmra.mxu0 %v18632_v39  ;;  %v16282_v8 = vld [vmem:[%s20649_s4 + $0x120] sm:$0xff]  ;;  %5989 = vmatpush.bf16.msra.mxu2 %v16298_v32 }
 0x43d   : > { %5232 = vmatmul.bf16.gmra.mxu1 %v18634_v50  ;;  %5911 = vmatpush.bf16.msra.mxu0 %v16282_v8  ;;  %v16280_v8 = vld [vmem:[%s20649_s4 + $0x110] sm:$0xff] }
 0x43e   : > { %5265 = vmatmul.bf16.gmra.mxu2 %v18639_v29 }
 0x43f   : > { %5298 = vmatmul.bf16.gmra.mxu3 %v18641_v5 }
 0x441   : > { %v4914_v53 = vpop.f32.mrf.mxu2  ;;  %v4850_v33 = vpop.f32.mrf.mxu0 }
 0x442   : > { %v4947_v28 = vpop.f32.mrf.mxu3  ;;  %v4915_v3 = vadd.f32 %v4914_v53, %v4882_v7  ;;  %v4883_v11 = vpop.f32.mrf.mxu1  ;;  %v16306_v7 = vld [vmem:[%s20649_s4 + $0x1e0] sm:$0xff]  ;;  %v16297_v33 = vld [vmem:[%s20649_s4 + $0x198] sm:$0xff] }
 0x443   : > { %6028 = vmatpush.bf16.msra.mxu3 %v16306_v7  ;;  %v16281_v11 = vld [vmem:[%s20649_s4 + $0x118] sm:$0xff]  ;;  %5990 = vmatpush.bf16.msra.mxu2 %v16297_v33  ;;  %v16304_v7 = vld [vmem:[%s20649_s4 + $0x1d0] sm:$0xff]  ;;  %v16295_v33 = vld [vmem:[%s20649_s4 + $0x188] sm:$0xff] }
 0x444   : > { %v18862_v21 = vadd.f32 %v4947_v28, %v4915_v3  ;;  %5912 = vmatpush.bf16.msra.mxu0 %v16281_v11  ;;  %v16279_v11 = vld [vmem:[%s20649_s4 + $0x108] sm:$0xff] }
 0x447   : > { %6029 = vmatpush.bf16.msra.mxu3 %v16305_v31  ;;  %v16303_v31 = vld [vmem:[%s20649_s4 + $0x1c8] sm:$0xff] }
 0x448   : > { %5913 = vmatpush.bf16.msra.mxu0 %v16280_v8  ;;  %v16278_v8 = vld [vmem:[%s20649_s4 + $0x100] sm:$0xff] }
 0x449   : > { %v4916_v48 = vpop.f32.mrf.mxu2  ;;  %v4852_v26 = vpop.f32.mrf.mxu0 }
 0x44a   : > { %v4949_v24 = vpop.f32.mrf.mxu3  ;;  %v4885_v37 = vpop.f32.mrf.mxu1 }
 0x44b   : > { %v4886_v18 = vadd.f32 %v4885_v37, %v4852_v26  ;;  %v16289_v37 = vld [vmem:[%s20649_s4 + $0x158] sm:$0xff]  ;;  %6030 = vmatpush.bf16.msra.mxu3 %v16304_v7  ;;  %v16302_v7 = vld [vmem:[%s20649_s4 + $0x1c0] sm:$0xff] }
 0x44c   : > { %5568 = vmatmul.bf16.vlgmr.msrb.gmra.mxu0 %v18468_v1  ;;  %5951 = vmatpush.bf16.msra.mxu1 %v16289_v37 }
 0x44d   : > { %5607 = vmatmul.bf16.vlgmr.msrb.gmra.mxu1 %v18470_v10  ;;  %5914 = vmatpush.bf16.msra.mxu0 %v16279_v11  ;;  %v16509_v11 = vld [vmem:[%s20646_s1 + $0x3b8] sm:$0xff] }
 0x44e   : > { %5646 = vmatmul.bf16.vlgmr.msrb.gmra.mxu2 %v18472_v19 }
 0x44f   : > { %5685 = vmatmul.bf16.vlgmr.msrb.gmra.mxu3 %v18474_v20 }
 0x450   : > { %6031 = vmatpush.bf16.msra.mxu3 %v16303_v31  ;;  %v16493_v31 = vld [vmem:[%s20646_s1 + $0x338] sm:$0xff] }
 0x451   : > { %v4918_v60 = vpop.f32.mrf.mxu2  ;;  %v4854_v62 = vpop.f32.mrf.mxu0  ;;  %5915 = vmatpush.bf16.msra.mxu0 %v16278_v8 }
 0x452   : > { %v4951_v38 = vpop.f32.mrf.mxu3  ;;  %v4919_v35 = vadd.f32 %v4918_v60, %v4886_v18  ;;  %v4887_v43 = vpop.f32.mrf.mxu1 }
 0x454   : > { %v18880_v34 = vadd.f32 %v4951_v38, %v4919_v35  ;;  %v16296_v38 = vld [vmem:[%s20649_s4 + $0x190] sm:$0xff]  ;;  %6032 = vmatpush.bf16.msra.mxu3 %v16302_v7 }
 0x455   : > { %5991 = vmatpush.bf16.msra.mxu2 %v16296_v38  ;;  %6623 = vmatpush.bf16.msrb.mxu0 %v16493_v31  ;;  %v16492_v7 = vld [vmem:[%s20646_s1 + $0x330] sm:$0xff]  ;;  %v16499_v31 = vld [vmem:[%s20646_s1 + $0x368] sm:$0xff] }
 0x459   : > { %v4920_v45 = vpop.f32.mrf.mxu2  ;;  %v4856_v53 = vpop.f32.mrf.mxu0  ;;  %5992 = vmatpush.bf16.msra.mxu2 %v16295_v33  ;;  %6624 = vmatpush.bf16.msrb.mxu0 %v16492_v7 }
 0x45a   : > { %v4953_v36 = vpop.f32.mrf.mxu3  ;;  %v4889_v28 = vpop.f32.mrf.mxu1 }
 0x45b   : > { %v4890_v3 = vadd.f32 %v4889_v28, %v4856_v53 }
 0x45c   : > { %5573 = vmatmul.bf16.gmra.mxu0 %v18506_v27 }
 0x45d   : > { %5612 = vmatmul.bf16.gmra.mxu1 %v18508_v17 }
 0x45e   : > { %5651 = vmatmul.bf16.gmra.mxu2 %v18513_v12 }
 0x45f   : > { %5690 = vmatmul.bf16.gmra.mxu3 %v18515_v40 }
 0x461   : > { %v4922_v59 = vpop.f32.mrf.mxu2  ;;  %v4858_v24 = vpop.f32.mrf.mxu0 }
 0x462   : > { %v4955_v25 = vpop.f32.mrf.mxu3  ;;  %v4923_v48 = vadd.f32 %v4922_v59, %v4890_v3  ;;  %v4891_v23 = vpop.f32.mrf.mxu1 }
 0x464   : > { %v18907_v26 = vadd.f32 %v4955_v25, %v4923_v48  ;;  %v16287_v48 = vld [vmem:[%s20649_s4 + $0x148] sm:$0xff] }
 0x469   : > { %v4924_v18 = vpop.f32.mrf.mxu2  ;;  %v5180_v35 = vpop.f32.mrf.mxu0 }
 0x46a   : > { %v4957_v60 = vpop.f32.mrf.mxu3  ;;  %v5213_v62 = vpop.f32.mrf.mxu1  ;;  %v5181_v43 = vadd.f32 %v5180_v35, %v18796_v51  ;;  %v16288_v51 = vld [vmem:[%s20649_s4 + $0x150] sm:$0xff] }
 0x46b   : > { %5952 = vmatpush.bf16.msra.mxu1 %v16288_v51  ;;  %v16286_v51 = vld [vmem:[%s20649_s4 + $0x140] sm:$0xff] }
 0x46c   : > { %v5214_v32 = vadd.f32 %v5213_v62, %v5181_v43  ;;  %5578 = vmatmul.bf16.gmra.mxu0 %v18547_v58 }
 0x46d   : > { %5617 = vmatmul.bf16.gmra.mxu1 %v18549_v63 }
 0x46e   : > { %5656 = vmatmul.bf16.gmra.mxu2 %v18551_v9 }
 0x46f   : > { %5695 = vmatmul.bf16.gmra.mxu3 %v18553_v52  ;;  %5953 = vmatpush.bf16.msra.mxu1 %v16287_v48 }
 0x471   : > { %v5246_v49 = vpop.f32.mrf.mxu2  ;;  %v5182_v53 = vpop.f32.mrf.mxu0 }
 0x472   : > { %v5279_v45 = vpop.f32.mrf.mxu3  ;;  %v5247_v36 = vadd.f32 %v5246_v49, %v5214_v32  ;;  %v5215_v28 = vpop.f32.mrf.mxu1 }
 0x473   : > { %5954 = vmatpush.bf16.msra.mxu1 %v16286_v51  ;;  %v16516_v51 = vld [vmem:[%s20646_s1 + $0x3f0] sm:$0xff] }
 0x474   : > { %v18929_v3 = vadd.f32 %v5279_v45, %v5247_v36 }
 0x479   : > { %v5248_v59 = vpop.f32.mrf.mxu2  ;;  %v5184_v24 = vpop.f32.mrf.mxu0 }
 0x47a   : > { %v5281_v25 = vpop.f32.mrf.mxu3  ;;  %v5217_v23 = vpop.f32.mrf.mxu1  ;;  %v5185_v37 = vadd.f32 %v5184_v24, %v18814_v41  ;;  %v16294_v41 = vld [vmem:[%s20649_s4 + $0x180] sm:$0xff] }
 0x47b   : > { %5993 = vmatpush.bf16.msra.mxu2 %v16294_v41 }
 0x47c   : > { %v5218_v18 = vadd.f32 %v5217_v23, %v5185_v37  ;;  %5583 = vmatmul.bf16.gmra.mxu0 %v18594_v0 }
 0x47d   : > { %5622 = vmatmul.bf16.gmra.mxu1 %v18596_v61 }
 0x47e   : > { %5661 = vmatmul.bf16.gmra.mxu2 %v18598_v44 }
 0x47f   : > { %5700 = vmatmul.bf16.gmra.mxu3 %v18600_v56  ;;  %6657 = vmatpush.bf16.msrb.mxu2 %v16509_v11 }
 0x481   : > { %v5250_v60 = vpop.f32.mrf.mxu2  ;;  %v5186_v62 = vpop.f32.mrf.mxu0 }
 0x482   : > { %v5283_v38 = vpop.f32.mrf.mxu3  ;;  %v5251_v35 = vadd.f32 %v5250_v60, %v5218_v18  ;;  %v5219_v43 = vpop.f32.mrf.mxu1  ;;  %v16501_v18 = vld [vmem:[%s20646_s1 + $0x378] sm:$0xff] }
 0x483   : > { %6640 = vmatpush.bf16.msrb.mxu1 %v16501_v18 }
 0x484   : > { %v18948_v32 = vadd.f32 %v5283_v38, %v5251_v35  ;;  %v16508_v35 = vld [vmem:[%s20646_s1 + $0x3b0] sm:$0xff] }
 0x485   : > { %6658 = vmatpush.bf16.msrb.mxu2 %v16508_v35 }
 0x489   : > { %v5252_v49 = vpop.f32.mrf.mxu2  ;;  %v5188_v36 = vpop.f32.mrf.mxu0 }
 0x48a   : > { %v5285_v45 = vpop.f32.mrf.mxu3  ;;  %v5221_v53 = vpop.f32.mrf.mxu1  ;;  %v5189_v28 = vadd.f32 %v5188_v36, %v18841_v16  ;;  %v16517_v16 = vld [vmem:[%s20646_s1 + $0x3f8] sm:$0xff] }
 0x48b   : > { %6674 = vmatpush.bf16.msrb.mxu3 %v16517_v16 }
 0x48c   : > { %v5222_v33 = vadd.f32 %v5221_v53, %v5189_v28  ;;  %5588 = vmatmul.bf16.gmra.mxu0 %v18632_v39  ;;  %v16515_v28 = vld [vmem:[%s20646_s1 + $0x3e8] sm:$0xff] }
 0x48d   : > { %5627 = vmatmul.bf16.gmra.mxu1 %v18634_v50 }
 0x48e   : > { %5666 = vmatmul.bf16.gmra.mxu2 %v18639_v29 }
 0x48f   : > { %5705 = vmatmul.bf16.gmra.mxu3 %v18641_v5 }
 0x490   : > { %6675 = vmatpush.bf16.msrb.mxu3 %v16516_v51  ;;  %v16505_v51 = vld [vmem:[%s20646_s1 + $0x398] sm:$0xff] }
 0x491   : > { %v5254_v59 = vpop.f32.mrf.mxu2  ;;  %v5190_v24 = vpop.f32.mrf.mxu0 }
 0x492   : > { %v5287_v25 = vpop.f32.mrf.mxu3  ;;  %v5255_v48 = vadd.f32 %v5254_v59, %v5222_v33  ;;  %v5223_v23 = vpop.f32.mrf.mxu1 }
 0x494   : > { %v18976_v37 = vadd.f32 %v5287_v25, %v5255_v48  ;;  %6676 = vmatpush.bf16.msrb.mxu3 %v16515_v28 }
 0x499   : > { %v5256_v60 = vpop.f32.mrf.mxu2  ;;  %v5192_v62 = vpop.f32.mrf.mxu0 }
 0x49a   : > { %v5289_v38 = vpop.f32.mrf.mxu3  ;;  %v5225_v43 = vpop.f32.mrf.mxu1  ;;  %v5193_v41 = vadd.f32 %v5192_v62, %v18862_v21  ;;  %v16500_v21 = vld [vmem:[%s20646_s1 + $0x370] sm:$0xff] }
 0x49b   : > { %6641 = vmatpush.bf16.msrb.mxu1 %v16500_v21  ;;  %v16489_v21 = vld [vmem:[%s20646_s1 + $0x318] sm:$0xff] }
 0x49c   : > { %v5226_v8 = vadd.f32 %v5225_v43, %v5193_v41  ;;  %5593 = vmatmul.bf16.gmra.mxu0 %v18673_v4 }
 0x49d   : > { %5632 = vmatmul.bf16.gmra.mxu1 %v18675_v6 }
 0x49e   : > { %5671 = vmatmul.bf16.gmra.mxu2 %v18677_v46  ;;  %v16507_v46 = vld [vmem:[%s20646_s1 + $0x3a8] sm:$0xff] }
 0x49f   : > { %5710 = vmatmul.bf16.gmra.mxu3 %v18679_v47  ;;  %v16491_v47 = vld [vmem:[%s20646_s1 + $0x328] sm:$0xff]  ;;  %6659 = vmatpush.bf16.msrb.mxu2 %v16507_v46 }
 0x4a0   : > { %6625 = vmatpush.bf16.msrb.mxu0 %v16491_v47  ;;  %6642 = vmatpush.bf16.msrb.mxu1 %v16499_v31  ;;  %v16512_v31 = vld [vmem:[%s20646_s1 + $0x3d0] sm:$0xff] }
 0x4a1   : > { %v5258_v4 = vpop.f32.mrf.mxu2  ;;  %v5194_v45 = vpop.f32.mrf.mxu0 }
 0x4a2   : > { %v5291_v6 = vpop.f32.mrf.mxu3  ;;  %v5259_v49 = vadd.f32 %v5258_v4, %v5226_v8  ;;  %v5227_v36 = vpop.f32.mrf.mxu1 }
 0x4a4   : > { %v18998_v53 = vadd.f32 %v5291_v6, %v5259_v49  ;;  %v16497_v49 = vld [vmem:[%s20646_s1 + $0x358] sm:$0xff] }
 0x4a9   : > { %v5260_v33 = vpop.f32.mrf.mxu2  ;;  %v5196_v16 = vpop.f32.mrf.mxu0 }
 0x4aa   : > { %v5293_v11 = vpop.f32.mrf.mxu3  ;;  %v5229_v59 = vpop.f32.mrf.mxu1  ;;  %v5197_v25 = vadd.f32 %v5196_v16, %v18880_v34  ;;  %v16506_v34 = vld [vmem:[%s20646_s1 + $0x3a0] sm:$0xff]  ;;  %v16504_v33 = vld [vmem:[%s20646_s1 + $0x390] sm:$0xff] }
 0x4ab   : > { %6660 = vmatpush.bf16.msrb.mxu2 %v16506_v34  ;;  %v16488_v11 = vld [vmem:[%s20646_s1 + $0x310] sm:$0xff] }
 0x4ac   : > { %v5230_v48 = vadd.f32 %v5229_v59, %v5197_v25  ;;  %5916 = vmatmul.bf16.vlgmr.msra.gmra.mxu0 %v18720_v54  ;;  %v16490_v54 = vld [vmem:[%s20646_s1 + $0x320] sm:$0xff]  ;;  %v16496_v16 = vld [vmem:[%s20646_s1 + $0x350] sm:$0xff] }
 0x4ad   : > { %5955 = vmatmul.bf16.vlgmr.msra.gmra.mxu1 %v18722_v14  ;;  %v16514_v14 = vld [vmem:[%s20646_s1 + $0x3e0] sm:$0xff]  ;;  %6626 = vmatpush.bf16.msrb.mxu0 %v16490_v54 }
 0x4ae   : > { %5994 = vmatmul.bf16.vlgmr.msra.gmra.mxu2 %v18724_v15  ;;  %v16498_v15 = vld [vmem:[%s20646_s1 + $0x360] sm:$0xff]  ;;  %6677 = vmatpush.bf16.msrb.mxu3 %v16514_v14 }
 0x4af   : > { %6033 = vmatmul.bf16.vlgmr.msra.gmra.mxu3 %v18726_v2  ;;  %6643 = vmatpush.bf16.msrb.mxu1 %v16498_v15 }
 0x4b0   : > { %6661 = vmatpush.bf16.msrb.mxu2 %v16505_v51 }
 0x4b1   : > { %v5262_v24 = vpop.f32.mrf.mxu2  ;;  %v5198_v60 = vpop.f32.mrf.mxu0  ;;  %6627 = vmatpush.bf16.msrb.mxu0 %v16489_v21 }
 0x4b2   : > { %v5295_v23 = vpop.f32.mrf.mxu3  ;;  %v5263_v18 = vadd.f32 %v5262_v24, %v5230_v48  ;;  %v5231_v38 = vpop.f32.mrf.mxu1 }
 0x4b3   : > { %6644 = vmatpush.bf16.msrb.mxu1 %v16497_v49 }
 0x4b4   : > { %v19017_v35 = vadd.f32 %v5295_v23, %v5263_v18  ;;  %6662 = vmatpush.bf16.msrb.mxu2 %v16504_v33  ;;  %v16404_v33 = vld [vmem:[%s20646_s1 + $0x70] sm:$0xff] }
 0x4b5   : > { %6628 = vmatpush.bf16.msrb.mxu0 %v16488_v11 }
 0x4b7   : > { %6645 = vmatpush.bf16.msrb.mxu1 %v16496_v16 }
 0x4b9   : > { %v5264_v2 = vpop.f32.mrf.mxu2  ;;  %v5200_v43 = vpop.f32.mrf.mxu0 }
 0x4ba   : > { %v5297_v62 = vpop.f32.mrf.mxu3  ;;  %v5233_v41 = vpop.f32.mrf.mxu1  ;;  %v5201_v8 = vadd.f32 %v5200_v43, %v18907_v26  ;;  %v16513_v26 = vld [vmem:[%s20646_s1 + $0x3d8] sm:$0xff] }
 0x4bb   : > { %6678 = vmatpush.bf16.msrb.mxu3 %v16513_v26  ;;  %v16495_v62 = vld [vmem:[%s20646_s1 + $0x348] sm:$0xff] }
 0x4bc   : > { %v5234_v7 = vadd.f32 %v5233_v41, %v5201_v8  ;;  %5921 = vmatmul.bf16.gmra.mxu0 %v18468_v1  ;;  %6646 = vmatpush.bf16.msrb.mxu1 %v16495_v62 }
 0x4bd   : > { %5960 = vmatmul.bf16.gmra.mxu1 %v18470_v10 }
 0x4be   : > { %5999 = vmatmul.bf16.gmra.mxu2 %v18472_v19 }
 0x4bf   : > { %6038 = vmatmul.bf16.gmra.mxu3 %v18474_v20 }
 0x4c0   : > { %6679 = vmatpush.bf16.msrb.mxu3 %v16512_v31 }
 0x4c1   : > { %v5266_v1 = vpop.f32.mrf.mxu2  ;;  %v5202_v4 = vpop.f32.mrf.mxu0 }
 0x4c2   : > { %v5299_v10 = vpop.f32.mrf.mxu3  ;;  %v5267_v19 = vadd.f32 %v5266_v1, %v5234_v7  ;;  %v5235_v20 = vpop.f32.mrf.mxu1  ;;  %v16502_v1 = vld [vmem:[%s20646_s1 + $0x380] sm:$0xff] }
 0x4c4   : > { %v19045_v6 = vadd.f32 %v5299_v10, %v5267_v19 }
 0x4c9   : > { %v5268_v45 = vpop.f32.mrf.mxu2  ;;  %v5569_v46 = vpop.f32.mrf.mxu0 }
 0x4ca   : > { %v5301_v36 = vpop.f32.mrf.mxu3  ;;  %v5608_v47 = vpop.f32.mrf.mxu1 }
 0x4cb   : > { %v5609_v28 = vadd.f32 %v5608_v47, %v5569_v46  ;;  %v16413_v36 = vld [vmem:[%s20646_s1 + $0xb8] sm:$0xff] }
 0x4cc   : > { %5926 = vmatmul.bf16.gmra.mxu0 %v18506_v27  ;;  %v16397_v46 = vld [vmem:[%s20646_s1 + $0x38] sm:$0xff] }
 0x4cd   : > { %5965 = vmatmul.bf16.gmra.mxu1 %v18508_v17  ;;  %v16503_v17 = vld [vmem:[%s20646_s1 + $0x388] sm:$0xff]  ;;  %v16405_v47 = vld [vmem:[%s20646_s1 + $0x78] sm:$0xff] }
 0x4ce   : > { %6004 = vmatmul.bf16.gmra.mxu2 %v18513_v12  ;;  %v16487_v12 = vld [vmem:[%s20646_s1 + $0x308] sm:$0xff] }
 0x4cf   : > { %6043 = vmatmul.bf16.gmra.mxu3 %v18515_v40  ;;  %v16511_v40 = vld [vmem:[%s20646_s1 + $0x3c8] sm:$0xff]  ;;  %6663 = vmatpush.bf16.msrb.mxu2 %v16503_v17 }
 0x4d0   : > { %6629 = vmatpush.bf16.msrb.mxu0 %v16487_v12  ;;  %6680 = vmatpush.bf16.msrb.mxu3 %v16511_v40  ;;  %v16419_v17 = vld [vmem:[%s20646_s1 + $0xe8] sm:$0xff] }
 0x4d1   : > { %v5647_v59 = vpop.f32.mrf.mxu2  ;;  %v5571_v24 = vpop.f32.mrf.mxu0 }
 0x4d2   : > { %v5686_v25 = vpop.f32.mrf.mxu3  ;;  %v5648_v48 = vadd.f32 %v5647_v59, %v5609_v28  ;;  %v5610_v23 = vpop.f32.mrf.mxu1  ;;  %v16420_v59 = vld [vmem:[%s20646_s1 + $0xf0] sm:$0xff] }
 0x4d3   : > { %v5611_v27 = vadd.f32 %v5610_v23, %v5571_v24  ;;  %6664 = vmatpush.bf16.msrb.mxu2 %v16502_v1  ;;  %v16411_v24 = vld [vmem:[%s20646_s1 + $0xa8] sm:$0xff]  ;;  %v16400_v1 = vld [vmem:[%s20646_s1 + $0x50] sm:$0xff] }
 0x4d4   : > { %v19066_v18 = vadd.f32 %v5686_v25, %v5648_v48  ;;  %v16395_v23 = vld [vmem:[%s20646_s1 + $0x28] sm:$0xff] }
 0x4d7   : > { %6937 = vmatpush.bf16.msra.mxu2 %v16413_v36  ;;  %v13595_v36 = vld [vmem:[%s17006_s10 + $0xe0] sm:$0xf] }
 0x4d9   : > { %v5649_v60 = vpop.f32.mrf.mxu2  ;;  %v5574_v54 = vpop.f32.mrf.mxu0 }
 0x4da   : > { %v5688_v38 = vpop.f32.mrf.mxu3  ;;  %v5650_v34 = vadd.f32 %v5649_v60, %v5611_v27  ;;  %v5613_v14 = vpop.f32.mrf.mxu1  ;;  %v16403_v27 = vld [vmem:[%s20646_s1 + $0x68] sm:$0xff]  ;;  %v16410_v60 = vld [vmem:[%s20646_s1 + $0xa0] sm:$0xff] }
 0x4db   : > { %v5614_v15 = vadd.f32 %v5613_v14, %v5574_v54 }
 0x4dc   : > { %v19077_v2 = vadd.f32 %v5688_v38, %v5650_v34  ;;  %5931 = vmatmul.bf16.gmra.mxu0 %v18547_v58  ;;  %v16486_v58 = vld [vmem:[%s20646_s1 + $0x300] sm:$0xff] }
 0x4dd   : > { %5970 = vmatmul.bf16.gmra.mxu1 %v18549_v63  ;;  %v16510_v63 = vld [vmem:[%s20646_s1 + $0x3c0] sm:$0xff]  ;;  %6630 = vmatpush.bf16.msrb.mxu0 %v16486_v58 }
 0x4de   : > { %6009 = vmatmul.bf16.gmra.mxu2 %v18551_v9  ;;  %v16494_v9 = vld [vmem:[%s20646_s1 + $0x340] sm:$0xff]  ;;  %6681 = vmatpush.bf16.msrb.mxu3 %v16510_v63 }
 0x4df   : > { %6048 = vmatmul.bf16.gmra.mxu3 %v18553_v52  ;;  %6647 = vmatpush.bf16.msrb.mxu1 %v16494_v9  ;;  %v16394_v38 = vld [vmem:[%s20646_s1 + $0x20] sm:$0xff] }
 0x4e0   : > { %v16402_v34 = vld [vmem:[%s20646_s1 + $0x60] sm:$0xff] }
 0x4e1   : > { %v5652_v43 = vpop.f32.mrf.mxu2  ;;  %v5576_v7 = vpop.f32.mrf.mxu0  ;;  %6903 = vmatpush.bf16.msra.mxu0 %v16397_v46  ;;  %v16380_v46 = vld [vmem:[%s17006_s10 + $0xec] sm:$0xf0] }
 0x4e2   : > { %v5691_v41 = vpop.f32.mrf.mxu3  ;;  %v5653_v8 = vadd.f32 %v5652_v43, %v5614_v15  ;;  %v5615_v51 = vpop.f32.mrf.mxu1  ;;  %v16418_v43 = vld [vmem:[%s20646_s1 + $0xe0] sm:$0xff] }
 0x4e3   : > { %v5616_v21 = vadd.f32 %v5615_v51, %v5576_v7  ;;  %6920 = vmatpush.bf16.msra.mxu1 %v16405_v47  ;;  %v16393_v7 = vld [vmem:[%s20646_s1 + $0x18] sm:$0xff]  ;;  %v16378_v47 = vld [vmem:[%s17006_s10 + $0xe4] sm:$0xf] }
 0x4e4   : > { %v19086_v26 = vadd.f32 %v5691_v41, %v5653_v8  ;;  %v16409_v8 = vld [vmem:[%s20646_s1 + $0x98] sm:$0xff] }
 0x4e5   : > { %v16401_v51 = vld [vmem:[%s20646_s1 + $0x58] sm:$0xff] }
 0x4e7   : > { %6921 = vmatpush.bf16.msra.mxu1 %v16404_v33  ;;  %v16415_v33 = vld [vmem:[%s20646_s1 + $0xc8] sm:$0xff] }
 0x4e9   : > { %v5654_v52 = vpop.f32.mrf.mxu2  ;;  %v5579_v4 = vpop.f32.mrf.mxu0 }
 0x4ea   : > { %v5693_v10 = vpop.f32.mrf.mxu3  ;;  %v5655_v19 = vadd.f32 %v5654_v52, %v5616_v21  ;;  %v5618_v20 = vpop.f32.mrf.mxu1  ;;  %v16392_v21 = vld [vmem:[%s20646_s1 + $0x10] sm:$0xff] }
 0x4eb   : > { %v5619_v49 = vadd.f32 %v5618_v20, %v5579_v4  ;;  %6922 = vmatpush.bf16.msra.mxu1 %v16403_v27  ;;  %v16407_v4 = vld [vmem:[%s20646_s1 + $0x88] sm:$0xff] }
 0x4ec   : > { %v19100_v45 = vadd.f32 %v5693_v10, %v5655_v19  ;;  %5936 = vmatmul.bf16.gmra.mxu0 %v18594_v0  ;;  %v16421_v0 = vld [vmem:[%s20646_s1 + $0xf8] sm:$0xff]  ;;  %v16416_v10 = vld [vmem:[%s20646_s1 + $0xd0] sm:$0xff]  ;;  %v16391_v20 = vld [vmem:[%s20646_s1 + $0x8] sm:$0xff] }
 0x4ed   : > { %5975 = vmatmul.bf16.gmra.mxu1 %v18596_v61  ;;  %6954 = vmatpush.bf16.msra.mxu3 %v16421_v0  ;;  %v13597_v0 = vld [vmem:[%s17006_s10 + $0xf0] sm:$0xf0] }
 0x4ee   : > { %6014 = vmatmul.bf16.gmra.mxu2 %v18598_v44  ;;  %v16412_v44 = vld [vmem:[%s20646_s1 + $0xb0] sm:$0xff] }
 0x4ef   : > { %6053 = vmatmul.bf16.gmra.mxu3 %v18600_v56  ;;  %v16396_v56 = vld [vmem:[%s20646_s1 + $0x30] sm:$0xff]  ;;  %6938 = vmatpush.bf16.msra.mxu2 %v16412_v44  ;;  %v16379_v44 = vld [vmem:[%s17006_s10 + $0xec] sm:$0xf] }
 0x4f0   : > { %6904 = vmatpush.bf16.msra.mxu0 %v16396_v56  ;;  %6923 = vmatpush.bf16.msra.mxu1 %v16402_v34  ;;  %v13605_v56 = vld [vmem:[%s17006_s10 + $0xf8] sm:$0xf0]  ;;  %v16414_v34 = vld [vmem:[%s20646_s1 + $0xc0] sm:$0xff] }
 0x4f1   : > { %v5657_v61 = vpop.f32.mrf.mxu2  ;;  %v5581_v31 = vpop.f32.mrf.mxu0  ;;  %6955 = vmatpush.bf16.msra.mxu3 %v16420_v59  ;;  %v19210_v59 = vor.u32 %v16378_v47, %v13597_v0  ;;  %v16547_v47 = vld [vmem:[%s20646_s1 + $0x4e8] sm:$0xff]  ;;  %v16385_v0 = vld [vmem:[%s17006_s10 + $0x114] sm:$0xf0] }
 0x4f2   : > { %v5696_v28 = vpop.f32.mrf.mxu3  ;;  %v5658_v11 = vadd.f32 %v5657_v61, %v5619_v49  ;;  %v5620_v16 = vpop.f32.mrf.mxu1  ;;  %v16399_v49 = vld [vmem:[%s20646_s1 + $0x48] sm:$0xff] }
 0x4f3   : > { %v5621_v25 = vadd.f32 %v5620_v16, %v5581_v31  ;;  %6939 = vmatpush.bf16.msra.mxu2 %v16411_v24  ;;  %v13603_v61 = vld [vmem:[%s17006_s10 + $0xe8] sm:$0xf]  ;;  %v19208_v16 = vor.u32 %v16380_v46, %v13595_v36  ;;  %v16390_v24 = vld [vmem:[%s20646_s1] sm:$0xff]  ;;  %v13613_v36 = vld [vmem:[%s17006_s10 + $0x110] sm:$0xf0] }
 0x4f4   : > { %v19130_v48 = vadd.f32 %v5696_v28, %v5658_v11  ;;  %6905 = vmatpush.bf16.msra.mxu0 %v16395_v23  ;;  %6924 = vmatpush.bf16.msra.mxu1 %v16401_v51  ;;  %v16381_v28 = vld [vmem:[%s17006_s10 + $0xf4] sm:$0xf0]  ;;  %v16398_v23 = vld [vmem:[%s20646_s1 + $0x40] sm:$0xff]  ;;  %v16540_v51 = vld [vmem:[%s20646_s1 + $0x4b0] sm:$0xff] }
 0x4f5   : > { %6956 = vmatpush.bf16.msra.mxu3 %v16419_v17  ;;  %v13619_v46 = vld [vmem:[%s17006_s10 + $0x108] sm:$0xf] }
 0x4f7   : > { %6940 = vmatpush.bf16.msra.mxu2 %v16410_v60  ;;  %v19223_v60 = vor.u32 %v16379_v44, %v13605_v56 }
 0x4f8   : > { %6906 = vmatpush.bf16.msra.mxu0 %v16394_v38  ;;  %6925 = vmatpush.bf16.msra.mxu1 %v16400_v1  ;;  %v16548_v1 = vld [vmem:[%s20646_s1 + $0x4f0] sm:$0xff] }
 0x4f9   : > { %v5659_v12 = vpop.f32.mrf.mxu2  ;;  %v5584_v14 = vpop.f32.mrf.mxu0  ;;  %6957 = vmatpush.bf16.msra.mxu3 %v16418_v43  ;;  %v16549_v43 = vld [vmem:[%s20646_s1 + $0x4f8] sm:$0xff] }
 0x4fa   : > { %v5698_v40 = vpop.f32.mrf.mxu3  ;;  %v5660_v54 = vadd.f32 %v5659_v12, %v5621_v25  ;;  %v5623_v15 = vpop.f32.mrf.mxu1  ;;  %v16406_v25 = vld [vmem:[%s20646_s1 + $0x80] sm:$0xff] }
 0x4fb   : > { %v5624_v62 = vadd.f32 %v5623_v15, %v5584_v14  ;;  %6941 = vmatpush.bf16.msra.mxu2 %v16409_v8  ;;  %v16541_v14 = vld [vmem:[%s20646_s1 + $0x4b8] sm:$0xff] }
 0x4fc   : > { %v19156_v41 = vadd.f32 %v5698_v40, %v5660_v54  ;;  %5941 = vmatmul.bf16.gmra.mxu0 %v18632_v39  ;;  %v16417_v39 = vld [vmem:[%s20646_s1 + $0xd8] sm:$0xff]  ;;  %6926 = vmatpush.bf16.msra.mxu1 %v16399_v49  ;;  %v19221_v40 = vor.u32 %v16381_v28, %v13603_v61  ;;  %v16531_v49 = vld [vmem:[%s20646_s1 + $0x468] sm:$0xff] }
 0x4fd   : > { %5980 = vmatmul.bf16.gmra.mxu1 %v18634_v50  ;;  %6907 = vmatpush.bf16.msra.mxu0 %v16393_v7  ;;  %v16525_v15 = vld [vmem:[%s20646_s1 + $0x438] sm:$0xff]  ;;  %v16383_v61 = vld [vmem:[%s17006_s10 + $0x10c] sm:$0xf] }
 0x4fe   : > { %6019 = vmatmul.bf16.gmra.mxu2 %v18639_v29  ;;  %6958 = vmatpush.bf16.msra.mxu3 %v16417_v39  ;;  %v16524_v39 = vld [vmem:[%s20646_s1 + $0x430] sm:$0xff]  ;;  %v13621_v28 = vld [vmem:[%s17006_s10 + $0x118] sm:$0xf0] }
 0x4ff   : > { %6058 = vmatmul.bf16.gmra.mxu3 %v18641_v5  ;;  %v16408_v5 = vld [vmem:[%s20646_s1 + $0x90] sm:$0xff] }
 0x500   : > { %6942 = vmatpush.bf16.msra.mxu2 %v16408_v5  ;;  %6927 = vmatpush.bf16.msra.mxu1 %v16398_v23 }
 0x501   : > { %v5662_v50 = vpop.f32.mrf.mxu2  ;;  %v5586_v63 = vpop.f32.mrf.mxu0  ;;  %6908 = vmatpush.bf16.msra.mxu0 %v16392_v21 }
 0x502   : > { %v5701_v29 = vpop.f32.mrf.mxu3  ;;  %v5663_v58 = vadd.f32 %v5662_v50, %v5624_v62  ;;  %v5625_v9 = vpop.f32.mrf.mxu1  ;;  %6959 = vmatpush.bf16.msra.mxu3 %v16416_v10  ;;  %v16533_v62 = vld [vmem:[%s20646_s1 + $0x478] sm:$0xff]  ;;  %v16532_v50 = vld [vmem:[%s20646_s1 + $0x470] sm:$0xff]  ;;  %v16382_v10 = vld [vmem:[%s17006_s10 + $0x104] sm:$0xf] }
 0x503   : > { %v5626_v52 = vadd.f32 %v5625_v9, %v5586_v63  ;;  %v13611_v9 = vld [vmem:[%s17006_s10 + $0x100] sm:$0xf] }
 0x504   : > { %v19186_v19 = vadd.f32 %v5701_v29, %v5663_v58  ;;  %6943 = vmatpush.bf16.msra.mxu2 %v16407_v4  ;;  %v16539_v4 = vld [vmem:[%s20646_s1 + $0x4a8] sm:$0xff] }
 0x505   : > { %6909 = vmatpush.bf16.msra.mxu0 %v16391_v20  ;;  %v16523_v20 = vld [vmem:[%s20646_s1 + $0x428] sm:$0xff] }
 0x506   : > { %6960 = vmatpush.bf16.msra.mxu3 %v16415_v33 }
 0x508   : > { %6944 = vmatpush.bf16.msra.mxu2 %v16406_v25  ;;  %v16522_v25 = vld [vmem:[%s20646_s1 + $0x420] sm:$0xff] }
 0x509   : > { %v5664_v11 = vpop.f32.mrf.mxu2  ;;  %v5589_v17 = vpop.f32.mrf.mxu0  ;;  %6910 = vmatpush.bf16.msra.mxu0 %v16390_v24  ;;  %v16530_v24 = vld [vmem:[%s20646_s1 + $0x460] sm:$0xff] }
 0x50a   : > { %v5703_v31 = vpop.f32.mrf.mxu3  ;;  %v5665_v27 = vadd.f32 %v5664_v11, %v5626_v52  ;;  %v5628_v12 = vpop.f32.mrf.mxu1  ;;  %6961 = vmatpush.bf16.msra.mxu3 %v16414_v34  ;;  %v16384_v52 = vld [vmem:[%s17006_s10 + $0x10c] sm:$0xf0]  ;;  %v19282_v11 = vor.u32 %v16382_v10, %v13613_v36  ;;  %v16535_v36 = vld [vmem:[%s20646_s1 + $0x488] sm:$0xff] }
 0x50b   : > { %v5629_v38 = vadd.f32 %v5628_v12, %v5589_v17  ;;  %v19280_v33 = vor.u32 %v16384_v52, %v13611_v9  ;;  %v19293_v12 = vor.u32 %v16385_v0, %v13619_v46  ;;  %v16544_v52 = vld [vmem:[%s20646_s1 + $0x4d0] sm:$0xff]  ;;  %v16519_v46 = vld [vmem:[%s20646_s1 + $0x408] sm:$0xff] }
 0x50c   : > { %v19228_v54 = vadd.f32 %v5703_v31, %v5665_v27  ;;  %6631 = vmatmul.bf16.vlgmr.msrb.gmra.mxu0 %v19208_v16  ;;  %v16538_v31 = vld [vmem:[%s20646_s1 + $0x4a0] sm:$0xff]  ;;  %v13757_v0 = vld [vmem:[%s17006_s10 + $0xd0] sm:$0xf0] }
 0x50d   : > { %6648 = vmatmul.bf16.vlgmr.msrb.gmra.mxu1 %v19210_v59  ;;  %7227 = vmatpush.bf16.msrb.mxu0 %v16525_v15 }
 0x50e   : > { %6665 = vmatmul.bf16.vlgmr.msrb.gmra.mxu2 %v19221_v40  ;;  %7246 = vmatpush.bf16.msrb.mxu1 %v16533_v62  ;;  %v16537_v62 = vld [vmem:[%s20646_s1 + $0x498] sm:$0xff] }
 0x50f   : > { %6682 = vmatmul.bf16.vlgmr.msrb.gmra.mxu3 %v19223_v60  ;;  %7265 = vmatpush.bf16.msrb.mxu2 %v16541_v14  ;;  %v16546_v14 = vld [vmem:[%s20646_s1 + $0x4e0] sm:$0xff] }
 0x510   : > { %7284 = vmatpush.bf16.msrb.mxu3 %v16549_v43  ;;  %v16521_v43 = vld [vmem:[%s20646_s1 + $0x418] sm:$0xff] }
 0x511   : > { %v5667_v8 = vpop.f32.mrf.mxu2  ;;  %v5591_v5 = vpop.f32.mrf.mxu0  ;;  %7228 = vmatpush.bf16.msrb.mxu0 %v16524_v39 }
 0x512   : > { %v5706_v7 = vpop.f32.mrf.mxu3  ;;  %v5668_v29 = vadd.f32 %v5667_v8, %v5629_v38  ;;  %v5630_v21 = vpop.f32.mrf.mxu1  ;;  %7247 = vmatpush.bf16.msrb.mxu1 %v16532_v50  ;;  %v19295_v38 = vor.u32 %v16383_v61, %v13621_v28  ;;  %v16529_v8 = vld [vmem:[%s20646_s1 + $0x458] sm:$0xff]  ;;  %v16536_v50 = vld [vmem:[%s20646_s1 + $0x490] sm:$0xff]  ;;  %v13763_v61 = vld [vmem:[%s17006_s10 + $0xc8] sm:$0xf] }
 0x513   : > { %v5631_v58 = vadd.f32 %v5630_v21, %v5591_v5  ;;  %7266 = vmatpush.bf16.msrb.mxu2 %v16540_v51  ;;  %v16528_v5 = vld [vmem:[%s20646_s1 + $0x450] sm:$0xff]  ;;  %v16377_v28 = vld [vmem:[%s17006_s10 + $0xd4] sm:$0xf0] }
 0x514   : > { %v19258_v63 = vadd.f32 %v5706_v7, %v5668_v29  ;;  %7285 = vmatpush.bf16.msrb.mxu3 %v16548_v1  ;;  %v16545_v7 = vld [vmem:[%s20646_s1 + $0x4d8] sm:$0xff]  ;;  %v16520_v29 = vld [vmem:[%s20646_s1 + $0x410] sm:$0xff] }
 0x515   : > { %7229 = vmatpush.bf16.msrb.mxu0 %v16523_v20  ;;  %v16376_v20 = vld [vmem:[%s17006_s10 + $0xcc] sm:$0xf0] }
 0x516   : > { %7248 = vmatpush.bf16.msrb.mxu1 %v16531_v49  ;;  %v16374_v49 = vld [vmem:[%s17006_s10 + $0xc4] sm:$0xf] }
 0x517   : > { %7267 = vmatpush.bf16.msrb.mxu2 %v16539_v4  ;;  %v13755_v4 = vld [vmem:[%s17006_s10 + $0xc0] sm:$0xf] }
 0x518   : > { %7286 = vmatpush.bf16.msrb.mxu3 %v16547_v47  ;;  %v16527_v47 = vld [vmem:[%s20646_s1 + $0x448] sm:$0xff] }
 0x519   : > { %v5669_v44 = vpop.f32.mrf.mxu2  ;;  %v5594_v27 = vpop.f32.mrf.mxu0  ;;  %7230 = vmatpush.bf16.msrb.mxu0 %v16522_v25 }
 0x51a   : > { %v5708_v56 = vpop.f32.mrf.mxu3  ;;  %v5670_v23 = vadd.f32 %v5669_v44, %v5631_v58  ;;  %v5633_v17 = vpop.f32.mrf.mxu1  ;;  %7249 = vmatpush.bf16.msrb.mxu1 %v16530_v24  ;;  %v16375_v44 = vld [vmem:[%s17006_s10 + $0xcc] sm:$0xf] }
 0x51b   : > { %v5634_v34 = vadd.f32 %v5633_v17, %v5594_v27  ;;  %7268 = vmatpush.bf16.msrb.mxu2 %v16538_v31  ;;  %v16543_v31 = vld [vmem:[%s20646_s1 + $0x4c8] sm:$0xff]  ;;  %v19354_v27 = vor.u32 %v16374_v49, %v13757_v0  ;;  %v16534_v17 = vld [vmem:[%s20646_s1 + $0x480] sm:$0xff]  ;;  %v16436_v49 = vld [vmem:[%s20646_s1 + $0x170] sm:$0xff] }
 0x51c   : > { %v19300_v15 = vadd.f32 %v5708_v56, %v5670_v23  ;;  %6635 = vmatmul.bf16.gmra.mxu0 %v19280_v33  ;;  %7287 = vmatpush.bf16.msrb.mxu3 %v16546_v14  ;;  %v13765_v56 = vld [vmem:[%s17006_s10 + $0xd8] sm:$0xf0]  ;;  %v19352_v23 = vor.u32 %v16376_v20, %v13755_v4  ;;  %v16526_v14 = vld [vmem:[%s20646_s1 + $0x440] sm:$0xff]  ;;  %v16444_v4 = vld [vmem:[%s20646_s1 + $0x1b0] sm:$0xff] }
 0x51d   : > { %6652 = vmatmul.bf16.gmra.mxu1 %v19282_v11  ;;  %7231 = vmatpush.bf16.msrb.mxu0 %v16521_v43  ;;  %v16428_v20 = vld [vmem:[%s20646_s1 + $0x130] sm:$0xff] }
 0x51e   : > { %6669 = vmatmul.bf16.gmra.mxu2 %v19293_v12  ;;  %7250 = vmatpush.bf16.msrb.mxu1 %v16529_v8 }
 0x51f   : > { %6686 = vmatmul.bf16.gmra.mxu3 %v19295_v38  ;;  %7269 = vmatpush.bf16.msrb.mxu2 %v16537_v62 }
 0x520   : > { %7288 = vmatpush.bf16.msrb.mxu3 %v16545_v7  ;;  %v19365_v7 = vor.u32 %v16377_v28, %v13763_v61  ;;  %v16443_v61 = vld [vmem:[%s20646_s1 + $0x1a8] sm:$0xff] }
 0x521   : > { %v5672_v51 = vpop.f32.mrf.mxu2  ;;  %v5596_v1 = vpop.f32.mrf.mxu0  ;;  %7232 = vmatpush.bf16.msrb.mxu0 %v16520_v29  ;;  %v16445_v29 = vld [vmem:[%s20646_s1 + $0x1b8] sm:$0xff]  ;;  %v16427_v28 = vld [vmem:[%s20646_s1 + $0x128] sm:$0xff] }
 0x522   : > { %v5711_v39 = vpop.f32.mrf.mxu3  ;;  %v5673_v21 = vadd.f32 %v5672_v51, %v5634_v34  ;;  %v5635_v58 = vpop.f32.mrf.mxu1  ;;  %7251 = vmatpush.bf16.msrb.mxu1 %v16528_v5  ;;  %v16518_v34 = vld [vmem:[%s20646_s1 + $0x400] sm:$0xff]  ;;  %v19367_v51 = vor.u32 %v16375_v44, %v13765_v56  ;;  %v16429_v5 = vld [vmem:[%s20646_s1 + $0x138] sm:$0xff]  ;;  %v16435_v44 = vld [vmem:[%s20646_s1 + $0x168] sm:$0xff] }
 0x523   : > { %v5636_v9 = vadd.f32 %v5635_v58, %v5596_v1  ;;  %7270 = vmatpush.bf16.msrb.mxu2 %v16536_v50  ;;  %v16453_v1 = vld [vmem:[%s20646_s1 + $0x1f8] sm:$0xff]  ;;  %v19416_v56 = vld [vmem:[%s20647_s2] ss:$0 sm:$0xff] }
 0x524   : > { %v19330_v10 = vadd.f32 %v5711_v39, %v5673_v21  ;;  %7289 = vmatpush.bf16.msrb.mxu3 %v16544_v52  ;;  %v16542_v39 = vld [vmem:[%s20646_s1 + $0x4c0] sm:$0xff]  ;;  %v16437_v21 = vld [vmem:[%s20646_s1 + $0x178] sm:$0xff] }
 0x525   : > { %7233 = vmatpush.bf16.msrb.mxu0 %v16519_v46 }
 0x526   : > { %7252 = vmatpush.bf16.msrb.mxu1 %v16527_v47 }
 0x527   : > { %7271 = vmatpush.bf16.msrb.mxu2 %v16535_v36 }
 0x528   : > { %7290 = vmatpush.bf16.msrb.mxu3 %v16543_v31  ;;  %v16451_v31 = vld [vmem:[%s20646_s1 + $0x1e8] sm:$0xff] }
 0x529   : > { %v5674_v25 = vpop.f32.mrf.mxu2  ;;  %v5917_v43 = vpop.f32.mrf.mxu0  ;;  %7234 = vmatpush.bf16.msrb.mxu0 %v16518_v34  ;;  %v16442_v34 = vld [vmem:[%s20646_s1 + $0x1a0] sm:$0xff] }
 0x52a   : > { %v5713_v24 = vpop.f32.mrf.mxu3  ;;  %v5675_v62 = vadd.f32 %v5674_v25, %v5636_v9  ;;  %v5956_v8 = vpop.f32.mrf.mxu1  ;;  %7253 = vmatpush.bf16.msrb.mxu1 %v16526_v14  ;;  %v5918_v58 = vadd.f32 %v5917_v43, %v19066_v18  ;;  %v16452_v18 = vld [vmem:[%s20646_s1 + $0x1f0] sm:$0xff]  ;;  %v16426_v14 = vld [vmem:[%s20646_s1 + $0x120] sm:$0xff]  ;;  %v4269_v43 = vadd.f32 %v19416_v56, %v18609_v57  ;;  %v16441_v57 = vld [vmem:[%s20646_s1 + $0x198] sm:$0xff] }
 0x52b   : > { %7272 = vmatpush.bf16.msrb.mxu2 %v16534_v17 }
 0x52c   : > { %v19372_v50 = vadd.f32 %v5713_v24, %v5675_v62  ;;  %6911 = vmatmul.bf16.vlgmr.msra.gmra.mxu0 %v19352_v23  ;;  %7291 = vmatpush.bf16.msrb.mxu3 %v16542_v39  ;;  %v5957_v47 = vadd.f32 %v5956_v8, %v5918_v58  ;;  %v16434_v62 = vld [vmem:[%s20646_s1 + $0x160] sm:$0xff]  ;;  %v16425_v58 = vld [vmem:[%s20646_s1 + $0x118] sm:$0xff]  ;;  %vm4275_vm2 = vcmp.ge.f32.partialorder %v4269_v43, 0.0 }
 0x52d   : > { %6928 = vmatmul.bf16.vlgmr.msra.gmra.mxu1 %v19354_v27  ;;  %7495 = vmatpush.bf16.msra.mxu0 %v16429_v5 }
 0x52e   : > { %6945 = vmatmul.bf16.vlgmr.msra.gmra.mxu2 %v19365_v7  ;;  %7514 = vmatpush.bf16.msra.mxu1 %v16437_v21  ;;  %v16450_v21 = vld [vmem:[%s20646_s1 + $0x1e0] sm:$0xff] }
 0x52f   : > { %6962 = vmatmul.bf16.vlgmr.msra.gmra.mxu3 %v19367_v51  ;;  %7533 = vmatpush.bf16.msra.mxu2 %v16445_v29 }
 0x530   : > { %7552 = vmatpush.bf16.msra.mxu3 %v16453_v1 }
 0x531   : > { %v5995_v9 = vpop.f32.mrf.mxu2  ;;  %v5919_v36 = vpop.f32.mrf.mxu0  ;;  %7496 = vmatpush.bf16.msra.mxu0 %v16428_v20 }
 0x532   : > { %v6034_v52 = vpop.f32.mrf.mxu3  ;;  %v5958_v46 = vpop.f32.mrf.mxu1  ;;  %v5920_v0 = vadd.f32 %v5919_v36, %v19077_v2  ;;  %7515 = vmatpush.bf16.msra.mxu1 %v16436_v49  ;;  %v5996_v2 = vadd.f32 %v5995_v9, %v5957_v47  ;;  %v16433_v9 = vld [vmem:[%s20646_s1 + $0x158] sm:$0xff] }
 0x533   : > { %7534 = vmatpush.bf16.msra.mxu2 %v16444_v4  ;;  %v4281_v4 = vmul.f32 0.2, %v4269_v43  ;;  %v16449_v49 = vld [vmem:[%s20646_s1 + $0x1d8] sm:$0xff] }
 0x534   : > { %7553 = vmatpush.bf16.msra.mxu3 %v16452_v18  ;;  %v5959_v25 = vadd.f32 %v5958_v46, %v5920_v0  ;;  %v6035_v8 = vadd.f32 %v6034_v52, %v5996_v2 }
 0x535   : > { %7497 = vmatpush.bf16.msra.mxu0 %v16427_v28  ;;  %v16424_v28 = vld [vmem:[%s20646_s1 + $0x110] sm:$0xff] }
 0x536   : > { %7516 = vmatpush.bf16.msra.mxu1 %v16435_v44  ;;  %v6076_v52 = vrot.slane %v6035_v8, 1  ;;  %v16432_v44 = vld [vmem:[%s20646_s1 + $0x150] sm:$0xff] }
 0x537   : > { %7535 = vmatpush.bf16.msra.mxu2 %v16443_v61  ;;  %v16440_v61 = vld [vmem:[%s20646_s1 + $0x190] sm:$0xff] }
 0x538   : > { %7554 = vmatpush.bf16.msra.mxu3 %v16451_v31 }
 0x539   : > { %v5997_v24 = vpop.f32.mrf.mxu2  ;;  %v5922_v29 = vpop.f32.mrf.mxu0  ;;  %7498 = vmatpush.bf16.msra.mxu0 %v16426_v14  ;;  %v16423_v14 = vld [vmem:[%s20646_s1 + $0x108] sm:$0xff] }
 0x53a   : > { %v6036_v17 = vpop.f32.mrf.mxu3  ;;  %v5998_v39 = vadd.f32 %v5997_v24, %v5959_v25  ;;  %v5961_v5 = vpop.f32.mrf.mxu1  ;;  %7517 = vmatpush.bf16.msra.mxu1 %v16434_v62  ;;  %v5923_v46 = vadd.f32 %v5922_v29, %v19086_v26  ;;  %v16448_v25 = vld [vmem:[%s20646_s1 + $0x1d0] sm:$0xff]  ;;  %v16431_v62 = vld [vmem:[%s20646_s1 + $0x148] sm:$0xff] }
 0x53b   : > { %7536 = vmatpush.bf16.msra.mxu2 %v16442_v34  ;;  %v16439_v34 = vld [vmem:[%s20646_s1 + $0x188] sm:$0xff] }
 0x53c   : > { %v6037_v1 = vadd.f32 %v6036_v17, %v5998_v39  ;;  %6915 = vmatmul.bf16.gmra.mxu0 %v19208_v16  ;;  %7555 = vmatpush.bf16.msra.mxu3 %v16450_v21  ;;  %v5962_v24 = vadd.f32 %v5961_v5, %v5923_v46  ;;  %v16438_v5 = vld [vmem:[%s20646_s1 + $0x180] sm:$0xff]  ;;  %v16565_v46 = vld [vmem:[%s20646_s1 + $0x578] sm:$0xff] }
 0x53d   : > { %6932 = vmatmul.bf16.gmra.mxu1 %v19210_v59  ;;  %7499 = vmatpush.bf16.msra.mxu0 %v16425_v58  ;;  %v16422_v21 = vld [vmem:[%s20646_s1 + $0x100] sm:$0xff] }
 0x53e   : > { %v6077_v20 = vrot.slane %v6037_v1, 1  ;;  %6949 = vmatmul.bf16.gmra.mxu2 %v19221_v40  ;;  %7518 = vmatpush.bf16.msra.mxu1 %v16433_v9  ;;  %v16430_v1 = vld [vmem:[%s20646_s1 + $0x140] sm:$0xff] }
 0x53f   : > { %6966 = vmatmul.bf16.gmra.mxu3 %v19223_v60  ;;  %7537 = vmatpush.bf16.msra.mxu2 %v16441_v57  ;;  %v4270_v57 = vadd.f32 %v19416_v56, %v18650_v22  ;;  %v16573_v22 = vld [vmem:[%s20646_s1 + $0x5b8] sm:$0xff] }
 0x540   : > { %v6078_v36 = vsel %vm4191_vm0, %v6076_v52, %v6077_v20  ;;  %7556 = vmatpush.bf16.msra.mxu3 %v16449_v49  ;;  %v16446_v20 = vld [vmem:[%s20646_s1 + $0x1c0] sm:$0xff] }
 0x541   : > { %v6100_v18 = vadd.f32 %v6078_v36, %v18929_v3  ;;  %v6000_v47 = vpop.f32.mrf.mxu2  ;;  %v4287_v3 = vsel %vm4275_vm2, %v4269_v43, %v4281_v4  ;;  %v5924_v26 = vpop.f32.mrf.mxu0  ;;  %7500 = vmatpush.bf16.msra.mxu0 %v16424_v28  ;;  %v16557_v36 = vld [vmem:[%s20646_s1 + $0x538] sm:$0xff]  ;;  %vm4276_vm3 = vcmp.ge.f32.partialorder %v4270_v57, 0.0 }
 0x542   : > { %v6039_v0 = vpop.f32.mrf.mxu3  ;;  %v5963_v2 = vpop.f32.mrf.mxu1  ;;  %v5925_v17 = vadd.f32 %v5924_v26, %v19100_v45  ;;  %7519 = vmatpush.bf16.msra.mxu1 %v16432_v44  ;;  %v6001_v43 = vadd.f32 %v6000_v47, %v5962_v24  ;;  %v16447_v45 = vld [vmem:[%s20646_s1 + $0x1c8] sm:$0xff]  ;;  %v4282_v47 = vmul.f32 0.2, %v4270_v57 }
 0x543   : > { %v6106_v31 = vadd.f32 %v6100_v18, %v4287_v3  ;;  %7538 = vmatpush.bf16.msra.mxu2 %v16440_v61  ;;  %v16581_v61 = vld [vmem:[%s20646_s1 + $0x5f8] sm:$0xff] }
 0x544   : > { %7557 = vmatpush.bf16.msra.mxu3 %v16448_v25  ;;  %v5964_v8 = vadd.f32 %v5963_v2, %v5925_v17  ;;  %v6040_v58 = vadd.f32 %v6039_v0, %v6001_v43  ;;  %v16556_v25 = vld [vmem:[%s20646_s1 + $0x530] sm:$0xff]  ;;  %v4288_v24 = vsel %vm4276_vm3, %v4270_v57, %v4282_v47  ;;  %v16570_v57 = vld [vmem:[%s20646_s1 + $0x5a0] sm:$0xff]  ;;  %v16561_v47 = vld [vmem:[%s20646_s1 + $0x558] sm:$0xff] }
 0x545   : > { %6112 = vst [vmem:[%s19467_s23] sm:$0xff] %v6106_v31  ;;  %7501 = vmatpush.bf16.msra.mxu0 %v16423_v14  ;;  %v16572_v31 = vld [vmem:[%s20646_s1 + $0x5b0] sm:$0xff] }
 0x546   : > { %7520 = vmatpush.bf16.msra.mxu1 %v16431_v62  ;;  %v6079_v18 = vrot.slane %v6040_v58, 1  ;;  %v16554_v58 = vld [vmem:[%s20646_s1 + $0x520] sm:$0xff] }
 0x547   : > { %7539 = vmatpush.bf16.msra.mxu2 %v16439_v34 }
 0x548   : > { %7558 = vmatpush.bf16.msra.mxu3 %v16447_v45  ;;  %v16571_v45 = vld [vmem:[%s20646_s1 + $0x5a8] sm:$0xff] }
 0x549   : > { %v6002_v39 = vpop.f32.mrf.mxu2  ;;  %v5927_v52 = vpop.f32.mrf.mxu0  ;;  %7502 = vmatpush.bf16.msra.mxu0 %v16422_v21 }
 0x54a   : > { %v6041_v29 = vpop.f32.mrf.mxu3  ;;  %v6003_v9 = vadd.f32 %v6002_v39, %v5964_v8  ;;  %v5966_v4 = vpop.f32.mrf.mxu1  ;;  %7521 = vmatpush.bf16.msra.mxu1 %v16430_v1  ;;  %v5928_v44 = vadd.f32 %v5927_v52, %v19130_v48  ;;  %v16564_v48 = vld [vmem:[%s20646_s1 + $0x570] sm:$0xff]  ;;  %v16555_v8 = vld [vmem:[%s20646_s1 + $0x528] sm:$0xff]  ;;  %v4271_v52 = vadd.f32 %v19416_v56, %v18688_v55  ;;  %v16569_v55 = vld [vmem:[%s20646_s1 + $0x598] sm:$0xff] }
 0x54b   : > { %7540 = vmatpush.bf16.msra.mxu2 %v16438_v5  ;;  %v16563_v39 = vld [vmem:[%s20646_s1 + $0x568] sm:$0xff] }
 0x54c   : > { %v6042_v49 = vadd.f32 %v6041_v29, %v6003_v9  ;;  %7235 = vmatmul.bf16.vlgmr.msrb.gmra.mxu0 %v19208_v16  ;;  %7559 = vmatpush.bf16.msra.mxu3 %v16446_v20  ;;  %v5967_v62 = vadd.f32 %v5966_v4, %v5928_v44  ;;  %v16562_v9 = vld [vmem:[%s20646_s1 + $0x560] sm:$0xff]  ;;  %vm4277_vm4 = vcmp.ge.f32.partialorder %v4271_v52, 0.0  ;;  %v16577_v44 = vld [vmem:[%s20646_s1 + $0x5d8] sm:$0xff] }
 0x54d   : > { %7254 = vmatmul.bf16.vlgmr.msrb.gmra.mxu1 %v19210_v59  ;;  %7827 = vmatpush.bf16.msrb.mxu0 %v16557_v36  ;;  %v16578_v36 = vld [vmem:[%s20646_s1 + $0x5e0] sm:$0xff] }
 0x54e   : > { %v6080_v0 = vrot.slane %v6042_v49, 1  ;;  %7273 = vmatmul.bf16.vlgmr.msrb.gmra.mxu2 %v19221_v40  ;;  %7846 = vmatpush.bf16.msrb.mxu1 %v16565_v46 }
 0x54f   : > { %7292 = vmatmul.bf16.vlgmr.msrb.gmra.mxu3 %v19223_v60  ;;  %7865 = vmatpush.bf16.msrb.mxu2 %v16573_v22 }
 0x550   : > { %v6081_v28 = vsel %vm4191_vm0, %v6079_v18, %v6080_v0  ;;  %7884 = vmatpush.bf16.msrb.mxu3 %v16581_v61  ;;  %v16553_v18 = vld [vmem:[%s20646_s1 + $0x518] sm:$0xff]  ;;  %v4283_v61 = vmul.f32 0.2, %v4271_v52 }
 0x551   : > { %v6101_v3 = vadd.f32 %v6081_v28, %v18948_v32  ;;  %v6005_v26 = vpop.f32.mrf.mxu2  ;;  %v5929_v17 = vpop.f32.mrf.mxu0  ;;  %v16580_v32 = vld [vmem:[%s20646_s1 + $0x5f0] sm:$0xff]  ;;  %7828 = vmatpush.bf16.msrb.mxu0 %v16556_v25 }
 0x552   : > { %v6044_v2 = vpop.f32.mrf.mxu3  ;;  %v5968_v34 = vpop.f32.mrf.mxu1  ;;  %v5930_v43 = vadd.f32 %v5929_v17, %v19156_v41  ;;  %7847 = vmatpush.bf16.msrb.mxu1 %v16564_v48  ;;  %v6006_v29 = vadd.f32 %v6005_v26, %v5967_v62  ;;  %v16579_v41 = vld [vmem:[%s20646_s1 + $0x5e8] sm:$0xff]  ;;  %v16568_v48 = vld [vmem:[%s20646_s1 + $0x590] sm:$0xff] }
 0x553   : > { %v6107_v14 = vadd.f32 %v6101_v3, %v4288_v24  ;;  %7866 = vmatpush.bf16.msrb.mxu2 %v16572_v31  ;;  %v16552_v24 = vld [vmem:[%s20646_s1 + $0x510] sm:$0xff] }
 0x554   : > { %7885 = vmatpush.bf16.msrb.mxu3 %v16580_v32  ;;  %v5969_v5 = vadd.f32 %v5968_v34, %v5930_v43  ;;  %v6045_v4 = vadd.f32 %v6044_v2, %v6006_v29  ;;  %v16560_v17 = vld [vmem:[%s20646_s1 + $0x550] sm:$0xff] }
 0x555   : > { %6113 = vst [vmem:[%s19467_s23 + $0x8] sm:$0xff] %v6107_v14  ;;  %7829 = vmatpush.bf16.msrb.mxu0 %v16555_v8  ;;  %v16551_v8 = vld [vmem:[%s20646_s1 + $0x508] sm:$0xff] }
 0x556   : > { %7848 = vmatpush.bf16.msrb.mxu1 %v16563_v39  ;;  %v6082_v0 = vrot.slane %v6045_v4, 1  ;;  %v16559_v39 = vld [vmem:[%s20646_s1 + $0x548] sm:$0xff] }
 0x557   : > { %7867 = vmatpush.bf16.msrb.mxu2 %v16571_v45  ;;  %v16567_v45 = vld [vmem:[%s20646_s1 + $0x588] sm:$0xff] }
 0x558   : > { %7886 = vmatpush.bf16.msrb.mxu3 %v16579_v41 }
 0x559   : > { %v6007_v21 = vpop.f32.mrf.mxu2  ;;  %v5932_v49 = vpop.f32.mrf.mxu0  ;;  %7830 = vmatpush.bf16.msrb.mxu0 %v16554_v58  ;;  %v16558_v58 = vld [vmem:[%s20646_s1 + $0x540] sm:$0xff] }
 0x55a   : > { %v6046_v1 = vpop.f32.mrf.mxu3  ;;  %v6008_v20 = vadd.f32 %v6007_v21, %v5969_v5  ;;  %v5971_v22 = vpop.f32.mrf.mxu1  ;;  %7849 = vmatpush.bf16.msrb.mxu1 %v16562_v9  ;;  %v5933_v26 = vadd.f32 %v5932_v49, %v19186_v19  ;;  %v4289_v19 = vsel %vm4277_vm4, %v4271_v52, %v4283_v61  ;;  %v4272_v9 = vadd.f32 %v19416_v56, %v18735_v30  ;;  %v16477_v30 = vld [vmem:[%s20646_s1 + $0x2b8] sm:$0xff] }
 0x55b   : > { %7868 = vmatpush.bf16.msrb.mxu2 %v16570_v57  ;;  %v16550_v57 = vld [vmem:[%s20646_s1 + $0x500] sm:$0xff]  ;;  %v16485_v61 = vld [vmem:[%s20646_s1 + $0x2f8] sm:$0xff] }
 0x55c   : > { %v6047_v46 = vadd.f32 %v6046_v1, %v6008_v20  ;;  %7240 = vmatmul.bf16.gmra.mxu0 %v19280_v33  ;;  %7887 = vmatpush.bf16.msrb.mxu3 %v16578_v36  ;;  %v5972_v62 = vadd.f32 %v5971_v22, %v5933_v26  ;;  %v16566_v1 = vld [vmem:[%s20646_s1 + $0x580] sm:$0xff]  ;;  %vm4278_vm5 = vcmp.ge.f32.partialorder %v4272_v9, 0.0 }
 0x55d   : > { %7259 = vmatmul.bf16.gmra.mxu1 %v19282_v11  ;;  %7831 = vmatpush.bf16.msrb.mxu0 %v16553_v18  ;;  %v16574_v22 = vld [vmem:[%s20646_s1 + $0x5c0] sm:$0xff] }
 0x55e   : > { %v6083_v28 = vrot.slane %v6047_v46, 1  ;;  %7278 = vmatmul.bf16.gmra.mxu2 %v19293_v12  ;;  %7850 = vmatpush.bf16.msrb.mxu1 %v16561_v47  ;;  %v16461_v46 = vld [vmem:[%s20646_s1 + $0x238] sm:$0xff]  ;;  %v4284_v47 = vmul.f32 0.2, %v4272_v9 }
 0x55f   : > { %7297 = vmatmul.bf16.gmra.mxu3 %v19295_v38  ;;  %7869 = vmatpush.bf16.msrb.mxu2 %v16569_v55  ;;  %v16469_v55 = vld [vmem:[%s20646_s1 + $0x278] sm:$0xff] }
 0x560   : > { %v6084_v3 = vsel %vm4191_vm0, %v6082_v0, %v6083_v28  ;;  %7888 = vmatpush.bf16.msrb.mxu3 %v16577_v44 }
 0x561   : > { %v6102_v2 = vadd.f32 %v6084_v3, %v18976_v37  ;;  %v6010_v31 = vpop.f32.mrf.mxu2  ;;  %v5934_v34 = vpop.f32.mrf.mxu0  ;;  %v16576_v37 = vld [vmem:[%s20646_s1 + $0x5d0] sm:$0xff]  ;;  %7832 = vmatpush.bf16.msrb.mxu0 %v16552_v24 }
 0x562   : > { %v6049_v25 = vpop.f32.mrf.mxu3  ;;  %v5973_v32 = vpop.f32.mrf.mxu1  ;;  %v5935_v43 = vadd.f32 %v5934_v34, %v19228_v54  ;;  %7851 = vmatpush.bf16.msrb.mxu1 %v16560_v17  ;;  %v6011_v29 = vadd.f32 %v6010_v31, %v5972_v62  ;;  %v16575_v54 = vld [vmem:[%s20646_s1 + $0x5c8] sm:$0xff]  ;;  %v16476_v31 = vld [vmem:[%s20646_s1 + $0x2b0] sm:$0xff] }
 0x563   : > { %v6108_v14 = vadd.f32 %v6102_v2, %v4289_v19  ;;  %7870 = vmatpush.bf16.msrb.mxu2 %v16568_v48  ;;  %v4290_v48 = vsel %vm4278_vm5, %v4272_v9, %v4284_v47  ;;  %v16467_v62 = vld [vmem:[%s20646_s1 + $0x268] sm:$0xff]  ;;  %v16482_v9 = vld [vmem:[%s20646_s1 + $0x2e0] sm:$0xff] }
 0x564   : > { %7889 = vmatpush.bf16.msrb.mxu3 %v16576_v37  ;;  %v5974_v41 = vadd.f32 %v5973_v32, %v5935_v43  ;;  %v6050_v52 = vadd.f32 %v6049_v25, %v6011_v29  ;;  %v16460_v25 = vld [vmem:[%s20646_s1 + $0x230] sm:$0xff]  ;;  %v16459_v37 = vld [vmem:[%s20646_s1 + $0x228] sm:$0xff]  ;;  %v16474_v29 = vld [vmem:[%s20646_s1 + $0x2a0] sm:$0xff] }
 0x565   : > { %6114 = vst [vmem:[%s19467_s23 + $0x10] sm:$0xff] %v6108_v14  ;;  %7833 = vmatpush.bf16.msrb.mxu0 %v16551_v8  ;;  %v16475_v14 = vld [vmem:[%s20646_s1 + $0x2a8] sm:$0xff] }
 0x566   : > { %7852 = vmatpush.bf16.msrb.mxu1 %v16559_v39  ;;  %v6085_v18 = vrot.slane %v6050_v52, 1 }
 0x567   : > { %7871 = vmatpush.bf16.msrb.mxu2 %v16567_v45 }
 0x568   : > { %7890 = vmatpush.bf16.msrb.mxu3 %v16575_v54  ;;  %v16458_v54 = vld [vmem:[%s20646_s1 + $0x220] sm:$0xff] }
 0x569   : > { %v6012_v5 = vpop.f32.mrf.mxu2  ;;  %v5937_v20 = vpop.f32.mrf.mxu0  ;;  %7834 = vmatpush.bf16.msrb.mxu0 %v16550_v57 }
 0x56a   : > { %v6051_v21 = vpop.f32.mrf.mxu3  ;;  %v6013_v4 = vadd.f32 %v6012_v5, %v5974_v41  ;;  %v5976_v49 = vpop.f32.mrf.mxu1  ;;  %7853 = vmatpush.bf16.msrb.mxu1 %v16558_v58  ;;  %v5938_v44 = vadd.f32 %v5937_v20, %v19258_v63  ;;  %v16468_v63 = vld [vmem:[%s20646_s1 + $0x270] sm:$0xff]  ;;  %v16466_v41 = vld [vmem:[%s20646_s1 + $0x260] sm:$0xff]  ;;  %v4273_v5 = vadd.f32 %v19416_v56, %v18769_v13  ;;  %v16473_v13 = vld [vmem:[%s20646_s1 + $0x298] sm:$0xff] }
 0x56b   : > { %7872 = vmatpush.bf16.msrb.mxu2 %v16566_v1  ;;  %v16465_v20 = vld [vmem:[%s20646_s1 + $0x258] sm:$0xff] }
 0x56c   : > { %v6052_v36 = vadd.f32 %v6051_v21, %v6013_v4  ;;  %7503 = vmatmul.bf16.vlgmr.msra.gmra.mxu0 %v19352_v23  ;;  %7891 = vmatpush.bf16.msrb.mxu3 %v16574_v22  ;;  %v5977_v34 = vadd.f32 %v5976_v49, %v5938_v44  ;;  %v16457_v4 = vld [vmem:[%s20646_s1 + $0x218] sm:$0xff]  ;;  %v4285_v22 = vmul.f32 0.2, %v4273_v5  ;;  %vm4279_vm6 = vcmp.ge.f32.partialorder %v4273_v5, 0.0  ;;  %v16464_v44 = vld [vmem:[%s20646_s1 + $0x250] sm:$0xff] }
 0x56d   : > { %7522 = vmatmul.bf16.vlgmr.msra.gmra.mxu1 %v19354_v27  ;;  %8095 = vmatpush.bf16.msra.mxu0 %v16461_v46 }
 0x56e   : > { %v6086_v0 = vrot.slane %v6052_v36, 1  ;;  %7541 = vmatmul.bf16.vlgmr.msra.gmra.mxu2 %v19365_v7  ;;  %8114 = vmatpush.bf16.msra.mxu1 %v16469_v55 }
 0x56f   : > { %7560 = vmatmul.bf16.vlgmr.msra.gmra.mxu3 %v19367_v51  ;;  %8133 = vmatpush.bf16.msra.mxu2 %v16477_v30  ;;  %v16481_v30 = vld [vmem:[%s20646_s1 + $0x2d8] sm:$0xff] }
 0x570   : > { %v6087_v28 = vsel %vm4191_vm0, %v6085_v18, %v6086_v0  ;;  %8152 = vmatpush.bf16.msra.mxu3 %v16485_v61  ;;  %v16472_v61 = vld [vmem:[%s20646_s1 + $0x290] sm:$0xff] }
 0x571   : > { %v6103_v3 = vadd.f32 %v6087_v28, %v18998_v53  ;;  %v6015_v26 = vpop.f32.mrf.mxu2  ;;  %v5939_v24 = vpop.f32.mrf.mxu0  ;;  %v16484_v53 = vld [vmem:[%s20646_s1 + $0x2f0] sm:$0xff]  ;;  %8096 = vmatpush.bf16.msra.mxu0 %v16460_v25 }
 0x572   : > { %v6054_v2 = vpop.f32.mrf.mxu3  ;;  %v5978_v17 = vpop.f32.mrf.mxu1  ;;  %v5940_v32 = vadd.f32 %v5939_v24, %v19300_v15  ;;  %8115 = vmatpush.bf16.msra.mxu1 %v16468_v63  ;;  %v6016_v43 = vadd.f32 %v6015_v26, %v5977_v34  ;;  %v16483_v15 = vld [vmem:[%s20646_s1 + $0x2e8] sm:$0xff]  ;;  %v16456_v28 = vld [vmem:[%s20646_s1 + $0x210] sm:$0xff] }
 0x573   : > { %v6109_v19 = vadd.f32 %v6103_v3, %v4290_v48  ;;  %8134 = vmatpush.bf16.msra.mxu2 %v16476_v31  ;;  %v16471_v63 = vld [vmem:[%s20646_s1 + $0x288] sm:$0xff] }
 0x574   : > { %8153 = vmatpush.bf16.msra.mxu3 %v16484_v53  ;;  %v5979_v45 = vadd.f32 %v5978_v17, %v5940_v32  ;;  %v6055_v21 = vadd.f32 %v6054_v2, %v6016_v43  ;;  %v16455_v48 = vld [vmem:[%s20646_s1 + $0x208] sm:$0xff]  ;;  %v16470_v32 = vld [vmem:[%s20646_s1 + $0x280] sm:$0xff] }
 0x575   : > { %6115 = vst [vmem:[%s19467_s23 + $0x18] sm:$0xff] %v6109_v19  ;;  %8097 = vmatpush.bf16.msra.mxu0 %v16459_v37  ;;  %v16463_v24 = vld [vmem:[%s20646_s1 + $0x248] sm:$0xff]  ;;  %v16462_v37 = vld [vmem:[%s20646_s1 + $0x240] sm:$0xff] }
 0x576   : > { %8116 = vmatpush.bf16.msra.mxu1 %v16467_v62  ;;  %v6088_v49 = vrot.slane %v6055_v21, 1  ;;  %v4274_v62 = vadd.f32 %v19416_v56, %v18794_v42  ;;  %v16605_v42 = vld [vmem:[%s20646_s1 + $0x6b8] sm:$0xff] }
 0x577   : > { %8135 = vmatpush.bf16.msra.mxu2 %v16475_v14  ;;  %v16454_v14 = vld [vmem:[%s20646_s1 + $0x200] sm:$0xff]  ;;  %v16589_v56 = vld [vmem:[%s20646_s1 + $0x638] sm:$0xff] }
 0x578   : > { %8154 = vmatpush.bf16.msra.mxu3 %v16483_v15  ;;  %v4286_v21 = vmul.f32 0.2, %v4274_v62  ;;  %vm4280_vm7 = vcmp.ge.f32.partialorder %v4274_v62, 0.0 }
 0x579   : > { %v6017_v8 = vpop.f32.mrf.mxu2  ;;  %v5942_v57 = vpop.f32.mrf.mxu0  ;;  %8098 = vmatpush.bf16.msra.mxu0 %v16458_v54 }
 0x57a   : > { %v6056_v39 = vpop.f32.mrf.mxu3  ;;  %v6018_v1 = vadd.f32 %v6017_v8, %v5979_v45  ;;  %v5981_v58 = vpop.f32.mrf.mxu1  ;;  %8117 = vmatpush.bf16.msra.mxu1 %v16466_v41  ;;  %v5943_v55 = vadd.f32 %v5942_v57, %v19330_v10  ;;  %v4291_v10 = vsel %vm4279_vm6, %v4273_v5, %v4285_v22  ;;  %v16597_v41 = vld [vmem:[%s20646_s1 + $0x678] sm:$0xff]  ;;  %v4292_v22 = vsel %vm4280_vm7, %v4274_v62, %v4286_v21  ;;  %v16590_v21 = vld [vmem:[%s20646_s1 + $0x640] sm:$0xff] }
 0x57b   : > { %8136 = vmatpush.bf16.msra.mxu2 %v16474_v29  ;;  %v16478_v29 = vld [vmem:[%s20646_s1 + $0x2c0] sm:$0xff]  ;;  %v16613_v57 = vld [vmem:[%s20646_s1 + $0x6f8] sm:$0xff] }
 0x57c   : > { %v6057_v52 = vadd.f32 %v6056_v39, %v6018_v1  ;;  %7508 = vmatmul.bf16.gmra.mxu0 %v19208_v16  ;;  %8155 = vmatpush.bf16.msra.mxu3 %v16482_v9  ;;  %v5982_v31 = vadd.f32 %v5981_v58, %v5943_v55 }
 0x57d   : > { %7527 = vmatmul.bf16.gmra.mxu1 %v19210_v59  ;;  %8099 = vmatpush.bf16.msra.mxu0 %v16457_v4  ;;  %v16604_v4 = vld [vmem:[%s20646_s1 + $0x6b0] sm:$0xff] }
 0x57e   : > { %v6089_v36 = vrot.slane %v6057_v52, 1  ;;  %7546 = vmatmul.bf16.gmra.mxu2 %v19221_v40  ;;  %8118 = vmatpush.bf16.msra.mxu1 %v16465_v20  ;;  %v16588_v20 = vld [vmem:[%s20646_s1 + $0x630] sm:$0xff] }
 0x57f   : > { %7565 = vmatmul.bf16.gmra.mxu3 %v19223_v60  ;;  %8137 = vmatpush.bf16.msra.mxu2 %v16473_v13 }
 0x580   : > { %v6090_v46 = vsel %vm4191_vm0, %v6088_v49, %v6089_v36  ;;  %8156 = vmatpush.bf16.msra.mxu3 %v16481_v30  ;;  %v16596_v49 = vld [vmem:[%s20646_s1 + $0x670] sm:$0xff] }
 0x581   : > { %v6104_v18 = vadd.f32 %v6090_v46, %v19017_v35  ;;  %v6020_v47 = vpop.f32.mrf.mxu2  ;;  %v5944_v3 = vpop.f32.mrf.mxu0  ;;  %v16480_v35 = vld [vmem:[%s20646_s1 + $0x2d0] sm:$0xff]  ;;  %8100 = vmatpush.bf16.msra.mxu0 %v16456_v28  ;;  %v16611_v28 = vld [vmem:[%s20646_s1 + $0x6e8] sm:$0xff] }
 0x582   : > { %v6059_v0 = vpop.f32.mrf.mxu3  ;;  %v5983_v26 = vpop.f32.mrf.mxu1  ;;  %v5945_v25 = vadd.f32 %v5944_v3, %v19372_v50  ;;  %8119 = vmatpush.bf16.msra.mxu1 %v16464_v44  ;;  %v6021_v17 = vadd.f32 %v6020_v47, %v5982_v31  ;;  %v16479_v50 = vld [vmem:[%s20646_s1 + $0x2c8] sm:$0xff]  ;;  %v16612_v46 = vld [vmem:[%s20646_s1 + $0x6f0] sm:$0xff]  ;;  %v16602_v3 = vld [vmem:[%s20646_s1 + $0x6a0] sm:$0xff] }
 0x583   : > { %v6110_v2 = vadd.f32 %v6104_v18, %v4291_v10  ;;  %8138 = vmatpush.bf16.msra.mxu2 %v16472_v61  ;;  %v16603_v47 = vld [vmem:[%s20646_s1 + $0x6a8] sm:$0xff] }
 0x584   : > { %8157 = vmatpush.bf16.msra.mxu3 %v16480_v35  ;;  %v5984_v53 = vadd.f32 %v5983_v26, %v5945_v25  ;;  %v6060_v43 = vadd.f32 %v6059_v0, %v6021_v17  ;;  %v16587_v0 = vld [vmem:[%s20646_s1 + $0x628] sm:$0xff]  ;;  %v16586_v26 = vld [vmem:[%s20646_s1 + $0x620] sm:$0xff]  ;;  %v16593_v17 = vld [vmem:[%s20646_s1 + $0x658] sm:$0xff] }
 0x585   : > { %6116 = vst [vmem:[%s19467_s23 + $0x20] sm:$0xff] %v6110_v2  ;;  %8101 = vmatpush.bf16.msra.mxu0 %v16455_v48  ;;  %v16595_v61 = vld [vmem:[%s20646_s1 + $0x668] sm:$0xff]  ;;  %v16594_v2 = vld [vmem:[%s20646_s1 + $0x660] sm:$0xff]  ;;  %v16601_v48 = vld [vmem:[%s20646_s1 + $0x698] sm:$0xff] }
 0x586   : > { %8120 = vmatpush.bf16.msra.mxu1 %v16463_v24  ;;  %v6091_v5 = vrot.slane %v6060_v43, 1  ;;  %v16585_v24 = vld [vmem:[%s20646_s1 + $0x618] sm:$0xff] }
 0x587   : > { %8139 = vmatpush.bf16.msra.mxu2 %v16471_v63  ;;  %v16610_v63 = vld [vmem:[%s20646_s1 + $0x6e0] sm:$0xff] }
 0x588   : > { %8158 = vmatpush.bf16.msra.mxu3 %v16479_v50  ;;  %v16609_v50 = vld [vmem:[%s20646_s1 + $0x6d8] sm:$0xff] }
 0x589   : > { %v6022_v19 = vpop.f32.mrf.mxu2  ;;  %v6632_v45 = vpop.f32.mrf.mxu0  ;;  %8102 = vmatpush.bf16.msra.mxu0 %v16454_v14  ;;  %v16592_v14 = vld [vmem:[%s20646_s1 + $0x650] sm:$0xff] }
 0x58a   : > { %v6061_v34 = vpop.f32.mrf.mxu3  ;;  %v6023_v15 = vadd.f32 %v6022_v19, %v5984_v53  ;;  %v6649_v8 = vpop.f32.mrf.mxu1  ;;  %8121 = vmatpush.bf16.msra.mxu1 %v16462_v37 }
 0x58b   : > { %v6650_v39 = vadd.f32 %v6649_v8, %v6632_v45  ;;  %8140 = vmatpush.bf16.msra.mxu2 %v16470_v32  ;;  %v16584_v32 = vld [vmem:[%s20646_s1 + $0x610] sm:$0xff]  ;;  %v16599_v8 = vld [vmem:[%s20646_s1 + $0x688] sm:$0xff] }
 0x58c   : > { %v6062_v54 = vadd.f32 %v6061_v34, %v6023_v15  ;;  %7835 = vmatmul.bf16.vlgmr.msrb.gmra.mxu0 %v19208_v16  ;;  %8159 = vmatpush.bf16.msra.mxu3 %v16478_v29  ;;  %v16600_v34 = vld [vmem:[%s20646_s1 + $0x690] sm:$0xff]  ;;  %v16591_v29 = vld [vmem:[%s20646_s1 + $0x648] sm:$0xff] }
 0x58d   : > { %7854 = vmatmul.bf16.vlgmr.msrb.gmra.mxu1 %v19210_v59  ;;  %8447 = vmatpush.bf16.msrb.mxu0 %v16589_v56  ;;  %v16608_v15 = vld [vmem:[%s20646_s1 + $0x6d0] sm:$0xff] }
 0x58e   : > { %v6092_v1 = vrot.slane %v6062_v54, 1  ;;  %7873 = vmatmul.bf16.vlgmr.msrb.gmra.mxu2 %v19221_v40  ;;  %8464 = vmatpush.bf16.msrb.mxu1 %v16597_v41  ;;  %v16607_v54 = vld [vmem:[%s20646_s1 + $0x6c8] sm:$0xff]  ;;  %v16598_v41 = vld [vmem:[%s20646_s1 + $0x680] sm:$0xff] }
 0x58f   : > { %7892 = vmatmul.bf16.vlgmr.msrb.gmra.mxu3 %v19223_v60  ;;  %8481 = vmatpush.bf16.msrb.mxu2 %v16605_v42 }
 0x590   : > { %v6093_v58 = vsel %vm4191_vm0, %v6091_v5, %v6092_v1  ;;  %8498 = vmatpush.bf16.msrb.mxu3 %v16613_v57  ;;  %v16582_v5 = vld [vmem:[%s20646_s1 + $0x600] sm:$0xff] }
 0x591   : > { %v6105_v9 = vadd.f32 %v6093_v58, %v19045_v6  ;;  %v6666_v52 = vpop.f32.mrf.mxu2  ;;  %v6634_v30 = vpop.f32.mrf.mxu0  ;;  %8448 = vmatpush.bf16.msrb.mxu0 %v16588_v20  ;;  %v16629_v20 = vld [vmem:[%s20646_s1 + $0x778] sm:$0xff] }
 0x592   : > { %v6683_v13 = vpop.f32.mrf.mxu3  ;;  %v6667_v36 = vadd.f32 %v6666_v52, %v6650_v39  ;;  %v6651_v6 = vpop.f32.mrf.mxu1  ;;  %8465 = vmatpush.bf16.msrb.mxu1 %v16596_v49  ;;  %v16583_v39 = vld [vmem:[%s20646_s1 + $0x608] sm:$0xff] }
 0x593   : > { %v6111_v55 = vadd.f32 %v6105_v9, %v4292_v22  ;;  %8482 = vmatpush.bf16.msrb.mxu2 %v16604_v4  ;;  %v16606_v9 = vld [vmem:[%s20646_s1 + $0x6c0] sm:$0xff]  ;;  %v16621_v4 = vld [vmem:[%s20646_s1 + $0x738] sm:$0xff]  ;;  %v16636_v22 = vld [vmem:[%s20646_s1 + $0x7b0] sm:$0xff] }
 0x594   : > { %v19766_v18 = vadd.f32 %v6683_v13, %v6667_v36  ;;  %8499 = vmatpush.bf16.msrb.mxu3 %v16612_v46  ;;  %v16637_v13 = vld [vmem:[%s20646_s1 + $0x7b8] sm:$0xff]  ;;  %v16644_v46 = vld [vmem:[%s20646_s1 + $0x7f0] sm:$0xff] }
 0x595   : > { %6117 = vst [vmem:[%s19467_s23 + $0x28] sm:$0xff] %v6111_v55  ;;  %8449 = vmatpush.bf16.msrb.mxu0 %v16587_v0  ;;  %v16627_v0 = vld [vmem:[%s20646_s1 + $0x768] sm:$0xff] }
 0x596   : > { %8466 = vmatpush.bf16.msrb.mxu1 %v16595_v61  ;;  %v16643_v61 = vld [vmem:[%s20646_s1 + $0x7e8] sm:$0xff] }
 0x597   : > { %8483 = vmatpush.bf16.msrb.mxu2 %v16603_v47  ;;  %v16619_v47 = vld [vmem:[%s20646_s1 + $0x728] sm:$0xff] }
 0x598   : > { %8500 = vmatpush.bf16.msrb.mxu3 %v16611_v28 }
 0x599   : > { %v6668_v44 = vpop.f32.mrf.mxu2  ;;  %v6636_v35 = vpop.f32.mrf.mxu0  ;;  %8450 = vmatpush.bf16.msrb.mxu0 %v16586_v26  ;;  %v16626_v26 = vld [vmem:[%s20646_s1 + $0x760] sm:$0xff] }
 0x59a   : > { %v6685_v10 = vpop.f32.mrf.mxu3  ;;  %v6653_v31 = vpop.f32.mrf.mxu1  ;;  %8467 = vmatpush.bf16.msrb.mxu1 %v16594_v2 }
 0x59b   : > { %v6654_v25 = vadd.f32 %v6653_v31, %v6636_v35  ;;  %8484 = vmatpush.bf16.msrb.mxu2 %v16602_v3  ;;  %v16634_v10 = vld [vmem:[%s20646_s1 + $0x7a0] sm:$0xff] }
 0x59c   : > { %7840 = vmatmul.bf16.gmra.mxu0 %v19280_v33  ;;  %8501 = vmatpush.bf16.msrb.mxu3 %v16610_v63  ;;  %v16618_v3 = vld [vmem:[%s20646_s1 + $0x720] sm:$0xff] }
 0x59d   : > { %7859 = vmatmul.bf16.gmra.mxu1 %v19282_v11  ;;  %8451 = vmatpush.bf16.msrb.mxu0 %v16585_v24  ;;  %v16617_v24 = vld [vmem:[%s20646_s1 + $0x718] sm:$0xff] }
 0x59e   : > { %7878 = vmatmul.bf16.gmra.mxu2 %v19293_v12  ;;  %8468 = vmatpush.bf16.msrb.mxu1 %v16593_v17  ;;  %v16625_v17 = vld [vmem:[%s20646_s1 + $0x758] sm:$0xff] }
 0x59f   : > { %7897 = vmatmul.bf16.gmra.mxu3 %v19295_v38  ;;  %8485 = vmatpush.bf16.msrb.mxu2 %v16601_v48  ;;  %v16633_v48 = vld [vmem:[%s20646_s1 + $0x798] sm:$0xff] }
 0x5a0   : > { %8502 = vmatpush.bf16.msrb.mxu3 %v16609_v50  ;;  %v16616_v50 = vld [vmem:[%s20646_s1 + $0x710] sm:$0xff] }
 0x5a1   : > { %v6670_v53 = vpop.f32.mrf.mxu2  ;;  %v6638_v62 = vpop.f32.mrf.mxu0  ;;  %8452 = vmatpush.bf16.msrb.mxu0 %v16584_v32 }
 0x5a2   : > { %v6687_v19 = vpop.f32.mrf.mxu3  ;;  %v6671_v37 = vadd.f32 %v6670_v53, %v6654_v25  ;;  %v6655_v43 = vpop.f32.mrf.mxu1  ;;  %8469 = vmatpush.bf16.msrb.mxu1 %v16592_v14  ;;  %v16642_v25 = vld [vmem:[%s20646_s1 + $0x7e0] sm:$0xff]  ;;  %v16624_v53 = vld [vmem:[%s20646_s1 + $0x750] sm:$0xff]  ;;  %v16631_v62 = vld [vmem:[%s20646_s1 + $0x788] sm:$0xff] }
 0x5a3   : > { %8486 = vmatpush.bf16.msrb.mxu2 %v16600_v34  ;;  %v16640_v14 = vld [vmem:[%s20646_s1 + $0x7d0] sm:$0xff]  ;;  %v16615_v43 = vld [vmem:[%s20646_s1 + $0x708] sm:$0xff] }
 0x5a4   : > { %v19821_v45 = vadd.f32 %v6687_v19, %v6671_v37  ;;  %8503 = vmatpush.bf16.msrb.mxu3 %v16608_v15  ;;  %v16623_v15 = vld [vmem:[%s20646_s1 + $0x748] sm:$0xff] }
 0x5a5   : > { %8453 = vmatpush.bf16.msrb.mxu0 %v16583_v39 }
 0x5a6   : > { %8470 = vmatpush.bf16.msrb.mxu1 %v16591_v29  ;;  %v16630_v29 = vld [vmem:[%s20646_s1 + $0x780] sm:$0xff] }
 0x5a7   : > { %8487 = vmatpush.bf16.msrb.mxu2 %v16599_v8 }
 0x5a8   : > { %8504 = vmatpush.bf16.msrb.mxu3 %v16607_v54  ;;  %v16614_v54 = vld [vmem:[%s20646_s1 + $0x700] sm:$0xff] }
 0x5a9   : > { %v6672_v42 = vpop.f32.mrf.mxu2  ;;  %v6912_v1 = vpop.f32.mrf.mxu0  ;;  %8454 = vmatpush.bf16.msrb.mxu0 %v16582_v5 }
 0x5aa   : > { %v6689_v56 = vpop.f32.mrf.mxu3  ;;  %v6929_v57 = vpop.f32.mrf.mxu1  ;;  %v6913_v58 = vadd.f32 %v6912_v1, %v19766_v18  ;;  %8471 = vmatpush.bf16.msrb.mxu1 %v16590_v21  ;;  %v16635_v18 = vld [vmem:[%s20646_s1 + $0x7a8] sm:$0xff]  ;;  %v16622_v42 = vld [vmem:[%s20646_s1 + $0x740] sm:$0xff]  ;;  %v16669_v1 = vld [vmem:[%s20646_s1 + $0x8b8] sm:$0xff] }
 0x5ab   : > { %8488 = vmatpush.bf16.msrb.mxu2 %v16598_v41  ;;  %v16638_v21 = vld [vmem:[%s20646_s1 + $0x7c0] sm:$0xff] }
 0x5ac   : > { %v6930_v52 = vadd.f32 %v6929_v57, %v6913_v58  ;;  %8103 = vmatmul.bf16.vlgmr.msra.gmra.mxu0 %v19352_v23  ;;  %v16645_v23 = vld [vmem:[%s20646_s1 + $0x7f8] sm:$0xff]  ;;  %8505 = vmatpush.bf16.msrb.mxu3 %v16606_v9 }
 0x5ad   : > { %8122 = vmatmul.bf16.vlgmr.msra.gmra.mxu1 %v19354_v27  ;;  %8773 = vmatpush.bf16.msra.mxu0 %v16621_v4  ;;  %v16653_v57 = vld [vmem:[%s20646_s1 + $0x838] sm:$0xff]  ;;  %v16668_v4 = vld [vmem:[%s20646_s1 + $0x8b0] sm:$0xff] }
 0x5ae   : > { %8141 = vmatmul.bf16.vlgmr.msra.gmra.mxu2 %v19365_v7  ;;  %8792 = vmatpush.bf16.msra.mxu1 %v16629_v20  ;;  %v16620_v7 = vld [vmem:[%s20646_s1 + $0x730] sm:$0xff]  ;;  %v16661_v58 = vld [vmem:[%s20646_s1 + $0x878] sm:$0xff] }
 0x5af   : > { %8160 = vmatmul.bf16.vlgmr.msra.gmra.mxu3 %v19367_v51  ;;  %8811 = vmatpush.bf16.msra.mxu2 %v16637_v13  ;;  %v16628_v51 = vld [vmem:[%s20646_s1 + $0x770] sm:$0xff]  ;;  %v16677_v9 = vld [vmem:[%s20646_s1 + $0x8f8] sm:$0xff] }
 0x5b0   : > { %8830 = vmatpush.bf16.msra.mxu3 %v16645_v23  ;;  %v16652_v20 = vld [vmem:[%s20646_s1 + $0x830] sm:$0xff] }
 0x5b1   : > { %v6946_v27 = vpop.f32.mrf.mxu2  ;;  %v6914_v30 = vpop.f32.mrf.mxu0  ;;  %8774 = vmatpush.bf16.msra.mxu0 %v16620_v7  ;;  %v16660_v23 = vld [vmem:[%s20646_s1 + $0x870] sm:$0xff] }
 0x5b2   : > { %v6963_v49 = vpop.f32.mrf.mxu3  ;;  %v6947_v36 = vadd.f32 %v6946_v27, %v6930_v52  ;;  %v6931_v6 = vpop.f32.mrf.mxu1  ;;  %8793 = vmatpush.bf16.msra.mxu1 %v16628_v51  ;;  %v16676_v7 = vld [vmem:[%s20646_s1 + $0x8f0] sm:$0xff]  ;;  %v14603_v30 = vld [vmem:[%s17006_s10 + $0x120] sm:$0xf] }
 0x5b3   : > { %8812 = vmatpush.bf16.msra.mxu2 %v16636_v22  ;;  %v16388_v6 = vld [vmem:[%s17006_s10 + $0x12c] sm:$0xf0] }
 0x5b4   : > { %v19876_v55 = vadd.f32 %v6963_v49, %v6947_v36  ;;  %8831 = vmatpush.bf16.msra.mxu3 %v16644_v46  ;;  %v16386_v46 = vld [vmem:[%s17006_s10 + $0x124] sm:$0xf] }
 0x5b5   : > { %8775 = vmatpush.bf16.msra.mxu0 %v16619_v47  ;;  %v16651_v47 = vld [vmem:[%s20646_s1 + $0x828] sm:$0xff] }
 0x5b6   : > { %8794 = vmatpush.bf16.msra.mxu1 %v16627_v0  ;;  %v16659_v0 = vld [vmem:[%s20646_s1 + $0x868] sm:$0xff] }
 0x5b7   : > { %8813 = vmatpush.bf16.msra.mxu2 %v16635_v18  ;;  %v16667_v18 = vld [vmem:[%s20646_s1 + $0x8a8] sm:$0xff] }
 0x5b8   : > { %8832 = vmatpush.bf16.msra.mxu3 %v16643_v61  ;;  %v14605_v61 = vld [vmem:[%s17006_s10 + $0x130] sm:$0xf0] }
 0x5b9   : > { %v6948_v28 = vpop.f32.mrf.mxu2  ;;  %v6916_v2 = vpop.f32.mrf.mxu0  ;;  %8776 = vmatpush.bf16.msra.mxu0 %v16618_v3  ;;  %v16387_v3 = vld [vmem:[%s17006_s10 + $0x12c] sm:$0xf] }
 0x5ba   : > { %v6965_v44 = vpop.f32.mrf.mxu3  ;;  %v6933_v35 = vpop.f32.mrf.mxu1  ;;  %v6917_v31 = vadd.f32 %v6916_v2, %v19821_v45  ;;  %8795 = vmatpush.bf16.msra.mxu1 %v16626_v26  ;;  %v16639_v45 = vld [vmem:[%s20646_s1 + $0x7c8] sm:$0xff]  ;;  %v14613_v26 = vld [vmem:[%s17006_s10 + $0x138] sm:$0xf0] }
 0x5bb   : > { %8814 = vmatpush.bf16.msra.mxu2 %v16634_v10  ;;  %v14611_v28 = vld [vmem:[%s17006_s10 + $0x128] sm:$0xf]  ;;  %v16389_v10 = vld [vmem:[%s17006_s10 + $0x134] sm:$0xf0] }
 0x5bc   : > { %v6934_v63 = vadd.f32 %v6933_v35, %v6917_v31  ;;  %8108 = vmatmul.bf16.gmra.mxu0 %v19208_v16  ;;  %8833 = vmatpush.bf16.msra.mxu3 %v16642_v25  ;;  %v16641_v16 = vld [vmem:[%s20646_s1 + $0x7d8] sm:$0xff]  ;;  %v16675_v44 = vld [vmem:[%s20646_s1 + $0x8e8] sm:$0xff]  ;;  %v20007_v31 = vor.u32 %v16388_v6, %v14603_v30  ;;  %v20009_v25 = vor.u32 %v16386_v46, %v14605_v61  ;;  %v16776_v61 = vld [vmem:[%s20649_s4 + $0x2b0] sm:$0xff] }
 0x5bd   : > { %8127 = vmatmul.bf16.gmra.mxu1 %v19210_v59  ;;  %8777 = vmatpush.bf16.msra.mxu0 %v16617_v24  ;;  %v16658_v24 = vld [vmem:[%s20646_s1 + $0x860] sm:$0xff]  ;;  %v16777_v6 = vld [vmem:[%s20649_s4 + $0x2b8] sm:$0xff] }
 0x5be   : > { %8146 = vmatmul.bf16.gmra.mxu2 %v19221_v40  ;;  %8796 = vmatpush.bf16.msra.mxu1 %v16625_v17  ;;  %v16769_v46 = vld [vmem:[%s20649_s4 + $0x278] sm:$0xff] }
 0x5bf   : > { %8165 = vmatmul.bf16.gmra.mxu3 %v19223_v60  ;;  %8815 = vmatpush.bf16.msra.mxu2 %v16633_v48  ;;  %v16632_v60 = vld [vmem:[%s20646_s1 + $0x790] sm:$0xff]  ;;  %v16650_v48 = vld [vmem:[%s20646_s1 + $0x820] sm:$0xff] }
 0x5c0   : > { %8834 = vmatpush.bf16.msra.mxu3 %v16641_v16 }
 0x5c1   : > { %v6950_v59 = vpop.f32.mrf.mxu2  ;;  %v6918_v34 = vpop.f32.mrf.mxu0  ;;  %8778 = vmatpush.bf16.msra.mxu0 %v16616_v50 }
 0x5c2   : > { %v6967_v40 = vpop.f32.mrf.mxu3  ;;  %v6951_v19 = vadd.f32 %v6950_v59, %v6934_v63  ;;  %v6935_v32 = vpop.f32.mrf.mxu1  ;;  %8797 = vmatpush.bf16.msra.mxu1 %v16624_v53  ;;  %v16666_v63 = vld [vmem:[%s20646_s1 + $0x8a0] sm:$0xff]  ;;  %v16665_v34 = vld [vmem:[%s20646_s1 + $0x898] sm:$0xff] }
 0x5c3   : > { %8816 = vmatpush.bf16.msra.mxu2 %v16632_v60  ;;  %v20022_v60 = vor.u32 %v16387_v3, %v14613_v26  ;;  %v16674_v53 = vld [vmem:[%s20646_s1 + $0x8e0] sm:$0xff]  ;;  %v16649_v32 = vld [vmem:[%s20646_s1 + $0x818] sm:$0xff] }
 0x5c4   : > { %v19931_v37 = vadd.f32 %v6967_v40, %v6951_v19  ;;  %8835 = vmatpush.bf16.msra.mxu3 %v16640_v14  ;;  %v20020_v40 = vor.u32 %v16389_v10, %v14611_v28  ;;  %v16657_v14 = vld [vmem:[%s20646_s1 + $0x858] sm:$0xff]  ;;  %v16760_v28 = vld [vmem:[%s20649_s4 + $0x230] sm:$0xff] }
 0x5c5   : > { %8779 = vmatpush.bf16.msra.mxu0 %v16615_v43 }
 0x5c6   : > { %8798 = vmatpush.bf16.msra.mxu1 %v16623_v15 }
 0x5c7   : > { %8817 = vmatpush.bf16.msra.mxu2 %v16631_v62  ;;  %v16673_v62 = vld [vmem:[%s20646_s1 + $0x8d8] sm:$0xff] }
 0x5c8   : > { %8836 = vmatpush.bf16.msra.mxu3 %v16639_v45  ;;  %v16664_v45 = vld [vmem:[%s20646_s1 + $0x890] sm:$0xff] }
 0x5c9   : > { %v6952_v8 = vpop.f32.mrf.mxu2  ;;  %v7236_v56 = vpop.f32.mrf.mxu0  ;;  %8780 = vmatpush.bf16.msra.mxu0 %v16614_v54 }
 0x5ca   : > { %v6969_v39 = vpop.f32.mrf.mxu3  ;;  %v7255_v41 = vpop.f32.mrf.mxu1  ;;  %8799 = vmatpush.bf16.msra.mxu1 %v16622_v42  ;;  %v16648_v8 = vld [vmem:[%s20646_s1 + $0x810] sm:$0xff] }
 0x5cb   : > { %v7256_v5 = vadd.f32 %v7255_v41, %v7236_v56  ;;  %8818 = vmatpush.bf16.msra.mxu2 %v16630_v29  ;;  %v16656_v39 = vld [vmem:[%s20646_s1 + $0x850] sm:$0xff] }
 0x5cc   : > { %8455 = vmatmul.bf16.vlgmr.msrb.gmra.mxu0 %v19280_v33  ;;  %8837 = vmatpush.bf16.msra.mxu3 %v16638_v21  ;;  %v16672_v41 = vld [vmem:[%s20646_s1 + $0x8d0] sm:$0xff]  ;;  %v16663_v21 = vld [vmem:[%s20646_s1 + $0x888] sm:$0xff] }
 0x5cd   : > { %8472 = vmatmul.bf16.vlgmr.msrb.gmra.mxu1 %v19282_v11  ;;  %9109 = vmatpush.bf16.msrb.mxu0 %v16653_v57  ;;  %v16655_v57 = vld [vmem:[%s20646_s1 + $0x848] sm:$0xff] }
 0x5ce   : > { %8489 = vmatmul.bf16.vlgmr.msrb.gmra.mxu2 %v19293_v12  ;;  %9128 = vmatpush.bf16.msrb.mxu1 %v16661_v58  ;;  %v16671_v58 = vld [vmem:[%s20646_s1 + $0x8c8] sm:$0xff] }
 0x5cf   : > { %8506 = vmatmul.bf16.vlgmr.msrb.gmra.mxu3 %v19295_v38  ;;  %9147 = vmatpush.bf16.msrb.mxu2 %v16669_v1  ;;  %v16647_v1 = vld [vmem:[%s20646_s1 + $0x808] sm:$0xff] }
 0x5d0   : > { %9166 = vmatpush.bf16.msrb.mxu3 %v16677_v9 }
 0x5d1   : > { %v7274_v52 = vpop.f32.mrf.mxu2  ;;  %v7238_v49 = vpop.f32.mrf.mxu0  ;;  %9110 = vmatpush.bf16.msrb.mxu0 %v16652_v20  ;;  %v16654_v20 = vld [vmem:[%s20646_s1 + $0x840] sm:$0xff] }
 0x5d2   : > { %v7293_v13 = vpop.f32.mrf.mxu3  ;;  %v7275_v27 = vadd.f32 %v7274_v52, %v7256_v5  ;;  %v7257_v22 = vpop.f32.mrf.mxu1  ;;  %9129 = vmatpush.bf16.msrb.mxu1 %v16660_v23 }
 0x5d3   : > { %v7258_v51 = vadd.f32 %v7257_v22, %v7238_v49  ;;  %9148 = vmatpush.bf16.msrb.mxu2 %v16668_v4  ;;  %v16646_v4 = vld [vmem:[%s20646_s1 + $0x800] sm:$0xff] }
 0x5d4   : > { %v19985_v36 = vadd.f32 %v7293_v13, %v7275_v27  ;;  %9167 = vmatpush.bf16.msrb.mxu3 %v16676_v7  ;;  %v16662_v13 = vld [vmem:[%s20646_s1 + $0x880] sm:$0xff] }
 0x5d5   : > { %9111 = vmatpush.bf16.msrb.mxu0 %v16651_v47  ;;  %v16670_v7 = vld [vmem:[%s20646_s1 + $0x8c0] sm:$0xff] }
 0x5d6   : > { %9130 = vmatpush.bf16.msrb.mxu1 %v16659_v0 }
 0x5d7   : > { %9149 = vmatpush.bf16.msrb.mxu2 %v16667_v18  ;;  %v16785_v18 = vld [vmem:[%s20649_s4 + $0x2f8] sm:$0xff] }
 0x5d8   : > { %9168 = vmatpush.bf16.msrb.mxu3 %v16675_v44  ;;  %v16768_v44 = vld [vmem:[%s20649_s4 + $0x270] sm:$0xff] }
 0x5d9   : > { %v7276_v2 = vpop.f32.mrf.mxu2  ;;  %v7241_v16 = vpop.f32.mrf.mxu0  ;;  %9112 = vmatpush.bf16.msrb.mxu0 %v16650_v48  ;;  %v16775_v48 = vld [vmem:[%s20649_s4 + $0x2a8] sm:$0xff] }
 0x5da   : > { %v7295_v35 = vpop.f32.mrf.mxu3  ;;  %v7277_v17 = vadd.f32 %v7276_v2, %v7258_v51  ;;  %v7260_v59 = vpop.f32.mrf.mxu1  ;;  %9131 = vmatpush.bf16.msrb.mxu1 %v16658_v24  ;;  %v16784_v2 = vld [vmem:[%s20649_s4 + $0x2f0] sm:$0xff]  ;;  %v16759_v24 = vld [vmem:[%s20649_s4 + $0x228] sm:$0xff] }
 0x5db   : > { %v7261_v50 = vadd.f32 %v7260_v59, %v7241_v16  ;;  %9150 = vmatpush.bf16.msrb.mxu2 %v16666_v63  ;;  %v16783_v59 = vld [vmem:[%s20649_s4 + $0x2e8] sm:$0xff] }
 0x5dc   : > { %v20027_v19 = vadd.f32 %v7295_v35, %v7277_v17  ;;  %8459 = vmatmul.bf16.gmra.mxu0 %v20007_v31  ;;  %9169 = vmatpush.bf16.msrb.mxu3 %v16674_v53  ;;  %v16767_v17 = vld [vmem:[%s20649_s4 + $0x268] sm:$0xff] }
 0x5dd   : > { %8476 = vmatmul.bf16.gmra.mxu1 %v20009_v25  ;;  %9113 = vmatpush.bf16.msrb.mxu0 %v16649_v32  ;;  %v16766_v32 = vld [vmem:[%s20649_s4 + $0x260] sm:$0xff] }
 0x5de   : > { %8493 = vmatmul.bf16.gmra.mxu2 %v20020_v40  ;;  %9132 = vmatpush.bf16.msrb.mxu1 %v16657_v14 }
 0x5df   : > { %8510 = vmatmul.bf16.gmra.mxu3 %v20022_v60  ;;  %9151 = vmatpush.bf16.msrb.mxu2 %v16665_v34  ;;  %v16758_v34 = vld [vmem:[%s20649_s4 + $0x220] sm:$0xff] }
 0x5e0   : > { %9170 = vmatpush.bf16.msrb.mxu3 %v16673_v62 }
 0x5e1   : > { %v7279_v43 = vpop.f32.mrf.mxu2  ;;  %v7243_v54 = vpop.f32.mrf.mxu0  ;;  %9114 = vmatpush.bf16.msrb.mxu0 %v16648_v8 }
 0x5e2   : > { %v7298_v15 = vpop.f32.mrf.mxu3  ;;  %v7280_v29 = vadd.f32 %v7279_v43, %v7261_v50  ;;  %v7262_v42 = vpop.f32.mrf.mxu1  ;;  %9133 = vmatpush.bf16.msrb.mxu1 %v16656_v39 }
 0x5e3   : > { %v7263_v56 = vadd.f32 %v7262_v42, %v7243_v54  ;;  %9152 = vmatpush.bf16.msrb.mxu2 %v16664_v45  ;;  %v16782_v45 = vld [vmem:[%s20649_s4 + $0x2e0] sm:$0xff]  ;;  %v16757_v54 = vld [vmem:[%s20649_s4 + $0x218] sm:$0xff] }
 0x5e4   : > { %v20057_v5 = vadd.f32 %v7298_v15, %v7280_v29  ;;  %9171 = vmatpush.bf16.msrb.mxu3 %v16672_v41  ;;  %v16773_v29 = vld [vmem:[%s20649_s4 + $0x298] sm:$0xff] }
 0x5e5   : > { %9115 = vmatpush.bf16.msrb.mxu0 %v16647_v1  ;;  %v16765_v42 = vld [vmem:[%s20649_s4 + $0x258] sm:$0xff]  ;;  %v16756_v1 = vld [vmem:[%s20649_s4 + $0x210] sm:$0xff] }
 0x5e6   : > { %9134 = vmatpush.bf16.msrb.mxu1 %v16655_v57  ;;  %v16764_v57 = vld [vmem:[%s20649_s4 + $0x250] sm:$0xff] }
 0x5e7   : > { %9153 = vmatpush.bf16.msrb.mxu2 %v16663_v21  ;;  %v16772_v21 = vld [vmem:[%s20649_s4 + $0x290] sm:$0xff] }
 0x5e8   : > { %9172 = vmatpush.bf16.msrb.mxu3 %v16671_v58 }
 0x5e9   : > { %v7281_v9 = vpop.f32.mrf.mxu2  ;;  %v7504_v27 = vpop.f32.mrf.mxu0  ;;  %9116 = vmatpush.bf16.msrb.mxu0 %v16646_v4  ;;  %v16780_v4 = vld [vmem:[%s20649_s4 + $0x2d0] sm:$0xff] }
 0x5ea   : > { %v7300_v52 = vpop.f32.mrf.mxu3  ;;  %v7282_v23 = vadd.f32 %v7281_v9, %v7263_v56  ;;  %v7523_v49 = vpop.f32.mrf.mxu1  ;;  %v7505_v22 = vadd.f32 %v7504_v27, %v19985_v36  ;;  %9135 = vmatpush.bf16.msrb.mxu1 %v16654_v20  ;;  %v16761_v36 = vld [vmem:[%s20649_s4 + $0x238] sm:$0xff]  ;;  %v16755_v27 = vld [vmem:[%s20649_s4 + $0x208] sm:$0xff] }
 0x5eb   : > { %9154 = vmatpush.bf16.msrb.mxu2 %v16662_v13  ;;  %v16781_v56 = vld [vmem:[%s20649_s4 + $0x2d8] sm:$0xff] }
 0x5ec   : > { %v20084_v51 = vadd.f32 %v7300_v52, %v7282_v23  ;;  %v7524_v30 = vadd.f32 %v7523_v49, %v7505_v22  ;;  %8781 = vmatmul.bf16.vlgmr.msra.gmra.mxu0 %v19280_v33  ;;  %9173 = vmatpush.bf16.msrb.mxu3 %v16670_v7  ;;  %v16771_v23 = vld [vmem:[%s20649_s4 + $0x288] sm:$0xff] }
 0x5ed   : > { %8800 = vmatmul.bf16.vlgmr.msra.gmra.mxu1 %v19282_v11  ;;  %9666 = vmatpush.bf16.msra.mxu0 %v16761_v36  ;;  %v16763_v49 = vld [vmem:[%s20649_s4 + $0x248] sm:$0xff]  ;;  %v16754_v36 = vld [vmem:[%s20649_s4 + $0x200] sm:$0xff] }
 0x5ee   : > { %8819 = vmatmul.bf16.vlgmr.msra.gmra.mxu2 %v19293_v12  ;;  %9683 = vmatpush.bf16.msra.mxu1 %v16769_v46  ;;  %v16779_v7 = vld [vmem:[%s20649_s4 + $0x2c8] sm:$0xff]  ;;  %v16762_v46 = vld [vmem:[%s20649_s4 + $0x240] sm:$0xff] }
 0x5ef   : > { %8838 = vmatmul.bf16.vlgmr.msra.gmra.mxu3 %v19295_v38  ;;  %9700 = vmatpush.bf16.msra.mxu2 %v16777_v6  ;;  %v16770_v6 = vld [vmem:[%s20649_s4 + $0x280] sm:$0xff] }
 0x5f0   : > { %9717 = vmatpush.bf16.msra.mxu3 %v16785_v18 }
 0x5f1   : > { %v7542_v47 = vpop.f32.mrf.mxu2  ;;  %v7506_v3 = vpop.f32.mrf.mxu0  ;;  %9667 = vmatpush.bf16.msra.mxu0 %v16760_v28  ;;  %v16778_v28 = vld [vmem:[%s20649_s4 + $0x2c0] sm:$0xff] }
 0x5f2   : > { %v7561_v0 = vpop.f32.mrf.mxu3  ;;  %v7543_v10 = vadd.f32 %v7542_v47, %v7524_v30  ;;  %v7525_v26 = vpop.f32.mrf.mxu1  ;;  %v7507_v35 = vadd.f32 %v7506_v3, %v20027_v19  ;;  %9684 = vmatpush.bf16.msra.mxu1 %v16768_v44  ;;  %v16774_v19 = vld [vmem:[%s20649_s4 + $0x2a0] sm:$0xff]  ;;  %v16697_v3 = vld [vmem:[%s20649_s4 + $0x38] sm:$0xff] }
 0x5f3   : > { %9701 = vmatpush.bf16.msra.mxu2 %v16776_v61 }
 0x5f4   : > { %v20115_v63 = vadd.f32 %v7561_v0, %v7543_v10  ;;  %v7526_v16 = vadd.f32 %v7525_v26, %v7507_v35  ;;  %9718 = vmatpush.bf16.msra.mxu3 %v16784_v2  ;;  %v16713_v10 = vld [vmem:[%s20649_s4 + $0xb8] sm:$0xff]  ;;  %v16696_v2 = vld [vmem:[%s20649_s4 + $0x30] sm:$0xff] }
 0x5f5   : > { %9668 = vmatpush.bf16.msra.mxu0 %v16759_v24  ;;  %v16705_v26 = vld [vmem:[%s20649_s4 + $0x78] sm:$0xff]  ;;  %v16704_v35 = vld [vmem:[%s20649_s4 + $0x70] sm:$0xff] }
 0x5f6   : > { %9685 = vmatpush.bf16.msra.mxu1 %v16767_v17 }
 0x5f7   : > { %9702 = vmatpush.bf16.msra.mxu2 %v16775_v48 }
 0x5f8   : > { %9719 = vmatpush.bf16.msra.mxu3 %v16783_v59 }
 0x5f9   : > { %v7544_v50 = vpop.f32.mrf.mxu2  ;;  %v7509_v62 = vpop.f32.mrf.mxu0  ;;  %9669 = vmatpush.bf16.msra.mxu0 %v16758_v34  ;;  %v16703_v34 = vld [vmem:[%s20649_s4 + $0x68] sm:$0xff] }
 0x5fa   : > { %v7563_v53 = vpop.f32.mrf.mxu3  ;;  %v7545_v14 = vadd.f32 %v7544_v50, %v7526_v16  ;;  %v7528_v43 = vpop.f32.mrf.mxu1  ;;  %v7510_v15 = vadd.f32 %v7509_v62, %v20057_v5  ;;  %9686 = vmatpush.bf16.msra.mxu1 %v16766_v32  ;;  %v16720_v16 = vld [vmem:[%s20649_s4 + $0xf0] sm:$0xff]  ;;  %v16719_v32 = vld [vmem:[%s20649_s4 + $0xe8] sm:$0xff] }
 0x5fb   : > { %9703 = vmatpush.bf16.msra.mxu2 %v16774_v19  ;;  %v16695_v19 = vld [vmem:[%s20649_s4 + $0x28] sm:$0xff] }
 0x5fc   : > { %v20142_v8 = vadd.f32 %v7563_v53, %v7545_v14  ;;  %v7529_v39 = vadd.f32 %v7528_v43, %v7510_v15  ;;  %8786 = vmatmul.bf16.gmra.mxu0 %v20007_v31  ;;  %9720 = vmatpush.bf16.msra.mxu3 %v16782_v45  ;;  %v16711_v53 = vld [vmem:[%s20649_s4 + $0xa8] sm:$0xff]  ;;  %v16710_v43 = vld [vmem:[%s20649_s4 + $0xa0] sm:$0xff] }
 0x5fd   : > { %8805 = vmatmul.bf16.gmra.mxu1 %v20009_v25  ;;  %9670 = vmatpush.bf16.msra.mxu0 %v16757_v54  ;;  %v16694_v15 = vld [vmem:[%s20649_s4 + $0x20] sm:$0xff] }
 0x5fe   : > { %8824 = vmatmul.bf16.gmra.mxu2 %v20020_v40  ;;  %9687 = vmatpush.bf16.msra.mxu1 %v16765_v42  ;;  %v16702_v45 = vld [vmem:[%s20649_s4 + $0x60] sm:$0xff] }
 0x5ff   : > { %8843 = vmatmul.bf16.gmra.mxu3 %v20022_v60  ;;  %9704 = vmatpush.bf16.msra.mxu2 %v16773_v29 }
 0x600   : > { %9721 = vmatpush.bf16.msra.mxu3 %v16781_v56  ;;  %v16718_v56 = vld [vmem:[%s20649_s4 + $0xe0] sm:$0xff] }
 0x601   : > { %v7547_v41 = vpop.f32.mrf.mxu2  ;;  %v7511_v9 = vpop.f32.mrf.mxu0  ;;  %9671 = vmatpush.bf16.msra.mxu0 %v16756_v1  ;;  %v16701_v1 = vld [vmem:[%s20649_s4 + $0x58] sm:$0xff] }
 0x602   : > { %v7566_v5 = vpop.f32.mrf.mxu3  ;;  %v7548_v58 = vadd.f32 %v7547_v41, %v7529_v39  ;;  %v7530_v52 = vpop.f32.mrf.mxu1  ;;  %v7512_v13 = vadd.f32 %v7511_v9, %v20084_v51  ;;  %9688 = vmatpush.bf16.msra.mxu1 %v16764_v57  ;;  %v16692_v57 = vld [vmem:[%s20649_s4 + $0x10] sm:$0xff] }
 0x603   : > { %9705 = vmatpush.bf16.msra.mxu2 %v16772_v21  ;;  %v16693_v21 = vld [vmem:[%s20649_s4 + $0x18] sm:$0xff] }
 0x604   : > { %v20173_v20 = vadd.f32 %v7566_v5, %v7548_v58  ;;  %v7531_v22 = vadd.f32 %v7530_v52, %v7512_v13  ;;  %9722 = vmatpush.bf16.msra.mxu3 %v16780_v4  ;;  %v16709_v5 = vld [vmem:[%s20649_s4 + $0x98] sm:$0xff]  ;;  %v16700_v58 = vld [vmem:[%s20649_s4 + $0x50] sm:$0xff] }
 0x605   : > { %9672 = vmatpush.bf16.msra.mxu0 %v16755_v27 }
 0x606   : > { %9689 = vmatpush.bf16.msra.mxu1 %v16763_v49  ;;  %v15271_v49 = vld [vmem:[%s18433_s9 + $0xe0] sm:$0xf] }
 0x607   : > { %9706 = vmatpush.bf16.msra.mxu2 %v16771_v23  ;;  %v16716_v23 = vld [vmem:[%s20649_s4 + $0xd0] sm:$0xff] }
 0x608   : > { %9723 = vmatpush.bf16.msra.mxu3 %v16779_v7  ;;  %v16682_v7 = vld [vmem:[%s18433_s9 + $0xe4] sm:$0xf] }
 0x609   : > { %v7549_v51 = vpop.f32.mrf.mxu2  ;;  %v7836_v47 = vpop.f32.mrf.mxu0  ;;  %9673 = vmatpush.bf16.msra.mxu0 %v16754_v36  ;;  %v15273_v36 = vld [vmem:[%s18433_s9 + $0xf0] sm:$0xf0] }
 0x60a   : > { %v7568_v30 = vpop.f32.mrf.mxu3  ;;  %v7550_v18 = vadd.f32 %v7549_v51, %v7531_v22  ;;  %v7855_v0 = vpop.f32.mrf.mxu1  ;;  %9690 = vmatpush.bf16.msra.mxu1 %v16762_v46  ;;  %v16684_v22 = vld [vmem:[%s18433_s9 + $0xec] sm:$0xf0]  ;;  %v16707_v51 = vld [vmem:[%s20649_s4 + $0x88] sm:$0xff] }
 0x60b   : > { %v7856_v61 = vadd.f32 %v7855_v0, %v7836_v47  ;;  %9707 = vmatpush.bf16.msra.mxu2 %v16770_v6  ;;  %v16699_v6 = vld [vmem:[%s20649_s4 + $0x48] sm:$0xff]  ;;  %v15281_v0 = vld [vmem:[%s18433_s9 + $0xf8] sm:$0xf0] }
 0x60c   : > { %v20199_v44 = vadd.f32 %v7568_v30, %v7550_v18  ;;  %9117 = vmatmul.bf16.vlgmr.msrb.gmra.mxu0 %v19280_v33  ;;  %v16721_v33 = vld [vmem:[%s20649_s4 + $0xf8] sm:$0xff]  ;;  %9724 = vmatpush.bf16.msra.mxu3 %v16778_v28  ;;  %v16691_v30 = vld [vmem:[%s20649_s4 + $0x8] sm:$0xff] }
 0x60d   : > { %9136 = vmatmul.bf16.vlgmr.msrb.gmra.mxu1 %v19282_v11  ;;  %9946 = vmatpush.bf16.msrb.mxu0 %v16697_v3  ;;  %v15279_v46 = vld [vmem:[%s18433_s9 + $0xe8] sm:$0xf]  ;;  %v16685_v18 = vld [vmem:[%s18433_s9 + $0xf4] sm:$0xf0]  ;;  %v16683_v47 = vld [vmem:[%s18433_s9 + $0xec] sm:$0xf]  ;;  %v20307_v3 = vor.u32 %v16684_v22, %v15271_v49 }
 0x60e   : > { %9155 = vmatmul.bf16.vlgmr.msrb.gmra.mxu2 %v19293_v12  ;;  %9963 = vmatpush.bf16.msrb.mxu1 %v16705_v26  ;;  %v20309_v26 = vor.u32 %v16682_v7, %v15273_v36 }
 0x60f   : > { %9174 = vmatmul.bf16.vlgmr.msrb.gmra.mxu3 %v19295_v38  ;;  %9980 = vmatpush.bf16.msrb.mxu2 %v16713_v10  ;;  %v16712_v38 = vld [vmem:[%s20649_s4 + $0xb0] sm:$0xff] }
 0x610   : > { %9997 = vmatpush.bf16.msrb.mxu3 %v16721_v33  ;;  %v16706_v33 = vld [vmem:[%s20649_s4 + $0x80] sm:$0xff] }
 0x611   : > { %v7874_v11 = vpop.f32.mrf.mxu2  ;;  %v7838_v24 = vpop.f32.mrf.mxu0  ;;  %9947 = vmatpush.bf16.msrb.mxu0 %v16696_v2 }
 0x612   : > { %v7893_v12 = vpop.f32.mrf.mxu3  ;;  %v7875_v48 = vadd.f32 %v7874_v11, %v7856_v61  ;;  %v7857_v17 = vpop.f32.mrf.mxu1  ;;  %9964 = vmatpush.bf16.msrb.mxu1 %v16704_v35  ;;  %v16715_v61 = vld [vmem:[%s20649_s4 + $0xc8] sm:$0xff]  ;;  %v16690_v11 = vld [vmem:[%s20649_s4] sm:$0xff] }
 0x613   : > { %v7858_v59 = vadd.f32 %v7857_v17, %v7838_v24  ;;  %9981 = vmatpush.bf16.msrb.mxu2 %v16712_v38  ;;  %v20322_v24 = vor.u32 %v16683_v47, %v15281_v0 }
 0x614   : > { %v20229_v50 = vadd.f32 %v7893_v12, %v7875_v48  ;;  %9998 = vmatpush.bf16.msrb.mxu3 %v16720_v16  ;;  %v16698_v12 = vld [vmem:[%s20649_s4 + $0x40] sm:$0xff]  ;;  %v20320_v48 = vor.u32 %v16685_v18, %v15279_v46 }
 0x615   : > { %9948 = vmatpush.bf16.msrb.mxu0 %v16695_v19  ;;  %v16714_v16 = vld [vmem:[%s20649_s4 + $0xc0] sm:$0xff]  ;;  %v16809_v19 = vld [vmem:[%s20649_s4 + $0x3b8] sm:$0xff] }
 0x616   : > { %9965 = vmatpush.bf16.msrb.mxu1 %v16703_v34  ;;  %v16801_v34 = vld [vmem:[%s20649_s4 + $0x378] sm:$0xff] }
 0x617   : > { %9982 = vmatpush.bf16.msrb.mxu2 %v16711_v53 }
 0x618   : > { %9999 = vmatpush.bf16.msrb.mxu3 %v16719_v32  ;;  %v16817_v32 = vld [vmem:[%s20649_s4 + $0x3f8] sm:$0xff] }
 0x619   : > { %v7876_v14 = vpop.f32.mrf.mxu2  ;;  %v7841_v29 = vpop.f32.mrf.mxu0  ;;  %9949 = vmatpush.bf16.msrb.mxu0 %v16694_v15  ;;  %v16792_v15 = vld [vmem:[%s20649_s4 + $0x330] sm:$0xff] }
 0x61a   : > { %v7895_v62 = vpop.f32.mrf.mxu3  ;;  %v7877_v39 = vadd.f32 %v7876_v14, %v7858_v59  ;;  %v7860_v54 = vpop.f32.mrf.mxu1  ;;  %9966 = vmatpush.bf16.msrb.mxu1 %v16702_v45  ;;  %v16800_v45 = vld [vmem:[%s20649_s4 + $0x370] sm:$0xff] }
 0x61b   : > { %v7861_v42 = vadd.f32 %v7860_v54, %v7841_v29  ;;  %9983 = vmatpush.bf16.msrb.mxu2 %v16710_v43  ;;  %v16808_v43 = vld [vmem:[%s20649_s4 + $0x3b0] sm:$0xff] }
 0x61c   : > { %v20255_v41 = vadd.f32 %v7895_v62, %v7877_v39  ;;  %9122 = vmatmul.bf16.gmra.mxu0 %v20007_v31  ;;  %10000 = vmatpush.bf16.msrb.mxu3 %v16718_v56  ;;  %v16717_v31 = vld [vmem:[%s20649_s4 + $0xd8] sm:$0xff] }
 0x61d   : > { %9141 = vmatmul.bf16.gmra.mxu1 %v20009_v25  ;;  %9950 = vmatpush.bf16.msrb.mxu0 %v16693_v21  ;;  %v15287_v21 = vld [vmem:[%s18433_s9 + $0x100] sm:$0xf] }
 0x61e   : > { %9160 = vmatmul.bf16.gmra.mxu2 %v20020_v40  ;;  %9967 = vmatpush.bf16.msrb.mxu1 %v16701_v1  ;;  %v16688_v1 = vld [vmem:[%s18433_s9 + $0x10c] sm:$0xf0] }
 0x61f   : > { %9179 = vmatmul.bf16.gmra.mxu3 %v20022_v60  ;;  %9984 = vmatpush.bf16.msrb.mxu2 %v16709_v5  ;;  %v16708_v60 = vld [vmem:[%s20649_s4 + $0x90] sm:$0xff]  ;;  %v20381_v22 = vor.u32 %v16688_v1, %v15287_v21  ;;  %v16681_v21 = vld [vmem:[%s18433_s9 + $0xd4] sm:$0xf0]  ;;  %v16679_v1 = vld [vmem:[%s18433_s9 + $0xcc] sm:$0xf] }
 0x620   : > { %10001 = vmatpush.bf16.msrb.mxu3 %v16717_v31  ;;  %v16686_v31 = vld [vmem:[%s18433_s9 + $0x104] sm:$0xf] }
 0x621   : > { %v7879_v25 = vpop.f32.mrf.mxu2  ;;  %v7843_v52 = vpop.f32.mrf.mxu0  ;;  %9951 = vmatpush.bf16.msrb.mxu0 %v16692_v57  ;;  %v15289_v57 = vld [vmem:[%s18433_s9 + $0x110] sm:$0xf0] }
 0x622   : > { %v7898_v40 = vpop.f32.mrf.mxu3  ;;  %v7880_v9 = vadd.f32 %v7879_v25, %v7861_v42  ;;  %v7862_v13 = vpop.f32.mrf.mxu1  ;;  %9968 = vmatpush.bf16.msrb.mxu1 %v16700_v58  ;;  %v16816_v42 = vld [vmem:[%s20649_s4 + $0x3f0] sm:$0xff]  ;;  %v15295_v58 = vld [vmem:[%s18433_s9 + $0x108] sm:$0xf]  ;;  %v20383_v7 = vor.u32 %v16686_v31, %v15289_v57  ;;  %v15441_v31 = vld [vmem:[%s18433_s9 + $0xd8] sm:$0xf0] }
 0x623   : > { %v7863_v4 = vadd.f32 %v7862_v13, %v7843_v52  ;;  %9985 = vmatpush.bf16.msrb.mxu2 %v16708_v60  ;;  %v16799_v60 = vld [vmem:[%s20649_s4 + $0x368] sm:$0xff]  ;;  %v16689_v52 = vld [vmem:[%s18433_s9 + $0x114] sm:$0xf0] }
 0x624   : > { %v20285_v27 = vadd.f32 %v7898_v40, %v7880_v9  ;;  %10002 = vmatpush.bf16.msrb.mxu3 %v16716_v23  ;;  %v16807_v40 = vld [vmem:[%s20649_s4 + $0x3a8] sm:$0xff]  ;;  %v20394_v47 = vor.u32 %v16689_v52, %v15295_v58  ;;  %v16802_v58 = vld [vmem:[%s20649_s4 + $0x380] sm:$0xff] }
 0x625   : > { %9952 = vmatpush.bf16.msrb.mxu0 %v16691_v30  ;;  %v16815_v9 = vld [vmem:[%s20649_s4 + $0x3e8] sm:$0xff]  ;;  %v16790_v30 = vld [vmem:[%s20649_s4 + $0x320] sm:$0xff] }
 0x626   : > { %9969 = vmatpush.bf16.msrb.mxu1 %v16699_v6  ;;  %v16687_v13 = vld [vmem:[%s18433_s9 + $0x10c] sm:$0xf]  ;;  %v16798_v6 = vld [vmem:[%s20649_s4 + $0x360] sm:$0xff] }
 0x627   : > { %9986 = vmatpush.bf16.msrb.mxu2 %v16707_v51  ;;  %v16806_v51 = vld [vmem:[%s20649_s4 + $0x3a0] sm:$0xff] }
 0x628   : > { %10003 = vmatpush.bf16.msrb.mxu3 %v16715_v61  ;;  %v16794_v52 = vld [vmem:[%s20649_s4 + $0x340] sm:$0xff] }
 0x629   : > { %v7881_v28 = vpop.f32.mrf.mxu2  ;;  %v8104_v2 = vpop.f32.mrf.mxu0  ;;  %9953 = vmatpush.bf16.msrb.mxu0 %v16690_v11  ;;  %v16805_v11 = vld [vmem:[%s20649_s4 + $0x398] sm:$0xff] }
 0x62a   : > { %v7900_v10 = vpop.f32.mrf.mxu3  ;;  %v7882_v38 = vadd.f32 %v7881_v28, %v7863_v4  ;;  %v8123_v35 = vpop.f32.mrf.mxu1  ;;  %v8105_v17 = vadd.f32 %v8104_v2, %v20229_v50  ;;  %9970 = vmatpush.bf16.msrb.mxu1 %v16698_v12  ;;  %v16793_v50 = vld [vmem:[%s20649_s4 + $0x338] sm:$0xff]  ;;  %v16814_v28 = vld [vmem:[%s20649_s4 + $0x3e0] sm:$0xff] }
 0x62b   : > { %9987 = vmatpush.bf16.msrb.mxu2 %v16706_v33  ;;  %v15297_v4 = vld [vmem:[%s18433_s9 + $0x118] sm:$0xf0] }
 0x62c   : > { %v20328_v59 = vadd.f32 %v7900_v10, %v7882_v38  ;;  %v8124_v53 = vadd.f32 %v8123_v35, %v8105_v17  ;;  %9674 = vmatmul.bf16.vlgmr.msra.gmra.mxu0 %v20307_v3  ;;  %10004 = vmatpush.bf16.msrb.mxu3 %v16714_v16  ;;  %v20396_v0 = vor.u32 %v16687_v13, %v15297_v4  ;;  %v16797_v12 = vld [vmem:[%s20649_s4 + $0x358] sm:$0xff]  ;;  %v16804_v17 = vld [vmem:[%s20649_s4 + $0x390] sm:$0xff] }
 0x62d   : > { %9691 = vmatmul.bf16.vlgmr.msra.gmra.mxu1 %v20309_v26  ;;  %10270 = vmatpush.bf16.msra.mxu0 %v16793_v50  ;;  %v16813_v38 = vld [vmem:[%s20649_s4 + $0x3d8] sm:$0xff]  ;;  %v16788_v16 = vld [vmem:[%s20649_s4 + $0x310] sm:$0xff] }
 0x62e   : > { %9708 = vmatmul.bf16.vlgmr.msra.gmra.mxu2 %v20320_v48  ;;  %10289 = vmatpush.bf16.msra.mxu1 %v16801_v34 }
 0x62f   : > { %9725 = vmatmul.bf16.vlgmr.msra.gmra.mxu3 %v20322_v24  ;;  %10308 = vmatpush.bf16.msra.mxu2 %v16809_v19 }
 0x630   : > { %10327 = vmatpush.bf16.msra.mxu3 %v16817_v32 }
 0x631   : > { %v8142_v14 = vpop.f32.mrf.mxu2  ;;  %v8106_v29 = vpop.f32.mrf.mxu0  ;;  %10271 = vmatpush.bf16.msra.mxu0 %v16792_v15  ;;  %v16680_v15 = vld [vmem:[%s18433_s9 + $0xcc] sm:$0xf0] }
 0x632   : > { %v8161_v62 = vpop.f32.mrf.mxu3  ;;  %v8143_v39 = vadd.f32 %v8142_v14, %v8124_v53  ;;  %v8125_v54 = vpop.f32.mrf.mxu1  ;;  %v8107_v56 = vadd.f32 %v8106_v29, %v20255_v41  ;;  %10290 = vmatpush.bf16.msra.mxu1 %v16800_v45  ;;  %v16791_v41 = vld [vmem:[%s20649_s4 + $0x328] sm:$0xff]  ;;  %v16796_v53 = vld [vmem:[%s20649_s4 + $0x350] sm:$0xff]  ;;  %v16678_v45 = vld [vmem:[%s18433_s9 + $0xc4] sm:$0xf] }
 0x633   : > { %10309 = vmatpush.bf16.msra.mxu2 %v16808_v43  ;;  %v16812_v14 = vld [vmem:[%s20649_s4 + $0x3d0] sm:$0xff]  ;;  %v15431_v43 = vld [vmem:[%s18433_s9 + $0xc0] sm:$0xf]  ;;  %v16787_v29 = vld [vmem:[%s20649_s4 + $0x308] sm:$0xff] }
 0x634   : > { %v20359_v5 = vadd.f32 %v8161_v62, %v8143_v39  ;;  %v8126_v25 = vadd.f32 %v8125_v54, %v8107_v56  ;;  %10328 = vmatpush.bf16.msra.mxu3 %v16816_v42  ;;  %v16795_v54 = vld [vmem:[%s20649_s4 + $0x348] sm:$0xff]  ;;  %v15433_v42 = vld [vmem:[%s18433_s9 + $0xd0] sm:$0xf0] }
 0x635   : > { %10272 = vmatpush.bf16.msra.mxu0 %v16791_v41  ;;  %v15439_v56 = vld [vmem:[%s18433_s9 + $0xc8] sm:$0xf]  ;;  %v20457_v57 = vor.u32 %v16678_v45, %v15433_v42  ;;  %v16742_v45 = vld [vmem:[%s20649_s4 + $0x1a0] sm:$0xff] }
 0x636   : > { %10291 = vmatpush.bf16.msra.mxu1 %v16799_v60  ;;  %v20455_v60 = vor.u32 %v16680_v15, %v15431_v43  ;;  %v16750_v42 = vld [vmem:[%s20649_s4 + $0x1e0] sm:$0xff] }
 0x637   : > { %10310 = vmatpush.bf16.msra.mxu2 %v16807_v40 }
 0x638   : > { %10329 = vmatpush.bf16.msra.mxu3 %v16815_v9  ;;  %v16786_v9 = vld [vmem:[%s20649_s4 + $0x300] sm:$0xff] }
 0x639   : > { %v8144_v23 = vpop.f32.mrf.mxu2  ;;  %v8109_v46 = vpop.f32.mrf.mxu0  ;;  %10273 = vmatpush.bf16.msra.mxu0 %v16790_v30 }
 0x63a   : > { %v8163_v49 = vpop.f32.mrf.mxu3  ;;  %v8145_v36 = vadd.f32 %v8144_v23, %v8126_v25  ;;  %v8128_v18 = vpop.f32.mrf.mxu1  ;;  %v8110_v61 = vadd.f32 %v8109_v46, %v20285_v27  ;;  %10292 = vmatpush.bf16.msra.mxu1 %v16798_v6  ;;  %v16789_v27 = vld [vmem:[%s20649_s4 + $0x318] sm:$0xff]  ;;  %v16811_v25 = vld [vmem:[%s20649_s4 + $0x3c8] sm:$0xff]  ;;  %v16810_v6 = vld [vmem:[%s20649_s4 + $0x3c0] sm:$0xff] }
 0x63b   : > { %10311 = vmatpush.bf16.msra.mxu2 %v16806_v51  ;;  %v20470_v51 = vor.u32 %v16679_v1, %v15441_v31  ;;  %v16745_v46 = vld [vmem:[%s20649_s4 + $0x1b8] sm:$0xff] }
 0x63c   : > { %v20402_v10 = vadd.f32 %v8163_v49, %v8145_v36  ;;  %v8129_v33 = vadd.f32 %v8128_v18, %v8110_v61  ;;  %9678 = vmatmul.bf16.gmra.mxu0 %v20381_v22  ;;  %10330 = vmatpush.bf16.msra.mxu3 %v16814_v28  ;;  %v20468_v49 = vor.u32 %v16681_v21, %v15439_v56  ;;  %v16729_v18 = vld [vmem:[%s20649_s4 + $0x138] sm:$0xff] }
 0x63d   : > { %9695 = vmatmul.bf16.gmra.mxu1 %v20383_v7  ;;  %10274 = vmatpush.bf16.msra.mxu0 %v16789_v27  ;;  %v16737_v61 = vld [vmem:[%s20649_s4 + $0x178] sm:$0xff]  ;;  %v16744_v27 = vld [vmem:[%s20649_s4 + $0x1b0] sm:$0xff] }
 0x63e   : > { %9712 = vmatmul.bf16.gmra.mxu2 %v20394_v47  ;;  %10293 = vmatpush.bf16.msra.mxu1 %v16797_v12  ;;  %v16753_v28 = vld [vmem:[%s20649_s4 + $0x1f8] sm:$0xff]  ;;  %v16728_v12 = vld [vmem:[%s20649_s4 + $0x130] sm:$0xff] }
 0x63f   : > { %9729 = vmatmul.bf16.gmra.mxu3 %v20396_v0  ;;  %10312 = vmatpush.bf16.msra.mxu2 %v16805_v11  ;;  %v16741_v56 = vld [vmem:[%s20649_s4 + $0x198] sm:$0xff] }
 0x640   : > { %10331 = vmatpush.bf16.msra.mxu3 %v16813_v38  ;;  %v16736_v38 = vld [vmem:[%s20649_s4 + $0x170] sm:$0xff]  ;;  %v16725_v21 = vld [vmem:[%s20649_s4 + $0x118] sm:$0xff] }
 0x641   : > { %v8147_v2 = vpop.f32.mrf.mxu2  ;;  %v8111_v50 = vpop.f32.mrf.mxu0  ;;  %10275 = vmatpush.bf16.msra.mxu0 %v16788_v16  ;;  %v16752_v16 = vld [vmem:[%s20649_s4 + $0x1f0] sm:$0xff]  ;;  %v16733_v1 = vld [vmem:[%s20649_s4 + $0x158] sm:$0xff] }
 0x642   : > { %v8166_v35 = vpop.f32.mrf.mxu3  ;;  %v8148_v19 = vadd.f32 %v8147_v2, %v8129_v33  ;;  %v8130_v34 = vpop.f32.mrf.mxu1  ;;  %v8112_v32 = vadd.f32 %v8111_v50, %v20328_v59  ;;  %10294 = vmatpush.bf16.msra.mxu1 %v16796_v53  ;;  %v16803_v59 = vld [vmem:[%s20649_s4 + $0x388] sm:$0xff]  ;;  %v16749_v31 = vld [vmem:[%s20649_s4 + $0x1d8] sm:$0xff] }
 0x643   : > { %10313 = vmatpush.bf16.msra.mxu2 %v16804_v17  ;;  %v16727_v50 = vld [vmem:[%s20649_s4 + $0x128] sm:$0xff] }
 0x644   : > { %v20433_v62 = vadd.f32 %v8166_v35, %v8148_v19  ;;  %v8131_v39 = vadd.f32 %v8130_v34, %v8112_v32  ;;  %10332 = vmatpush.bf16.msra.mxu3 %v16812_v14  ;;  %v16743_v19 = vld [vmem:[%s20649_s4 + $0x1a8] sm:$0xff] }
 0x645   : > { %10276 = vmatpush.bf16.msra.mxu0 %v16787_v29  ;;  %v16735_v34 = vld [vmem:[%s20649_s4 + $0x168] sm:$0xff] }
 0x646   : > { %10295 = vmatpush.bf16.msra.mxu1 %v16795_v54  ;;  %v16751_v14 = vld [vmem:[%s20649_s4 + $0x1e8] sm:$0xff] }
 0x647   : > { %10314 = vmatpush.bf16.msra.mxu2 %v16803_v59 }
 0x648   : > { %10333 = vmatpush.bf16.msra.mxu3 %v16811_v25 }
 0x649   : > { %v8149_v40 = vpop.f32.mrf.mxu2  ;;  %v8456_v4 = vpop.f32.mrf.mxu0  ;;  %10277 = vmatpush.bf16.msra.mxu0 %v16786_v9  ;;  %v16732_v9 = vld [vmem:[%s20649_s4 + $0x150] sm:$0xff] }
 0x64a   : > { %v8168_v41 = vpop.f32.mrf.mxu3  ;;  %v8150_v13 = vadd.f32 %v8149_v40, %v8131_v39  ;;  %v8473_v23 = vpop.f32.mrf.mxu1  ;;  %10296 = vmatpush.bf16.msra.mxu1 %v16794_v52  ;;  %v16726_v39 = vld [vmem:[%s20649_s4 + $0x120] sm:$0xff] }
 0x64b   : > { %v8474_v30 = vadd.f32 %v8473_v23, %v8456_v4  ;;  %10315 = vmatpush.bf16.msra.mxu2 %v16802_v58  ;;  %v16724_v58 = vld [vmem:[%s20649_s4 + $0x110] sm:$0xff] }
 0x64c   : > { %v20475_v36 = vadd.f32 %v8168_v41, %v8150_v13  ;;  %9954 = vmatmul.bf16.vlgmr.msrb.gmra.mxu0 %v20455_v60  ;;  %10334 = vmatpush.bf16.msra.mxu3 %v16810_v6  ;;  %v16740_v41 = vld [vmem:[%s20649_s4 + $0x190] sm:$0xff]  ;;  %v16739_v6 = vld [vmem:[%s20649_s4 + $0x188] sm:$0xff] }
 0x64d   : > { %9971 = vmatmul.bf16.vlgmr.msrb.gmra.mxu1 %v20457_v57  ;;  %10538 = vmatpush.bf16.msrb.mxu0 %v16729_v18  ;;  %v16748_v23 = vld [vmem:[%s20649_s4 + $0x1d0] sm:$0xff]  ;;  %v16731_v18 = vld [vmem:[%s20649_s4 + $0x148] sm:$0xff] }
 0x64e   : > { %9988 = vmatmul.bf16.vlgmr.msrb.gmra.mxu2 %v20468_v49  ;;  %10557 = vmatpush.bf16.msrb.mxu1 %v16737_v61 }
 0x64f   : > { %10005 = vmatmul.bf16.vlgmr.msrb.gmra.mxu3 %v20470_v51  ;;  %10576 = vmatpush.bf16.msrb.mxu2 %v16745_v46  ;;  %v16723_v46 = vld [vmem:[%s20649_s4 + $0x108] sm:$0xff] }
 0x650   : > { %10595 = vmatpush.bf16.msrb.mxu3 %v16753_v28  ;;  %v16747_v28 = vld [vmem:[%s20649_s4 + $0x1c8] sm:$0xff] }
 0x651   : > { %v8490_v33 = vpop.f32.mrf.mxu2  ;;  %v8458_v35 = vpop.f32.mrf.mxu0  ;;  %10539 = vmatpush.bf16.msrb.mxu0 %v16728_v12  ;;  %v16722_v12 = vld [vmem:[%s20649_s4 + $0x100] sm:$0xff] }
 0x652   : > { %v8507_v11 = vpop.f32.mrf.mxu3  ;;  %v8491_v2 = vadd.f32 %v8490_v33, %v8474_v30  ;;  %v8475_v17 = vpop.f32.mrf.mxu1  ;;  %10558 = vmatpush.bf16.msrb.mxu1 %v16736_v38 }
 0x653   : > { %10577 = vmatpush.bf16.msrb.mxu2 %v16744_v27  ;;  %v16738_v27 = vld [vmem:[%s20649_s4 + $0x180] sm:$0xff] }
 0x654   : > { %v8508_v53 = vadd.f32 %v8507_v11, %v8491_v2  ;;  %10596 = vmatpush.bf16.msrb.mxu3 %v16752_v16  ;;  %v16746_v17 = vld [vmem:[%s20649_s4 + $0x1c0] sm:$0xff] }
 0x655   : > { %10540 = vmatpush.bf16.msrb.mxu0 %v16727_v50 }
 0x656   : > { %v20515_v32 = vadd.f32 %v8508_v53, %v19876_v55  ;;  %10559 = vmatpush.bf16.msrb.mxu1 %v16735_v34  ;;  %v16734_v55 = vld [vmem:[%s20649_s4 + $0x160] sm:$0xff] }
 0x657   : > { %10578 = vmatpush.bf16.msrb.mxu2 %v16743_v19 }
 0x658   : > { %10597 = vmatpush.bf16.msrb.mxu3 %v16751_v14 }
 0x659   : > { %v8492_v43 = vpop.f32.mrf.mxu2  ;;  %v8460_v59 = vpop.f32.mrf.mxu0  ;;  %10541 = vmatpush.bf16.msrb.mxu0 %v16726_v39 }
 0x65a   : > { %v8509_v15 = vpop.f32.mrf.mxu3  ;;  %v8477_v29 = vpop.f32.mrf.mxu1  ;;  %10560 = vmatpush.bf16.msrb.mxu1 %v16734_v55 }
 0x65b   : > { %v8478_v54 = vadd.f32 %v8477_v29, %v8460_v59  ;;  %10579 = vmatpush.bf16.msrb.mxu2 %v16742_v45 }
 0x65c   : > { %9958 = vmatmul.bf16.gmra.mxu0 %v20307_v3  ;;  %10598 = vmatpush.bf16.msrb.mxu3 %v16750_v42 }
 0x65d   : > { %9975 = vmatmul.bf16.gmra.mxu1 %v20309_v26  ;;  %10542 = vmatpush.bf16.msrb.mxu0 %v16725_v21 }
 0x65e   : > { %9992 = vmatmul.bf16.gmra.mxu2 %v20320_v48  ;;  %10561 = vmatpush.bf16.msrb.mxu1 %v16733_v1 }
 0x65f   : > { %10009 = vmatmul.bf16.gmra.mxu3 %v20322_v24  ;;  %10580 = vmatpush.bf16.msrb.mxu2 %v16741_v56 }
 0x660   : > { %10599 = vmatpush.bf16.msrb.mxu3 %v16749_v31 }
 0x661   : > { %v8494_v25 = vpop.f32.mrf.mxu2  ;;  %v8462_v13 = vpop.f32.mrf.mxu0  ;;  %10543 = vmatpush.bf16.msrb.mxu0 %v16724_v58 }
 0x662   : > { %v8511_v40 = vpop.f32.mrf.mxu3  ;;  %v8495_v52 = vadd.f32 %v8494_v25, %v8478_v54  ;;  %v8479_v4 = vpop.f32.mrf.mxu1  ;;  %10562 = vmatpush.bf16.msrb.mxu1 %v16732_v9 }
 0x663   : > { %10581 = vmatpush.bf16.msrb.mxu2 %v16740_v41 }
 0x664   : > { %v8512_v30 = vadd.f32 %v8511_v40, %v8495_v52  ;;  %10600 = vmatpush.bf16.msrb.mxu3 %v16748_v23 }
 0x665   : > { %10544 = vmatpush.bf16.msrb.mxu0 %v16723_v46 }
 0x666   : > { %v20570_v61 = vadd.f32 %v8512_v30, %v19931_v37  ;;  %10563 = vmatpush.bf16.msrb.mxu1 %v16731_v18  ;;  %v16730_v37 = vld [vmem:[%s20649_s4 + $0x140] sm:$0xff] }
 0x667   : > { %10582 = vmatpush.bf16.msrb.mxu2 %v16739_v6 }
 0x668   : > { %10601 = vmatpush.bf16.msrb.mxu3 %v16747_v28 }
 0x669   : > { %v8496_v33 = vpop.f32.mrf.mxu2  ;;  %v8782_v38 = vpop.f32.mrf.mxu0  ;;  %10545 = vmatpush.bf16.msrb.mxu0 %v16722_v12 }
 0x66a   : > { %v8513_v11 = vpop.f32.mrf.mxu3  ;;  %v8801_v2 = vpop.f32.mrf.mxu1  ;;  %10564 = vmatpush.bf16.msrb.mxu1 %v16730_v37 }
 0x66b   : > { %v8802_v35 = vadd.f32 %v8801_v2, %v8782_v38  ;;  %10583 = vmatpush.bf16.msrb.mxu2 %v16738_v27 }
 0x66c   : > { %10278 = vmatmul.bf16.vlgmr.msra.gmra.mxu0 %v20307_v3  ;;  %10602 = vmatpush.bf16.msrb.mxu3 %v16746_v17 }
 0x66d   : > { %10297 = vmatmul.bf16.vlgmr.msra.gmra.mxu1 %v20309_v26 }
 0x66e   : > { %10316 = vmatmul.bf16.vlgmr.msra.gmra.mxu2 %v20320_v48 }
 0x66f   : > { %10335 = vmatmul.bf16.vlgmr.msra.gmra.mxu3 %v20322_v24 }
 0x671   : > { %v8820_v16 = vpop.f32.mrf.mxu2  ;;  %v8784_v50 = vpop.f32.mrf.mxu0 }
 0x672   : > { %v8839_v53 = vpop.f32.mrf.mxu3  ;;  %v8821_v19 = vadd.f32 %v8820_v16, %v8802_v35  ;;  %v8803_v34 = vpop.f32.mrf.mxu1 }
 0x673   : > { %v8804_v14 = vadd.f32 %v8803_v34, %v8784_v50 }
 0x674   : > { %v8840_v43 = vadd.f32 %v8839_v53, %v8821_v19 }
 0x676   : > { %v8849_v15 = vadd.f32 %v8840_v43, %v20115_v63 }
 0x678   : > { %v9193_v21 = vrot.slane %v8849_v15, 1 }
 0x679   : > { %v8822_v45 = vpop.f32.mrf.mxu2  ;;  %v8787_v59 = vpop.f32.mrf.mxu0 }
 0x67a   : > { %v8841_v39 = vpop.f32.mrf.mxu3  ;;  %v8823_v55 = vadd.f32 %v8822_v45, %v8804_v14  ;;  %v8806_v29 = vpop.f32.mrf.mxu1 }
 0x67b   : > { %v8807_v54 = vadd.f32 %v8806_v29, %v8787_v59 }
 0x67c   : > { %v8842_v42 = vadd.f32 %v8841_v39, %v8823_v55  ;;  %10283 = vmatmul.bf16.gmra.mxu0 %v20381_v22 }
 0x67d   : > { %10302 = vmatmul.bf16.gmra.mxu1 %v20383_v7 }
 0x67e   : > { %v8850_v56 = vadd.f32 %v8842_v42, %v20142_v8  ;;  %10321 = vmatmul.bf16.gmra.mxu2 %v20394_v47 }
 0x67f   : > { %10340 = vmatmul.bf16.gmra.mxu3 %v20396_v0 }
 0x680   : > { %v9194_v1 = vrot.slane %v8850_v56, 1 }
 0x681   : > { %v8825_v63 = vpop.f32.mrf.mxu2  ;;  %v8789_v41 = vpop.f32.mrf.mxu0 }
 0x682   : > { %v8844_v31 = vpop.f32.mrf.mxu3  ;;  %v9195_v25 = vsel %vm4191_vm0, %v9193_v21, %v9194_v1  ;;  %v8826_v40 = vadd.f32 %v8825_v63, %v8807_v54  ;;  %v8808_v58 = vpop.f32.mrf.mxu1 }
 0x683   : > { %v9201_v9 = vadd.f32 %v9195_v25, %v20515_v32  ;;  %v8809_v22 = vadd.f32 %v8808_v58, %v8789_v41 }
 0x684   : > { %v8845_v52 = vadd.f32 %v8844_v31, %v8826_v40 }
 0x686   : > { %v8851_v7 = vadd.f32 %v8845_v52, %v20173_v20 }
 0x688   : > { %v9196_v32 = vrot.slane %v8851_v7, 1 }
 0x689   : > { %v8827_v8 = vpop.f32.mrf.mxu2  ;;  %v9118_v4 = vpop.f32.mrf.mxu0 }
 0x68a   : > { %v8846_v13 = vpop.f32.mrf.mxu3  ;;  %v8828_v47 = vadd.f32 %v8827_v8, %v8809_v22  ;;  %v9137_v0 = vpop.f32.mrf.mxu1 }
 0x68b   : > { %v9138_v23 = vadd.f32 %v9137_v0, %v9118_v4 }
 0x68c   : > { %v8847_v30 = vadd.f32 %v8846_v13, %v8828_v47  ;;  %10546 = vmatmul.bf16.vlgmr.msrb.gmra.mxu0 %v20455_v60 }
 0x68d   : > { %10565 = vmatmul.bf16.vlgmr.msrb.gmra.mxu1 %v20457_v57 }
 0x68e   : > { %v8852_v6 = vadd.f32 %v8847_v30, %v20199_v44  ;;  %10584 = vmatmul.bf16.vlgmr.msrb.gmra.mxu2 %v20468_v49 }
 0x68f   : > { %10603 = vmatmul.bf16.vlgmr.msrb.gmra.mxu3 %v20470_v51 }
 0x690   : > { %v9197_v46 = vrot.slane %v8852_v6, 1 }
 0x691   : > { %v9156_v20 = vpop.f32.mrf.mxu2  ;;  %v9120_v11 = vpop.f32.mrf.mxu0 }
 0x692   : > { %v9175_v18 = vpop.f32.mrf.mxu3  ;;  %v9198_v28 = vsel %vm4191_vm0, %v9196_v32, %v9197_v46  ;;  %v9157_v33 = vadd.f32 %v9156_v20, %v9138_v23  ;;  %v9139_v27 = vpop.f32.mrf.mxu1 }
 0x693   : > { %v9202_v12 = vadd.f32 %v9198_v28, %v20570_v61  ;;  %v9140_v60 = vadd.f32 %v9139_v27, %v9120_v11 }
 0x694   : > { %v9176_v37 = vadd.f32 %v9175_v18, %v9157_v33 }
 0x696   : > { %v9185_v57 = vadd.f32 %v9176_v37, %v20359_v5 }
 0x698   : > { %v9207_v61 = vrot.slane %v9185_v57, 2 }
 0x699   : > { %v9158_v44 = vpop.f32.mrf.mxu2  ;;  %v9123_v2 = vpop.f32.mrf.mxu0 }
 0x69a   : > { %v9177_v38 = vpop.f32.mrf.mxu3  ;;  %v9159_v49 = vadd.f32 %v9158_v44, %v9140_v60  ;;  %v9142_v51 = vpop.f32.mrf.mxu1 }
 0x69b   : > { %v9143_v35 = vadd.f32 %v9142_v51, %v9123_v2 }
 0x69c   : > { %v9178_v17 = vadd.f32 %v9177_v38, %v9159_v49  ;;  %10551 = vmatmul.bf16.gmra.mxu0 %v20307_v3 }
 0x69d   : > { %10570 = vmatmul.bf16.gmra.mxu1 %v20309_v26 }
 0x69e   : > { %v9186_v16 = vadd.f32 %v9178_v17, %v20402_v10  ;;  %10589 = vmatmul.bf16.gmra.mxu2 %v20320_v48 }
 0x69f   : > { %10608 = vmatmul.bf16.gmra.mxu3 %v20322_v24 }
 0x6a0   : > { %v9208_v53 = vrot.slane %v9186_v16, 2 }
 0x6a1   : > { %v9161_v5 = vpop.f32.mrf.mxu2  ;;  %v9125_v14 = vpop.f32.mrf.mxu0 }
 0x6a2   : > { %v9180_v19 = vpop.f32.mrf.mxu3  ;;  %v9209_v50 = vsel %vm4234_vm1, %v9207_v61, %v9208_v53  ;;  %v9162_v34 = vadd.f32 %v9161_v5, %v9143_v35  ;;  %v9144_v43 = vpop.f32.mrf.mxu1 }
 0x6a3   : > { %v20614_v15 = vadd.f32 %v9209_v50, %v9201_v9  ;;  %v9145_v3 = vadd.f32 %v9144_v43, %v9125_v14 }
 0x6a4   : > { %v9181_v45 = vadd.f32 %v9180_v19, %v9162_v34 }
 0x6a6   : > { %v9187_v26 = vadd.f32 %v9181_v45, %v20433_v62 }
 0x6a8   : > { %v9210_v42 = vrot.slane %v9187_v26, 2 }
 0x6a9   : > { %v9163_v10 = vpop.f32.mrf.mxu2  ;;  %v9675_v55 = vpop.f32.mrf.mxu0 }
 0x6aa   : > { %v9182_v39 = vpop.f32.mrf.mxu3  ;;  %v9164_v48 = vadd.f32 %v9163_v10, %v9145_v3  ;;  %v9692_v24 = vpop.f32.mrf.mxu1 }
 0x6ab   : > { %v9693_v59 = vadd.f32 %v9692_v24, %v9675_v55 }
 0x6ac   : > { %v9183_v29 = vadd.f32 %v9182_v39, %v9164_v48 }
 0x6ae   : > { %v9188_v54 = vadd.f32 %v9183_v29, %v20475_v36 }
 0x6b0   : > { %v9211_v56 = vrot.slane %v9188_v54, 2 }
 0x6b1   : > { %v9709_v21 = vpop.f32.mrf.mxu2  ;;  %v9677_v25 = vpop.f32.mrf.mxu0 }
 0x6b2   : > { %v9726_v1 = vpop.f32.mrf.mxu3  ;;  %v9212_v63 = vsel %vm4234_vm1, %v9210_v42, %v9211_v56  ;;  %v9710_v31 = vadd.f32 %v9709_v21, %v9693_v59  ;;  %v9694_v40 = vpop.f32.mrf.mxu1 }
 0x6b3   : > { %v20619_v41 = vadd.f32 %v9212_v63, %v9202_v12 }
 0x6b4   : > { %v9727_v62 = vadd.f32 %v9726_v1, %v9710_v31 }
 0x6b9   : > { %v9711_v58 = vpop.f32.mrf.mxu2  ;;  %v9679_v22 = vpop.f32.mrf.mxu0 }
 0x6ba   : > { %v9728_v9 = vpop.f32.mrf.mxu3  ;;  %v9696_v52 = vpop.f32.mrf.mxu1 }
 0x6bb   : > { %v9697_v7 = vadd.f32 %v9696_v52, %v9679_v22 }
 0x6c1   : > { %v9713_v8 = vpop.f32.mrf.mxu2  ;;  %v9681_v47 = vpop.f32.mrf.mxu0 }
 0x6c2   : > { %v9730_v13 = vpop.f32.mrf.mxu3  ;;  %v9714_v36 = vadd.f32 %v9713_v8, %v9697_v7  ;;  %v9698_v4 = vpop.f32.mrf.mxu1 }
 0x6c4   : > { %v9731_v0 = vadd.f32 %v9730_v13, %v9714_v36  ;;  %v16845_v13 = vld [vmem:[%s20647_s2] ss:$0 sm:$0xff] }
 0x6c9   : > { %v9715_v23 = vpop.f32.mrf.mxu2  ;;  %v9955_v6 = vpop.f32.mrf.mxu0 }
 0x6ca   : > { %v9732_v30 = vpop.f32.mrf.mxu3  ;;  %v9972_v32 = vpop.f32.mrf.mxu1  ;;  %v9956_v46 = vadd.f32 %v9955_v6, %v9727_v62 }
 0x6cc   : > { %v9973_v20 = vadd.f32 %v9972_v32, %v9956_v46 }
 0x6d1   : > { %v9989_v18 = vpop.f32.mrf.mxu2  ;;  %v9957_v11 = vpop.f32.mrf.mxu0 }
 0x6d2   : > { %v10006_v28 = vpop.f32.mrf.mxu3  ;;  %v9990_v33 = vadd.f32 %v9989_v18, %v9973_v20  ;;  %v9974_v27 = vpop.f32.mrf.mxu1 }
 0x6d4   : > { %v20621_v12 = vadd.f32 %v10006_v28, %v9990_v33 }
 0x6d9   : > { %v9991_v60 = vpop.f32.mrf.mxu2  ;;  %v9959_v57 = vpop.f32.mrf.mxu0 }
 0x6da   : > { %v10008_v37 = vpop.f32.mrf.mxu3  ;;  %v9976_v44 = vpop.f32.mrf.mxu1  ;;  %v9960_v38 = vadd.f32 %v9959_v57, %v9731_v0  ;;  %v9221_v0 = vadd.f32 %v16845_v13, %v20614_v15 }
 0x6dc   : > { %v9977_v49 = vadd.f32 %v9976_v44, %v9960_v38  ;;  %v9225_v33 = vmul.f32 0.2, %v9221_v0  ;;  %vm9223_vm8 = vcmp.ge.f32.partialorder %v9221_v0, 0.0 }
 0x6e1   : > { %v9993_v2 = vpop.f32.mrf.mxu2  ;;  %v9961_v17 = vpop.f32.mrf.mxu0 }
 0x6e2   : > { %v10010_v51 = vpop.f32.mrf.mxu3  ;;  %v9994_v35 = vadd.f32 %v9993_v2, %v9977_v49  ;;  %v9978_v16 = vpop.f32.mrf.mxu1 }
 0x6e4   : > { %v20623_v61 = vadd.f32 %v10010_v51, %v9994_v35  ;;  %v9227_v35 = vsel %vm9223_vm8, %v9221_v0, %v9225_v33 }
 0x6e9   : > { %v9995_v53 = vpop.f32.mrf.mxu2  ;;  %v10279_v19 = vpop.f32.mrf.mxu0 }
 0x6ea   : > { %v10012_v5 = vpop.f32.mrf.mxu3  ;;  %v10298_v50 = vpop.f32.mrf.mxu1 }
 0x6eb   : > { %v10299_v29 = vadd.f32 %v10298_v50, %v10279_v19 }
 0x6f1   : > { %v10317_v34 = vpop.f32.mrf.mxu2  ;;  %v10281_v43 = vpop.f32.mrf.mxu0 }
 0x6f2   : > { %v10336_v14 = vpop.f32.mrf.mxu3  ;;  %v10300_v3 = vpop.f32.mrf.mxu1  ;;  %v10318_v56 = vadd.f32 %v10317_v34, %v10299_v29 }
 0x6f3   : > { %v10301_v63 = vadd.f32 %v10300_v3, %v10281_v43  ;;  %v9222_v43 = vadd.f32 %v16845_v13, %v20619_v41 }
 0x6f4   : > { %v10337_v31 = vadd.f32 %v10336_v14, %v10318_v56 }
 0x6f5   : > { %vm9224_vm9 = vcmp.ge.f32.partialorder %v9222_v43, 0.0 }
 0x6f9   : > { %v10319_v45 = vpop.f32.mrf.mxu2  ;;  %v10284_v10 = vpop.f32.mrf.mxu0 }
 0x6fa   : > { %v10338_v26 = vpop.f32.mrf.mxu3  ;;  %v10303_v39 = vpop.f32.mrf.mxu1  ;;  %v10320_v25 = vadd.f32 %v10319_v45, %v10301_v63 }
 0x6fb   : > { %v10304_v47 = vadd.f32 %v10303_v39, %v10284_v10  ;;  %v9226_v39 = vmul.f32 0.2, %v9222_v43 }
 0x6fc   : > { %v10339_v9 = vadd.f32 %v10338_v26, %v10320_v25 }
 0x701   : > { %v10322_v48 = vpop.f32.mrf.mxu2  ;;  %v10286_v24 = vpop.f32.mrf.mxu0 }
 0x702   : > { %v10341_v55 = vpop.f32.mrf.mxu3  ;;  %v10305_v59 = vpop.f32.mrf.mxu1  ;;  %v10323_v6 = vadd.f32 %v10322_v48, %v10304_v47 }
 0x703   : > { %v10306_v18 = vadd.f32 %v10305_v59, %v10286_v24  ;;  %v9228_v59 = vsel %vm9224_vm9, %v9222_v43, %v9226_v39 }
 0x704   : > { %v10342_v27 = vadd.f32 %v10341_v55, %v10323_v6 }
 0x709   : > { %v10324_v54 = vpop.f32.mrf.mxu2  ;;  %v10547_v21 = vpop.f32.mrf.mxu0 }
 0x70a   : > { %v10343_v42 = vpop.f32.mrf.mxu3  ;;  %v10566_v1 = vpop.f32.mrf.mxu1  ;;  %v10548_v40 = vadd.f32 %v10547_v21, %v10337_v31  ;;  %v10325_v60 = vadd.f32 %v10324_v54, %v10306_v18 }
 0x70c   : > { %v10567_v7 = vadd.f32 %v10566_v1, %v10548_v40  ;;  %v10344_v51 = vadd.f32 %v10343_v42, %v10325_v60 }
 0x711   : > { %v10585_v62 = vpop.f32.mrf.mxu2  ;;  %v10549_v22 = vpop.f32.mrf.mxu0 }
 0x712   : > { %v10604_v58 = vpop.f32.mrf.mxu3  ;;  %v10568_v52 = vpop.f32.mrf.mxu1  ;;  %v10550_v8 = vadd.f32 %v10549_v22, %v10339_v9  ;;  %v10586_v36 = vadd.f32 %v10585_v62, %v10567_v7 }
 0x714   : > { %v10569_v4 = vadd.f32 %v10568_v52, %v10550_v8  ;;  %v10605_v32 = vadd.f32 %v10604_v58, %v10586_v36 }
 0x716   : > { %v10618_v37 = vrot.slane %v10605_v32, 1 }
 0x719   : > { %v10587_v23 = vpop.f32.mrf.mxu2  ;;  %v10552_v20 = vpop.f32.mrf.mxu0 }
 0x71a   : > { %v10606_v30 = vpop.f32.mrf.mxu3  ;;  %v10588_v46 = vadd.f32 %v10587_v23, %v10569_v4  ;;  %v10571_v11 = vpop.f32.mrf.mxu1  ;;  %v10553_v38 = vadd.f32 %v10552_v20, %v10342_v27 }
 0x71c   : > { %v10607_v28 = vadd.f32 %v10606_v30, %v10588_v46  ;;  %v10572_v53 = vadd.f32 %v10571_v11, %v10553_v38 }
 0x71e   : > { %v10619_v57 = vrot.slane %v10607_v28, 1 }
 0x720   : > { %v10620_v44 = vsel %vm4191_vm0, %v10618_v37, %v10619_v57 }
 0x721   : > { %v10626_v15 = vadd.f32 %v10620_v44, %v20621_v12  ;;  %v10590_v49 = vpop.f32.mrf.mxu2  ;;  %v10554_v17 = vpop.f32.mrf.mxu0 }
 0x722   : > { %v10609_v2 = vpop.f32.mrf.mxu3  ;;  %v10555_v5 = vadd.f32 %v10554_v17, %v10344_v51  ;;  %v10591_v19 = vadd.f32 %v10590_v49, %v10572_v53  ;;  %v10573_v50 = vpop.f32.mrf.mxu1 }
 0x723   : > { %v10628_v16 = vadd.f32 %v10626_v15, %v9227_v35 }
 0x724   : > { %v10574_v34 = vadd.f32 %v10573_v50, %v10555_v5  ;;  %v10610_v3 = vadd.f32 %v10609_v2, %v10591_v19 }
 0x725   : > { %15893 = vst [vmem:[%s19467_s23 + $0x30] sm:$0xff] %v10628_v16 }
 0x726   : > { %v10621_v10 = vrot.slane %v10610_v3, 1 }
 0x729   : > { %v10592_v14 = vpop.f32.mrf.mxu2 }
 0x72a   : > { %v10593_v45 = vadd.f32 %v10592_v14, %v10574_v34  ;;  %v10611_v26 = vpop.f32.mrf.mxu3 }
 0x72c   : > { %v10612_v12 = vadd.f32 %v10611_v26, %v10593_v45 }
 0x72e   : > { %v10622_v48 = vrot.slane %v10612_v12, 1 }
 0x730   : > { %v10623_v55 = vsel %vm4191_vm0, %v10621_v10, %v10622_v48 }
 0x731   : > { %v10627_v24 = vadd.f32 %v10623_v55, %v20623_v61 }
 0x733   : > { %v10629_v29 = vadd.f32 %v10627_v24, %v9228_v59 }
 0x735   : > { %15894 = vst [vmem:[%s19467_s23 + $0x38] sm:$0xff] %v10629_v29 }
 0x736 PF: > { %s15_s20 = sadd.s32 1, %s16868_s20   ;;  %s20665_s18 = smov %s16864_s19 }
 0x737   : > { %p12_p5 = scmp.ge.s32.totalorder %s15_s20, 4   ;;  %s20666_s19 = smov %s20668_s21 }
 0x739   :  { %14 = sbr.rel (!%p12_p5) target bundleno = 2 (0x2), region = 96 }

</bundles_post_ra>
